<compile_context>
chip_gen: v5e
topology: v5e:2x2
jax: 0.10.0
libtpu: 0.0.40
codegen_flags: <defaults>
</compile_context>

<pallas_src>
import functools
import math

import numpy as np

import jax
import jax.numpy as jnp
from jax.experimental import pallas as pl
from jax.experimental.pallas import tpu as pltpu

VMEM_SPEC = pl.BlockSpec(memory_space=pltpu.MemorySpace.VMEM)
_LN_EPS = 1e-5
_BLOCK_M = 256          # row tile for the conv/im2col matmuls


# ------------------------------ Pallas kernels ------------------------------ #

def _mm_kernel(x_ref, w_ref, b_ref, o_ref, *, act):
    """o = act(x @ w + b); bf16 operands, f32 accumulation, f32 epilogue."""
    y = jnp.dot(x_ref[...], w_ref[...], preferred_element_type=jnp.float32)
    y = y + b_ref[...]
    if act == "relu":
        y = jnp.maximum(y, 0.0)
    o_ref[...] = y.astype(o_ref.dtype)


def _mm_res_relu_kernel(x_ref, w_ref, b_ref, r_ref, o_ref):
    """o = relu(x @ w + b + r)  (residual-block conv2 + folded BN + skip + ReLU)."""
    y = jnp.dot(x_ref[...], w_ref[...], preferred_element_type=jnp.float32)
    y = y + b_ref[...] + r_ref[...].astype(jnp.float32)
    o_ref[...] = jnp.maximum(y, 0.0).astype(o_ref.dtype)


def _cbam_kernel(x_ref, caw1_ref, caw2_ref, sa_avg_ref, sa_max_ref, o_ref):
    """Fused ChannelAttention + SpatialAttention on a (B, HW, C) block."""
    x = x_ref[...].astype(jnp.float32)                       # (B, HW, C)

    # -- channel attention: global avg/max pool over HW + shared 2-layer MLP --
    avg_c = jnp.mean(x, axis=1)                              # (B, C)
    max_c = jnp.max(x, axis=1)                               # (B, C)
    w1 = caw1_ref[...]
    w2 = caw2_ref[...]
    ha = jnp.maximum(jnp.dot(avg_c, w1, preferred_element_type=jnp.float32), 0.0)
    hm = jnp.maximum(jnp.dot(max_c, w1, preferred_element_type=jnp.float32), 0.0)
    gate_c = jax.nn.sigmoid(
        jnp.dot(ha, w2, preferred_element_type=jnp.float32)
        + jnp.dot(hm, w2, preferred_element_type=jnp.float32))          # (B, C)
    x = x * gate_c[:, None, :]

    # -- spatial attention: mean/max over C, kxk conv as dense (HW,HW) operator --
    avg_s = jnp.mean(x, axis=2)                              # (B, HW)
    max_s = jnp.max(x, axis=2)                               # (B, HW)
    att = (jnp.dot(avg_s, sa_avg_ref[...], preferred_element_type=jnp.float32)
           + jnp.dot(max_s, sa_max_ref[...], preferred_element_type=jnp.float32))
    gate_s = jax.nn.sigmoid(att)                             # (B, HW)
    o_ref[...] = (x * gate_s[:, :, None]).astype(o_ref.dtype)


def _head_kernel(f_ref, w1_ref, b1_ref,
                 ga_ref, ba_ref, gv_ref, bv_ref,
                 w2a_ref, b2a_ref, w2v_ref, b2v_ref,
                 w3a_ref, b3a_ref, w3v_ref, b3v_ref,
                 logits_ref, value_ref, *, eps):
    """Both FC streams (Linear -> LayerNorm -> ReLU -> Linear -> ReLU -> Linear)."""
    f = f_ref[...]                                           # (B, 128) bf16
    # advantage/value first layers are concatenated -> one N=1024 MXU pass
    h1 = jnp.dot(f, w1_ref[...], preferred_element_type=jnp.float32) + b1_ref[...]
    h_adv = h1[:, :512]
    h_val = h1[:, 512:]

    def ln_relu(h, g, b):
        mu = jnp.mean(h, axis=1, keepdims=True)
        var = jnp.mean(jnp.square(h - mu), axis=1, keepdims=True)
        y = (h - mu) * jax.lax.rsqrt(var + eps) * g + b
        return jnp.maximum(y, 0.0)

    h_adv = ln_relu(h_adv, ga_ref[...], ba_ref[...])
    h_val = ln_relu(h_val, gv_ref[...], bv_ref[...])
    # TODO(synk): Dropout(0.2)/Dropout(0.1) are identity (eval mode).
    h2a = jnp.maximum(
        jnp.dot(h_adv.astype(jnp.bfloat16), w2a_ref[...],
                preferred_element_type=jnp.float32) + b2a_ref[...], 0.0)
    h2v = jnp.maximum(
        jnp.dot(h_val.astype(jnp.bfloat16), w2v_ref[...],
                preferred_element_type=jnp.float32) + b2v_ref[...], 0.0)
    logits_ref[...] = jnp.dot(h2a.astype(jnp.bfloat16), w3a_ref[...],
                              preferred_element_type=jnp.float32) + b3a_ref[...]
    value_ref[...] = jnp.dot(h2v.astype(jnp.bfloat16), w3v_ref[...],
                             preferred_element_type=jnp.float32) + b3v_ref[...]


# ------------------------------ kernel wrappers ----------------------------- #

def fused_matmul(x, w, b, *, act="none", residual=None,
                 out_dtype=jnp.bfloat16, block_m=_BLOCK_M):
    """act(x @ w + b [+ residual]) with bf16 operands / f32 accumulation.

    When M > block_m the rows are tiled so large batches double-buffer
    HBM<->VMEM and the grid axis can shard across TensorCores ("parallel")."""
    M, K = x.shape
    N = w.shape[1]
    x = x.astype(jnp.bfloat16)
    w = w.astype(jnp.bfloat16)
    b = jnp.asarray(b, jnp.float32).reshape(1, N)

    if residual is None:
        kernel = functools.partial(_mm_kernel, act=act)
        inputs = (x, w, b)
    else:
        kernel = _mm_res_relu_kernel
        inputs = (x, w, b, residual.astype(jnp.bfloat16))

    out_shape = jax.ShapeDtypeStruct((M, N), out_dtype)
    if M <= block_m:
        return pl.pallas_call(
            kernel, out_shape=out_shape,
            in_specs=[VMEM_SPEC] * len(inputs), out_specs=VMEM_SPEC,
        )(*inputs)

    in_specs = [pl.BlockSpec((block_m, K), lambda i: (i, 0)),
                pl.BlockSpec((K, N), lambda i: (0, 0)),
                pl.BlockSpec((1, N), lambda i: (0, 0))]
    if residual is not None:
        in_specs.append(pl.BlockSpec((block_m, N), lambda i: (i, 0)))
    return pl.pallas_call(
        kernel, out_shape=out_shape,
        grid=(pl.cdiv(M, block_m),),
        in_specs=in_specs,
        out_specs=pl.BlockSpec((block_m, N), lambda i: (i, 0)),
        compiler_params=pltpu.CompilerParams(
            dimension_semantics=("parallel",),
            vmem_limit_bytes=32 * 1024 * 1024),
    )(*inputs)


def conv_patches(x_nhwc, kh, kw, stride, pad):
    """im2col via a single fused XLA op. x:(B,H,W,C) -> ((B*Ho*Wo, C*kh*kw), Ho, Wo)."""
    B = x_nhwc.shape[0]
    patches = jax.lax.conv_general_dilated_patches(
        x_nhwc, (kh, kw), (stride, stride),
        padding=((pad, pad), (pad, pad)),
        dimension_numbers=("NHWC", "HWIO", "NHWC"))
    _, Ho, Wo, CK = patches.shape
    return patches.reshape(B * Ho * Wo, CK), Ho, Wo


def residual_block(x_slab, B, H, W, rp):
    """Conv3x3+BN+ReLU -> Conv3x3+BN -> +skip -> ReLU (BN folded into weights)."""
    C = x_slab.shape[-1]
    cols, _, _ = conv_patches(x_slab.reshape(B, H, W, C), 3, 3, 1, 1)
    h = fused_matmul(cols, rp["w1"], rp["b1"], act="relu")
    cols, _, _ = conv_patches(h.reshape(B, H, W, C), 3, 3, 1, 1)
    return fused_matmul(cols, rp["w2"], rp["b2"], residual=x_slab)


@functools.lru_cache(maxsize=None)
def _sa_geometry(H, W, k):
    """(k*k, HW, HW) 0/1 tensor: G[d, p_in, p_out]=1 iff input pixel p_in sits at
    kernel offset d of output pixel p_out (stride 1, zero padding k//2)."""
    pad = k // 2
    HW = H * W
    G = np.zeros((k * k, HW, HW), np.float32)
    for di in range(k):
        for dj in range(k):
            d = di * k + dj
            for oi in range(H):
                ii = oi + di - pad
                if not (0 <= ii < H):
                    continue
                for oj in range(W):
                    jj = oj + dj - pad
                    if 0 <= jj < W:
                        G[d, ii * W + jj, oi * W + oj] = 1.0
    return jnp.asarray(G)


def cbam(x_slab, B, H, W, ca_w1, ca_w2, sa_w, ksize):
    """ChannelAttention + SpatialAttention fused into one Pallas kernel."""
    C = x_slab.shape[-1]
    HW = H * W
    # Lower the kxk (2 -> 1) spatial conv to dense (HW, HW) operators (avg/max
    # channel) so the whole attention block stays resident in VMEM.
    saop = jnp.einsum("cd,dpq->cpq",
                      sa_w.reshape(2, ksize * ksize).astype(jnp.float32),
                      _sa_geometry(H, W, ksize))
    out = pl.pallas_call(
        _cbam_kernel,
        out_shape=jax.ShapeDtypeStruct((B, HW, C), jnp.bfloat16),
        in_specs=[VMEM_SPEC] * 5,
        out_specs=VMEM_SPEC,
    )(x_slab.reshape(B, HW, C), ca_w1, ca_w2, saop[0], saop[1])
    return out.reshape(B * HW, C)


def dueling_head(feats, p):
    B = feats.shape[0]
    A = p["adv_l3_w"].shape[1]
    return pl.pallas_call(
        functools.partial(_head_kernel, eps=_LN_EPS),
        out_shape=(jax.ShapeDtypeStruct((B, A), jnp.float32),
                   jax.ShapeDtypeStruct((B, 1), jnp.float32)),
        in_specs=[VMEM_SPEC] * 15,
        out_specs=(VMEM_SPEC, VMEM_SPEC),
    )(feats,
      p["head_w1"], p["head_b1"],
      p["ln_adv_g"], p["ln_adv_b"], p["ln_val_g"], p["ln_val_b"],
      p["adv_l2_w"], p["adv_l2_b"], p["val_l2_w"], p["val_l2_b"],
      p["adv_l3_w"], p["adv_l3_b"], p["val_l3_w"], p["val_l3_b"])


# ------------------------------ parameter init ------------------------------ #

def _orth(key, k, n):
    """Orthogonal init of a (K_in, N_out) matrix with the PyTorch gain rule."""
    if n == 1:
        gain = 0.01
    elif n > 10:
        gain = math.sqrt(0.1)
    else:
        gain = math.sqrt(2.0)
    return jax.nn.initializers.orthogonal(scale=gain)(key, (k, n), jnp.float32)


def _fold_bn(w, b, eps=1e-5):
    """Fold eval-mode BatchNorm (mean=0, var=1, gamma=1, beta=0) into the conv."""
    s = 1.0 / math.sqrt(1.0 + eps)
    return w * s, b * s


def init_params(key, num_actions):
    keys = iter(jax.random.split(key, 24))
    f32, bf16 = jnp.float32, jnp.bfloat16
    p = {}
    # conv trunk (matmul weights stored bf16; c1 stays f32 so the runtime input
    # scale can be folded into it before the bf16 cast)
    p["c1_w"] = _orth(next(keys), 12 * 8 * 8, 32)
    p["c1_b"] = jnp.zeros((1, 32), f32)
    p["c2_w"] = _orth(next(keys), 32 * 4 * 4, 64).astype(bf16)
    p["c2_b"] = jnp.zeros((1, 64), f32)

    def res_block():
        w1, b1 = _fold_bn(_orth(next(keys), 64 * 9, 64), jnp.zeros((64,), f32))
        w2, b2 = _fold_bn(_orth(next(keys), 64 * 9, 64), jnp.zeros((64,), f32))
        return {"w1": w1.astype(bf16), "b1": b1.reshape(1, 64),
                "w2": w2.astype(bf16), "b2": b2.reshape(1, 64)}

    p["rb1"] = res_block()
    p["ca1_w1"] = _orth(next(keys), 64, 4)
    p["ca1_w2"] = _orth(next(keys), 4, 64)
    p["sa1_w"] = _orth(next(keys), 2 * 5 * 5, 1)
    p["c3_w"] = _orth(next(keys), 64 * 9, 64).astype(bf16)
    p["c3_b"] = jnp.zeros((1, 64), f32)
    p["rb2"] = res_block()
    p["ca2_w1"] = _orth(next(keys), 64, 4)
    p["ca2_w2"] = _orth(next(keys), 4, 64)
    p["sa2_w"] = _orth(next(keys), 2 * 3 * 3, 1)
    p["c4_w"] = _orth(next(keys), 64 * 9, 128).astype(bf16)
    p["c4_b"] = jnp.zeros((1, 128), f32)

    conv_out = 128  # 128 channels * 1 * 1 spatial for a 56x56 input
    # adv/val first-layer weights concatenated -> one N=1024 matmul for `feats`
    adv1 = _orth(next(keys), conv_out, 512)
    val1 = _orth(next(keys), conv_out, 512)
    p["head_w1"] = jnp.concatenate([adv1, val1], axis=1).astype(bf16)
    p["head_b1"] = jnp.zeros((1, 1024), f32)
    p["ln_adv_g"] = jnp.ones((1, 512), f32)
    p["ln_adv_b"] = jnp.zeros((1, 512), f32)
    p["ln_val_g"] = jnp.ones((1, 512), f32)
    p["ln_val_b"] = jnp.zeros((1, 512), f32)
    p["adv_l2_w"] = _orth(next(keys), 512, 256).astype(bf16)
    p["adv_l2_b"] = jnp.zeros((1, 256), f32)
    p["val_l2_w"] = _orth(next(keys), 512, 256).astype(bf16)
    p["val_l2_b"] = jnp.zeros((1, 256), f32)
    p["adv_l3_w"] = _orth(next(keys), 256, num_actions).astype(bf16)
    p["adv_l3_b"] = jnp.zeros((1, num_actions), f32)
    p["val_l3_w"] = _orth(next(keys), 256, 1).astype(bf16)
    p["val_l3_b"] = jnp.zeros((1, 1), f32)
    return p


# ---------------------------------- forward --------------------------------- #

@jax.jit
def ppo_forward(p, x):
    """x: (B, 12, 56, 56) NCHW float32 -> (policy_logits (B, A), value (B, 1))."""
    if x.ndim == 3:
        x = x[None]
    B = x.shape[0]

    # PyTorch: `if x.max() > 1.0: x = x / 255.0`.  The global-max test is kept
    # (same batch-wide semantics); the 1/255 scale is folded into conv1 weights
    # instead of rescaling the whole input tensor.
    scale = jnp.where(jnp.max(x) > 1.0, 1.0 / 255.0, 1.0).astype(jnp.float32)
    w1 = (p["c1_w"] * scale).astype(jnp.bfloat16)

    x = jnp.transpose(x, (0, 2, 3, 1)).astype(jnp.bfloat16)     # NHWC, bf16

    cols, H, W = conv_patches(x, 8, 8, 4, 0)                    # -> 13x13
    x = fused_matmul(cols, w1, p["c1_b"], act="relu")           # (B*169, 32)

    cols, H, W = conv_patches(x.reshape(B, H, W, 32), 4, 4, 2, 0)   # -> 5x5
    x = fused_matmul(cols, p["c2_w"], p["c2_b"], act="relu")    # (B*25, 64)

    x = residual_block(x, B, H, W, p["rb1"])
    x = cbam(x, B, H, W, p["ca1_w1"], p["ca1_w2"], p["sa1_w"], 5)

    cols, H, W = conv_patches(x.reshape(B, H, W, 64), 3, 3, 1, 0)   # -> 3x3
    x = fused_matmul(cols, p["c3_w"], p["c3_b"], act="relu")    # (B*9, 64)

    x = residual_block(x, B, H, W, p["rb2"])
    x = cbam(x, B, H, W, p["ca2_w1"], p["ca2_w2"], p["sa2_w"], 3)

    cols, H, W = conv_patches(x.reshape(B, H, W, 64), 3, 3, 1, 0)   # -> 1x1
    feats = fused_matmul(cols, p["c4_w"], p["c4_b"], act="relu")    # (B, 128)

    return dueling_head(feats, p)


if __name__ == "__main__":
    num_actions = 6
    batch = 2
    key = jax.random.PRNGKey(0)
    pkey, xkey = jax.random.split(key)
    params = init_params(pkey, num_actions)
    x = jax.random.uniform(xkey, (batch, 12, 56, 56), dtype=jnp.float32)

    logits, value = ppo_forward(params, x)
    jax.block_until_ready((logits, value))
    assert logits.shape == (batch, num_actions), logits.shape
    assert value.shape == (batch, 1), value.shape
    assert bool(jnp.all(jnp.isfinite(logits))) and bool(jnp.all(jnp.isfinite(value)))
    print("KERNEL_OK")
</pallas_src>

<mosaic_0001>
module attributes {stable_mosaic.version = 11 : i64} {
  func.func @_mm_kernel(%arg0: i32, %arg1: memref<256x768xbf16, #tpu.memory_space<vmem>>, %arg2: memref<768x32xbf16, #tpu.memory_space<vmem>>, %arg3: memref<1x32xf32, #tpu.memory_space<vmem>>, %arg4: memref<256x32xbf16, #tpu.memory_space<vmem>>) attributes {dimension_semantics = [#tpu.dimension_semantics<parallel>], iteration_bounds = array<i64: 2>, scalar_prefetch = 0 : i64, scratch_operands = 0 : i64, tpu.core_type = #tpu.core_type<tc>, window_params = [{transform_indices = @transform_0, window_bounds = array<i64: 256, 768>}, {pipeline_mode = #tpu.pipeline_mode<synchronous>, transform_indices = @transform_1, window_bounds = array<i64: 768, 32>}, {pipeline_mode = #tpu.pipeline_mode<synchronous>, transform_indices = @transform_2, window_bounds = array<i64: 1, 32>}, {transform_indices = @transform_3, window_bounds = array<i64: 256, 32>}]} {
    %c0 = arith.constant 0 : index
    %c0_0 = arith.constant 0 : index
    %0 = vector.load %arg1[%c0, %c0_0] : memref<256x768xbf16, #tpu.memory_space<vmem>>, vector<256x768xbf16>
    %c0_1 = arith.constant 0 : index
    %c0_2 = arith.constant 0 : index
    %1 = vector.load %arg2[%c0_1, %c0_2] : memref<768x32xbf16, #tpu.memory_space<vmem>>, vector<768x32xbf16>
    %cst = arith.constant dense<0.000000e+00> : vector<256x32xf32>
    %2 = tpu.matmul %0, %1, %cst {dimension_numbers = #tpu.dot_dimension_numbers<[1], [0], [0], [1], [0, 0, 1, 1], [], []>} : vector<256x768xbf16>, vector<768x32xbf16>, vector<256x32xf32> -> vector<256x32xf32>
    %c0_3 = arith.constant 0 : index
    %c0_4 = arith.constant 0 : index
    %3 = vector.load %arg3[%c0_3, %c0_4] : memref<1x32xf32, #tpu.memory_space<vmem>>, vector<1x32xf32>
    %4 = vector.broadcast %3 : vector<1x32xf32> to vector<256x32xf32>
    %5 = arith.addf %2, %4 : vector<256x32xf32>
    %cst_5 = arith.constant 0.000000e+00 : f32
    %6 = vector.broadcast %cst_5 : f32 to vector<256x32xf32>
    %7 = arith.maximumf %5, %6 : vector<256x32xf32>
    %8 = arith.truncf %7 : vector<256x32xf32> to vector<256x32xbf16>
    %c0_6 = arith.constant 0 : index
    %c0_7 = arith.constant 0 : index
    %9 = vector.load %arg4[%c0_6, %c0_7] : memref<256x32xbf16, #tpu.memory_space<vmem>>, vector<256x32xbf16>
    tpu.vector_store %arg4[%c0_6, %c0_7], %8 {strides = array<i32>} : memref<256x32xbf16, #tpu.memory_space<vmem>>, vector<256x32xbf16>,
    return
  }
  func.func @transform_0(%arg0: i32) -> (i32, i32) {
    %c0_i32 = arith.constant 0 : i32
    %c0_i32_0 = arith.constant 0 : i32
    return %arg0, %c0_i32 : i32, i32
  }
  func.func @transform_1(%arg0: i32) -> (i32, i32) {
    %c0_i32 = arith.constant 0 : i32
    %c0_i32_0 = arith.constant 0 : i32
    %c0_i32_1 = arith.constant 0 : i32
    return %c0_i32, %c0_i32_0 : i32, i32
  }
  func.func @transform_2(%arg0: i32) -> (i32, i32) {
    %c0_i32 = arith.constant 0 : i32
    %c0_i32_0 = arith.constant 0 : i32
    %c0_i32_1 = arith.constant 0 : i32
    return %c0_i32, %c0_i32_0 : i32, i32
  }
  func.func @transform_3(%arg0: i32) -> (i32, i32) {
    %c0_i32 = arith.constant 0 : i32
    %c0_i32_0 = arith.constant 0 : i32
    return %arg0, %c0_i32 : i32, i32
  }
}

module attributes {stable_mosaic.version = 11 : i64} {
  func.func @_mm_kernel(%arg0: memref<50x512xbf16, #tpu.memory_space<vmem>>, %arg1: memref<512x64xbf16, #tpu.memory_space<vmem>>, %arg2: memref<1x64xf32, #tpu.memory_space<vmem>>, %arg3: memref<50x64xbf16, #tpu.memory_space<vmem>>) attributes {dimension_semantics = [], scalar_prefetch = 0 : i64, scratch_operands = 0 : i64, tpu.core_type = #tpu.core_type<tc>} {
    %c0 = arith.constant 0 : index
    %c0_0 = arith.constant 0 : index
    %0 = vector.load %arg0[%c0, %c0_0] : memref<50x512xbf16, #tpu.memory_space<vmem>>, vector<50x512xbf16>
    %c0_1 = arith.constant 0 : index
    %c0_2 = arith.constant 0 : index
    %1 = vector.load %arg1[%c0_1, %c0_2] : memref<512x64xbf16, #tpu.memory_space<vmem>>, vector<512x64xbf16>
    %cst = arith.constant dense<0.000000e+00> : vector<50x64xf32>
    %2 = tpu.matmul %0, %1, %cst {dimension_numbers = #tpu.dot_dimension_numbers<[1], [0], [0], [1], [0, 0, 1, 1], [], []>} : vector<50x512xbf16>, vector<512x64xbf16>, vector<50x64xf32> -> vector<50x64xf32>
    %c0_3 = arith.constant 0 : index
    %c0_4 = arith.constant 0 : index
    %3 = vector.load %arg2[%c0_3, %c0_4] : memref<1x64xf32, #tpu.memory_space<vmem>>, vector<1x64xf32>
    %4 = vector.broadcast %3 : vector<1x64xf32> to vector<50x64xf32>
    %5 = arith.addf %2, %4 : vector<50x64xf32>
    %cst_5 = arith.constant 0.000000e+00 : f32
    %6 = vector.broadcast %cst_5 : f32 to vector<50x64xf32>
    %7 = arith.maximumf %5, %6 : vector<50x64xf32>
    %8 = arith.truncf %7 : vector<50x64xf32> to vector<50x64xbf16>
    %c0_6 = arith.constant 0 : index
    %c0_7 = arith.constant 0 : index
    %9 = vector.load %arg3[%c0_6, %c0_7] : memref<50x64xbf16, #tpu.memory_space<vmem>>, vector<50x64xbf16>
    tpu.vector_store %arg3[%c0_6, %c0_7], %8 {strides = array<i32>} : memref<50x64xbf16, #tpu.memory_space<vmem>>, vector<50x64xbf16>,
    return
  }
}

module attributes {stable_mosaic.version = 11 : i64} {
  func.func @_mm_kernel(%arg0: memref<50x576xbf16, #tpu.memory_space<vmem>>, %arg1: memref<576x64xbf16, #tpu.memory_space<vmem>>, %arg2: memref<1x64xf32, #tpu.memory_space<vmem>>, %arg3: memref<50x64xbf16, #tpu.memory_space<vmem>>) attributes {dimension_semantics = [], scalar_prefetch = 0 : i64, scratch_operands = 0 : i64, tpu.core_type = #tpu.core_type<tc>} {
    %c0 = arith.constant 0 : index
    %c0_0 = arith.constant 0 : index
    %0 = vector.load %arg0[%c0, %c0_0] : memref<50x576xbf16, #tpu.memory_space<vmem>>, vector<50x576xbf16>
    %c0_1 = arith.constant 0 : index
    %c0_2 = arith.constant 0 : index
    %1 = vector.load %arg1[%c0_1, %c0_2] : memref<576x64xbf16, #tpu.memory_space<vmem>>, vector<576x64xbf16>
    %cst = arith.constant dense<0.000000e+00> : vector<50x64xf32>
    %2 = tpu.matmul %0, %1, %cst {dimension_numbers = #tpu.dot_dimension_numbers<[1], [0], [0], [1], [0, 0, 1, 1], [], []>} : vector<50x576xbf16>, vector<576x64xbf16>, vector<50x64xf32> -> vector<50x64xf32>
    %c0_3 = arith.constant 0 : index
    %c0_4 = arith.constant 0 : index
    %3 = vector.load %arg2[%c0_3, %c0_4] : memref<1x64xf32, #tpu.memory_space<vmem>>, vector<1x64xf32>
    %4 = vector.broadcast %3 : vector<1x64xf32> to vector<50x64xf32>
    %5 = arith.addf %2, %4 : vector<50x64xf32>
    %cst_5 = arith.constant 0.000000e+00 : f32
    %6 = vector.broadcast %cst_5 : f32 to vector<50x64xf32>
    %7 = arith.maximumf %5, %6 : vector<50x64xf32>
    %8 = arith.truncf %7 : vector<50x64xf32> to vector<50x64xbf16>
    %c0_6 = arith.constant 0 : index
    %c0_7 = arith.constant 0 : index
    %9 = vector.load %arg3[%c0_6, %c0_7] : memref<50x64xbf16, #tpu.memory_space<vmem>>, vector<50x64xbf16>
    tpu.vector_store %arg3[%c0_6, %c0_7], %8 {strides = array<i32>} : memref<50x64xbf16, #tpu.memory_space<vmem>>, vector<50x64xbf16>,
    return
  }
}

module attributes {stable_mosaic.version = 11 : i64} {
  func.func @_mm_res_relu_kernel(%arg0: memref<50x576xbf16, #tpu.memory_space<vmem>>, %arg1: memref<576x64xbf16, #tpu.memory_space<vmem>>, %arg2: memref<1x64xf32, #tpu.memory_space<vmem>>, %arg3: memref<50x64xbf16, #tpu.memory_space<vmem>>, %arg4: memref<50x64xbf16, #tpu.memory_space<vmem>>) attributes {dimension_semantics = [], scalar_prefetch = 0 : i64, scratch_operands = 0 : i64, tpu.core_type = #tpu.core_type<tc>} {
    %c0 = arith.constant 0 : index
    %c0_0 = arith.constant 0 : index
    %0 = vector.load %arg0[%c0, %c0_0] : memref<50x576xbf16, #tpu.memory_space<vmem>>, vector<50x576xbf16>
    %c0_1 = arith.constant 0 : index
    %c0_2 = arith.constant 0 : index
    %1 = vector.load %arg1[%c0_1, %c0_2] : memref<576x64xbf16, #tpu.memory_space<vmem>>, vector<576x64xbf16>
    %cst = arith.constant dense<0.000000e+00> : vector<50x64xf32>
    %2 = tpu.matmul %0, %1, %cst {dimension_numbers = #tpu.dot_dimension_numbers<[1], [0], [0], [1], [0, 0, 1, 1], [], []>} : vector<50x576xbf16>, vector<576x64xbf16>, vector<50x64xf32> -> vector<50x64xf32>
    %c0_3 = arith.constant 0 : index
    %c0_4 = arith.constant 0 : index
    %3 = vector.load %arg2[%c0_3, %c0_4] : memref<1x64xf32, #tpu.memory_space<vmem>>, vector<1x64xf32>
    %4 = vector.broadcast %3 : vector<1x64xf32> to vector<50x64xf32>
    %5 = arith.addf %2, %4 : vector<50x64xf32>
    %c0_5 = arith.constant 0 : index
    %c0_6 = arith.constant 0 : index
    %6 = vector.load %arg3[%c0_5, %c0_6] : memref<50x64xbf16, #tpu.memory_space<vmem>>, vector<50x64xbf16>
    %7 = arith.extf %6 : vector<50x64xbf16> to vector<50x64xf32>
    %8 = arith.addf %5, %7 : vector<50x64xf32>
    %cst_7 = arith.constant 0.000000e+00 : f32
    %9 = vector.broadcast %cst_7 : f32 to vector<50x64xf32>
    %10 = arith.maximumf %8, %9 : vector<50x64xf32>
    %11 = arith.truncf %10 : vector<50x64xf32> to vector<50x64xbf16>
    %c0_8 = arith.constant 0 : index
    %c0_9 = arith.constant 0 : index
    %12 = vector.load %arg4[%c0_8, %c0_9] : memref<50x64xbf16, #tpu.memory_space<vmem>>, vector<50x64xbf16>
    tpu.vector_store %arg4[%c0_8, %c0_9], %11 {strides = array<i32>} : memref<50x64xbf16, #tpu.memory_space<vmem>>, vector<50x64xbf16>,
    return
  }
}

module attributes {stable_mosaic.version = 11 : i64} {
  func.func @_cbam_kernel(%arg0: memref<2x25x64xbf16, #tpu.memory_space<vmem>>, %arg1: memref<64x4xf32, #tpu.memory_space<vmem>>, %arg2: memref<4x64xf32, #tpu.memory_space<vmem>>, %arg3: memref<25x25xf32, #tpu.memory_space<vmem>>, %arg4: memref<25x25xf32, #tpu.memory_space<vmem>>, %arg5: memref<2x25x64xbf16, #tpu.memory_space<vmem>>) attributes {dimension_semantics = [], scalar_prefetch = 0 : i64, scratch_operands = 0 : i64, tpu.core_type = #tpu.core_type<tc>} {
    %c0 = arith.constant 0 : index
    %c0_0 = arith.constant 0 : index
    %c0_1 = arith.constant 0 : index
    %0 = vector.load %arg0[%c0, %c0_0, %c0_1] : memref<2x25x64xbf16, #tpu.memory_space<vmem>>, vector<2x25x64xbf16>
    %1 = arith.extf %0 : vector<2x25x64xbf16> to vector<2x25x64xf32>
    %cst = arith.constant dense<0.000000e+00> : vector<2x64xf32>
    %2 = vector.multi_reduction <add>, %1, %cst [1] : vector<2x25x64xf32> to vector<2x64xf32>
    %cst_2 = arith.constant 2.500000e+01 : f32
    %3 = vector.broadcast %cst_2 : f32 to vector<2x64xf32>
    %4 = arith.divf %2, %3 : vector<2x64xf32>
    %cst_3 = arith.constant dense<0xFF800000> : vector<2x64xf32>
    %5 = vector.multi_reduction <maximumf>, %1, %cst_3 [1] : vector<2x25x64xf32> to vector<2x64xf32>
    %c0_4 = arith.constant 0 : index
    %c0_5 = arith.constant 0 : index
    %6 = vector.load %arg1[%c0_4, %c0_5] : memref<64x4xf32, #tpu.memory_space<vmem>>, vector<64x4xf32>
    %c0_6 = arith.constant 0 : index
    %c0_7 = arith.constant 0 : index
    %7 = vector.load %arg2[%c0_6, %c0_7] : memref<4x64xf32, #tpu.memory_space<vmem>>, vector<4x64xf32>
    %cst_8 = arith.constant dense<0.000000e+00> : vector<2x4xf32>
    %8 = tpu.matmul %4, %6, %cst_8 {dimension_numbers = #tpu.dot_dimension_numbers<[1], [0], [0], [1], [0, 0, 1, 1], [], []>} : vector<2x64xf32>, vector<64x4xf32>, vector<2x4xf32> -> vector<2x4xf32>
    %cst_9 = arith.constant 0.000000e+00 : f32
    %9 = vector.broadcast %cst_9 : f32 to vector<2x4xf32>
    %10 = arith.maximumf %8, %9 : vector<2x4xf32>
    %cst_10 = arith.constant dense<0.000000e+00> : vector<2x4xf32>
    %11 = tpu.matmul %5, %6, %cst_10 {dimension_numbers = #tpu.dot_dimension_numbers<[1], [0], [0], [1], [0, 0, 1, 1], [], []>} : vector<2x64xf32>, vector<64x4xf32>, vector<2x4xf32> -> vector<2x4xf32>
    %cst_11 = arith.constant 0.000000e+00 : f32
    %12 = vector.broadcast %cst_11 : f32 to vector<2x4xf32>
    %13 = arith.maximumf %11, %12 : vector<2x4xf32>
    %cst_12 = arith.constant dense<0.000000e+00> : vector<2x64xf32>
    %14 = tpu.matmul %10, %7, %cst_12 {dimension_numbers = #tpu.dot_dimension_numbers<[1], [0], [0], [1], [0, 0, 1, 1], [], []>} : vector<2x4xf32>, vector<4x64xf32>, vector<2x64xf32> -> vector<2x64xf32>
    %cst_13 = arith.constant dense<0.000000e+00> : vector<2x64xf32>
    %15 = tpu.matmul %13, %7, %cst_13 {dimension_numbers = #tpu.dot_dimension_numbers<[1], [0], [0], [1], [0, 0, 1, 1], [], []>} : vector<2x4xf32>, vector<4x64xf32>, vector<2x64xf32> -> vector<2x64xf32>
    %16 = arith.addf %14, %15 : vector<2x64xf32>
    %17 = arith.negf %16 : vector<2x64xf32>
    %18 = math.exp %17 : vector<2x64xf32>
    %cst_14 = arith.constant 1.000000e+00 : f32
    %19 = vector.broadcast %cst_14 : f32 to vector<2x64xf32>
    %20 = arith.addf %19, %18 : vector<2x64xf32>
    %21 = arith.divf %19, %20 : vector<2x64xf32>
    %22 = vector.shape_cast %21 : vector<2x64xf32> to vector<2x1x64xf32>
    %23 = vector.broadcast %22 : vector<2x1x64xf32> to vector<2x25x64xf32>
    %24 = arith.mulf %1, %23 : vector<2x25x64xf32>
    %cst_15 = arith.constant dense<0.000000e+00> : vector<2x25xf32>
    %25 = vector.multi_reduction <add>, %24, %cst_15 [2] : vector<2x25x64xf32> to vector<2x25xf32>
    %cst_16 = arith.constant 6.400000e+01 : f32
    %26 = vector.broadcast %cst_16 : f32 to vector<2x25xf32>
    %27 = arith.divf %25, %26 : vector<2x25xf32>
    %cst_17 = arith.constant dense<0xFF800000> : vector<2x25xf32>
    %28 = vector.multi_reduction <maximumf>, %24, %cst_17 [2] : vector<2x25x64xf32> to vector<2x25xf32>
    %c0_18 = arith.constant 0 : index
    %c0_19 = arith.constant 0 : index
    %29 = vector.load %arg3[%c0_18, %c0_19] : memref<25x25xf32, #tpu.memory_space<vmem>>, vector<25x25xf32>
    %cst_20 = arith.constant dense<0.000000e+00> : vector<2x25xf32>
    %30 = tpu.matmul %27, %29, %cst_20 {dimension_numbers = #tpu.dot_dimension_numbers<[1], [0], [0], [1], [0, 0, 1, 1], [], []>} : vector<2x25xf32>, vector<25x25xf32>, vector<2x25xf32> -> vector<2x25xf32>
    %c0_21 = arith.constant 0 : index
    %c0_22 = arith.constant 0 : index
    %31 = vector.load %arg4[%c0_21, %c0_22] : memref<25x25xf32, #tpu.memory_space<vmem>>, vector<25x25xf32>
    %cst_23 = arith.constant dense<0.000000e+00> : vector<2x25xf32>
    %32 = tpu.matmul %28, %31, %cst_23 {dimension_numbers = #tpu.dot_dimension_numbers<[1], [0], [0], [1], [0, 0, 1, 1], [], []>} : vector<2x25xf32>, vector<25x25xf32>, vector<2x25xf32> -> vector<2x25xf32>
    %33 = arith.addf %30, %32 : vector<2x25xf32>
    %34 = arith.negf %33 : vector<2x25xf32>
    %35 = math.exp %34 : vector<2x25xf32>
    %cst_24 = arith.constant 1.000000e+00 : f32
    %36 = vector.broadcast %cst_24 : f32 to vector<2x25xf32>
    %37 = arith.addf %36, %35 : vector<2x25xf32>
    %38 = arith.divf %36, %37 : vector<2x25xf32>
    %39 = vector.shape_cast %38 : vector<2x25xf32> to vector<2x25x1xf32>
    %40 = vector.broadcast %39 : vector<2x25x1xf32> to vector<2x25x64xf32>
    %41 = arith.mulf %24, %40 : vector<2x25x64xf32>
    %42 = arith.truncf %41 : vector<2x25x64xf32> to vector<2x25x64xbf16>
    %c0_25 = arith.constant 0 : index
    %c0_26 = arith.constant 0 : index
    %c0_27 = arith.constant 0 : index
    %43 = vector.load %arg5[%c0_25, %c0_26, %c0_27] : memref<2x25x64xbf16, #tpu.memory_space<vmem>>, vector<2x25x64xbf16>
    tpu.vector_store %arg5[%c0_25, %c0_26, %c0_27], %42 {strides = array<i32>} : memref<2x25x64xbf16, #tpu.memory_space<vmem>>, vector<2x25x64xbf16>,
    return
  }
}

module attributes {stable_mosaic.version = 11 : i64} {
  func.func @_mm_kernel(%arg0: memref<18x576xbf16, #tpu.memory_space<vmem>>, %arg1: memref<576x64xbf16, #tpu.memory_space<vmem>>, %arg2: memref<1x64xf32, #tpu.memory_space<vmem>>, %arg3: memref<18x64xbf16, #tpu.memory_space<vmem>>) attributes {dimension_semantics = [], scalar_prefetch = 0 : i64, scratch_operands = 0 : i64, tpu.core_type = #tpu.core_type<tc>} {
    %c0 = arith.constant 0 : index
    %c0_0 = arith.constant 0 : index
    %0 = vector.load %arg0[%c0, %c0_0] : memref<18x576xbf16, #tpu.memory_space<vmem>>, vector<18x576xbf16>
    %c0_1 = arith.constant 0 : index
    %c0_2 = arith.constant 0 : index
    %1 = vector.load %arg1[%c0_1, %c0_2] : memref<576x64xbf16, #tpu.memory_space<vmem>>, vector<576x64xbf16>
    %cst = arith.constant dense<0.000000e+00> : vector<18x64xf32>
    %2 = tpu.matmul %0, %1, %cst {dimension_numbers = #tpu.dot_dimension_numbers<[1], [0], [0], [1], [0, 0, 1, 1], [], []>} : vector<18x576xbf16>, vector<576x64xbf16>, vector<18x64xf32> -> vector<18x64xf32>
    %c0_3 = arith.constant 0 : index
    %c0_4 = arith.constant 0 : index
    %3 = vector.load %arg2[%c0_3, %c0_4] : memref<1x64xf32, #tpu.memory_space<vmem>>, vector<1x64xf32>
    %4 = vector.broadcast %3 : vector<1x64xf32> to vector<18x64xf32>
    %5 = arith.addf %2, %4 : vector<18x64xf32>
    %cst_5 = arith.constant 0.000000e+00 : f32
    %6 = vector.broadcast %cst_5 : f32 to vector<18x64xf32>
    %7 = arith.maximumf %5, %6 : vector<18x64xf32>
    %8 = arith.truncf %7 : vector<18x64xf32> to vector<18x64xbf16>
    %c0_6 = arith.constant 0 : index
    %c0_7 = arith.constant 0 : index
    %9 = vector.load %arg3[%c0_6, %c0_7] : memref<18x64xbf16, #tpu.memory_space<vmem>>, vector<18x64xbf16>
    tpu.vector_store %arg3[%c0_6, %c0_7], %8 {strides = array<i32>} : memref<18x64xbf16, #tpu.memory_space<vmem>>, vector<18x64xbf16>,
    return
  }
}

module attributes {stable_mosaic.version = 11 : i64} {
  func.func @_mm_res_relu_kernel(%arg0: memref<18x576xbf16, #tpu.memory_space<vmem>>, %arg1: memref<576x64xbf16, #tpu.memory_space<vmem>>, %arg2: memref<1x64xf32, #tpu.memory_space<vmem>>, %arg3: memref<18x64xbf16, #tpu.memory_space<vmem>>, %arg4: memref<18x64xbf16, #tpu.memory_space<vmem>>) attributes {dimension_semantics = [], scalar_prefetch = 0 : i64, scratch_operands = 0 : i64, tpu.core_type = #tpu.core_type<tc>} {
    %c0 = arith.constant 0 : index
    %c0_0 = arith.constant 0 : index
    %0 = vector.load %arg0[%c0, %c0_0] : memref<18x576xbf16, #tpu.memory_space<vmem>>, vector<18x576xbf16>
    %c0_1 = arith.constant 0 : index
    %c0_2 = arith.constant 0 : index
    %1 = vector.load %arg1[%c0_1, %c0_2] : memref<576x64xbf16, #tpu.memory_space<vmem>>, vector<576x64xbf16>
    %cst = arith.constant dense<0.000000e+00> : vector<18x64xf32>
    %2 = tpu.matmul %0, %1, %cst {dimension_numbers = #tpu.dot_dimension_numbers<[1], [0], [0], [1], [0, 0, 1, 1], [], []>} : vector<18x576xbf16>, vector<576x64xbf16>, vector<18x64xf32> -> vector<18x64xf32>
    %c0_3 = arith.constant 0 : index
    %c0_4 = arith.constant 0 : index
    %3 = vector.load %arg2[%c0_3, %c0_4] : memref<1x64xf32, #tpu.memory_space<vmem>>, vector<1x64xf32>
    %4 = vector.broadcast %3 : vector<1x64xf32> to vector<18x64xf32>
    %5 = arith.addf %2, %4 : vector<18x64xf32>
    %c0_5 = arith.constant 0 : index
    %c0_6 = arith.constant 0 : index
    %6 = vector.load %arg3[%c0_5, %c0_6] : memref<18x64xbf16, #tpu.memory_space<vmem>>, vector<18x64xbf16>
    %7 = arith.extf %6 : vector<18x64xbf16> to vector<18x64xf32>
    %8 = arith.addf %5, %7 : vector<18x64xf32>
    %cst_7 = arith.constant 0.000000e+00 : f32
    %9 = vector.broadcast %cst_7 : f32 to vector<18x64xf32>
    %10 = arith.maximumf %8, %9 : vector<18x64xf32>
    %11 = arith.truncf %10 : vector<18x64xf32> to vector<18x64xbf16>
    %c0_8 = arith.constant 0 : index
    %c0_9 = arith.constant 0 : index
    %12 = vector.load %arg4[%c0_8, %c0_9] : memref<18x64xbf16, #tpu.memory_space<vmem>>, vector<18x64xbf16>
    tpu.vector_store %arg4[%c0_8, %c0_9], %11 {strides = array<i32>} : memref<18x64xbf16, #tpu.memory_space<vmem>>, vector<18x64xbf16>,
    return
  }
}

module attributes {stable_mosaic.version = 11 : i64} {
  func.func @_mm_kernel(%arg0: memref<2x576xbf16, #tpu.memory_space<vmem>>, %arg1: memref<576x128xbf16, #tpu.memory_space<vmem>>, %arg2: memref<1x128xf32, #tpu.memory_space<vmem>>, %arg3: memref<2x128xbf16, #tpu.memory_space<vmem>>) attributes {dimension_semantics = [], scalar_prefetch = 0 : i64, scratch_operands = 0 : i64, tpu.core_type = #tpu.core_type<tc>} {
    %c0 = arith.constant 0 : index
    %c0_0 = arith.constant 0 : index
    %0 = vector.load %arg0[%c0, %c0_0] : memref<2x576xbf16, #tpu.memory_space<vmem>>, vector<2x576xbf16>
    %c0_1 = arith.constant 0 : index
    %c0_2 = arith.constant 0 : index
    %1 = vector.load %arg1[%c0_1, %c0_2] : memref<576x128xbf16, #tpu.memory_space<vmem>>, vector<576x128xbf16>
    %cst = arith.constant dense<0.000000e+00> : vector<2x128xf32>
    %2 = tpu.matmul %0, %1, %cst {dimension_numbers = #tpu.dot_dimension_numbers<[1], [0], [0], [1], [0, 0, 1, 1], [], []>} : vector<2x576xbf16>, vector<576x128xbf16>, vector<2x128xf32> -> vector<2x128xf32>
    %c0_3 = arith.constant 0 : index
    %c0_4 = arith.constant 0 : index
    %3 = vector.load %arg2[%c0_3, %c0_4] : memref<1x128xf32, #tpu.memory_space<vmem>>, vector<1x128xf32>
    %4 = vector.broadcast %3 : vector<1x128xf32> to vector<2x128xf32>
    %5 = arith.addf %2, %4 : vector<2x128xf32>
    %cst_5 = arith.constant 0.000000e+00 : f32
    %6 = vector.broadcast %cst_5 : f32 to vector<2x128xf32>
    %7 = arith.maximumf %5, %6 : vector<2x128xf32>
    %8 = arith.truncf %7 : vector<2x128xf32> to vector<2x128xbf16>
    %c0_6 = arith.constant 0 : index
    %c0_7 = arith.constant 0 : index
    %9 = vector.load %arg3[%c0_6, %c0_7] : memref<2x128xbf16, #tpu.memory_space<vmem>>, vector<2x128xbf16>
    tpu.vector_store %arg3[%c0_6, %c0_7], %8 {strides = array<i32>} : memref<2x128xbf16, #tpu.memory_space<vmem>>, vector<2x128xbf16>,
    return
  }
}

module attributes {stable_mosaic.version = 11 : i64} {
  func.func @_cbam_kernel(%arg0: memref<2x9x64xbf16, #tpu.memory_space<vmem>>, %arg1: memref<64x4xf32, #tpu.memory_space<vmem>>, %arg2: memref<4x64xf32, #tpu.memory_space<vmem>>, %arg3: memref<9x9xf32, #tpu.memory_space<vmem>>, %arg4: memref<9x9xf32, #tpu.memory_space<vmem>>, %arg5: memref<2x9x64xbf16, #tpu.memory_space<vmem>>) attributes {dimension_semantics = [], scalar_prefetch = 0 : i64, scratch_operands = 0 : i64, tpu.core_type = #tpu.core_type<tc>} {
    %c0 = arith.constant 0 : index
    %c0_0 = arith.constant 0 : index
    %c0_1 = arith.constant 0 : index
    %0 = vector.load %arg0[%c0, %c0_0, %c0_1] : memref<2x9x64xbf16, #tpu.memory_space<vmem>>, vector<2x9x64xbf16>
    %1 = arith.extf %0 : vector<2x9x64xbf16> to vector<2x9x64xf32>
    %cst = arith.constant dense<0.000000e+00> : vector<2x64xf32>
    %2 = vector.multi_reduction <add>, %1, %cst [1] : vector<2x9x64xf32> to vector<2x64xf32>
    %cst_2 = arith.constant 9.000000e+00 : f32
    %3 = vector.broadcast %cst_2 : f32 to vector<2x64xf32>
    %4 = arith.divf %2, %3 : vector<2x64xf32>
    %cst_3 = arith.constant dense<0xFF800000> : vector<2x64xf32>
    %5 = vector.multi_reduction <maximumf>, %1, %cst_3 [1] : vector<2x9x64xf32> to vector<2x64xf32>
    %c0_4 = arith.constant 0 : index
    %c0_5 = arith.constant 0 : index
    %6 = vector.load %arg1[%c0_4, %c0_5] : memref<64x4xf32, #tpu.memory_space<vmem>>, vector<64x4xf32>
    %c0_6 = arith.constant 0 : index
    %c0_7 = arith.constant 0 : index
    %7 = vector.load %arg2[%c0_6, %c0_7] : memref<4x64xf32, #tpu.memory_space<vmem>>, vector<4x64xf32>
    %cst_8 = arith.constant dense<0.000000e+00> : vector<2x4xf32>
    %8 = tpu.matmul %4, %6, %cst_8 {dimension_numbers = #tpu.dot_dimension_numbers<[1], [0], [0], [1], [0, 0, 1, 1], [], []>} : vector<2x64xf32>, vector<64x4xf32>, vector<2x4xf32> -> vector<2x4xf32>
    %cst_9 = arith.constant 0.000000e+00 : f32
    %9 = vector.broadcast %cst_9 : f32 to vector<2x4xf32>
    %10 = arith.maximumf %8, %9 : vector<2x4xf32>
    %cst_10 = arith.constant dense<0.000000e+00> : vector<2x4xf32>
    %11 = tpu.matmul %5, %6, %cst_10 {dimension_numbers = #tpu.dot_dimension_numbers<[1], [0], [0], [1], [0, 0, 1, 1], [], []>} : vector<2x64xf32>, vector<64x4xf32>, vector<2x4xf32> -> vector<2x4xf32>
    %cst_11 = arith.constant 0.000000e+00 : f32
    %12 = vector.broadcast %cst_11 : f32 to vector<2x4xf32>
    %13 = arith.maximumf %11, %12 : vector<2x4xf32>
    %cst_12 = arith.constant dense<0.000000e+00> : vector<2x64xf32>
    %14 = tpu.matmul %10, %7, %cst_12 {dimension_numbers = #tpu.dot_dimension_numbers<[1], [0], [0], [1], [0, 0, 1, 1], [], []>} : vector<2x4xf32>, vector<4x64xf32>, vector<2x64xf32> -> vector<2x64xf32>
    %cst_13 = arith.constant dense<0.000000e+00> : vector<2x64xf32>
    %15 = tpu.matmul %13, %7, %cst_13 {dimension_numbers = #tpu.dot_dimension_numbers<[1], [0], [0], [1], [0, 0, 1, 1], [], []>} : vector<2x4xf32>, vector<4x64xf32>, vector<2x64xf32> -> vector<2x64xf32>
    %16 = arith.addf %14, %15 : vector<2x64xf32>
    %17 = arith.negf %16 : vector<2x64xf32>
    %18 = math.exp %17 : vector<2x64xf32>
    %cst_14 = arith.constant 1.000000e+00 : f32
    %19 = vector.broadcast %cst_14 : f32 to vector<2x64xf32>
    %20 = arith.addf %19, %18 : vector<2x64xf32>
    %21 = arith.divf %19, %20 : vector<2x64xf32>
    %22 = vector.shape_cast %21 : vector<2x64xf32> to vector<2x1x64xf32>
    %23 = vector.broadcast %22 : vector<2x1x64xf32> to vector<2x9x64xf32>
    %24 = arith.mulf %1, %23 : vector<2x9x64xf32>
    %cst_15 = arith.constant dense<0.000000e+00> : vector<2x9xf32>
    %25 = vector.multi_reduction <add>, %24, %cst_15 [2] : vector<2x9x64xf32> to vector<2x9xf32>
    %cst_16 = arith.constant 6.400000e+01 : f32
    %26 = vector.broadcast %cst_16 : f32 to vector<2x9xf32>
    %27 = arith.divf %25, %26 : vector<2x9xf32>
    %cst_17 = arith.constant dense<0xFF800000> : vector<2x9xf32>
    %28 = vector.multi_reduction <maximumf>, %24, %cst_17 [2] : vector<2x9x64xf32> to vector<2x9xf32>
    %c0_18 = arith.constant 0 : index
    %c0_19 = arith.constant 0 : index
    %29 = vector.load %arg3[%c0_18, %c0_19] : memref<9x9xf32, #tpu.memory_space<vmem>>, vector<9x9xf32>
    %cst_20 = arith.constant dense<0.000000e+00> : vector<2x9xf32>
    %30 = tpu.matmul %27, %29, %cst_20 {dimension_numbers = #tpu.dot_dimension_numbers<[1], [0], [0], [1], [0, 0, 1, 1], [], []>} : vector<2x9xf32>, vector<9x9xf32>, vector<2x9xf32> -> vector<2x9xf32>
    %c0_21 = arith.constant 0 : index
    %c0_22 = arith.constant 0 : index
    %31 = vector.load %arg4[%c0_21, %c0_22] : memref<9x9xf32, #tpu.memory_space<vmem>>, vector<9x9xf32>
    %cst_23 = arith.constant dense<0.000000e+00> : vector<2x9xf32>
    %32 = tpu.matmul %28, %31, %cst_23 {dimension_numbers = #tpu.dot_dimension_numbers<[1], [0], [0], [1], [0, 0, 1, 1], [], []>} : vector<2x9xf32>, vector<9x9xf32>, vector<2x9xf32> -> vector<2x9xf32>
    %33 = arith.addf %30, %32 : vector<2x9xf32>
    %34 = arith.negf %33 : vector<2x9xf32>
    %35 = math.exp %34 : vector<2x9xf32>
    %cst_24 = arith.constant 1.000000e+00 : f32
    %36 = vector.broadcast %cst_24 : f32 to vector<2x9xf32>
    %37 = arith.addf %36, %35 : vector<2x9xf32>
    %38 = arith.divf %36, %37 : vector<2x9xf32>
    %39 = vector.shape_cast %38 : vector<2x9xf32> to vector<2x9x1xf32>
    %40 = vector.broadcast %39 : vector<2x9x1xf32> to vector<2x9x64xf32>
    %41 = arith.mulf %24, %40 : vector<2x9x64xf32>
    %42 = arith.truncf %41 : vector<2x9x64xf32> to vector<2x9x64xbf16>
    %c0_25 = arith.constant 0 : index
    %c0_26 = arith.constant 0 : index
    %c0_27 = arith.constant 0 : index
    %43 = vector.load %arg5[%c0_25, %c0_26, %c0_27] : memref<2x9x64xbf16, #tpu.memory_space<vmem>>, vector<2x9x64xbf16>
    tpu.vector_store %arg5[%c0_25, %c0_26, %c0_27], %42 {strides = array<i32>} : memref<2x9x64xbf16, #tpu.memory_space<vmem>>, vector<2x9x64xbf16>,
    return
  }
}

module attributes {stable_mosaic.version = 11 : i64} {
  func.func @_head_kernel(%arg0: memref<2x128xbf16, #tpu.memory_space<vmem>>, %arg1: memref<128x1024xbf16, #tpu.memory_space<vmem>>, %arg2: memref<1x1024xf32, #tpu.memory_space<vmem>>, %arg3: memref<1x512xf32, #tpu.memory_space<vmem>>, %arg4: memref<1x512xf32, #tpu.memory_space<vmem>>, %arg5: memref<1x512xf32, #tpu.memory_space<vmem>>, %arg6: memref<1x512xf32, #tpu.memory_space<vmem>>, %arg7: memref<512x256xbf16, #tpu.memory_space<vmem>>, %arg8: memref<1x256xf32, #tpu.memory_space<vmem>>, %arg9: memref<512x256xbf16, #tpu.memory_space<vmem>>, %arg10: memref<1x256xf32, #tpu.memory_space<vmem>>, %arg11: memref<256x6xbf16, #tpu.memory_space<vmem>>, %arg12: memref<1x6xf32, #tpu.memory_space<vmem>>, %arg13: memref<256x1xbf16, #tpu.memory_space<vmem>>, %arg14: memref<1x1xf32, #tpu.memory_space<vmem>>, %arg15: memref<2x6xf32, #tpu.memory_space<vmem>>, %arg16: memref<2x1xf32, #tpu.memory_space<vmem>>) attributes {dimension_semantics = [], scalar_prefetch = 0 : i64, scratch_operands = 0 : i64, tpu.core_type = #tpu.core_type<tc>} {
    %c0 = arith.constant 0 : index
    %c0_0 = arith.constant 0 : index
    %0 = vector.load %arg0[%c0, %c0_0] : memref<2x128xbf16, #tpu.memory_space<vmem>>, vector<2x128xbf16>
    %c0_1 = arith.constant 0 : index
    %c0_2 = arith.constant 0 : index
    %1 = vector.load %arg1[%c0_1, %c0_2] : memref<128x1024xbf16, #tpu.memory_space<vmem>>, vector<128x1024xbf16>
    %cst = arith.constant dense<0.000000e+00> : vector<2x1024xf32>
    %2 = tpu.matmul %0, %1, %cst {dimension_numbers = #tpu.dot_dimension_numbers<[1], [0], [0], [1], [0, 0, 1, 1], [], []>} : vector<2x128xbf16>, vector<128x1024xbf16>, vector<2x1024xf32> -> vector<2x1024xf32>
    %c0_3 = arith.constant 0 : index
    %c0_4 = arith.constant 0 : index
    %3 = vector.load %arg2[%c0_3, %c0_4] : memref<1x1024xf32, #tpu.memory_space<vmem>>, vector<1x1024xf32>
    %4 = vector.broadcast %3 : vector<1x1024xf32> to vector<2x1024xf32>
    %5 = arith.addf %2, %4 : vector<2x1024xf32>
    %6 = vector.extract_strided_slice %5 {offsets = [0, 0], sizes = [2, 512], strides = [1, 1]} : vector<2x1024xf32> to vector<2x512xf32>
    %7 = vector.extract_strided_slice %5 {offsets = [0, 512], sizes = [2, 512], strides = [1, 1]} : vector<2x1024xf32> to vector<2x512xf32>
    %c0_5 = arith.constant 0 : index
    %c0_6 = arith.constant 0 : index
    %8 = vector.load %arg3[%c0_5, %c0_6] : memref<1x512xf32, #tpu.memory_space<vmem>>, vector<1x512xf32>
    %c0_7 = arith.constant 0 : index
    %c0_8 = arith.constant 0 : index
    %9 = vector.load %arg4[%c0_7, %c0_8] : memref<1x512xf32, #tpu.memory_space<vmem>>, vector<1x512xf32>
    %cst_9 = arith.constant dense<0.000000e+00> : vector<2xf32>
    %10 = vector.multi_reduction <add>, %6, %cst_9 [1] : vector<2x512xf32> to vector<2xf32>
    %11 = vector.shape_cast %10 : vector<2xf32> to vector<2x1xf32>
    %cst_10 = arith.constant 5.120000e+02 : f32
    %12 = vector.broadcast %cst_10 : f32 to vector<2x1xf32>
    %13 = arith.divf %11, %12 : vector<2x1xf32>
    %14 = vector.broadcast %13 : vector<2x1xf32> to vector<2x512xf32>
    %15 = arith.subf %6, %14 : vector<2x512xf32>
    %16 = arith.mulf %15, %15 : vector<2x512xf32>
    %cst_11 = arith.constant dense<0.000000e+00> : vector<2xf32>
    %17 = vector.multi_reduction <add>, %16, %cst_11 [1] : vector<2x512xf32> to vector<2xf32>
    %18 = vector.shape_cast %17 : vector<2xf32> to vector<2x1xf32>
    %cst_12 = arith.constant 5.120000e+02 : f32
    %19 = vector.broadcast %cst_12 : f32 to vector<2x1xf32>
    %20 = arith.divf %18, %19 : vector<2x1xf32>
    %21 = vector.broadcast %13 : vector<2x1xf32> to vector<2x512xf32>
    %22 = arith.subf %6, %21 : vector<2x512xf32>
    %cst_13 = arith.constant 9.99999974E-6 : f32
    %23 = vector.broadcast %cst_13 : f32 to vector<2x1xf32>
    %24 = arith.addf %20, %23 : vector<2x1xf32>
    %25 = math.rsqrt %24 : vector<2x1xf32>
    %26 = vector.broadcast %25 : vector<2x1xf32> to vector<2x512xf32>
    %27 = arith.mulf %22, %26 : vector<2x512xf32>
    %28 = vector.broadcast %8 : vector<1x512xf32> to vector<2x512xf32>
    %29 = arith.mulf %27, %28 : vector<2x512xf32>
    %30 = vector.broadcast %9 : vector<1x512xf32> to vector<2x512xf32>
    %31 = arith.addf %29, %30 : vector<2x512xf32>
    %cst_14 = arith.constant 0.000000e+00 : f32
    %32 = vector.broadcast %cst_14 : f32 to vector<2x512xf32>
    %33 = arith.maximumf %31, %32 : vector<2x512xf32>
    %c0_15 = arith.constant 0 : index
    %c0_16 = arith.constant 0 : index
    %34 = vector.load %arg5[%c0_15, %c0_16] : memref<1x512xf32, #tpu.memory_space<vmem>>, vector<1x512xf32>
    %c0_17 = arith.constant 0 : index
    %c0_18 = arith.constant 0 : index
    %35 = vector.load %arg6[%c0_17, %c0_18] : memref<1x512xf32, #tpu.memory_space<vmem>>, vector<1x512xf32>
    %cst_19 = arith.constant dense<0.000000e+00> : vector<2xf32>
    %36 = vector.multi_reduction <add>, %7, %cst_19 [1] : vector<2x512xf32> to vector<2xf32>
    %37 = vector.shape_cast %36 : vector<2xf32> to vector<2x1xf32>
    %cst_20 = arith.constant 5.120000e+02 : f32
    %38 = vector.broadcast %cst_20 : f32 to vector<2x1xf32>
    %39 = arith.divf %37, %38 : vector<2x1xf32>
    %40 = vector.broadcast %39 : vector<2x1xf32> to vector<2x512xf32>
    %41 = arith.subf %7, %40 : vector<2x512xf32>
    %42 = arith.mulf %41, %41 : vector<2x512xf32>
    %cst_21 = arith.constant dense<0.000000e+00> : vector<2xf32>
    %43 = vector.multi_reduction <add>, %42, %cst_21 [1] : vector<2x512xf32> to vector<2xf32>
    %44 = vector.shape_cast %43 : vector<2xf32> to vector<2x1xf32>
    %cst_22 = arith.constant 5.120000e+02 : f32
    %45 = vector.broadcast %cst_22 : f32 to vector<2x1xf32>
    %46 = arith.divf %44, %45 : vector<2x1xf32>
    %47 = vector.broadcast %39 : vector<2x1xf32> to vector<2x512xf32>
    %48 = arith.subf %7, %47 : vector<2x512xf32>
    %cst_23 = arith.constant 9.99999974E-6 : f32
    %49 = vector.broadcast %cst_23 : f32 to vector<2x1xf32>
    %50 = arith.addf %46, %49 : vector<2x1xf32>
    %51 = math.rsqrt %50 : vector<2x1xf32>
    %52 = vector.broadcast %51 : vector<2x1xf32> to vector<2x512xf32>
    %53 = arith.mulf %48, %52 : vector<2x512xf32>
    %54 = vector.broadcast %34 : vector<1x512xf32> to vector<2x512xf32>
    %55 = arith.mulf %53, %54 : vector<2x512xf32>
    %56 = vector.broadcast %35 : vector<1x512xf32> to vector<2x512xf32>
    %57 = arith.addf %55, %56 : vector<2x512xf32>
    %cst_24 = arith.constant 0.000000e+00 : f32
    %58 = vector.broadcast %cst_24 : f32 to vector<2x512xf32>
    %59 = arith.maximumf %57, %58 : vector<2x512xf32>
    %60 = arith.truncf %33 : vector<2x512xf32> to vector<2x512xbf16>
    %c0_25 = arith.constant 0 : index
    %c0_26 = arith.constant 0 : index
    %61 = vector.load %arg7[%c0_25, %c0_26] : memref<512x256xbf16, #tpu.memory_space<vmem>>, vector<512x256xbf16>
    %cst_27 = arith.constant dense<0.000000e+00> : vector<2x256xf32>
    %62 = tpu.matmul %60, %61, %cst_27 {dimension_numbers = #tpu.dot_dimension_numbers<[1], [0], [0], [1], [0, 0, 1, 1], [], []>} : vector<2x512xbf16>, vector<512x256xbf16>, vector<2x256xf32> -> vector<2x256xf32>
    %c0_28 = arith.constant 0 : index
    %c0_29 = arith.constant 0 : index
    %63 = vector.load %arg8[%c0_28, %c0_29] : memref<1x256xf32, #tpu.memory_space<vmem>>, vector<1x256xf32>
    %64 = vector.broadcast %63 : vector<1x256xf32> to vector<2x256xf32>
    %65 = arith.addf %62, %64 : vector<2x256xf32>
    %cst_30 = arith.constant 0.000000e+00 : f32
    %66 = vector.broadcast %cst_30 : f32 to vector<2x256xf32>
    %67 = arith.maximumf %65, %66 : vector<2x256xf32>
    %68 = arith.truncf %59 : vector<2x512xf32> to vector<2x512xbf16>
    %c0_31 = arith.constant 0 : index
    %c0_32 = arith.constant 0 : index
    %69 = vector.load %arg9[%c0_31, %c0_32] : memref<512x256xbf16, #tpu.memory_space<vmem>>, vector<512x256xbf16>
    %cst_33 = arith.constant dense<0.000000e+00> : vector<2x256xf32>
    %70 = tpu.matmul %68, %69, %cst_33 {dimension_numbers = #tpu.dot_dimension_numbers<[1], [0], [0], [1], [0, 0, 1, 1], [], []>} : vector<2x512xbf16>, vector<512x256xbf16>, vector<2x256xf32> -> vector<2x256xf32>
    %c0_34 = arith.constant 0 : index
    %c0_35 = arith.constant 0 : index
    %71 = vector.load %arg10[%c0_34, %c0_35] : memref<1x256xf32, #tpu.memory_space<vmem>>, vector<1x256xf32>
    %72 = vector.broadcast %71 : vector<1x256xf32> to vector<2x256xf32>
    %73 = arith.addf %70, %72 : vector<2x256xf32>
    %cst_36 = arith.constant 0.000000e+00 : f32
    %74 = vector.broadcast %cst_36 : f32 to vector<2x256xf32>
    %75 = arith.maximumf %73, %74 : vector<2x256xf32>
    %76 = arith.truncf %67 : vector<2x256xf32> to vector<2x256xbf16>
    %c0_37 = arith.constant 0 : index
    %c0_38 = arith.constant 0 : index
    %77 = vector.load %arg11[%c0_37, %c0_38] : memref<256x6xbf16, #tpu.memory_space<vmem>>, vector<256x6xbf16>
    %cst_39 = arith.constant dense<0.000000e+00> : vector<2x6xf32>
    %78 = tpu.matmul %76, %77, %cst_39 {dimension_numbers = #tpu.dot_dimension_numbers<[1], [0], [0], [1], [0, 0, 1, 1], [], []>} : vector<2x256xbf16>, vector<256x6xbf16>, vector<2x6xf32> -> vector<2x6xf32>
    %c0_40 = arith.constant 0 : index
    %c0_41 = arith.constant 0 : index
    %79 = vector.load %arg12[%c0_40, %c0_41] : memref<1x6xf32, #tpu.memory_space<vmem>>, vector<1x6xf32>
    %80 = vector.broadcast %79 : vector<1x6xf32> to vector<2x6xf32>
    %81 = arith.addf %78, %80 : vector<2x6xf32>
    %c0_42 = arith.constant 0 : index
    %c0_43 = arith.constant 0 : index
    %82 = vector.load %arg15[%c0_42, %c0_43] : memref<2x6xf32, #tpu.memory_space<vmem>>, vector<2x6xf32>
    tpu.vector_store %arg15[%c0_42, %c0_43], %81 {strides = array<i32>} : memref<2x6xf32, #tpu.memory_space<vmem>>, vector<2x6xf32>,
    %83 = arith.truncf %75 : vector<2x256xf32> to vector<2x256xbf16>
    %c0_44 = arith.constant 0 : index
    %c0_45 = arith.constant 0 : index
    %84 = vector.load %arg13[%c0_44, %c0_45] : memref<256x1xbf16, #tpu.memory_space<vmem>>, vector<256x1xbf16>
    %cst_46 = arith.constant dense<0.000000e+00> : vector<2x1xf32>
    %85 = tpu.matmul %83, %84, %cst_46 {dimension_numbers = #tpu.dot_dimension_numbers<[1], [0], [0], [1], [0, 0, 1, 1], [], []>} : vector<2x256xbf16>, vector<256x1xbf16>, vector<2x1xf32> -> vector<2x1xf32>
    %c0_47 = arith.constant 0 : index
    %c0_48 = arith.constant 0 : index
    %86 = vector.load %arg14[%c0_47, %c0_48] : memref<1x1xf32, #tpu.memory_space<vmem>>, vector<1x1xf32>
    %87 = vector.broadcast %86 : vector<1x1xf32> to vector<2x1xf32>
    %88 = arith.addf %85, %87 : vector<2x1xf32>
    %c0_49 = arith.constant 0 : index
    %c0_50 = arith.constant 0 : index
    %89 = vector.load %arg16[%c0_49, %c0_50] : memref<2x1xf32, #tpu.memory_space<vmem>>, vector<2x1xf32>
    tpu.vector_store %arg16[%c0_49, %c0_50], %88 {strides = array<i32>} : memref<2x1xf32, #tpu.memory_space<vmem>>, vector<2x1xf32>,
    return
  }
}

</mosaic_0001>

<bundles_post_ra>
// kernel: ppo_forward.11
= control target key start
LH: loop header
LB: loop body
LE: loop exit
PB: predicated region body
PF: predicated region fallthrough
CT: control target
= control target key end

     0   :  { %s3096_s12 = smov 0   ;;  %s3098_s13 = smov 0   ;;  %s3813_s0 = inlined_call_operand.vmem [shape: bf16[338,768], index: 0, kind: input, shape index: {}]   ;;  %s3814_s1 = inlined_call_operand.vmem [shape: bf16[768,32], index: 1, kind: input, shape index: {}]   ;;  %s3815_s2 = inlined_call_operand.vmem [shape: f32[1,32], index: 2, kind: input, shape index: {}]   ;;  %s3816_s3 = inlined_call_operand.vmem [shape: bf16[338,32], index: 3, kind: output, shape index: {}]  }
   0x1   :  { %s3100_s14 = smov 0  }
   0x2 LB: > { %s3109_s15 = sadd.s32 4294967295, %s3042_s14   ;;  %s3111_s16 = sadd.s32 1, %s3042_s14   ;;  %s3042_s14 = sphi %s3100_s14, %s3825_s14   ;;  %s3038_s13 = sphi %s3098_s13, %s3824_s13   ;;  %s3034_s12 = sphi %s3096_s12, %s3823_s12  }
   0x3   : > { %s85_s17 = ssub.s32 %s3042_s14, %s3111_s16  ;;  %s88_s18 = sadd.s32 1, %s3038_s13 }
   0x4   : > { %p86_p0 = scmp.eq.s32.totalorder %s85_s17, 0  ;;  %p98_p1 = scmp.ne.s32.totalorder %s3038_s13, %s3034_s12 }
   0x5   : > { %p99_p2 = scmp.eq.s32.totalorder %s3109_s15, 1  ;;  %p2138_p3 = scmp.ge.s32.totalorder %s3042_s14, 1 }
   0x6   : > { %s3119_s19 = scalar_select %p86_p0, %s3038_s13, %s88_s18  }
   0x7   : > { %p3121_p4 = por %p99_p2, %p98_p1  ;;  %p149_p5 = scmp.lt.s32.totalorder %s3042_s14, 3 }
   0x9   : > { %p150_p6 = pnand %p2138_p3, %p149_p5 }
   0xa   : > { %s3144_s6 = sshll.u32 (!%p150_p6), %s3109_s15, 5  ;;  %s175_s27 = sand.u32 (!%p150_p6), 1, %s3034_s12  }
   0xb   : > { %153 = sbr.rel (%p150_p6) target bundleno = 633 (0x279), region = 32  ;;  %p184_p7 = scmp.lt.s32.totalorder (!%p150_p6), %s3144_s6, 42 }
   0xc   : > { %s2139_s28 = sshll.u32 (!%p150_p6), %s175_s27, 7 }
   0xd   : > { %s3527_s12 = scalar_lea.vmem (!%p150_p6), [#allocation2], %s2139_s28  }
  0x10   : > { %v2838_v0 = vld [vmem:[%s3814_s1 + $0x38] sm:$0xff]  ;;  %v2837_v2 = vld [vmem:[%s3814_s1 + $0x30] sm:$0xff]  ;;  %v2836_v4 = vld [vmem:[%s3814_s1 + $0x28] sm:$0xff]  ;;  %s185_s21 = scalar_select %p184_p7, %s3144_s6, 42  ;;  %vm1762_vm0 = vcmask 257024  }
  0x11   : > { %v2846_v1 = vld [vmem:[%s3814_s1 + $0x78] sm:$0xff]  ;;  %2882 = vmatpush.bf16.msra.mxu2 %v2838_v0  ;;  %v2845_v3 = vld [vmem:[%s3814_s1 + $0x70] sm:$0xff]  ;;  %1164 = vmatpush.bf16.msra.mxu0 %v2838_v0  ;;  %v2844_v5 = vld [vmem:[%s3814_s1 + $0x68] sm:$0xff]  ;;  %s2879_s29 = sshll.u32 (%p3121_p4), %s3109_s15, 7 }
  0x12   : > { %2890 = vmatpush.bf16.msra.mxu3 %v2846_v1  ;;  %1253 = vmatpush.bf16.msra.mxu1 %v2846_v1  ;;  %v2835_v6 = vld [vmem:[%s3814_s1 + $0x20] sm:$0xff]  ;;  %v2834_v8 = vld [vmem:[%s3814_s1 + $0x18] sm:$0xff]  ;;  %v2833_v10 = vld [vmem:[%s3814_s1 + $0x10] sm:$0xff]  ;;  %s2898_s26 = smul.u32 24, %s185_s21  ;;  %s3678_s5 = scalar_lea.vmem (%p3121_p4), %s3816_s3, %s2879_s29  }
  0x13   : > { %v2843_v7 = vld [vmem:[%s3814_s1 + $0x60] sm:$0xff]  ;;  %v2842_v9 = vld [vmem:[%s3814_s1 + $0x58] sm:$0xff]  ;;  %v2841_v11 = vld [vmem:[%s3814_s1 + $0x50] sm:$0xff] }
  0x14   : > { %v2832_v12 = vld [vmem:[%s3814_s1 + $0x8] sm:$0xff]  ;;  %s3175_s7 = scalar_lea.vmem %s3813_s0, %s2898_s26  ;;  %v2831_v14 = vld [vmem:[%s3814_s1] sm:$0xff]  ;;  %v2854_v20 = vld [vmem:[%s3814_s1 + $0xb8] sm:$0xff] }
  0x15   : > { %2883 = vmatpush.bf16.msra.mxu2 %v2837_v2  ;;  %1165 = vmatpush.bf16.msra.mxu0 %v2837_v2  ;;  %v2840_v13 = vld [vmem:[%s3814_s1 + $0x48] sm:$0xff]  ;;  %v2839_v15 = vld [vmem:[%s3814_s1 + $0x40] sm:$0xff]  ;;  %v2786_v17 = vld [vmem:[%s3175_s7 + $0x194] sm:$0xf0] }
  0x16   : > { %2891 = vmatpush.bf16.msra.mxu3 %v2845_v3  ;;  %1254 = vmatpush.bf16.msra.mxu1 %v2845_v3  ;;  %v2336_v16 = vld [vmem:[%s3175_s7 + $0x180] sm:$0xf]  ;;  %v2783_v18 = vld [vmem:[%s3175_s7 + $0x184] sm:$0xf]  ;;  %v2338_v19 = vld [vmem:[%s3175_s7 + $0x198] sm:$0xf0] }
  0x17   : > { %v2144_v21 = vld [vmem:[%s3175_s7] sm:$0xf]  ;;  %v2738_v22 = vld [vmem:[%s3175_s7 + $0x14] sm:$0xf0]  ;;  %v2735_v24 = vld [vmem:[%s3175_s7 + $0x4] sm:$0xf]  ;;  %v2337_v26 = vor.u32 %v2786_v17, %v2336_v16  ;;  %v2341_v27 = vor.u32 %v2783_v18, %v2338_v19 }
  0x18   : > { %v2862_v23 = vld [vmem:[%s3814_s1 + $0xf8] sm:$0xff]  ;;  %v2145_v28 = vor.u32 %v2738_v22, %v2144_v21  ;;  %v2853_v32 = vld [vmem:[%s3814_s1 + $0xb0] sm:$0xff]  ;;  %v2852_v36 = vld [vmem:[%s3814_s1 + $0xa8] sm:$0xff] }
  0x19   : > { %2884 = vmatpush.bf16.msra.mxu2 %v2836_v4  ;;  %1166 = vmatpush.bf16.msra.mxu0 %v2836_v4  ;;  %v2146_v25 = vld [vmem:[%s3175_s7 + $0x18] sm:$0xf0]  ;;  %v2861_v33 = vld [vmem:[%s3814_s1 + $0xf0] sm:$0xff]  ;;  %v2860_v37 = vld [vmem:[%s3814_s1 + $0xe8] sm:$0xff] }
  0x1a   : > { %2892 = vmatpush.bf16.msra.mxu3 %v2844_v5  ;;  %1255 = vmatpush.bf16.msra.mxu1 %v2844_v5  ;;  %v2878_v29 = vld [vmem:[%s3814_s1 + $0x178] sm:$0xff]  ;;  %v2149_v30 = vor.u32 %v2735_v24, %v2146_v25  ;;  %v2877_v34 = vld [vmem:[%s3814_s1 + $0x170] sm:$0xff]  ;;  %v2876_v38 = vld [vmem:[%s3814_s1 + $0x168] sm:$0xff] }
  0x1b   : > { %v2870_v31 = vld [vmem:[%s3814_s1 + $0x138] sm:$0xff]  ;;  %v2869_v35 = vld [vmem:[%s3814_s1 + $0x130] sm:$0xff]  ;;  %v2868_v39 = vld [vmem:[%s3814_s1 + $0x128] sm:$0xff] }
  0x1c   : > { %v2360_v40 = vld [vmem:[%s3175_s7 + $0x1b0] sm:$0xf]  ;;  %v2792_v41 = vld [vmem:[%s3175_s7 + $0x1c4] sm:$0xf0]  ;;  %v2789_v42 = vld [vmem:[%s3175_s7 + $0x1b4] sm:$0xf] }
  0x1d   : > { %2885 = vmatpush.bf16.msra.mxu2 %v2835_v6  ;;  %1167 = vmatpush.bf16.msra.mxu0 %v2835_v6  ;;  %v2362_v43 = vld [vmem:[%s3175_s7 + $0x1c8] sm:$0xf0]  ;;  %v2168_v44 = vld [vmem:[%s3175_s7 + $0x30] sm:$0xf]  ;;  %v2744_v45 = vld [vmem:[%s3175_s7 + $0x44] sm:$0xf0]  ;;  %v2361_v48 = vor.u32 %v2792_v41, %v2360_v40 }
  0x1e   : > { %2893 = vmatpush.bf16.msra.mxu3 %v2843_v7  ;;  %1256 = vmatpush.bf16.msra.mxu1 %v2843_v7  ;;  %v2741_v46 = vld [vmem:[%s3175_s7 + $0x34] sm:$0xf]  ;;  %v2170_v47 = vld [vmem:[%s3175_s7 + $0x48] sm:$0xf0]  ;;  %v2365_v49 = vor.u32 %v2789_v42, %v2362_v43  ;;  %v2169_v50 = vor.u32 %v2744_v45, %v2168_v44  ;;  %v2851_v52 = vld [vmem:[%s3814_s1 + $0xa0] sm:$0xff] }
  0x1f   : > { %v2173_v51 = vor.u32 %v2741_v46, %v2170_v47  ;;  %v2859_v53 = vld [vmem:[%s3814_s1 + $0xe0] sm:$0xff]  ;;  %v2798_v57 = vld [vmem:[%s3175_s7 + $0x1f4] sm:$0xf0]  ;;  %v2386_v59 = vld [vmem:[%s3175_s7 + $0x1f8] sm:$0xf0] }
  0x20   : > { %v2867_v54 = vld [vmem:[%s3814_s1 + $0x120] sm:$0xff]  ;;  %v2750_v61 = vld [vmem:[%s3175_s7 + $0x74] sm:$0xf0]  ;;  %v2194_v63 = vld [vmem:[%s3175_s7 + $0x78] sm:$0xf0] }
  0x21   : > { %2886 = vmatpush.bf16.msra.mxu2 %v2834_v8  ;;  %1168 = vmatpush.bf16.msra.mxu0 %v2834_v8  ;;  %v2875_v55 = vld [vmem:[%s3814_s1 + $0x160] sm:$0xff]  ;;  %v2850_v4 = vld [vmem:[%s3814_s1 + $0x98] sm:$0xff]  ;;  %v2408_v8 = vld [vmem:[%s3175_s7 + $0x210] sm:$0xf] }
  0x22   : > { %2894 = vmatpush.bf16.msra.mxu3 %v2842_v9  ;;  %1257 = vmatpush.bf16.msra.mxu1 %v2842_v9  ;;  %v2384_v56 = vld [vmem:[%s3175_s7 + $0x1e0] sm:$0xf]  ;;  %v2795_v58 = vld [vmem:[%s3175_s7 + $0x1e4] sm:$0xf]  ;;  %v2858_v5 = vld [vmem:[%s3814_s1 + $0xd8] sm:$0xff] }
  0x23   : > { %v2192_v60 = vld [vmem:[%s3175_s7 + $0x60] sm:$0xf]  ;;  %v2747_v62 = vld [vmem:[%s3175_s7 + $0x64] sm:$0xf]  ;;  %v2385_v0 = vor.u32 %v2798_v57, %v2384_v56  ;;  %v2389_v1 = vor.u32 %v2795_v58, %v2386_v59  ;;  %v2866_v6 = vld [vmem:[%s3814_s1 + $0x118] sm:$0xff] }
  0x24   : > { %v2193_v2 = vor.u32 %v2750_v61, %v2192_v60  ;;  %v2197_v3 = vor.u32 %v2747_v62, %v2194_v63  ;;  %v2874_v7 = vld [vmem:[%s3814_s1 + $0x158] sm:$0xff]  ;;  %v2804_v9 = vld [vmem:[%s3175_s7 + $0x224] sm:$0xf0]  ;;  %v2857_v21 = vld [vmem:[%s3814_s1 + $0xd0] sm:$0xff] }
  0x25   : > { %2887 = vmatpush.bf16.msra.mxu2 %v2833_v10  ;;  %1169 = vmatpush.bf16.msra.mxu0 %v2833_v10  ;;  %v2801_v10 = vld [vmem:[%s3175_s7 + $0x214] sm:$0xf]  ;;  %v2409_v16 = vor.u32 %v2804_v9, %v2408_v8  ;;  %v2432_v24 = vld [vmem:[%s3175_s7 + $0x240] sm:$0xf]  ;;  %v2810_v25 = vld [vmem:[%s3175_s7 + $0x254] sm:$0xf0] }
  0x26   : > { %2895 = vmatpush.bf16.msra.mxu3 %v2841_v11  ;;  %1258 = vmatpush.bf16.msra.mxu1 %v2841_v11  ;;  %v2410_v11 = vld [vmem:[%s3175_s7 + $0x228] sm:$0xf0]  ;;  %v2865_v22 = vld [vmem:[%s3814_s1 + $0x110] sm:$0xff]  ;;  %v2816_v41 = vld [vmem:[%s3175_s7 + $0x284] sm:$0xf0] }
  0x27   : > { %v2413_v17 = vor.u32 %v2801_v10, %v2410_v11  ;;  %v2456_v40 = vld [vmem:[%s3175_s7 + $0x270] sm:$0xf]  ;;  %v2813_v42 = vld [vmem:[%s3175_s7 + $0x274] sm:$0xf]  ;;  %v2458_v43 = vld [vmem:[%s3175_s7 + $0x288] sm:$0xf0] }
  0x28   : > { %v2264_v44 = vld [vmem:[%s3175_s7 + $0xf0] sm:$0xf]  ;;  %v2768_v45 = vld [vmem:[%s3175_s7 + $0x104] sm:$0xf0]  ;;  %v2765_v46 = vld [vmem:[%s3175_s7 + $0xf4] sm:$0xf] }
  0x29   : > { %2888 = vmatpush.bf16.msra.mxu2 %v2832_v12  ;;  %1170 = vmatpush.bf16.msra.mxu0 %v2832_v12  ;;  %v2216_v12 = vld [vmem:[%s3175_s7 + $0x90] sm:$0xf]  ;;  %v2266_v47 = vld [vmem:[%s3175_s7 + $0x108] sm:$0xf0]  ;;  %v2480_v56 = vld [vmem:[%s3175_s7 + $0x2a0] sm:$0xf] }
  0x2a   : > { %2896 = vmatpush.bf16.msra.mxu3 %v2840_v13  ;;  %1259 = vmatpush.bf16.msra.mxu1 %v2840_v13  ;;  %v2756_v13 = vld [vmem:[%s3175_s7 + $0xa4] sm:$0xf0]  ;;  %v2822_v57 = vld [vmem:[%s3175_s7 + $0x2b4] sm:$0xf0]  ;;  %v2819_v58 = vld [vmem:[%s3175_s7 + $0x2a4] sm:$0xf] }
  0x2b   : > { %v2217_v18 = vor.u32 %v2756_v13, %v2216_v12  ;;  %v2482_v59 = vld [vmem:[%s3175_s7 + $0x2b8] sm:$0xf0]  ;;  %v2288_v60 = vld [vmem:[%s3175_s7 + $0x120] sm:$0xf]  ;;  %v2774_v61 = vld [vmem:[%s3175_s7 + $0x134] sm:$0xf0] }
  0x2c   : > { %v2771_v62 = vld [vmem:[%s3175_s7 + $0x124] sm:$0xf]  ;;  %v2290_v63 = vld [vmem:[%s3175_s7 + $0x138] sm:$0xf0]  ;;  %v2312_v8 = vld [vmem:[%s3175_s7 + $0x150] sm:$0xf] }
  0x2d   : > { %2889 = vmatpush.bf16.msra.mxu2 %v2831_v14  ;;  %1171 = vmatpush.bf16.msra.mxu0 %v2831_v14  ;;  %v2753_v14 = vld [vmem:[%s3175_s7 + $0x94] sm:$0xf]  ;;  %v2780_v9 = vld [vmem:[%s3175_s7 + $0x164] sm:$0xf0]  ;;  %v2314_v11 = vld [vmem:[%s3175_s7 + $0x168] sm:$0xf0] }
  0x2e   : > { %2897 = vmatpush.bf16.msra.mxu3 %v2839_v15  ;;  %1260 = vmatpush.bf16.msra.mxu1 %v2839_v15  ;;  %v2218_v15 = vld [vmem:[%s3175_s7 + $0xa8] sm:$0xf0]  ;;  %v2777_v10 = vld [vmem:[%s3175_s7 + $0x154] sm:$0xf] }
  0x2f   : > { %v2221_v19 = vor.u32 %v2753_v14, %v2218_v15  ;;  %v2313_v14 = vor.u32 %v2780_v9, %v2312_v8  ;;  %v2317_v15 = vor.u32 %v2777_v10, %v2314_v11  ;;  %v2202_v8 = vld [vmem:[%s3175_s7 + $0x80] sm:$0xf0]  ;;  %v2208_v9 = vld [vmem:[%s3175_s7 + $0x70] sm:$0xf]  ;;  %v2752_v10 = vld [vmem:[%s3175_s7 + $0x84] sm:$0xf0] }
  0x30   : > { %1212 = vmatmul.bf16.vlgmr.msra.gmra.mxu2 %v2337_v26  ;;  %1172 = vmatmul.bf16.vlgmr.msra.gmra.mxu0 %v2145_v28  ;;  %v2807_v26 = vld [vmem:[%s3175_s7 + $0x244] sm:$0xf]  ;;  %v2240_v28 = vld [vmem:[%s3175_s7 + $0xc0] sm:$0xf] }
  0x31   : > { %1342 = vmatpush.bf16.msrb.mxu2 %v2854_v20  ;;  %1301 = vmatmul.bf16.vlgmr.msra.gmra.mxu3 %v2341_v27  ;;  %v2849_v20 = vld [vmem:[%s3814_s1 + $0x90] sm:$0xff]  ;;  %v2434_v27 = vld [vmem:[%s3175_s7 + $0x258] sm:$0xf0] }
  0x32   : > { %1431 = vmatpush.bf16.msrb.mxu3 %v2862_v23  ;;  %1609 = vmatpush.bf16.msrb.mxu1 %v2878_v29  ;;  %v2873_v23 = vld [vmem:[%s3814_s1 + $0x150] sm:$0xff]  ;;  %v2762_v29 = vld [vmem:[%s3175_s7 + $0xd4] sm:$0xf0] }
  0x33   : > { %1261 = vmatmul.bf16.vlgmr.msra.gmra.mxu1 %v2149_v30  ;;  %1520 = vmatpush.bf16.msrb.mxu0 %v2870_v31  ;;  %v2759_v30 = vld [vmem:[%s3175_s7 + $0xc4] sm:$0xf]  ;;  %v2242_v31 = vld [vmem:[%s3175_s7 + $0xd8] sm:$0xf0] }
  0x35   : > { %1343 = vmatpush.bf16.msrb.mxu2 %v2853_v32  ;;  %v2433_v32 = vor.u32 %v2810_v25, %v2432_v24 }
  0x36   : > { %1432 = vmatpush.bf16.msrb.mxu3 %v2861_v33  ;;  %1610 = vmatpush.bf16.msrb.mxu1 %v2877_v34  ;;  %v2437_v33 = vor.u32 %v2807_v26, %v2434_v27  ;;  %v2241_v34 = vor.u32 %v2762_v29, %v2240_v28  ;;  %v3354_v26 = vld [vmem:[%s3815_s2] ss:$0 sm:$0xff] }
  0x37   : > { %1521 = vmatpush.bf16.msrb.mxu0 %v2869_v35  ;;  %v2245_v35 = vor.u32 %v2759_v30, %v2242_v31 }
  0x39   : > { %1344 = vmatpush.bf16.msrb.mxu2 %v2852_v36  ;;  %v2848_v36 = vld [vmem:[%s3814_s1 + $0x88] sm:$0xff] }
  0x3a   : > { %1433 = vmatpush.bf16.msrb.mxu3 %v2860_v37  ;;  %1611 = vmatpush.bf16.msrb.mxu1 %v2876_v38  ;;  %v2856_v37 = vld [vmem:[%s3814_s1 + $0xc8] sm:$0xff] }
  0x3b   : > { %1522 = vmatpush.bf16.msrb.mxu0 %v2868_v39  ;;  %v2864_v38 = vld [vmem:[%s3814_s1 + $0x108] sm:$0xff] }
  0x3c   : > { %v2872_v39 = vld [vmem:[%s3814_s1 + $0x148] sm:$0xff] }
  0x3d   : > { %1345 = vmatpush.bf16.msrb.mxu2 %v2851_v52  ;;  %v2847_v52 = vld [vmem:[%s3814_s1 + $0x80] sm:$0xff] }
  0x3e   : > { %1434 = vmatpush.bf16.msrb.mxu3 %v2859_v53  ;;  %1612 = vmatpush.bf16.msrb.mxu1 %v2875_v55  ;;  %v2855_v53 = vld [vmem:[%s3814_s1 + $0xc0] sm:$0xff] }
  0x3f   : > { %1523 = vmatpush.bf16.msrb.mxu0 %v2867_v54  ;;  %v2863_v54 = vld [vmem:[%s3814_s1 + $0x100] sm:$0xff] }
  0x40   : > { %1217 = vmatmul.bf16.gmra.mxu2 %v2361_v48  ;;  %1177 = vmatmul.bf16.gmra.mxu0 %v2169_v50  ;;  %v2457_v48 = vor.u32 %v2816_v41, %v2456_v40  ;;  %v2265_v50 = vor.u32 %v2768_v45, %v2264_v44  ;;  %v2871_v55 = vld [vmem:[%s3814_s1 + $0x140] sm:$0xff]  ;;  %v2176_v40 = vld [vmem:[%s3175_s7 + $0x38] sm:$0xf]  ;;  %v2178_v44 = vld [vmem:[%s3175_s7 + $0x50] sm:$0xf0] }
  0x41   : > { %1306 = vmatmul.bf16.gmra.mxu3 %v2365_v49  ;;  %1346 = vmatpush.bf16.msrb.mxu2 %v2850_v4  ;;  %v2461_v49 = vor.u32 %v2813_v42, %v2458_v43  ;;  %v2504_v4 = vld [vmem:[%s3175_s7 + $0x2d0] sm:$0xf]  ;;  %v2742_v43 = vld [vmem:[%s3175_s7 + $0x3c] sm:$0xf]  ;;  %v2184_v45 = vld [vmem:[%s3175_s7 + $0x40] sm:$0xf] }
  0x42   : > { %1435 = vmatpush.bf16.msrb.mxu3 %v2858_v5  ;;  %1613 = vmatpush.bf16.msrb.mxu1 %v2874_v7  ;;  %v2828_v5 = vld [vmem:[%s3175_s7 + $0x2e4] sm:$0xf0]  ;;  %v2506_v7 = vld [vmem:[%s3175_s7 + $0x2e8] sm:$0xf0]  ;;  %v2745_v42 = vld [vmem:[%s3175_s7 + $0x4c] sm:$0xf0] }
  0x43   : > { %1266 = vmatmul.bf16.gmra.mxu1 %v2173_v51  ;;  %1524 = vmatpush.bf16.msrb.mxu0 %v2866_v6  ;;  %v2269_v51 = vor.u32 %v2765_v46, %v2266_v47  ;;  %v2825_v6 = vld [vmem:[%s3175_s7 + $0x2d4] sm:$0xf]  ;;  %v2505_v12 = vor.u32 %v2828_v5, %v2504_v4  ;;  %v2746_v46 = vld [vmem:[%s3175_s7 + $0x54] sm:$0xf0]  ;;  %v2200_v4 = vld [vmem:[%s3175_s7 + $0x68] sm:$0xf] }
  0x44   : > { %v2509_v13 = vor.u32 %v2825_v6, %v2506_v7  ;;  %v2751_v6 = vld [vmem:[%s3175_s7 + $0x7c] sm:$0xf0]  ;;  %v2748_v7 = vld [vmem:[%s3175_s7 + $0x6c] sm:$0xf] }
  0x45   : > { %1347 = vmatpush.bf16.msrb.mxu2 %v2849_v20  ;;  %v2160_v20 = vld [vmem:[%s3175_s7 + $0x10] sm:$0xf] }
  0x46   : > { %1436 = vmatpush.bf16.msrb.mxu3 %v2857_v21  ;;  %1614 = vmatpush.bf16.msrb.mxu1 %v2873_v23  ;;  %v2740_v21 = vld [vmem:[%s3175_s7 + $0x24] sm:$0xf0]  ;;  %v2162_v23 = vld [vmem:[%s3175_s7 + $0x28] sm:$0xf0] }
  0x47   : > { %1525 = vmatpush.bf16.msrb.mxu0 %v2865_v22  ;;  %v2737_v22 = vld [vmem:[%s3175_s7 + $0x14] sm:$0xf]  ;;  %v2161_v27 = vor.u32 %v2740_v21, %v2160_v20 }
  0x48   : > { %v2165_v29 = vor.u32 %v2737_v22, %v2162_v23 }
  0x49   : > { %1348 = vmatpush.bf16.msrb.mxu2 %v2848_v36 }
  0x4a   : > { %1437 = vmatpush.bf16.msrb.mxu3 %v2856_v37  ;;  %1615 = vmatpush.bf16.msrb.mxu1 %v2872_v39 }
  0x4b   : > { %1526 = vmatpush.bf16.msrb.mxu0 %v2864_v38 }
  0x4d   : > { %1349 = vmatpush.bf16.msrb.mxu2 %v2847_v52  ;;  %v2177_v52 = vor.u32 %v2745_v42, %v2176_v40  ;;  %v2232_v40 = vld [vmem:[%s3175_s7 + $0xa0] sm:$0xf]  ;;  %v2758_v42 = vld [vmem:[%s3175_s7 + $0xb4] sm:$0xf0] }
  0x4e   : > { %1438 = vmatpush.bf16.msrb.mxu3 %v2855_v53  ;;  %1616 = vmatpush.bf16.msrb.mxu1 %v2871_v55  ;;  %v2181_v53 = vor.u32 %v2742_v43, %v2178_v44 }
  0x4f   : > { %1527 = vmatpush.bf16.msrb.mxu0 %v2863_v54  ;;  %v2185_v54 = vor.u32 %v2746_v46, %v2184_v45  ;;  %v2755_v45 = vld [vmem:[%s3175_s7 + $0xa4] sm:$0xf]  ;;  %v2234_v46 = vld [vmem:[%s3175_s7 + $0xb8] sm:$0xf0] }
  0x50   : > { %1222 = vmatmul.bf16.gmra.mxu2 %v2385_v0  ;;  %1182 = vmatmul.bf16.gmra.mxu0 %v2193_v2  ;;  %v2481_v0 = vor.u32 %v2822_v57, %v2480_v56  ;;  %v2289_v2 = vor.u32 %v2774_v61, %v2288_v60 }
  0x51   : > { %1311 = vmatmul.bf16.gmra.mxu3 %v2389_v1  ;;  %v2485_v1 = vor.u32 %v2819_v58, %v2482_v59 }
  0x53   : > { %1271 = vmatmul.bf16.gmra.mxu1 %v2197_v3  ;;  %v2293_v3 = vor.u32 %v2771_v62, %v2290_v63 }
  0x60   : > { %1227 = vmatmul.bf16.gmra.mxu2 %v2409_v16  ;;  %1187 = vmatmul.bf16.gmra.mxu0 %v2217_v18  ;;  %v2152_v16 = vld [vmem:[%s3175_s7 + $0x8] sm:$0xf]  ;;  %v2736_v18 = vld [vmem:[%s3175_s7 + $0xc] sm:$0xf] }
  0x61   : > { %1316 = vmatmul.bf16.gmra.mxu3 %v2413_v17  ;;  %v2739_v17 = vld [vmem:[%s3175_s7 + $0x1c] sm:$0xf0] }
  0x62   : > { %v2153_v24 = vor.u32 %v2739_v17, %v2152_v16  ;;  %v2201_v16 = vor.u32 %v2751_v6, %v2200_v4  ;;  %v2205_v17 = vor.u32 %v2748_v7, %v2202_v8  ;;  %v2763_v6 = vld [vmem:[%s3175_s7 + $0xdc] sm:$0xf0]  ;;  %v2760_v7 = vld [vmem:[%s3175_s7 + $0xcc] sm:$0xf]  ;;  %v2250_v8 = vld [vmem:[%s3175_s7 + $0xe0] sm:$0xf0] }
  0x63   : > { %1276 = vmatmul.bf16.gmra.mxu1 %v2221_v19  ;;  %v2154_v19 = vld [vmem:[%s3175_s7 + $0x20] sm:$0xf0] }
  0x64   : > { %v2157_v25 = vor.u32 %v2736_v18, %v2154_v19  ;;  %v2209_v18 = vor.u32 %v2752_v10, %v2208_v9  ;;  %v2256_v9 = vld [vmem:[%s3175_s7 + $0xd0] sm:$0xf]  ;;  %v2764_v10 = vld [vmem:[%s3175_s7 + $0xe4] sm:$0xf0] }
  0x70   : > { %1232 = vmatmul.bf16.gmra.mxu2 %v2433_v32  ;;  %1192 = vmatmul.bf16.gmra.mxu0 %v2241_v34 }
  0x71   : > { %1321 = vmatmul.bf16.gmra.mxu3 %v2437_v33 }
  0x73   : > { %1281 = vmatmul.bf16.gmra.mxu1 %v2245_v35 }
  0x80   : > { %1237 = vmatmul.bf16.gmra.mxu2 %v2457_v48  ;;  %1197 = vmatmul.bf16.gmra.mxu0 %v2265_v50  ;;  %v2186_v50 = vld [vmem:[%s3175_s7 + $0x58] sm:$0xf0] }
  0x81   : > { %1326 = vmatmul.bf16.gmra.mxu3 %v2461_v49  ;;  %v2743_v49 = vld [vmem:[%s3175_s7 + $0x44] sm:$0xf] }
  0x82   : > { %v2189_v57 = vor.u32 %v2743_v49, %v2186_v50  ;;  %v2233_v50 = vor.u32 %v2758_v42, %v2232_v40  ;;  %v2769_v42 = vld [vmem:[%s3175_s7 + $0x10c] sm:$0xf0] }
  0x83   : > { %1286 = vmatmul.bf16.gmra.mxu1 %v2269_v51 }
  0x90   : > { %1242 = vmatmul.bf16.gmra.mxu2 %v2481_v0  ;;  %1202 = vmatmul.bf16.gmra.mxu0 %v2289_v2 }
  0x91   : > { %1331 = vmatmul.bf16.gmra.mxu3 %v2485_v1 }
  0x93   : > { %1291 = vmatmul.bf16.gmra.mxu1 %v2293_v3 }
  0xa0   : > { %1247 = vmatmul.bf16.gmra.mxu2 %v2505_v12  ;;  %1207 = vmatmul.bf16.gmra.mxu0 %v2313_v14  ;;  %v2210_v14 = vld [vmem:[%s3175_s7 + $0x88] sm:$0xf0] }
  0xa1   : > { %1336 = vmatmul.bf16.gmra.mxu3 %v2509_v13  ;;  %v2749_v13 = vld [vmem:[%s3175_s7 + $0x74] sm:$0xf] }
  0xa2   : > { %v2213_v21 = vor.u32 %v2749_v13, %v2210_v14  ;;  %v2761_v13 = vld [vmem:[%s3175_s7 + $0xd4] sm:$0xf]  ;;  %v2258_v14 = vld [vmem:[%s3175_s7 + $0xe8] sm:$0xf0] }
  0xa3   : > { %1296 = vmatmul.bf16.gmra.mxu1 %v2317_v15 }
  0xad   : > { %v1173_v28 = vpop.f32.mrf.mxu0 }
  0xae   : > { %v1174_v30 = vadd.f32 %v3354_v26, %v1173_v28 }
  0xb0   : > { %v1262_v31 = vpop.f32.mrf.mxu1  ;;  %1350 = vmatmul.bf16.vlgmr.msrb.gmra.mxu2 %v2153_v24  ;;  %1528 = vmatmul.bf16.vlgmr.msrb.gmra.mxu0 %v2161_v27 }
  0xb1   : > { %1439 = vmatmul.bf16.vlgmr.msrb.gmra.mxu3 %v2157_v25  ;;  %v3357_v32 = vadd.f32 %v1262_v31, %v1174_v30 }
  0xb3   : > { %1617 = vmatmul.bf16.vlgmr.msrb.gmra.mxu1 %v2165_v29  ;;  %v1213_v33 = vpop.f32.mrf.mxu2 }
  0xb4   : > { %v1302_v34 = vpop.f32.mrf.mxu3  ;;  %v1214_v35 = vadd.f32 %v3354_v26, %v1213_v33 }
  0xb5   : > { %v1175_v37 = vpop.f32.mrf.mxu0 }
  0xb6   : > { %v3360_v36 = vadd.f32 %v1302_v34, %v1214_v35  ;;  %v1176_v38 = vadd.f32 %v3354_v26, %v1175_v37  ;;  %v2224_v34 = vld [vmem:[%s3175_s7 + $0x98] sm:$0xf]  ;;  %v2757_v37 = vld [vmem:[%s3175_s7 + $0xac] sm:$0xf0] }
  0xb8   : > { %v1264_v39 = vpop.f32.mrf.mxu1 }
  0xb9   : > { %v3364_v41 = vadd.f32 %v1264_v39, %v1176_v38  ;;  %v2754_v38 = vld [vmem:[%s3175_s7 + $0x9c] sm:$0xf]  ;;  %v2226_v39 = vld [vmem:[%s3175_s7 + $0xb0] sm:$0xf0] }
  0xba   : > { %v2229_v49 = vor.u32 %v2754_v38, %v2226_v39  ;;  %v2272_v39 = vld [vmem:[%s3175_s7 + $0xf8] sm:$0xf] }
  0xbb   : > { %v1215_v47 = vpop.f32.mrf.mxu2 }
  0xbc   : > { %v1304_v48 = vpop.f32.mrf.mxu3  ;;  %v1216_v51 = vadd.f32 %v3354_v26, %v1215_v47 }
  0xbd   : > { %v1178_v56 = vpop.f32.mrf.mxu0 }
  0xbe   : > { %v3374_v55 = vadd.f32 %v1304_v48, %v1216_v51  ;;  %v1179_v58 = vadd.f32 %v3354_v26, %v1178_v56  ;;  %v2225_v48 = vor.u32 %v2757_v37, %v2224_v34 }
  0xc0   : > { %v1267_v59 = vpop.f32.mrf.mxu1  ;;  %1355 = vmatmul.bf16.gmra.mxu2 %v2177_v52  ;;  %1533 = vmatmul.bf16.gmra.mxu0 %v2185_v54 }
  0xc1   : > { %1444 = vmatmul.bf16.gmra.mxu3 %v2181_v53  ;;  %v3377_v60 = vadd.f32 %v1267_v59, %v1179_v58  ;;  %v2237_v53 = vor.u32 %v2755_v45, %v2234_v46  ;;  %v2280_v45 = vld [vmem:[%s3175_s7 + $0x100] sm:$0xf]  ;;  %v2770_v46 = vld [vmem:[%s3175_s7 + $0x114] sm:$0xf0] }
  0xc3   : > { %1622 = vmatmul.bf16.gmra.mxu1 %v2189_v57  ;;  %v1218_v61 = vpop.f32.mrf.mxu2 }
  0xc4   : > { %v1307_v62 = vpop.f32.mrf.mxu3  ;;  %v1219_v63 = vadd.f32 %v3354_v26, %v1218_v61 }
  0xc5   : > { %v1180_v1 = vpop.f32.mrf.mxu0 }
  0xc6   : > { %v3380_v0 = vadd.f32 %v1307_v62, %v1219_v63  ;;  %v1181_v2 = vadd.f32 %v3354_v26, %v1180_v1 }
  0xc8   : > { %v1269_v3 = vpop.f32.mrf.mxu1 }
  0xc9   : > { %v3384_v5 = vadd.f32 %v1269_v3, %v1181_v2  ;;  %v2248_v3 = vld [vmem:[%s3175_s7 + $0xc8] sm:$0xf] }
  0xcb   : > { %v1220_v11 = vpop.f32.mrf.mxu2 }
  0xcc   : > { %v1309_v12 = vpop.f32.mrf.mxu3  ;;  %v1221_v15 = vadd.f32 %v3354_v26, %v1220_v11 }
  0xcd   : > { %v1183_v20 = vpop.f32.mrf.mxu0 }
  0xce   : > { %v3394_v19 = vadd.f32 %v1309_v12, %v1221_v15  ;;  %v1184_v22 = vadd.f32 %v3354_v26, %v1183_v20 }
  0xd0   : > { %v1272_v23 = vpop.f32.mrf.mxu1  ;;  %1360 = vmatmul.bf16.gmra.mxu2 %v2201_v16  ;;  %1538 = vmatmul.bf16.gmra.mxu0 %v2209_v18  ;;  %v2249_v16 = vor.u32 %v2763_v6, %v2248_v3  ;;  %v2257_v18 = vor.u32 %v2764_v10, %v2256_v9 }
  0xd1   : > { %1449 = vmatmul.bf16.gmra.mxu3 %v2205_v17  ;;  %v3397_v24 = vadd.f32 %v1272_v23, %v1184_v22  ;;  %v2253_v17 = vor.u32 %v2760_v7, %v2250_v8  ;;  %v2261_v22 = vor.u32 %v2761_v13, %v2258_v14  ;;  %v2775_v14 = vld [vmem:[%s3175_s7 + $0x13c] sm:$0xf0] }
  0xd3   : > { %1627 = vmatmul.bf16.gmra.mxu1 %v2213_v21  ;;  %v1223_v25 = vpop.f32.mrf.mxu2 }
  0xd4   : > { %v1312_v27 = vpop.f32.mrf.mxu3  ;;  %v1224_v28 = vadd.f32 %v3354_v26, %v1223_v25 }
  0xd5   : > { %v1185_v30 = vpop.f32.mrf.mxu0 }
  0xd6   : > { %v3400_v29 = vadd.f32 %v1312_v27, %v1224_v28  ;;  %v1186_v31 = vadd.f32 %v3354_v26, %v1185_v30 }
  0xd8   : > { %v1274_v33 = vpop.f32.mrf.mxu1 }
  0xd9   : > { %v3404_v35 = vadd.f32 %v1274_v33, %v1186_v31 }
  0xdb   : > { %v1225_v43 = vpop.f32.mrf.mxu2 }
  0xdc   : > { %v1314_v44 = vpop.f32.mrf.mxu3  ;;  %v1226_v47 = vadd.f32 %v3354_v26, %v1225_v43  ;;  %v2766_v43 = vld [vmem:[%s3175_s7 + $0xfc] sm:$0xf] }
  0xdd   : > { %v1188_v52 = vpop.f32.mrf.mxu0 }
  0xde   : > { %v3414_v51 = vadd.f32 %v1314_v44, %v1226_v47  ;;  %v1189_v54 = vadd.f32 %v3354_v26, %v1188_v52  ;;  %v2274_v44 = vld [vmem:[%s3175_s7 + $0x110] sm:$0xf0] }
  0xe0   : > { %v1277_v56 = vpop.f32.mrf.mxu1  ;;  %1365 = vmatmul.bf16.gmra.mxu2 %v2225_v48  ;;  %1543 = vmatmul.bf16.gmra.mxu0 %v2233_v50  ;;  %v2282_v50 = vld [vmem:[%s3175_s7 + $0x118] sm:$0xf0] }
  0xe1   : > { %1454 = vmatmul.bf16.gmra.mxu3 %v2229_v49  ;;  %v3417_v57 = vadd.f32 %v1277_v56, %v1189_v54  ;;  %v2767_v49 = vld [vmem:[%s3175_s7 + $0x104] sm:$0xf]  ;;  %v2277_v54 = vor.u32 %v2766_v43, %v2274_v44  ;;  %v2281_v56 = vor.u32 %v2770_v46, %v2280_v45 }
  0xe3   : > { %1632 = vmatmul.bf16.gmra.mxu1 %v2237_v53  ;;  %v1228_v58 = vpop.f32.mrf.mxu2  ;;  %v2273_v53 = vor.u32 %v2769_v42, %v2272_v39 }
  0xe4   : > { %v1317_v59 = vpop.f32.mrf.mxu3  ;;  %v1229_v61 = vadd.f32 %v3354_v26, %v1228_v58 }
  0xe5   : > { %v1190_v63 = vpop.f32.mrf.mxu0 }
  0xe6   : > { %v3420_v62 = vadd.f32 %v1317_v59, %v1229_v61  ;;  %v1191_v1 = vadd.f32 %v3354_v26, %v1190_v63  ;;  %v2285_v61 = vor.u32 %v2767_v49, %v2282_v50 }
  0xe8   : > { %v1279_v2 = vpop.f32.mrf.mxu1 }
  0xe9   : > { %v3424_v4 = vadd.f32 %v1279_v2, %v1191_v1 }
  0xeb   : > { %v1230_v11 = vpop.f32.mrf.mxu2 }
  0xec   : > { %v1319_v12 = vpop.f32.mrf.mxu3  ;;  %v1231_v15 = vadd.f32 %v3354_v26, %v1230_v11 }
  0xed   : > { %v1193_v21 = vpop.f32.mrf.mxu0 }
  0xee   : > { %v3434_v20 = vadd.f32 %v1319_v12, %v1231_v15  ;;  %v1194_v23 = vadd.f32 %v3354_v26, %v1193_v21  ;;  %v2296_v12 = vld [vmem:[%s3175_s7 + $0x128] sm:$0xf]  ;;  %v2772_v15 = vld [vmem:[%s3175_s7 + $0x12c] sm:$0xf] }
  0xf0   : > { %v1282_v25 = vpop.f32.mrf.mxu1  ;;  %1370 = vmatmul.bf16.gmra.mxu2 %v2249_v16  ;;  %1548 = vmatmul.bf16.gmra.mxu0 %v2257_v18  ;;  %v2298_v16 = vld [vmem:[%s3175_s7 + $0x140] sm:$0xf0]  ;;  %v2776_v18 = vld [vmem:[%s3175_s7 + $0x144] sm:$0xf0] }
  0xf1   : > { %1459 = vmatmul.bf16.gmra.mxu3 %v2253_v17  ;;  %v3437_v27 = vadd.f32 %v1282_v25, %v1194_v23  ;;  %v2304_v17 = vld [vmem:[%s3175_s7 + $0x130] sm:$0xf]  ;;  %v2773_v23 = vld [vmem:[%s3175_s7 + $0x134] sm:$0xf]  ;;  %v2306_v25 = vld [vmem:[%s3175_s7 + $0x148] sm:$0xf0] }
  0xf2   : > { %v2309_v39 = vor.u32 %v2773_v23, %v2306_v25 }
  0xf3   : > { %1637 = vmatmul.bf16.gmra.mxu1 %v2261_v22  ;;  %v1233_v28 = vpop.f32.mrf.mxu2 }
  0xf4   : > { %v1322_v30 = vpop.f32.mrf.mxu3  ;;  %v1234_v31 = vadd.f32 %v3354_v26, %v1233_v28 }
  0xf5   : > { %v1195_v34 = vpop.f32.mrf.mxu0 }
  0xf6   : > { %v3440_v33 = vadd.f32 %v1322_v30, %v1234_v31  ;;  %v1196_v37 = vadd.f32 %v3354_v26, %v1195_v34  ;;  %v2297_v30 = vor.u32 %v2775_v14, %v2296_v12  ;;  %v2301_v31 = vor.u32 %v2772_v15, %v2298_v16 }
  0xf7   : > { %v2305_v34 = vor.u32 %v2776_v18, %v2304_v17 }
  0xf8   : > { %v1284_v38 = vpop.f32.mrf.mxu1 }
  0xf9   : > { %v3444_v40 = vadd.f32 %v1284_v38, %v1196_v37 }
  0xfb   : > { %v1235_v47 = vpop.f32.mrf.mxu2 }
  0xfc   : > { %v1324_v48 = vpop.f32.mrf.mxu3  ;;  %v1236_v52 = vadd.f32 %v3354_v26, %v1235_v47 }
  0xfd   : > { %v1198_v59 = vpop.f32.mrf.mxu0 }
  0xfe   : > { %v3454_v58 = vadd.f32 %v1324_v48, %v1236_v52  ;;  %v1199_v63 = vadd.f32 %v3354_v26, %v1198_v59  ;;  %v2778_v59 = vld [vmem:[%s3175_s7 + $0x15c] sm:$0xf] }
 0x100   : > { %v1287_v1 = vpop.f32.mrf.mxu1  ;;  %1375 = vmatmul.bf16.gmra.mxu2 %v2273_v53  ;;  %1553 = vmatmul.bf16.gmra.mxu0 %v2281_v56  ;;  %v2320_v53 = vld [vmem:[%s3175_s7 + $0x158] sm:$0xf]  ;;  %v2781_v56 = vld [vmem:[%s3175_s7 + $0x16c] sm:$0xf0] }
 0x101   : > { %1464 = vmatmul.bf16.gmra.mxu3 %v2277_v54  ;;  %v3457_v2 = vadd.f32 %v1287_v1, %v1199_v63  ;;  %v2328_v63 = vld [vmem:[%s3175_s7 + $0x160] sm:$0xf]  ;;  %v2782_v1 = vld [vmem:[%s3175_s7 + $0x174] sm:$0xf0] }
 0x102   : > { %v2329_v14 = vor.u32 %v2782_v1, %v2328_v63 }
 0x103   : > { %1642 = vmatmul.bf16.gmra.mxu1 %v2285_v61  ;;  %v1238_v3 = vpop.f32.mrf.mxu2  ;;  %v2322_v61 = vld [vmem:[%s3175_s7 + $0x170] sm:$0xf0] }
 0x104   : > { %v1327_v6 = vpop.f32.mrf.mxu3  ;;  %v1239_v7 = vadd.f32 %v3354_v26, %v1238_v3  ;;  %v2325_v12 = vor.u32 %v2778_v59, %v2322_v61 }
 0x105   : > { %v1200_v9 = vpop.f32.mrf.mxu0 }
 0x106   : > { %v3460_v8 = vadd.f32 %v1327_v6, %v1239_v7  ;;  %v1201_v10 = vadd.f32 %v3354_v26, %v1200_v9  ;;  %v2779_v7 = vld [vmem:[%s3175_s7 + $0x164] sm:$0xf]  ;;  %v2330_v9 = vld [vmem:[%s3175_s7 + $0x178] sm:$0xf0] }
 0x107   : > { %v2333_v17 = vor.u32 %v2779_v7, %v2330_v9 }
 0x108   : > { %v1289_v11 = vpop.f32.mrf.mxu1 }
 0x109   : > { %v3464_v13 = vadd.f32 %v1289_v11, %v1201_v10  ;;  %v2321_v11 = vor.u32 %v2781_v56, %v2320_v53  ;;  %v2785_v53 = vld [vmem:[%s3175_s7 + $0x194] sm:$0xf]  ;;  %v2354_v56 = vld [vmem:[%s3175_s7 + $0x1a8] sm:$0xf0] }
 0x10a   : > { %v2357_v7 = vor.u32 %v2785_v53, %v2354_v56 }
 0x10b   : > { %v1240_v21 = vpop.f32.mrf.mxu2 }
 0x10c   : > { %v1329_v22 = vpop.f32.mrf.mxu3  ;;  %v1241_v28 = vadd.f32 %v3354_v26, %v1240_v21 }
 0x10d   : > { %v1203_v38 = vpop.f32.mrf.mxu0 }
 0x10e   : > { %v3474_v37 = vadd.f32 %v1329_v22, %v1241_v28  ;;  %v1204_v42 = vadd.f32 %v3354_v26, %v1203_v38 }
 0x110   : > { %v1292_v43 = vpop.f32.mrf.mxu1  ;;  %1380 = vmatmul.bf16.gmra.mxu2 %v2297_v30  ;;  %1558 = vmatmul.bf16.gmra.mxu0 %v2305_v34 }
 0x111   : > { %1469 = vmatmul.bf16.gmra.mxu3 %v2301_v31  ;;  %v3477_v44 = vadd.f32 %v1292_v43, %v1204_v42  ;;  %v2787_v43 = vld [vmem:[%s3175_s7 + $0x19c] sm:$0xf0] }
 0x113   : > { %1647 = vmatmul.bf16.gmra.mxu1 %v2309_v39  ;;  %v1243_v45 = vpop.f32.mrf.mxu2  ;;  %v2344_v39 = vld [vmem:[%s3175_s7 + $0x188] sm:$0xf] }
 0x114   : > { %v1332_v46 = vpop.f32.mrf.mxu3  ;;  %v1244_v47 = vadd.f32 %v3354_v26, %v1243_v45  ;;  %v2784_v45 = vld [vmem:[%s3175_s7 + $0x18c] sm:$0xf]  ;;  %v2345_v61 = vor.u32 %v2787_v43, %v2344_v39  ;;  %v2791_v43 = vld [vmem:[%s3175_s7 + $0x1c4] sm:$0xf] }
 0x115   : > { %v1205_v49 = vpop.f32.mrf.mxu0 }
 0x116   : > { %v3480_v48 = vadd.f32 %v1332_v46, %v1244_v47  ;;  %v1206_v50 = vadd.f32 %v3354_v26, %v1205_v49  ;;  %v2346_v46 = vld [vmem:[%s3175_s7 + $0x1a0] sm:$0xf0]  ;;  %v2352_v47 = vld [vmem:[%s3175_s7 + $0x190] sm:$0xf]  ;;  %v2788_v49 = vld [vmem:[%s3175_s7 + $0x1a4] sm:$0xf0] }
 0x117   : > { %v2349_v63 = vor.u32 %v2784_v45, %v2346_v46  ;;  %v2353_v1 = vor.u32 %v2788_v49, %v2352_v47  ;;  %v2378_v45 = vld [vmem:[%s3175_s7 + $0x1d8] sm:$0xf0] }
 0x118   : > { %v1294_v52 = vpop.f32.mrf.mxu1 }
 0x119   : > { %v3484_v54 = vadd.f32 %v1294_v52, %v1206_v50 }
 0x11b   : > { %v1245_v3 = vpop.f32.mrf.mxu2 }
 0x11c   : > { %v1334_v6 = vpop.f32.mrf.mxu3  ;;  %v1246_v10 = vadd.f32 %v3354_v26, %v1245_v3 }
 0x11d   : > { %v1208_v16 = vpop.f32.mrf.mxu0 }
 0x11e   : > { %v3494_v15 = vadd.f32 %v1334_v6, %v1246_v10  ;;  %v1209_v18 = vadd.f32 %v3354_v26, %v1208_v16 }
 0x120   : > { %v1297_v21 = vpop.f32.mrf.mxu1  ;;  %1385 = vmatmul.bf16.gmra.mxu2 %v2321_v11  ;;  %1563 = vmatmul.bf16.gmra.mxu0 %v2329_v14 }
 0x121   : > { %1474 = vmatmul.bf16.gmra.mxu3 %v2325_v12  ;;  %v3497_v22 = vadd.f32 %v1297_v21, %v1209_v18  ;;  %v2368_v18 = vld [vmem:[%s3175_s7 + $0x1b8] sm:$0xf]  ;;  %v2793_v21 = vld [vmem:[%s3175_s7 + $0x1cc] sm:$0xf0] }
 0x122   : > { %v2369_v47 = vor.u32 %v2793_v21, %v2368_v18  ;;  %v2799_v18 = vld [vmem:[%s3175_s7 + $0x1fc] sm:$0xf0]  ;;  %v2394_v21 = vld [vmem:[%s3175_s7 + $0x200] sm:$0xf0] }
 0x123   : > { %1652 = vmatmul.bf16.gmra.mxu1 %v2333_v17  ;;  %v1248_v23 = vpop.f32.mrf.mxu2 }
 0x124   : > { %v1337_v25 = vpop.f32.mrf.mxu3  ;;  %v1249_v28 = vadd.f32 %v3354_v26, %v1248_v23  ;;  %v2790_v23 = vld [vmem:[%s3175_s7 + $0x1bc] sm:$0xf] }
 0x125   : > { %v1210_v31 = vpop.f32.mrf.mxu0 }
 0x126   : > { %v3500_v30 = vadd.f32 %v1337_v25, %v1249_v28  ;;  %v1211_v34 = vadd.f32 %v3354_v26, %v1210_v31  ;;  %v2370_v25 = vld [vmem:[%s3175_s7 + $0x1d0] sm:$0xf0]  ;;  %v2376_v31 = vld [vmem:[%s3175_s7 + $0x1c0] sm:$0xf] }
 0x127   : > { %v2373_v49 = vor.u32 %v2790_v23, %v2370_v25  ;;  %v2400_v25 = vld [vmem:[%s3175_s7 + $0x1f0] sm:$0xf] }
 0x128   : > { %v1299_v38 = vpop.f32.mrf.mxu1 }
 0x129   : > { %v3504_v42 = vadd.f32 %v1299_v38, %v1211_v34  ;;  %v2794_v34 = vld [vmem:[%s3175_s7 + $0x1d4] sm:$0xf0] }
 0x12b   : > { %v1250_v50 = vpop.f32.mrf.mxu2 }
 0x12c   : > { %v1339_v52 = vpop.f32.mrf.mxu3  ;;  %v1251_v59 = vadd.f32 %v3354_v26, %v1250_v50  ;;  %v2377_v50 = vor.u32 %v2794_v34, %v2376_v31 }
 0x12d   : > { %v1529_v6 = vpop.f32.mrf.mxu0 }
 0x12e   : > { %v3514_v3 = vadd.f32 %v1339_v52, %v1251_v59  ;;  %v2381_v59 = vor.u32 %v2791_v43, %v2378_v45 }
 0x130   : > { %v1618_v9 = vpop.f32.mrf.mxu1  ;;  %1390 = vmatmul.bf16.gmra.mxu2 %v2345_v61  ;;  %1568 = vmatmul.bf16.gmra.mxu0 %v2353_v1 }
 0x131   : > { %1479 = vmatmul.bf16.gmra.mxu3 %v2349_v63 }
 0x133   : > { %1657 = vmatmul.bf16.gmra.mxu1 %v2357_v7  ;;  %v1351_v26 = vpop.f32.mrf.mxu2 }
 0x134   : > { %v1440_v10 = vpop.f32.mrf.mxu3  ;;  %v1352_v11 = vadd.f32 %v1351_v26, %v3357_v32 }
 0x135   : > { %v1531_v14 = vpop.f32.mrf.mxu0 }
 0x136   : > { %v1441_v12 = vadd.f32 %v1440_v10, %v1352_v11 }
 0x138   : > { %v1620_v16 = vpop.f32.mrf.mxu1  ;;  %v1530_v17 = vadd.f32 %v1529_v6, %v1441_v12 }
 0x13a   : > { %v1619_v28 = vadd.f32 %v1618_v9, %v1530_v17  ;;  %v2392_v17 = vld [vmem:[%s3175_s7 + $0x1e8] sm:$0xf] }
 0x13b   : > { %v1353_v38 = vpop.f32.mrf.mxu2  ;;  %v2393_v45 = vor.u32 %v2799_v18, %v2392_v17  ;;  %v2424_v18 = vld [vmem:[%s3175_s7 + $0x220] sm:$0xf] }
 0x13c   : > { %v1442_v39 = vpop.f32.mrf.mxu3  ;;  %v1698_v32 = vmax.f32 %v1619_v28, 0.0  ;;  %v1354_v46 = vadd.f32 %v1353_v38, %v3364_v41  ;;  %v2800_v28 = vld [vmem:[%s3175_s7 + $0x204] sm:$0xf0]  ;;  %v2402_v38 = vld [vmem:[%s3175_s7 + $0x208] sm:$0xf0] }
 0x13d   : > { %v1534_v56 = vpop.f32.mrf.mxu0 }
 0x13e   : > { %v1730_v52 = vpack.c.bf16 %v1698_v32, %v1698_v32  ;;  %v1443_v53 = vadd.f32 %v1442_v39, %v1354_v46  ;;  %v2401_v46 = vor.u32 %v2800_v28, %v2400_v25  ;;  %v2426_v25 = vld [vmem:[%s3175_s7 + $0x238] sm:$0xf0] }
 0x140   : > { %v1623_v61 = vpop.f32.mrf.mxu1  ;;  %1763 = vst.msk [vmem:[%s3527_s12] sm:$0xf] %vm1762_vm0, %v1730_v52  ;;  %v1532_v63 = vadd.f32 %v1531_v14, %v1443_v53  ;;  %1395 = vmatmul.bf16.gmra.mxu2 %v2369_v47  ;;  %1573 = vmatmul.bf16.gmra.mxu0 %v2377_v50 }
 0x141   : > { %1484 = vmatmul.bf16.gmra.mxu3 %v2373_v49 }
 0x142   : > { %v1621_v41 = vadd.f32 %v1620_v16, %v1532_v63  ;;  %v2796_v16 = vld [vmem:[%s3175_s7 + $0x1ec] sm:$0xf] }
 0x143   : > { %1662 = vmatmul.bf16.gmra.mxu1 %v2381_v59  ;;  %v1356_v1 = vpop.f32.mrf.mxu2  ;;  %v2397_v32 = vor.u32 %v2796_v16, %v2394_v21  ;;  %v2806_v16 = vld [vmem:[%s3175_s7 + $0x234] sm:$0xf0] }
 0x144   : > { %v1445_v6 = vpop.f32.mrf.mxu3  ;;  %v1699_v7 = vmax.f32 %v1621_v41, 0.0  ;;  %v1357_v9 = vadd.f32 %v1356_v1, %v3377_v60  ;;  %v2797_v60 = vld [vmem:[%s3175_s7 + $0x1f4] sm:$0xf] }
 0x145   : > { %v1536_v11 = vpop.f32.mrf.mxu0  ;;  %v2405_v52 = vor.u32 %v2797_v60, %v2402_v38  ;;  %v2425_v38 = vor.u32 %v2806_v16, %v2424_v18 }
 0x146   : > { %v1731_v26 = vpack.c.bf16 %v1699_v7, %v1699_v7  ;;  %v1446_v10 = vadd.f32 %v1445_v6, %v1357_v9 }
 0x148   : > { %v1625_v12 = vpop.f32.mrf.mxu1  ;;  %1764 = vst.msk [vmem:[%s3527_s12 + $0x4] sm:$0xf] %vm1762_vm0, %v1731_v26  ;;  %v1535_v14 = vadd.f32 %v1534_v56, %v1446_v10  ;;  %v2416_v10 = vld [vmem:[%s3175_s7 + $0x218] sm:$0xf] }
 0x14a   : > { %v1624_v23 = vadd.f32 %v1623_v61, %v1535_v14  ;;  %v2418_v14 = vld [vmem:[%s3175_s7 + $0x230] sm:$0xf0] }
 0x14b   : > { %v1358_v31 = vpop.f32.mrf.mxu2 }
 0x14c   : > { %v1447_v34 = vpop.f32.mrf.mxu3  ;;  %v1700_v39 = vmax.f32 %v1624_v23, 0.0  ;;  %v1359_v43 = vadd.f32 %v1358_v31, %v3384_v5 }
 0x14d   : > { %v1539_v50 = vpop.f32.mrf.mxu0 }
 0x14e   : > { %v1732_v47 = vpack.c.bf16 %v1700_v39, %v1700_v39  ;;  %v1448_v49 = vadd.f32 %v1447_v34, %v1359_v43 }
 0x150   : > { %v1628_v53 = vpop.f32.mrf.mxu1  ;;  %1765 = vst.msk [vmem:[%s3527_s12 + $0x8] sm:$0xf] %vm1762_vm0, %v1732_v47  ;;  %v1537_v56 = vadd.f32 %v1536_v11, %v1448_v49  ;;  %1400 = vmatmul.bf16.gmra.mxu2 %v2393_v45  ;;  %1578 = vmatmul.bf16.gmra.mxu0 %v2401_v46  ;;  %v2805_v11 = vld [vmem:[%s3175_s7 + $0x22c] sm:$0xf0] }
 0x151   : > { %1489 = vmatmul.bf16.gmra.mxu3 %v2397_v32  ;;  %v2417_v34 = vor.u32 %v2805_v11, %v2416_v10  ;;  %v2812_v10 = vld [vmem:[%s3175_s7 + $0x264] sm:$0xf0] }
 0x152   : > { %v1626_v5 = vadd.f32 %v1625_v12, %v1537_v56  ;;  %v2802_v12 = vld [vmem:[%s3175_s7 + $0x21c] sm:$0xf] }
 0x153   : > { %1667 = vmatmul.bf16.gmra.mxu1 %v2405_v52  ;;  %v1361_v59 = vpop.f32.mrf.mxu2  ;;  %v2421_v60 = vor.u32 %v2802_v12, %v2418_v14  ;;  %v2450_v14 = vld [vmem:[%s3175_s7 + $0x268] sm:$0xf0] }
 0x154   : > { %v1450_v61 = vpop.f32.mrf.mxu3  ;;  %v1701_v63 = vmax.f32 %v1626_v5, 0.0  ;;  %v1362_v41 = vadd.f32 %v1361_v59, %v3397_v24  ;;  %v2803_v24 = vld [vmem:[%s3175_s7 + $0x224] sm:$0xf] }
 0x155   : > { %v1541_v7 = vpop.f32.mrf.mxu0  ;;  %v2429_v32 = vor.u32 %v2803_v24, %v2426_v25 }
 0x156   : > { %v1733_v1 = vpack.c.bf16 %v1701_v63, %v1701_v63  ;;  %v1451_v6 = vadd.f32 %v1450_v61, %v1362_v41  ;;  %v2440_v41 = vld [vmem:[%s3175_s7 + $0x248] sm:$0xf] }
 0x158   : > { %v1630_v9 = vpop.f32.mrf.mxu1  ;;  %1766 = vst.msk [vmem:[%s3527_s12 + $0xc] sm:$0xf] %vm1762_vm0, %v1733_v1  ;;  %v1540_v26 = vadd.f32 %v1539_v50, %v1451_v6  ;;  %v2811_v1 = vld [vmem:[%s3175_s7 + $0x25c] sm:$0xf0]  ;;  %v2808_v6 = vld [vmem:[%s3175_s7 + $0x24c] sm:$0xf] }
 0x159   : > { %v2441_v16 = vor.u32 %v2811_v1, %v2440_v41  ;;  %v2474_v1 = vld [vmem:[%s3175_s7 + $0x298] sm:$0xf0] }
 0x15a   : > { %v1629_v17 = vadd.f32 %v1628_v53, %v1540_v26  ;;  %v2448_v26 = vld [vmem:[%s3175_s7 + $0x250] sm:$0xf] }
 0x15b   : > { %v1363_v21 = vpop.f32.mrf.mxu2 }
 0x15c   : > { %v1452_v23 = vpop.f32.mrf.mxu3  ;;  %v1702_v28 = vmax.f32 %v1629_v17, 0.0  ;;  %v1364_v31 = vadd.f32 %v1363_v21, %v3404_v35 }
 0x15d   : > { %v1544_v45 = vpop.f32.mrf.mxu0 }
 0x15e   : > { %v1734_v39 = vpack.c.bf16 %v1702_v28, %v1702_v28  ;;  %v1453_v43 = vadd.f32 %v1452_v23, %v1364_v31  ;;  %v2449_v23 = vor.u32 %v2812_v10, %v2448_v26 }
 0x160   : > { %v1633_v46 = vpop.f32.mrf.mxu1  ;;  %1767 = vst.msk [vmem:[%s3527_s12 + $0x10] sm:$0xf] %vm1762_vm0, %v1734_v39  ;;  %v1542_v47 = vadd.f32 %v1541_v7, %v1453_v43  ;;  %1405 = vmatmul.bf16.gmra.mxu2 %v2417_v34  ;;  %1583 = vmatmul.bf16.gmra.mxu0 %v2425_v38  ;;  %v2442_v7 = vld [vmem:[%s3175_s7 + $0x260] sm:$0xf0] }
 0x161   : > { %1494 = vmatmul.bf16.gmra.mxu3 %v2421_v60  ;;  %v2445_v21 = vor.u32 %v2808_v6, %v2442_v7 }
 0x162   : > { %v1631_v35 = vadd.f32 %v1630_v9, %v1542_v47 }
 0x163   : > { %1672 = vmatmul.bf16.gmra.mxu1 %v2429_v32  ;;  %v1366_v49 = vpop.f32.mrf.mxu2 }
 0x164   : > { %v1455_v50 = vpop.f32.mrf.mxu3  ;;  %v1703_v52 = vmax.f32 %v1631_v35, 0.0  ;;  %v1367_v53 = vadd.f32 %v1366_v49, %v3417_v57  ;;  %v2809_v57 = vld [vmem:[%s3175_s7 + $0x254] sm:$0xf] }
 0x165   : > { %v1546_v59 = vpop.f32.mrf.mxu0  ;;  %v2453_v31 = vor.u32 %v2809_v57, %v2450_v14 }
 0x166   : > { %v1735_v56 = vpack.c.bf16 %v1703_v52, %v1703_v52  ;;  %v1456_v5 = vadd.f32 %v1455_v50, %v1367_v53  ;;  %v2464_v50 = vld [vmem:[%s3175_s7 + $0x278] sm:$0xf]  ;;  %v2817_v52 = vld [vmem:[%s3175_s7 + $0x28c] sm:$0xf0]  ;;  %v2814_v53 = vld [vmem:[%s3175_s7 + $0x27c] sm:$0xf] }
 0x168   : > { %v1635_v61 = vpop.f32.mrf.mxu1  ;;  %1768 = vst.msk [vmem:[%s3527_s12 + $0x14] sm:$0xf] %vm1762_vm0, %v1735_v56  ;;  %v1545_v63 = vadd.f32 %v1544_v45, %v1456_v5  ;;  %v2466_v56 = vld [vmem:[%s3175_s7 + $0x290] sm:$0xf0] }
 0x169   : > { %v2469_v26 = vor.u32 %v2814_v53, %v2466_v56 }
 0x16a   : > { %v1634_v9 = vadd.f32 %v1633_v46, %v1545_v63 }
 0x16b   : > { %v1368_v11 = vpop.f32.mrf.mxu2 }
 0x16c   : > { %v1457_v12 = vpop.f32.mrf.mxu3  ;;  %v1704_v17 = vmax.f32 %v1634_v9, 0.0  ;;  %v1369_v18 = vadd.f32 %v1368_v11, %v3424_v4  ;;  %v2465_v9 = vor.u32 %v2817_v52, %v2464_v50 }
 0x16d   : > { %v1549_v28 = vpop.f32.mrf.mxu0 }
 0x16e   : > { %v1736_v24 = vpack.c.bf16 %v1704_v17, %v1704_v17  ;;  %v1458_v25 = vadd.f32 %v1457_v12, %v1369_v18 }
 0x170   : > { %v1638_v34 = vpop.f32.mrf.mxu1  ;;  %1769 = vst.msk [vmem:[%s3527_s12 + $0x18] sm:$0xf] %vm1762_vm0, %v1736_v24  ;;  %v1547_v60 = vadd.f32 %v1546_v59, %v1458_v25  ;;  %1410 = vmatmul.bf16.gmra.mxu2 %v2441_v16  ;;  %1588 = vmatmul.bf16.gmra.mxu0 %v2449_v23  ;;  %v2472_v59 = vld [vmem:[%s3175_s7 + $0x280] sm:$0xf] }
 0x171   : > { %1499 = vmatmul.bf16.gmra.mxu3 %v2445_v21 }
 0x172   : > { %v1636_v4 = vadd.f32 %v1635_v61, %v1547_v60  ;;  %v2818_v61 = vld [vmem:[%s3175_s7 + $0x294] sm:$0xf0] }
 0x173   : > { %1677 = vmatmul.bf16.gmra.mxu1 %v2453_v31  ;;  %v1371_v38 = vpop.f32.mrf.mxu2  ;;  %v2473_v10 = vor.u32 %v2818_v61, %v2472_v59 }
 0x174   : > { %v1460_v39 = vpop.f32.mrf.mxu3  ;;  %v1705_v43 = vmax.f32 %v1636_v4, 0.0  ;;  %v1372_v45 = vadd.f32 %v1371_v38, %v3437_v27  ;;  %v2815_v27 = vld [vmem:[%s3175_s7 + $0x284] sm:$0xf]  ;;  %v2488_v4 = vld [vmem:[%s3175_s7 + $0x2a8] sm:$0xf] }
 0x175   : > { %v1551_v47 = vpop.f32.mrf.mxu0  ;;  %v2477_v14 = vor.u32 %v2815_v27, %v2474_v1  ;;  %v2823_v38 = vld [vmem:[%s3175_s7 + $0x2bc] sm:$0xf0] }
 0x176   : > { %v1737_v32 = vpack.c.bf16 %v1705_v43, %v1705_v43  ;;  %v1461_v46 = vadd.f32 %v1460_v39, %v1372_v45  ;;  %v2820_v39 = vld [vmem:[%s3175_s7 + $0x2ac] sm:$0xf]  ;;  %v2490_v43 = vld [vmem:[%s3175_s7 + $0x2c0] sm:$0xf0]  ;;  %v2489_v53 = vor.u32 %v2823_v38, %v2488_v4 }
 0x177   : > { %v2493_v56 = vor.u32 %v2820_v39, %v2490_v43 }
 0x178   : > { %v1640_v35 = vpop.f32.mrf.mxu1  ;;  %1770 = vst.msk [vmem:[%s3527_s12 + $0x1c] sm:$0xf] %vm1762_vm0, %v1737_v32  ;;  %v1550_v49 = vadd.f32 %v1549_v28, %v1461_v46  ;;  %v2496_v32 = vld [vmem:[%s3175_s7 + $0x2b0] sm:$0xf]  ;;  %v2824_v46 = vld [vmem:[%s3175_s7 + $0x2c4] sm:$0xf0] }
 0x17a   : > { %v1639_v5 = vadd.f32 %v1638_v34, %v1550_v49  ;;  %v2498_v49 = vld [vmem:[%s3175_s7 + $0x2c8] sm:$0xf0] }
 0x17b   : > { %v1373_v63 = vpop.f32.mrf.mxu2 }
 0x17c   : > { %v1462_v41 = vpop.f32.mrf.mxu3  ;;  %v1706_v6 = vmax.f32 %v1639_v5, 0.0  ;;  %v1374_v7 = vadd.f32 %v1373_v63, %v3444_v40  ;;  %v2497_v5 = vor.u32 %v2824_v46, %v2496_v32 }
 0x17d   : > { %v1554_v57 = vpop.f32.mrf.mxu0 }
 0x17e   : > { %v1738_v11 = vpack.c.bf16 %v1706_v6, %v1706_v6  ;;  %v1463_v12 = vadd.f32 %v1462_v41, %v1374_v7 }
 0x180   : > { %v1643_v17 = vpop.f32.mrf.mxu1  ;;  %1771 = vst.msk [vmem:[%s3527_s12 + $0x20] sm:$0xf] %vm1762_vm0, %v1738_v11  ;;  %v1552_v18 = vadd.f32 %v1551_v47, %v1463_v12  ;;  %1415 = vmatmul.bf16.gmra.mxu2 %v2465_v9  ;;  %1593 = vmatmul.bf16.gmra.mxu0 %v2473_v10 }
 0x181   : > { %1504 = vmatmul.bf16.gmra.mxu3 %v2469_v26 }
 0x182   : > { %v1641_v40 = vadd.f32 %v1640_v35, %v1552_v18  ;;  %v2829_v18 = vld [vmem:[%s3175_s7 + $0x2ec] sm:$0xf0] }
 0x183   : > { %1682 = vmatmul.bf16.gmra.mxu1 %v2477_v14  ;;  %v1376_v16 = vpop.f32.mrf.mxu2 }
 0x184   : > { %v1465_v21 = vpop.f32.mrf.mxu3  ;;  %v1707_v23 = vmax.f32 %v1641_v40, 0.0  ;;  %v1377_v24 = vadd.f32 %v1376_v16, %v3457_v2  ;;  %v2821_v2 = vld [vmem:[%s3175_s7 + $0x2b4] sm:$0xf]  ;;  %v2826_v40 = vld [vmem:[%s3175_s7 + $0x2dc] sm:$0xf] }
 0x185   : > { %v1556_v31 = vpop.f32.mrf.mxu0  ;;  %v2501_v41 = vor.u32 %v2821_v2, %v2498_v49  ;;  %v2514_v16 = vld [vmem:[%s3175_s7 + $0x2f0] sm:$0xf0] }
 0x186   : > { %v1739_v25 = vpack.c.bf16 %v1707_v23, %v1707_v23  ;;  %v1466_v28 = vadd.f32 %v1465_v21, %v1377_v24  ;;  %v2520_v23 = vld [vmem:[%s3175_s7 + $0x2e0] sm:$0xf]  ;;  %v2830_v24 = vld [vmem:[%s3175_s7 + $0x2f4] sm:$0xf0]  ;;  %v2517_v38 = vor.u32 %v2826_v40, %v2514_v16 }
 0x187   : > { %v2521_v39 = vor.u32 %v2830_v24, %v2520_v23 }
 0x188   : > { %v1645_v34 = vpop.f32.mrf.mxu1  ;;  %1772 = vst.msk [vmem:[%s3527_s12 + $0x24] sm:$0xf] %vm1762_vm0, %v1739_v25  ;;  %v1555_v60 = vadd.f32 %v1554_v57, %v1466_v28 }
 0x18a   : > { %v1644_v45 = vadd.f32 %v1643_v17, %v1555_v60  ;;  %v2512_v17 = vld [vmem:[%s3175_s7 + $0x2d8] sm:$0xf] }
 0x18b   : > { %v1378_v47 = vpop.f32.mrf.mxu2  ;;  %v2513_v4 = vor.u32 %v2829_v18, %v2512_v17 }
 0x18c   : > { %v1467_v35 = vpop.f32.mrf.mxu3  ;;  %v1708_v50 = vmax.f32 %v1644_v45, 0.0  ;;  %v1379_v52 = vadd.f32 %v1378_v47, %v3464_v13 }
 0x18d   : > { %v1559_v63 = vpop.f32.mrf.mxu0 }
 0x18e   : > { %v1740_v59 = vpack.c.bf16 %v1708_v50, %v1708_v50  ;;  %v1468_v61 = vadd.f32 %v1467_v35, %v1379_v52 }
 0x190   : > { %v1648_v27 = vpop.f32.mrf.mxu1  ;;  %1773 = vst.msk [vmem:[%s3527_s12 + $0x28] sm:$0xf] %vm1762_vm0, %v1740_v59  ;;  %v1557_v1 = vadd.f32 %v1556_v31, %v1468_v61  ;;  %1420 = vmatmul.bf16.gmra.mxu2 %v2489_v53  ;;  %1598 = vmatmul.bf16.gmra.mxu0 %v2497_v5  ;;  %v2522_v31 = vld [vmem:[%s3175_s7 + $0x2f8] sm:$0xf0] }
 0x191   : > { %1509 = vmatmul.bf16.gmra.mxu3 %v2493_v56 }
 0x192   : > { %v1646_v13 = vadd.f32 %v1645_v34, %v1557_v1 }
 0x193   : > { %1687 = vmatmul.bf16.gmra.mxu1 %v2501_v41  ;;  %v1381_v6 = vpop.f32.mrf.mxu2 }
 0x194   : > { %v1470_v7 = vpop.f32.mrf.mxu3  ;;  %v1709_v9 = vmax.f32 %v1646_v13, 0.0  ;;  %v1382_v26 = vadd.f32 %v1381_v6, %v3477_v44  ;;  %v2827_v44 = vld [vmem:[%s3175_s7 + $0x2e4] sm:$0xf]  ;;  %s1803_s7 = ssub.s32 (%p3121_p4), 43, %s3144_s6 }
 0x195   : > { %v1561_v12 = vpop.f32.mrf.mxu0  ;;  %v2525_v46 = vor.u32 %v2827_v44, %v2522_v31  ;;  %p1804_p8 = scmp.lt.s32.totalorder (%p3121_p4), %s1803_s7, 32 }
 0x196   : > { %v1741_v10 = vpack.c.bf16 %v1709_v9, %v1709_v9  ;;  %v1471_v11 = vadd.f32 %v1470_v7, %v1382_v26 }
 0x198   : > { %v1650_v57 = vpop.f32.mrf.mxu1  ;;  %1774 = vst.msk [vmem:[%s3527_s12 + $0x2c] sm:$0xf] %vm1762_vm0, %v1741_v10  ;;  %v1560_v14 = vadd.f32 %v1559_v63, %v1471_v11 }
 0x19a   : > { %v1649_v21 = vadd.f32 %v1648_v27, %v1560_v14 }
 0x19b   : > { %v1383_v25 = vpop.f32.mrf.mxu2 }
 0x19c   : > { %v1472_v28 = vpop.f32.mrf.mxu3  ;;  %v1710_v34 = vmax.f32 %v1649_v21, 0.0  ;;  %v1384_v60 = vadd.f32 %v1383_v25, %v3484_v54 }
 0x19d   : > { %v1564_v32 = vpop.f32.mrf.mxu0 }
 0x19e   : > { %v1742_v43 = vpack.c.bf16 %v1710_v34, %v1710_v34  ;;  %v1473_v45 = vadd.f32 %v1472_v28, %v1384_v60 }
 0x1a0   : > { %v1653_v47 = vpop.f32.mrf.mxu1  ;;  %1775 = vst.msk [vmem:[%s3527_s12 + $0x30] sm:$0xf] %vm1762_vm0, %v1742_v43  ;;  %v1562_v35 = vadd.f32 %v1561_v12, %v1473_v45  ;;  %1425 = vmatmul.bf16.gmra.mxu2 %v2513_v4  ;;  %1603 = vmatmul.bf16.gmra.mxu0 %v2521_v39 }
 0x1a1   : > { %1514 = vmatmul.bf16.gmra.mxu3 %v2517_v38 }
 0x1a2   : > { %v1651_v2 = vadd.f32 %v1650_v57, %v1562_v35 }
 0x1a3   : > { %1692 = vmatmul.bf16.gmra.mxu1 %v2525_v46  ;;  %v1386_v49 = vpop.f32.mrf.mxu2 }
 0x1a4   : > { %v1475_v50 = vpop.f32.mrf.mxu3  ;;  %v1711_v54 = vmax.f32 %v1651_v2, 0.0  ;;  %v1387_v52 = vadd.f32 %v1386_v49, %v3497_v22 }
 0x1a5   : > { %v1566_v5 = vpop.f32.mrf.mxu0 }
 0x1a6   : > { %v1743_v53 = vpack.c.bf16 %v1711_v54, %v1711_v54  ;;  %v1476_v56 = vadd.f32 %v1475_v50, %v1387_v52 }
 0x1a8   : > { %v1655_v59 = vpop.f32.mrf.mxu1  ;;  %1776 = vst.msk [vmem:[%s3527_s12 + $0x34] sm:$0xf] %vm1762_vm0, %v1743_v53  ;;  %v1565_v61 = vadd.f32 %v1564_v32, %v1476_v56 }
 0x1aa   : > { %v1654_v63 = vadd.f32 %v1653_v47, %v1565_v61 }
 0x1ab   : > { %v1388_v41 = vpop.f32.mrf.mxu2 }
 0x1ac   : > { %v1477_v27 = vpop.f32.mrf.mxu3  ;;  %v1712_v1 = vmax.f32 %v1654_v63, 0.0  ;;  %v1389_v13 = vadd.f32 %v1388_v41, %v3504_v42 }
 0x1ad   : > { %v1569_v9 = vpop.f32.mrf.mxu0 }
 0x1ae   : > { %v1744_v6 = vpack.c.bf16 %v1712_v1, %v1712_v1  ;;  %v1478_v7 = vadd.f32 %v1477_v27, %v1389_v13 }
 0x1b0   : > { %v1658_v26 = vpop.f32.mrf.mxu1  ;;  %1777 = vst.msk [vmem:[%s3527_s12 + $0x38] sm:$0xf] %vm1762_vm0, %v1744_v6  ;;  %v1567_v22 = vadd.f32 %v1566_v5, %v1478_v7 }
 0x1b2   : > { %v1656_v10 = vadd.f32 %v1655_v59, %v1567_v22 }
 0x1b3   : > { %v1391_v11 = vpop.f32.mrf.mxu2 }
 0x1b4   : > { %v1480_v12 = vpop.f32.mrf.mxu3  ;;  %v1713_v57 = vmax.f32 %v1656_v10, 0.0  ;;  %v1392_v14 = vadd.f32 %v1391_v11, %v3360_v36 }
 0x1b5   : > { %v1571_v40 = vpop.f32.mrf.mxu0 }
 0x1b6   : > { %v1745_v17 = vpack.c.bf16 %v1713_v57, %v1713_v57  ;;  %v1481_v18 = vadd.f32 %v1480_v12, %v1392_v14 }
 0x1b8   : > { %v1660_v16 = vpop.f32.mrf.mxu1  ;;  %1778 = vst.msk [vmem:[%s3527_s12 + $0x3c] sm:$0xf] %vm1762_vm0, %v1745_v17  ;;  %v1570_v42 = vadd.f32 %v1569_v9, %v1481_v18 }
 0x1ba   : > { %v1659_v21 = vadd.f32 %v1658_v26, %v1570_v42 }
 0x1bb   : > { %v1393_v23 = vpop.f32.mrf.mxu2 }
 0x1bc   : > { %v1482_v24 = vpop.f32.mrf.mxu3  ;;  %v1714_v25 = vmax.f32 %v1659_v21, 0.0  ;;  %v1394_v28 = vadd.f32 %v1393_v23, %v3374_v55 }
 0x1bd   : > { %v1574_v34 = vpop.f32.mrf.mxu0 }
 0x1be   : > { %v1746_v44 = vpack.c.bf16 %v1714_v25, %v1714_v25  ;;  %v1483_v31 = vadd.f32 %v1482_v24, %v1394_v28 }
 0x1c0   : > { %v1663_v60 = vpop.f32.mrf.mxu1  ;;  %1779 = vst.msk [vmem:[%s3527_s12 + $0x40] sm:$0xf] %vm1762_vm0, %v1746_v44  ;;  %v1572_v36 = vadd.f32 %v1571_v40, %v1483_v31 }
 0x1c2   : > { %v1661_v4 = vadd.f32 %v1660_v16, %v1572_v36 }
 0x1c3   : > { %v1396_v38 = vpop.f32.mrf.mxu2 }
 0x1c4   : > { %v1485_v39 = vpop.f32.mrf.mxu3  ;;  %v1715_v43 = vmax.f32 %v1661_v4, 0.0  ;;  %v1397_v45 = vadd.f32 %v1396_v38, %v3380_v0 }
 0x1c5   : > { %v1576_v47 = vpop.f32.mrf.mxu0 }
 0x1c6   : > { %v1747_v32 = vpack.c.bf16 %v1715_v43, %v1715_v43  ;;  %v1486_v46 = vadd.f32 %v1485_v39, %v1397_v45 }
 0x1c8   : > { %v1665_v35 = vpop.f32.mrf.mxu1  ;;  %1780 = vst.msk [vmem:[%s3527_s12 + $0x44] sm:$0xf] %vm1762_vm0, %v1747_v32  ;;  %v1575_v55 = vadd.f32 %v1574_v34, %v1486_v46 }
 0x1ca   : > { %v1664_v2 = vadd.f32 %v1663_v60, %v1575_v55 }
 0x1cb   : > { %v1398_v49 = vpop.f32.mrf.mxu2 }
 0x1cc   : > { %v1487_v50 = vpop.f32.mrf.mxu3  ;;  %v1716_v54 = vmax.f32 %v1664_v2, 0.0  ;;  %v1399_v52 = vadd.f32 %v1398_v49, %v3394_v19 }
 0x1cd   : > { %v1579_v5 = vpop.f32.mrf.mxu0 }
 0x1ce   : > { %v1748_v53 = vpack.c.bf16 %v1716_v54, %v1716_v54  ;;  %v1488_v56 = vadd.f32 %v1487_v50, %v1399_v52 }
 0x1d0   : > { %v1668_v59 = vpop.f32.mrf.mxu1  ;;  %1781 = vst.msk [vmem:[%s3527_s12 + $0x48] sm:$0xf] %vm1762_vm0, %v1748_v53  ;;  %v1577_v0 = vadd.f32 %v1576_v47, %v1488_v56 }
 0x1d2   : > { %v1666_v61 = vadd.f32 %v1665_v35, %v1577_v0 }
 0x1d3   : > { %v1401_v63 = vpop.f32.mrf.mxu2 }
 0x1d4   : > { %v1490_v41 = vpop.f32.mrf.mxu3  ;;  %v1717_v27 = vmax.f32 %v1666_v61, 0.0  ;;  %v1402_v1 = vadd.f32 %v1401_v63, %v3400_v29 }
 0x1d5   : > { %v1581_v7 = vpop.f32.mrf.mxu0 }
 0x1d6   : > { %v1749_v13 = vpack.c.bf16 %v1717_v27, %v1717_v27  ;;  %v1491_v6 = vadd.f32 %v1490_v41, %v1402_v1 }
 0x1d8   : > { %v1670_v9 = vpop.f32.mrf.mxu1  ;;  %1782 = vst.msk [vmem:[%s3527_s12 + $0x4c] sm:$0xf] %vm1762_vm0, %v1749_v13  ;;  %v1580_v19 = vadd.f32 %v1579_v5, %v1491_v6 }
 0x1da   : > { %v1669_v26 = vadd.f32 %v1668_v59, %v1580_v19 }
 0x1db   : > { %v1403_v22 = vpop.f32.mrf.mxu2 }
 0x1dc   : > { %v1492_v10 = vpop.f32.mrf.mxu3  ;;  %v1718_v11 = vmax.f32 %v1669_v26, 0.0  ;;  %v1404_v12 = vadd.f32 %v1403_v22, %v3414_v51 }
 0x1dd   : > { %v1584_v17 = vpop.f32.mrf.mxu0 }
 0x1de   : > { %v1750_v57 = vpack.c.bf16 %v1718_v11, %v1718_v11  ;;  %v1493_v14 = vadd.f32 %v1492_v10, %v1404_v12 }
 0x1e0   : > { %v1673_v18 = vpop.f32.mrf.mxu1  ;;  %1783 = vst.msk [vmem:[%s3527_s12 + $0x50] sm:$0xf] %vm1762_vm0, %v1750_v57  ;;  %v1582_v29 = vadd.f32 %v1581_v7, %v1493_v14 }
 0x1e2   : > { %v1671_v40 = vadd.f32 %v1670_v9, %v1582_v29 }
 0x1e3   : > { %v1406_v16 = vpop.f32.mrf.mxu2 }
 0x1e4   : > { %v1495_v42 = vpop.f32.mrf.mxu3  ;;  %v1719_v21 = vmax.f32 %v1671_v40, 0.0  ;;  %v1407_v23 = vadd.f32 %v1406_v16, %v3420_v62 }
 0x1e5   : > { %v1586_v28 = vpop.f32.mrf.mxu0 }
 0x1e6   : > { %v1751_v24 = vpack.c.bf16 %v1719_v21, %v1719_v21  ;;  %v1496_v25 = vadd.f32 %v1495_v42, %v1407_v23 }
 0x1e8   : > { %v1675_v44 = vpop.f32.mrf.mxu1  ;;  %1784 = vst.msk [vmem:[%s3527_s12 + $0x54] sm:$0xf] %vm1762_vm0, %v1751_v24  ;;  %v1585_v51 = vadd.f32 %v1584_v17, %v1496_v25 }
 0x1ea   : > { %v1674_v31 = vadd.f32 %v1673_v18, %v1585_v51 }
 0x1eb   : > { %v1408_v34 = vpop.f32.mrf.mxu2 }
 0x1ec   : > { %v1497_v60 = vpop.f32.mrf.mxu3  ;;  %v1720_v36 = vmax.f32 %v1674_v31, 0.0  ;;  %v1409_v4 = vadd.f32 %v1408_v34, %v3434_v20 }
 0x1ed   : > { %v1589_v43 = vpop.f32.mrf.mxu0 }
 0x1ee   : > { %v1752_v38 = vpack.c.bf16 %v1720_v36, %v1720_v36  ;;  %v1498_v39 = vadd.f32 %v1497_v60, %v1409_v4 }
 0x1f0   : > { %v1678_v45 = vpop.f32.mrf.mxu1  ;;  %1785 = vst.msk [vmem:[%s3527_s12 + $0x58] sm:$0xf] %vm1762_vm0, %v1752_v38  ;;  %v1587_v62 = vadd.f32 %v1586_v28, %v1498_v39 }
 0x1f2   : > { %v1676_v32 = vadd.f32 %v1675_v44, %v1587_v62 }
 0x1f3   : > { %v1411_v46 = vpop.f32.mrf.mxu2 }
 0x1f4   : > { %v1500_v47 = vpop.f32.mrf.mxu3  ;;  %v1721_v35 = vmax.f32 %v1676_v32, 0.0  ;;  %v1412_v55 = vadd.f32 %v1411_v46, %v3440_v33 }
 0x1f5   : > { %v1591_v50 = vpop.f32.mrf.mxu0 }
 0x1f6   : > { %v1753_v2 = vpack.c.bf16 %v1721_v35, %v1721_v35  ;;  %v1501_v49 = vadd.f32 %v1500_v47, %v1412_v55 }
 0x1f8   : > { %v1680_v54 = vpop.f32.mrf.mxu1  ;;  %1786 = vst.msk [vmem:[%s3527_s12 + $0x5c] sm:$0xf] %vm1762_vm0, %v1753_v2  ;;  %v1590_v20 = vadd.f32 %v1589_v43, %v1501_v49 }
 0x1fa   : > { %v1679_v52 = vadd.f32 %v1678_v45, %v1590_v20 }
 0x1fb   : > { %v1413_v53 = vpop.f32.mrf.mxu2 }
 0x1fc   : > { %v1502_v56 = vpop.f32.mrf.mxu3  ;;  %v1722_v5 = vmax.f32 %v1679_v52, 0.0  ;;  %v1414_v59 = vadd.f32 %v1413_v53, %v3454_v58 }
 0x1fd   : > { %v1594_v63 = vpop.f32.mrf.mxu0 }
 0x1fe   : > { %v1754_v0 = vpack.c.bf16 %v1722_v5, %v1722_v5  ;;  %v1503_v61 = vadd.f32 %v1502_v56, %v1414_v59 }
 0x200   : > { %v1683_v41 = vpop.f32.mrf.mxu1  ;;  %1787 = vst.msk [vmem:[%s3527_s12 + $0x60] sm:$0xf] %vm1762_vm0, %v1754_v0  ;;  %v1592_v33 = vadd.f32 %v1591_v50, %v1503_v61 }
 0x202   : > { %v1681_v27 = vadd.f32 %v1680_v54, %v1592_v33 }
 0x203   : > { %v1416_v1 = vpop.f32.mrf.mxu2 }
 0x204   : > { %v1505_v13 = vpop.f32.mrf.mxu3  ;;  %v1723_v6 = vmax.f32 %v1681_v27, 0.0  ;;  %v1417_v7 = vadd.f32 %v1416_v1, %v3460_v8 }
 0x205   : > { %v1596_v26 = vpop.f32.mrf.mxu0 }
 0x206   : > { %v1755_v9 = vpack.c.bf16 %v1723_v6, %v1723_v6  ;;  %v1506_v19 = vadd.f32 %v1505_v13, %v1417_v7 }
 0x208   : > { %1788 = vst.msk [vmem:[%s3527_s12 + $0x64] sm:$0xf] %vm1762_vm0, %v1755_v9  ;;  %v1595_v58 = vadd.f32 %v1594_v63, %v1506_v19  ;;  %v1685_v22 = vpop.f32.mrf.mxu1 }
 0x20a   : > { %v1684_v10 = vadd.f32 %v1683_v41, %v1595_v58 }
 0x20b   : > { %v1418_v11 = vpop.f32.mrf.mxu2 }
 0x20c   : > { %v1507_v12 = vpop.f32.mrf.mxu3  ;;  %v1724_v57 = vmax.f32 %v1684_v10, 0.0  ;;  %v1419_v14 = vadd.f32 %v1418_v11, %v3474_v37 }
 0x20d   : > { %v1599_v8 = vpop.f32.mrf.mxu0 }
 0x20e   : > { %v1756_v17 = vpack.c.bf16 %v1724_v57, %v1724_v57  ;;  %v1508_v18 = vadd.f32 %v1507_v12, %v1419_v14 }
 0x210   : > { %1789 = vst.msk [vmem:[%s3527_s12 + $0x68] sm:$0xf] %vm1762_vm0, %v1756_v17  ;;  %v1597_v29 = vadd.f32 %v1596_v26, %v1508_v18  ;;  %v1688_v16 = vpop.f32.mrf.mxu1 }
 0x212   : > { %v1686_v40 = vadd.f32 %v1685_v22, %v1597_v29 }
 0x213   : > { %v1421_v42 = vpop.f32.mrf.mxu2 }
 0x214   : > { %v1510_v21 = vpop.f32.mrf.mxu3  ;;  %v1725_v23 = vmax.f32 %v1686_v40, 0.0  ;;  %v1422_v24 = vadd.f32 %v1421_v42, %v3480_v48 }
 0x215   : > { %v1601_v51 = vpop.f32.mrf.mxu0 }
 0x216   : > { %v1757_v25 = vpack.c.bf16 %v1725_v23, %v1725_v23  ;;  %v1511_v28 = vadd.f32 %v1510_v21, %v1422_v24 }
 0x218   : > { %1790 = vst.msk [vmem:[%s3527_s12 + $0x6c] sm:$0xf] %vm1762_vm0, %v1757_v25  ;;  %v1600_v44 = vadd.f32 %v1599_v8, %v1511_v28  ;;  %v1690_v4 = vpop.f32.mrf.mxu1 }
 0x21a   : > { %v1689_v37 = vadd.f32 %v1688_v16, %v1600_v44 }
 0x21b   : > { %v1423_v31 = vpop.f32.mrf.mxu2 }
 0x21c   : > { %v1512_v34 = vpop.f32.mrf.mxu3  ;;  %v1726_v60 = vmax.f32 %v1689_v37, 0.0  ;;  %v1424_v36 = vadd.f32 %v1423_v31, %v3494_v15 }
 0x21d   : > { %v1604_v47 = vpop.f32.mrf.mxu0 }
 0x21e   : > { %v1758_v38 = vpack.c.bf16 %v1726_v60, %v1726_v60  ;;  %v1513_v39 = vadd.f32 %v1512_v34, %v1424_v36 }
 0x220   : > { %1791 = vst.msk [vmem:[%s3527_s12 + $0x70] sm:$0xf] %vm1762_vm0, %v1758_v38  ;;  %v1602_v43 = vadd.f32 %v1601_v51, %v1513_v39  ;;  %v1693_v2 = vpop.f32.mrf.mxu1 }
 0x222   : > { %v1691_v48 = vadd.f32 %v1690_v4, %v1602_v43 }
 0x223   : > { %v1426_v45 = vpop.f32.mrf.mxu2 }
 0x224   : > { %v1515_v62 = vpop.f32.mrf.mxu3  ;;  %v1727_v32 = vmax.f32 %v1691_v48, 0.0  ;;  %v1427_v46 = vadd.f32 %v1426_v45, %v3500_v30 }
 0x225   : > { %v1606_v5 = vpop.f32.mrf.mxu0 }
 0x226   : > { %v1759_v35 = vpack.c.bf16 %v1727_v32, %v1727_v32  ;;  %v1516_v55 = vadd.f32 %v1515_v62, %v1427_v46 }
 0x228   : > { %1792 = vst.msk [vmem:[%s3527_s12 + $0x74] sm:$0xf] %vm1762_vm0, %v1759_v35  ;;  %v1605_v15 = vadd.f32 %v1604_v47, %v1516_v55  ;;  %v1695_v59 = vpop.f32.mrf.mxu1 }
 0x22a   : > { %v1694_v49 = vadd.f32 %v1693_v2, %v1605_v15 }
 0x22b   : > { %v1428_v50 = vpop.f32.mrf.mxu2 }
 0x22c   : > { %v1728_v54 = vmax.f32 %v1694_v49, 0.0  ;;  %v1429_v20 = vadd.f32 %v1428_v50, %v3514_v3  ;;  %v1517_v52 = vpop.f32.mrf.mxu3 }
 0x22e   : > { %v1760_v53 = vpack.c.bf16 %v1728_v54, %v1728_v54  ;;  %v1518_v56 = vadd.f32 %v1517_v52, %v1429_v20 }
 0x230   : > { %1793 = vst.msk [vmem:[%s3527_s12 + $0x78] sm:$0xf] %vm1762_vm0, %v1760_v53  ;;  %v1607_v30 = vadd.f32 %v1606_v5, %v1518_v56 }
 0x232   : > { %v1696_v0 = vadd.f32 %v1695_v59, %v1607_v30 }
 0x234   : > { %v1729_v61 = vmax.f32 %v1696_v0, 0.0  ;;  %1801 = sbr.rel (!%p3121_p4) target bundleno = 633 (0x279), region = 36 }
 0x236   : > { %v1761_v63 = vpack.c.bf16 %v1729_v61, %v1729_v61 }
 0x238   : > { %1794 = vst.msk [vmem:[%s3527_s12 + $0x7c] sm:$0xf] %vm1762_vm0, %v1761_v63 }
 0x239   : > { %s3827_s7 = smov (!%p1804_p8, %s1803_s7), 32 }
 0x23a   : > { %s2720_s8 = sshll.u32 %s3827_s7, 2 }
 0x23b   : > { %p2723_p9 = scmp.eq.s32.totalorder %s2720_s8, 0 }
 0x23c   : > { %s3684_s9 = sshrl.u32 (!%p2723_p9), %s3827_s7, 5 }
 0x23d   : > { %1812 = sbr.rel (%p2723_p9) target bundleno = 633 (0x279), region = 40  ;;  %p2724_p10 = scmp.le.s32.totalorder (!%p2723_p9), %s3684_s9, 0 }
 0x242   : > { %2091 = sbr.rel (%p2724_p10) target bundleno = 616 (0x268), region = 112  ;;  %s3818_s15 = smov (!%p2724_p10), %s3678_s5 }
 0x243   : > { %s3819_s20 = smov (!%p2724_p10), %s3527_s12  ;;  %s3693_s6 = smov (!%p2724_p10), 0  }
 0x244   : > { %s3695_s10 = smov (!%p2724_p10), 0  }
 0x247 LB: >> { %v1829_v3 = vld [vmem:[%s3050_s20] sm:$0xf]  ;;  %v1831_v41 = vld [vmem:[%s3050_s20 + $0x4] sm:$0xf]  ;;  %v1833_v33 = vld [vmem:[%s3050_s20 + $0x8] sm:$0xf]  ;;  %s3058_s10 = sphi %s3695_s10, %s1823_s10   ;;  %s3054_s6 = sphi %s3693_s6, %s3822_s6   ;;  %s3050_s20 = sphi %s3819_s20, %s3821_s20   ;;  %s3046_s15 = sphi %s3818_s15, %s3820_s15  }
 0x248   : >> { %1830 = vst [vmem:[%s3046_s15] sm:$0xf] %v1829_v3  ;;  %v1835_v27 = vld [vmem:[%s3050_s20 + $0xc] sm:$0xf]  ;;  %v1837_v1 = vld [vmem:[%s3050_s20 + $0x10] sm:$0xf]  ;;  %s1893_s11 = sadd.s32 1, %s3054_s6 }
 0x249   : >> { %1832 = vst [vmem:[%s3046_s15 + $0x4] sm:$0xf] %v1831_v41  ;;  %v1839_v13 = vld [vmem:[%s3050_s20 + $0x14] sm:$0xf]  ;;  %v1841_v6 = vld [vmem:[%s3050_s20 + $0x18] sm:$0xf]  ;;  %p1894_p11 = scmp.ge.s32.totalorder %s1893_s11, %s3684_s9 }
 0x24a   : >> { %1834 = vst [vmem:[%s3046_s15 + $0x8] sm:$0xf] %v1833_v33  ;;  %v1843_v7 = vld [vmem:[%s3050_s20 + $0x1c] sm:$0xf]  ;;  %v1845_v9 = vld [vmem:[%s3050_s20 + $0x20] sm:$0xf] }
 0x24b   : >> { %1836 = vst [vmem:[%s3046_s15 + $0xc] sm:$0xf] %v1835_v27  ;;  %v1847_v19 = vld [vmem:[%s3050_s20 + $0x24] sm:$0xf]  ;;  %v1849_v26 = vld [vmem:[%s3050_s20 + $0x28] sm:$0xf] }
 0x24c   : >> { %1838 = vst [vmem:[%s3046_s15 + $0x10] sm:$0xf] %v1837_v1  ;;  %v1851_v58 = vld [vmem:[%s3050_s20 + $0x2c] sm:$0xf]  ;;  %v1853_v22 = vld [vmem:[%s3050_s20 + $0x30] sm:$0xf] }
 0x24d   : >> { %1840 = vst [vmem:[%s3046_s15 + $0x14] sm:$0xf] %v1839_v13  ;;  %v1855_v10 = vld [vmem:[%s3050_s20 + $0x34] sm:$0xf]  ;;  %v1857_v11 = vld [vmem:[%s3050_s20 + $0x38] sm:$0xf] }
 0x24e   : >> { %1842 = vst [vmem:[%s3046_s15 + $0x18] sm:$0xf] %v1841_v6  ;;  %v1859_v12 = vld [vmem:[%s3050_s20 + $0x3c] sm:$0xf]  ;;  %v1861_v57 = vld [vmem:[%s3050_s20 + $0x40] sm:$0xf] }
 0x24f   : >> { %1844 = vst [vmem:[%s3046_s15 + $0x1c] sm:$0xf] %v1843_v7  ;;  %v1863_v14 = vld [vmem:[%s3050_s20 + $0x44] sm:$0xf]  ;;  %s3829_s11 = smov (%p1894_p11, %s1893_s11), 0  ;;  %s1823_s10 = sadd.s32 1, %s3058_s10  }
 0x250   : >> { %1846 = vst [vmem:[%s3046_s15 + $0x20] sm:$0xf] %v1845_v9  ;;  %v1865_v17 = vld [vmem:[%s3050_s20 + $0x48] sm:$0xf]  ;;  %v1867_v18 = vld [vmem:[%s3050_s20 + $0x4c] sm:$0xf]  ;;  %p1822_p12 = scmp.ge.s32.totalorder %s1823_s10, %s3684_s9  ;;  %s3822_s6 = smov %s3829_s11 }
 0x251   : >> { %1848 = vst [vmem:[%s3046_s15 + $0x24] sm:$0xf] %v1847_v19  ;;  %s2725_s14 = sshll.u32 %s3829_s11, 7  ;;  %v1869_v29 = vld [vmem:[%s3050_s20 + $0x50] sm:$0xf] }
 0x252   : >> { %1850 = vst [vmem:[%s3046_s15 + $0x28] sm:$0xf] %v1849_v26  ;;  %s3754_s17 = scalar_lea.vmem %s3527_s12, %s2725_s14 [#allocation2]   ;;  %s1899_s18 = scalar_lea.vmem %s3678_s5, %s2725_s14   ;;  %v1871_v8 = vld [vmem:[%s3050_s20 + $0x54] sm:$0xf]  ;;  %v1873_v40 = vld [vmem:[%s3050_s20 + $0x58] sm:$0xf] }
 0x253   : >> { %1852 = vst [vmem:[%s3046_s15 + $0x2c] sm:$0xf] %v1851_v58  ;;  %v1875_v16 = vld [vmem:[%s3050_s20 + $0x5c] sm:$0xf]  ;;  %v1877_v42 = vld [vmem:[%s3050_s20 + $0x60] sm:$0xf] }
 0x254   : >> { %1854 = vst [vmem:[%s3046_s15 + $0x30] sm:$0xf] %v1853_v22  ;;  %v1879_v21 = vld [vmem:[%s3050_s20 + $0x64] sm:$0xf]  ;;  %v1881_v23 = vld [vmem:[%s3050_s20 + $0x68] sm:$0xf] }
 0x255   : >> { %1856 = vst [vmem:[%s3046_s15 + $0x34] sm:$0xf] %v1855_v10  ;;  %v1883_v24 = vld [vmem:[%s3050_s20 + $0x6c] sm:$0xf]  ;;  %v1885_v25 = vld [vmem:[%s3050_s20 + $0x70] sm:$0xf] }
 0x256   : >> { %1858 = vst [vmem:[%s3046_s15 + $0x38] sm:$0xf] %v1857_v11  ;;  %v1887_v28 = vld [vmem:[%s3050_s20 + $0x74] sm:$0xf]  ;;  %v1889_v44 = vld [vmem:[%s3050_s20 + $0x78] sm:$0xf] }
 0x257   : >> { %1860 = vst [vmem:[%s3046_s15 + $0x3c] sm:$0xf] %v1859_v12  ;;  %v1891_v37 = vld [vmem:[%s3050_s20 + $0x7c] sm:$0xf]  ;;  %s3821_s20 = smov %s3754_s17 }
 0x258   : >> { %1862 = vst [vmem:[%s3046_s15 + $0x40] sm:$0xf] %v1861_v57 }
 0x259   : >> { %1864 = vst [vmem:[%s3046_s15 + $0x44] sm:$0xf] %v1863_v14 }
 0x25a   : >> { %1866 = vst [vmem:[%s3046_s15 + $0x48] sm:$0xf] %v1865_v17 }
 0x25b   : >> { %1868 = vst [vmem:[%s3046_s15 + $0x4c] sm:$0xf] %v1867_v18 }
 0x25c   : >> { %1870 = vst [vmem:[%s3046_s15 + $0x50] sm:$0xf] %v1869_v29 }
 0x25d   : >> { %1872 = vst [vmem:[%s3046_s15 + $0x54] sm:$0xf] %v1871_v8 }
 0x25e   : >> { %1874 = vst [vmem:[%s3046_s15 + $0x58] sm:$0xf] %v1873_v40 }
 0x25f   : >> { %1876 = vst [vmem:[%s3046_s15 + $0x5c] sm:$0xf] %v1875_v16 }
 0x260   : >> { %1878 = vst [vmem:[%s3046_s15 + $0x60] sm:$0xf] %v1877_v42 }
 0x261   : >> { %1880 = vst [vmem:[%s3046_s15 + $0x64] sm:$0xf] %v1879_v21 }
 0x262   : >> { %1882 = vst [vmem:[%s3046_s15 + $0x68] sm:$0xf] %v1881_v23 }
 0x263   : >> { %1884 = vst [vmem:[%s3046_s15 + $0x6c] sm:$0xf] %v1883_v24  ;;  %1825 = sbr.rel (!%p1822_p12) target bundleno = 583 (0x247), region = 118 }
 0x264   : >> { %1886 = vst [vmem:[%s3046_s15 + $0x70] sm:$0xf] %v1885_v25 }
 0x265   : >> { %1888 = vst [vmem:[%s3046_s15 + $0x74] sm:$0xf] %v1887_v28 }
 0x266   : >> { %1890 = vst [vmem:[%s3046_s15 + $0x78] sm:$0xf] %v1889_v44 }
 0x267   : >> { %1892 = vst [vmem:[%s3046_s15 + $0x7c] sm:$0xf] %v1891_v37  ;;  %s3820_s15 = smov %s1899_s18 }
 0x268 PF: > { %s3795_s21 = sand.u32 31, %s3827_s7   ;;  %s2880_s22 = sshll.u32 %s3684_s9, 7 }
 0x269   : > { %s1904_s23 = scalar_lea.vmem %s3527_s12, %s2880_s22 [#allocation2]   ;;  %s1906_s24 = scalar_lea.vmem %s3678_s5, %s2880_s22  }
 0x26a   : > { %p2730_p13 = scmp.le.s32.totalorder %s3795_s21, 0 }
 0x26b   : > { %s3060_s25 = smov (!%p2730_p13), %s1906_s24   ;;  %s3064_s26 = smov (!%p2730_p13), %s1904_s23  }
 0x26c   : > { %2105 = sbr.rel (%p2730_p13) target bundleno = 633 (0x279), region = 123  ;;  %s3068_s27 = smov (!%p2730_p13), 0  }
 0x26d   : > { %s3072_s28 = smov (!%p2730_p13), 0  }
 0x271 LB: >> { %v1916_v51 = vld [vmem:[%s3066_s26] sm:$0xf]  ;;  %s1918_s7 = sadd.s32 1, %s3070_s27  ;;  %s1910_s28 = sadd.s32 1, %s3074_s28   ;;  %s3074_s28 = sphi %s3072_s28, %s1910_s28   ;;  %s3070_s27 = sphi %s3068_s27, %s3069_s27   ;;  %s3066_s26 = sphi %s3064_s26, %s1923_s26   ;;  %s3062_s25 = sphi %s3060_s25, %s1924_s25  }
 0x272   : >> { %1917 = vst [vmem:[%s3062_s25] sm:$0xf] %v1916_v51  ;;  %p1919_p0 = scmp.ge.s32.totalorder %s1918_s7, %s3795_s21  ;;  %p1909_p1 = scmp.ge.s32.totalorder %s1910_s28, %s3795_s21 }
 0x274   : >> { %s3831_s7 = smov (%p1919_p0, %s1918_s7), 0  ;;  %1912 = sbr.rel (!%p1909_p1) target bundleno = 625 (0x271), region = 129 }
 0x275   : >> { %s2731_s12 = sshll.u32 %s3831_s7, 2  ;;  %s3069_s27 = smov %s3831_s7  }
 0x276   : >> { %s1923_s26 = scalar_lea.vmem %s1904_s23, %s2731_s12 [#allocation2]   ;;  %s1924_s25 = scalar_lea.vmem %s1906_s24, %s2731_s12  }
 0x279 PF: > { %p10_p2 = scmp.ge.s32.totalorder %s3111_s16, 4   ;;  %s3823_s12 = smov %s3038_s13 }
 0x27a   : > { %s3824_s13 = smov %s3119_s19  ;;  %s3825_s14 = smov %s3111_s16 }
 0x27b   :  { %12 = sbr.rel (!%p10_p2) target bundleno = 2 (0x2), region = 140 }

// kernel: ppo_forward.12
= control target key start
LH: loop header
LB: loop body
LE: loop exit
PB: predicated region body
PF: predicated region fallthrough
CT: control target
= control target key end

     0   :  { %vm488_vm0 = vcmask 519168   ;;  %vm495_vm1 = vcmask 516096   ;;  %s955_s1 = inlined_call_operand.vmem [shape: bf16[512,64], index: 1, kind: input, shape index: {}]   ;;  %s956_s2 = inlined_call_operand.vmem [shape: f32[1,64], index: 2, kind: input, shape index: {}]   ;;  %s957_s0 = inlined_call_operand.vmem [shape: bf16[50,512], index: 0, kind: input, shape index: {}]   ;;  %s958_s3 = inlined_call_operand.vmem [shape: bf16[50,64], index: 3, kind: output, shape index: {}]  }
   0x1   :  { %v696_v0 = vld [vmem:[%s955_s1 + $0x38] sm:$0xff]  ;;  %v695_v4 = vld [vmem:[%s955_s1 + $0x30] sm:$0xff]  ;;  %v694_v8 = vld [vmem:[%s955_s1 + $0x28] sm:$0xff] }
   0x2   :  { %v704_v1 = vld [vmem:[%s955_s1 + $0x78] sm:$0xff]  ;;  %362 = vmatpush.bf16.msra.mxu0 %v696_v0  ;;  %v703_v5 = vld [vmem:[%s955_s1 + $0x70] sm:$0xff]  ;;  %v702_v9 = vld [vmem:[%s955_s1 + $0x68] sm:$0xff] }
   0x3   :  { %v712_v2 = vld [vmem:[%s955_s1 + $0xb8] sm:$0xff]  ;;  %390 = vmatpush.bf16.msra.mxu1 %v704_v1  ;;  %v711_v6 = vld [vmem:[%s955_s1 + $0xb0] sm:$0xff]  ;;  %v710_v10 = vld [vmem:[%s955_s1 + $0xa8] sm:$0xff] }
   0x4   :  { %v720_v3 = vld [vmem:[%s955_s1 + $0xf8] sm:$0xff]  ;;  %418 = vmatpush.bf16.msra.mxu2 %v712_v2  ;;  %v719_v7 = vld [vmem:[%s955_s1 + $0xf0] sm:$0xff]  ;;  %v718_v11 = vld [vmem:[%s955_s1 + $0xe8] sm:$0xff] }
   0x5   :  { %446 = vmatpush.bf16.msra.mxu3 %v720_v3  ;;  %v693_v12 = vld [vmem:[%s955_s1 + $0x20] sm:$0xff]  ;;  %v692_v16 = vld [vmem:[%s955_s1 + $0x18] sm:$0xff]  ;;  %v691_v20 = vld [vmem:[%s955_s1 + $0x10] sm:$0xff] }
   0x6   :  { %363 = vmatpush.bf16.msra.mxu0 %v695_v4  ;;  %v701_v13 = vld [vmem:[%s955_s1 + $0x60] sm:$0xff]  ;;  %v700_v17 = vld [vmem:[%s955_s1 + $0x58] sm:$0xff]  ;;  %v699_v21 = vld [vmem:[%s955_s1 + $0x50] sm:$0xff] }
   0x7   :  { %391 = vmatpush.bf16.msra.mxu1 %v703_v5  ;;  %v709_v14 = vld [vmem:[%s955_s1 + $0xa0] sm:$0xff]  ;;  %v708_v18 = vld [vmem:[%s955_s1 + $0x98] sm:$0xff]  ;;  %v707_v22 = vld [vmem:[%s955_s1 + $0x90] sm:$0xff] }
   0x8   :  { %419 = vmatpush.bf16.msra.mxu2 %v711_v6  ;;  %v717_v15 = vld [vmem:[%s955_s1 + $0xe0] sm:$0xff]  ;;  %v716_v19 = vld [vmem:[%s955_s1 + $0xd8] sm:$0xff]  ;;  %v715_v23 = vld [vmem:[%s955_s1 + $0xd0] sm:$0xff] }
   0x9   :  { %447 = vmatpush.bf16.msra.mxu3 %v719_v7  ;;  %v690_v24 = vld [vmem:[%s955_s1 + $0x8] sm:$0xff]  ;;  %v689_v28 = vld [vmem:[%s955_s1] sm:$0xff]  ;;  %v679_v33 = vld [vmem:[%s957_s0 + $0xc] sm:$0xf0] }
   0xa   :  { %364 = vmatpush.bf16.msra.mxu0 %v694_v8  ;;  %v698_v25 = vld [vmem:[%s955_s1 + $0x48] sm:$0xff]  ;;  %v697_v29 = vld [vmem:[%s955_s1 + $0x40] sm:$0xff]  ;;  %v505_v35 = vld [vmem:[%s957_s0 + $0x10] sm:$0xf0] }
   0xb   :  { %392 = vmatpush.bf16.msra.mxu1 %v702_v9  ;;  %v706_v26 = vld [vmem:[%s955_s1 + $0x88] sm:$0xff]  ;;  %v705_v30 = vld [vmem:[%s955_s1 + $0x80] sm:$0xff]  ;;  %v680_v37 = vld [vmem:[%s957_s0 + $0x14] sm:$0xf0] }
   0xc   :  { %420 = vmatpush.bf16.msra.mxu2 %v710_v10  ;;  %v714_v27 = vld [vmem:[%s955_s1 + $0xc8] sm:$0xff]  ;;  %v713_v31 = vld [vmem:[%s955_s1 + $0xc0] sm:$0xff]  ;;  %v513_v39 = vld [vmem:[%s957_s0 + $0x18] sm:$0xf0] }
   0xd   :  { %448 = vmatpush.bf16.msra.mxu3 %v718_v11  ;;  %v503_v32 = vld [vmem:[%s957_s0] sm:$0xf]  ;;  %v677_v34 = vld [vmem:[%s957_s0 + $0x4] sm:$0xf]  ;;  %v511_v36 = vld [vmem:[%s957_s0 + $0x8] sm:$0xf] }
   0xe   :  { %365 = vmatpush.bf16.msra.mxu0 %v693_v12  ;;  %v678_v38 = vld [vmem:[%s957_s0 + $0xc] sm:$0xf]  ;;  %v504_v40 = vor.u32 %v679_v33, %v503_v32  ;;  %v508_v41 = vor.u32 %v677_v34, %v505_v35  ;;  %v512_v42 = vor.u32 %v680_v37, %v511_v36  ;;  %v519_v44 = vld [vmem:[%s957_s0 + $0x20] sm:$0xf]  ;;  %v683_v45 = vld [vmem:[%s957_s0 + $0x2c] sm:$0xf0] }
   0xf   :  { %393 = vmatpush.bf16.msra.mxu1 %v701_v13  ;;  %v516_v43 = vor.u32 %v678_v38, %v513_v39  ;;  %v681_v46 = vld [vmem:[%s957_s0 + $0x24] sm:$0xf]  ;;  %v521_v47 = vld [vmem:[%s957_s0 + $0x30] sm:$0xf0]  ;;  %v527_v48 = vld [vmem:[%s957_s0 + $0x28] sm:$0xf]  ;;  %v520_v52 = vor.u32 %v683_v45, %v519_v44 }
  0x10   :  { %421 = vmatpush.bf16.msra.mxu2 %v709_v14  ;;  %v684_v49 = vld [vmem:[%s957_s0 + $0x34] sm:$0xf0]  ;;  %v682_v50 = vld [vmem:[%s957_s0 + $0x2c] sm:$0xf]  ;;  %v529_v51 = vld [vmem:[%s957_s0 + $0x38] sm:$0xf0]  ;;  %v524_v53 = vor.u32 %v681_v46, %v521_v47 }
  0x11   :  { %449 = vmatpush.bf16.msra.mxu3 %v717_v15  ;;  %v528_v54 = vor.u32 %v684_v49, %v527_v48  ;;  %v532_v55 = vor.u32 %v682_v50, %v529_v51  ;;  %v535_v56 = vld [vmem:[%s957_s0 + $0x40] sm:$0xf]  ;;  %v687_v57 = vld [vmem:[%s957_s0 + $0x4c] sm:$0xf0]  ;;  %v685_v58 = vld [vmem:[%s957_s0 + $0x44] sm:$0xf] }
  0x12   :  { %366 = vmatpush.bf16.msra.mxu0 %v692_v16  ;;  %v537_v59 = vld [vmem:[%s957_s0 + $0x50] sm:$0xf0]  ;;  %v543_v60 = vld [vmem:[%s957_s0 + $0x48] sm:$0xf]  ;;  %v688_v61 = vld [vmem:[%s957_s0 + $0x54] sm:$0xf0]  ;;  %v536_v0 = vor.u32 %v687_v57, %v535_v56 }
  0x13   :  { %394 = vmatpush.bf16.msra.mxu1 %v700_v17  ;;  %v686_v62 = vld [vmem:[%s957_s0 + $0x4c] sm:$0xf]  ;;  %v545_v63 = vld [vmem:[%s957_s0 + $0x58] sm:$0xf0]  ;;  %v540_v1 = vor.u32 %v685_v58, %v537_v59  ;;  %v544_v2 = vor.u32 %v688_v61, %v543_v60  ;;  %v26_v4 = vld [vmem:[%s957_s0 + $0x60] sm:$0x11] }
  0x14   :  { %422 = vmatpush.bf16.msra.mxu2 %v708_v18  ;;  %v548_v3 = vor.u32 %v686_v62, %v545_v63  ;;  %v27_v5 = vld [vmem:[%s957_s0 + $0x68] sm:$0x11]  ;;  %v134_v6 = vunpack.c.l.b16 %v26_v4  ;;  %v135_v7 = vunpack.c.h.b16 %v26_v4  ;;  %v919_v14 = vld [vmem:[%s956_s2] ss:$0 sm:$0xff] }
  0x15   :  { %450 = vmatpush.bf16.msra.mxu3 %v716_v19  ;;  %v136_v8 = vunpack.c.l.b16 %v27_v5  ;;  %v137_v9 = vunpack.c.h.b16 %v27_v5 }
  0x16   :  { %367 = vmatpush.bf16.msra.mxu0 %v691_v20  ;;  %v150_v10 = vpack.c.b16 %v134_v6, %v134_v6  ;;  %v151_v11 = vpack.c.b16 %v135_v7, %v135_v7 }
  0x17   :  { %395 = vmatpush.bf16.msra.mxu1 %v699_v21  ;;  %v152_v12 = vpack.c.b16 %v136_v8, %v136_v8  ;;  %v153_v13 = vpack.c.b16 %v137_v9, %v137_v9 }
  0x18   :  { %423 = vmatpush.bf16.msra.mxu2 %v707_v22 }
  0x19   :  { %451 = vmatpush.bf16.msra.mxu3 %v715_v23 }
  0x1a   :  { %368 = vmatpush.bf16.msra.mxu0 %v690_v24 }
  0x1b   :  { %396 = vmatpush.bf16.msra.mxu1 %v698_v25 }
  0x1c   :  { %424 = vmatpush.bf16.msra.mxu2 %v706_v26 }
  0x1d   :  { %452 = vmatpush.bf16.msra.mxu3 %v714_v27 }
  0x1e   :  { %369 = vmatpush.bf16.msra.mxu0 %v689_v28 }
  0x1f   :  { %397 = vmatpush.bf16.msra.mxu1 %v697_v29 }
  0x20   :  { %425 = vmatpush.bf16.msra.mxu2 %v705_v30 }
  0x21   :  { %453 = vmatpush.bf16.msra.mxu3 %v713_v31  ;;  %370 = vmatmul.bf16.vlgmr.msra.gmra.mxu0 %v504_v40 }
  0x22   :  { %398 = vmatmul.bf16.vlgmr.msra.gmra.mxu1 %v508_v41 }
  0x23   :  { %426 = vmatmul.bf16.vlgmr.msra.gmra.mxu2 %v512_v42 }
  0x24   :  { %454 = vmatmul.bf16.vlgmr.msra.gmra.mxu3 %v516_v43 }
  0x31   :  { %375 = vmatmul.bf16.gmra.mxu0 %v520_v52 }
  0x32   :  { %403 = vmatmul.bf16.gmra.mxu1 %v524_v53 }
  0x33   :  { %431 = vmatmul.bf16.gmra.mxu2 %v528_v54 }
  0x34   :  { %459 = vmatmul.bf16.gmra.mxu3 %v532_v55 }
  0x41   :  { %380 = vmatmul.bf16.gmra.mxu0 %v536_v0 }
  0x42   :  { %408 = vmatmul.bf16.gmra.mxu1 %v540_v1 }
  0x43   :  { %436 = vmatmul.bf16.gmra.mxu2 %v544_v2 }
  0x44   :  { %464 = vmatmul.bf16.gmra.mxu3 %v548_v3 }
  0x51   :  { %385 = vmatmul.bf16.gmra.mxu0 %v150_v10 }
  0x52   :  { %413 = vmatmul.bf16.gmra.mxu1 %v151_v11 }
  0x53   :  { %441 = vmatmul.bf16.gmra.mxu2 %v152_v12 }
  0x54   :  { %469 = vmatmul.bf16.gmra.mxu3 %v153_v13 }
  0x9e   :  { %v371_v15 = vpop.f32.mrf.mxu0 }
  0x9f   :  { %v399_v16 = vpop.f32.mrf.mxu1  ;;  %v372_v17 = vadd.f32 %v919_v14, %v371_v15 }
  0xa1   :  { %v400_v18 = vadd.f32 %v399_v16, %v372_v17 }
  0xa6   :  { %v427_v19 = vpop.f32.mrf.mxu2  ;;  %v373_v22 = vpop.f32.mrf.mxu0 }
  0xa7   :  { %v455_v20 = vpop.f32.mrf.mxu3  ;;  %v428_v21 = vadd.f32 %v427_v19, %v400_v18  ;;  %v401_v23 = vpop.f32.mrf.mxu1  ;;  %v374_v25 = vadd.f32 %v919_v14, %v373_v22 }
  0xa9   :  { %v456_v24 = vadd.f32 %v455_v20, %v428_v21  ;;  %v402_v28 = vadd.f32 %v401_v23, %v374_v25 }
  0xab   :  { %v474_v26 = vmax.f32 %v456_v24, 0.0 }
  0xad   :  { %v481_v27 = vpack.c.bf16 %v474_v26, %v474_v26 }
  0xae   :  { %v429_v29 = vpop.f32.mrf.mxu2  ;;  %v376_v32 = vpop.f32.mrf.mxu0 }
  0xaf   :  { %v457_v30 = vpop.f32.mrf.mxu3  ;;  %489 = vst.msk [vmem:[%s958_s3] sm:$0xf] %vm488_vm0, %v481_v27  ;;  %v430_v31 = vadd.f32 %v429_v29, %v402_v28  ;;  %v404_v33 = vpop.f32.mrf.mxu1  ;;  %v377_v34 = vadd.f32 %v919_v14, %v376_v32 }
  0xb1   :  { %v458_v35 = vadd.f32 %v457_v30, %v430_v31  ;;  %v405_v37 = vadd.f32 %v404_v33, %v377_v34 }
  0xb3   :  { %v475_v36 = vmax.f32 %v458_v35, 0.0 }
  0xb5   :  { %v482_v38 = vpack.c.bf16 %v475_v36, %v475_v36 }
  0xb6   :  { %v432_v39 = vpop.f32.mrf.mxu2  ;;  %v378_v42 = vpop.f32.mrf.mxu0 }
  0xb7   :  { %v460_v40 = vpop.f32.mrf.mxu3  ;;  %490 = vst.msk [vmem:[%s958_s3 + $0x4] sm:$0xf] %vm488_vm0, %v482_v38  ;;  %v433_v41 = vadd.f32 %v432_v39, %v405_v37  ;;  %v406_v43 = vpop.f32.mrf.mxu1  ;;  %v379_v45 = vadd.f32 %v919_v14, %v378_v42 }
  0xb9   :  { %v461_v44 = vadd.f32 %v460_v40, %v433_v41  ;;  %v407_v48 = vadd.f32 %v406_v43, %v379_v45 }
  0xbb   :  { %v476_v46 = vmax.f32 %v461_v44, 0.0 }
  0xbd   :  { %v483_v47 = vpack.c.bf16 %v476_v46, %v476_v46 }
  0xbe   :  { %v434_v49 = vpop.f32.mrf.mxu2  ;;  %v381_v52 = vpop.f32.mrf.mxu0 }
  0xbf   :  { %v462_v50 = vpop.f32.mrf.mxu3  ;;  %491 = vst.msk [vmem:[%s958_s3 + $0x8] sm:$0xf] %vm488_vm0, %v483_v47  ;;  %v435_v51 = vadd.f32 %v434_v49, %v407_v48  ;;  %v409_v53 = vpop.f32.mrf.mxu1  ;;  %v382_v54 = vadd.f32 %v919_v14, %v381_v52 }
  0xc1   :  { %v463_v55 = vadd.f32 %v462_v50, %v435_v51  ;;  %v410_v57 = vadd.f32 %v409_v53, %v382_v54 }
  0xc3   :  { %v477_v56 = vmax.f32 %v463_v55, 0.0 }
  0xc5   :  { %v484_v58 = vpack.c.bf16 %v477_v56, %v477_v56 }
  0xc6   :  { %v437_v59 = vpop.f32.mrf.mxu2  ;;  %v383_v62 = vpop.f32.mrf.mxu0 }
  0xc7   :  { %v465_v60 = vpop.f32.mrf.mxu3  ;;  %492 = vst.msk [vmem:[%s958_s3 + $0xc] sm:$0xf] %vm488_vm0, %v484_v58  ;;  %v438_v61 = vadd.f32 %v437_v59, %v410_v57  ;;  %v411_v63 = vpop.f32.mrf.mxu1  ;;  %v384_v1 = vadd.f32 %v919_v14, %v383_v62 }
  0xc9   :  { %v466_v0 = vadd.f32 %v465_v60, %v438_v61  ;;  %v412_v4 = vadd.f32 %v411_v63, %v384_v1 }
  0xcb   :  { %v478_v2 = vmax.f32 %v466_v0, 0.0 }
  0xcd   :  { %v485_v3 = vpack.c.bf16 %v478_v2, %v478_v2 }
  0xce   :  { %v439_v5 = vpop.f32.mrf.mxu2  ;;  %v386_v8 = vpop.f32.mrf.mxu0 }
  0xcf   :  { %v467_v6 = vpop.f32.mrf.mxu3  ;;  %493 = vst.msk [vmem:[%s958_s3 + $0x10] sm:$0xf] %vm488_vm0, %v485_v3  ;;  %v440_v7 = vadd.f32 %v439_v5, %v412_v4  ;;  %v414_v9 = vpop.f32.mrf.mxu1  ;;  %v387_v10 = vadd.f32 %v919_v14, %v386_v8 }
  0xd1   :  { %v468_v11 = vadd.f32 %v467_v6, %v440_v7  ;;  %v415_v13 = vadd.f32 %v414_v9, %v387_v10 }
  0xd3   :  { %v479_v12 = vmax.f32 %v468_v11, 0.0 }
  0xd5   :  { %v486_v15 = vpack.c.bf16 %v479_v12, %v479_v12 }
  0xd6   :  { %v442_v16 = vpop.f32.mrf.mxu2  ;;  %v388_v19 = vpop.f32.mrf.mxu0 }
  0xd7   :  { %v470_v17 = vpop.f32.mrf.mxu3  ;;  %494 = vst.msk [vmem:[%s958_s3 + $0x14] sm:$0xf] %vm488_vm0, %v486_v15  ;;  %v443_v18 = vadd.f32 %v442_v16, %v415_v13  ;;  %v416_v20 = vpop.f32.mrf.mxu1 }
  0xd9   :  { %v471_v21 = vadd.f32 %v470_v17, %v443_v18 }
  0xdb   :  { %v480_v22 = vmax.f32 %v471_v21, 0.0 }
  0xdd   :  { %v487_v23 = vpack.c.bf16 %v480_v22, %v480_v22 }
  0xde   :  { %v444_v24 = vpop.f32.mrf.mxu2 }
  0xdf   :  { %v472_v14 = vpop.f32.mrf.mxu3  ;;  %496 = vst.msk [vmem:[%s958_s3 + $0x18] sm:$0x1] %vm495_vm1, %v487_v23 }

// kernel: ppo_forward.13
= control target key start
LH: loop header
LB: loop body
LE: loop exit
PB: predicated region body
PF: predicated region fallthrough
CT: control target
= control target key end

     0   :  { %vm420_vm0 = vcmask 523264   ;;  %vm587_vm1 = vcmask 519168   ;;  %vm594_vm2 = vcmask 516096   ;;  %s1153_s1 = inlined_call_operand.vmem [shape: bf16[576,64], index: 1, kind: input, shape index: {}]   ;;  %s1154_s2 = inlined_call_operand.vmem [shape: f32[1,64], index: 2, kind: input, shape index: {}]   ;;  %s1155_s0 = inlined_call_operand.vmem [shape: bf16[50,576], index: 0, kind: input, shape index: {}]   ;;  %s1156_s3 = inlined_call_operand.vmem [shape: bf16[50,64], index: 3, kind: output, shape index: {}]  }
   0x1   :  { %v830_v0 = vld [vmem:[%s1153_s1 + $0x38] sm:$0xff]  ;;  %v829_v1 = vld [vmem:[%s1153_s1 + $0x30] sm:$0xff]  ;;  %v828_v4 = vld [vmem:[%s1153_s1 + $0x28] sm:$0xff] }
   0x2   :  { %859 = vmatpush.bf16.msra.mxu1 %v830_v0  ;;  %860 = vmatpush.bf16.msra.mxu2 %v830_v0  ;;  %v854_v2 = vld [vmem:[%s1153_s1 + $0xf8] sm:$0xff]  ;;  %v853_v3 = vld [vmem:[%s1153_s1 + $0xf0] sm:$0xff]  ;;  %v852_v5 = vld [vmem:[%s1153_s1 + $0xe8] sm:$0xff] }
   0x3   :  { %433 = vmatpush.bf16.msra.mxu0 %v830_v0  ;;  %517 = vmatpush.bf16.msra.mxu3 %v854_v2  ;;  %v827_v6 = vld [vmem:[%s1153_s1 + $0x20] sm:$0xff]  ;;  %v826_v8 = vld [vmem:[%s1153_s1 + $0x18] sm:$0xff]  ;;  %v825_v10 = vld [vmem:[%s1153_s1 + $0x10] sm:$0xff] }
   0x4   :  { %v851_v7 = vld [vmem:[%s1153_s1 + $0xe0] sm:$0xff]  ;;  %v850_v9 = vld [vmem:[%s1153_s1 + $0xd8] sm:$0xff]  ;;  %v849_v11 = vld [vmem:[%s1153_s1 + $0xd0] sm:$0xff] }
   0x5   :  { %v824_v12 = vld [vmem:[%s1153_s1 + $0x8] sm:$0xff]  ;;  %v938_v13 = vld [vmem:[%s1155_s0 + $0x78] sm:$0x11]  ;;  %v823_v16 = vld [vmem:[%s1153_s1] sm:$0xff] }
   0x6   :  { %861 = vmatpush.bf16.msra.mxu1 %v829_v1  ;;  %862 = vmatpush.bf16.msra.mxu2 %v829_v1  ;;  %v848_v14 = vld [vmem:[%s1153_s1 + $0xc8] sm:$0xff]  ;;  %v163_v15 = vunpack.c.l.b16 %v938_v13  ;;  %v815_v18 = vld [vmem:[%s1155_s0 + $0x38] sm:$0xf0]  ;;  %v602_v21 = vld [vmem:[%s1155_s0] sm:$0xf] }
   0x7   :  { %434 = vmatpush.bf16.msra.mxu0 %v829_v1  ;;  %518 = vmatpush.bf16.msra.mxu3 %v853_v3  ;;  %v622_v17 = vld [vmem:[%s1155_s0 + $0x28] sm:$0xf]  ;;  %v846_v19 = vld [vmem:[%s1153_s1 + $0xb8] sm:$0xff]  ;;  %v847_v22 = vld [vmem:[%s1153_s1 + $0xc0] sm:$0xff] }
   0x8   :  { %v838_v20 = vld [vmem:[%s1153_s1 + $0x78] sm:$0xff]  ;;  %v623_v23 = vor.u32 %v815_v18, %v622_v17  ;;  %v183_v24 = vpack.c.b16 %v163_v15, %v163_v15  ;;  %v810_v25 = vld [vmem:[%s1155_s0 + $0x10] sm:$0xf0]  ;;  %v809_v26 = vld [vmem:[%s1155_s0 + $0xc] sm:$0xf] }
   0x9   :  { %v612_v27 = vld [vmem:[%s1155_s0 + $0x1c] sm:$0xf0]  ;;  %v858_v28 = vld [vmem:[%s1153_s1 + $0x118] sm:$0xff]  ;;  %v845_v29 = vld [vmem:[%s1153_s1 + $0xb0] sm:$0xff]  ;;  %v603_v31 = vor.u32 %v810_v25, %v602_v21 }
   0xa   :  { %863 = vmatpush.bf16.msra.mxu1 %v828_v4  ;;  %864 = vmatpush.bf16.msra.mxu2 %v828_v4  ;;  %v837_v30 = vld [vmem:[%s1153_s1 + $0x70] sm:$0xff]  ;;  %v615_v32 = vor.u32 %v809_v26, %v612_v27  ;;  %v844_v34 = vld [vmem:[%s1153_s1 + $0xa8] sm:$0xff]  ;;  %v843_v37 = vld [vmem:[%s1153_s1 + $0xa0] sm:$0xff] }
   0xb   :  { %435 = vmatpush.bf16.msra.mxu0 %v828_v4  ;;  %519 = vmatpush.bf16.msra.mxu3 %v852_v5  ;;  %v857_v33 = vld [vmem:[%s1153_s1 + $0x110] sm:$0xff]  ;;  %v836_v35 = vld [vmem:[%s1153_s1 + $0x68] sm:$0xff]  ;;  %v835_v38 = vld [vmem:[%s1153_s1 + $0x60] sm:$0xff] }
   0xc   :  { %v856_v36 = vld [vmem:[%s1153_s1 + $0x108] sm:$0xff]  ;;  %v642_v39 = vld [vmem:[%s1155_s0 + $0x50] sm:$0xf]  ;;  %v820_v40 = vld [vmem:[%s1155_s0 + $0x60] sm:$0xf0] }
   0xd   :  { %v855_v41 = vld [vmem:[%s1153_s1 + $0x100] sm:$0xff]  ;;  %v842_v42 = vld [vmem:[%s1153_s1 + $0x98] sm:$0xff]  ;;  %v618_v44 = vld [vmem:[%s1155_s0 + $0x10] sm:$0xf]  ;;  %v643_v45 = vor.u32 %v820_v40, %v642_v39 }
   0xe   :  { %865 = vmatpush.bf16.msra.mxu1 %v827_v6  ;;  %866 = vmatpush.bf16.msra.mxu2 %v827_v6  ;;  %v834_v43 = vld [vmem:[%s1153_s1 + $0x58] sm:$0xff]  ;;  %v812_v46 = vld [vmem:[%s1155_s0 + $0x20] sm:$0xf0]  ;;  %v814_v47 = vld [vmem:[%s1155_s0 + $0x34] sm:$0xf] }
   0xf   :  { %436 = vmatpush.bf16.msra.mxu0 %v827_v6  ;;  %520 = vmatpush.bf16.msra.mxu3 %v851_v7  ;;  %v632_v48 = vld [vmem:[%s1155_s0 + $0x44] sm:$0xf0]  ;;  %v841_v49 = vld [vmem:[%s1153_s1 + $0x90] sm:$0xff]  ;;  %v619_v51 = vor.u32 %v812_v46, %v618_v44  ;;  %v839_v55 = vld [vmem:[%s1153_s1 + $0x80] sm:$0xff] }
  0x10   :  { %v833_v50 = vld [vmem:[%s1153_s1 + $0x50] sm:$0xff]  ;;  %v635_v52 = vor.u32 %v814_v47, %v632_v48  ;;  %v840_v53 = vld [vmem:[%s1153_s1 + $0x88] sm:$0xff]  ;;  %v831_v56 = vld [vmem:[%s1153_s1 + $0x40] sm:$0xff] }
  0x11   :  { %v832_v54 = vld [vmem:[%s1153_s1 + $0x48] sm:$0xff]  ;;  %v811_v58 = vld [vmem:[%s1155_s0 + $0x18] sm:$0xf0]  ;;  %v808_v60 = vld [vmem:[%s1155_s0 + $0x4] sm:$0xf] }
  0x12   :  { %867 = vmatpush.bf16.msra.mxu1 %v826_v8  ;;  %868 = vmatpush.bf16.msra.mxu2 %v826_v8  ;;  %v610_v57 = vld [vmem:[%s1155_s0 + $0x8] sm:$0xf]  ;;  %v604_v61 = vld [vmem:[%s1155_s0 + $0x14] sm:$0xf0]  ;;  %v817_v0 = vld [vmem:[%s1155_s0 + $0x48] sm:$0xf0] }
  0x13   :  { %437 = vmatpush.bf16.msra.mxu0 %v826_v8  ;;  %521 = vmatpush.bf16.msra.mxu3 %v850_v9  ;;  %v611_v59 = vor.u32 %v811_v58, %v610_v57  ;;  %v638_v62 = vld [vmem:[%s1155_s0 + $0x38] sm:$0xf]  ;;  %v607_v63 = vor.u32 %v808_v60, %v604_v61  ;;  %v819_v1 = vld [vmem:[%s1155_s0 + $0x5c] sm:$0xf]  ;;  %v652_v2 = vld [vmem:[%s1155_s0 + $0x6c] sm:$0xf0] }
  0x14   :  { %v639_v3 = vor.u32 %v817_v0, %v638_v62  ;;  %v655_v4 = vor.u32 %v819_v1, %v652_v2  ;;  %v630_v5 = vld [vmem:[%s1155_s0 + $0x30] sm:$0xf]  ;;  %v816_v6 = vld [vmem:[%s1155_s0 + $0x40] sm:$0xf0]  ;;  %v813_v9 = vld [vmem:[%s1155_s0 + $0x2c] sm:$0xf] }
  0x15   :  { %v34_v7 = vld [vmem:[%s1155_s0 + $0x80] sm:$0x11]  ;;  %v631_v8 = vor.u32 %v816_v6, %v630_v5  ;;  %v822_v15 = vld [vmem:[%s1155_s0 + $0x70] sm:$0xf0]  ;;  %v650_v18 = vld [vmem:[%s1155_s0 + $0x58] sm:$0xf] }
  0x16   :  { %869 = vmatpush.bf16.msra.mxu1 %v825_v10  ;;  %870 = vmatpush.bf16.msra.mxu2 %v825_v10  ;;  %v165_v27 = vunpack.c.l.b16 %v34_v7 }
  0x17   :  { %438 = vmatpush.bf16.msra.mxu0 %v825_v10  ;;  %522 = vmatpush.bf16.msra.mxu3 %v849_v11  ;;  %v624_v10 = vld [vmem:[%s1155_s0 + $0x3c] sm:$0xf0]  ;;  %v166_v11 = vunpack.c.h.b16 %v34_v7 }
  0x19   :  { %v186_v17 = vpack.c.b16 %v166_v11, %v166_v11 }
  0x1a   :  { %871 = vmatpush.bf16.msra.mxu1 %v824_v12  ;;  %872 = vmatpush.bf16.msra.mxu2 %v824_v12 }
  0x1b   :  { %439 = vmatpush.bf16.msra.mxu0 %v824_v12  ;;  %523 = vmatpush.bf16.msra.mxu3 %v848_v14  ;;  %v627_v12 = vor.u32 %v813_v9, %v624_v10  ;;  %v658_v14 = vld [vmem:[%s1155_s0 + $0x60] sm:$0xf] }
  0x1e   :  { %873 = vmatpush.bf16.msra.mxu1 %v823_v16  ;;  %874 = vmatpush.bf16.msra.mxu2 %v823_v16 }
  0x1f   :  { %440 = vmatpush.bf16.msra.mxu0 %v823_v16  ;;  %524 = vmatpush.bf16.msra.mxu3 %v847_v22  ;;  %v659_v16 = vor.u32 %v822_v15, %v658_v14  ;;  %v818_v22 = vld [vmem:[%s1155_s0 + $0x54] sm:$0xf] }
  0x21   :  { %446 = vmatmul.bf16.vlgmr.msra.gmra.mxu1 %v623_v23  ;;  %456 = vmatmul.bf16.vlgmr.msra.gmra.mxu2 %v183_v24  ;;  %v644_v23 = vld [vmem:[%s1155_s0 + $0x64] sm:$0xf0] }
  0x22   :  { %489 = vmatpush.bf16.msrb.mxu2 %v846_v19  ;;  %461 = vmatpush.bf16.msrb.mxu1 %v838_v20  ;;  %v821_v19 = vld [vmem:[%s1155_s0 + $0x68] sm:$0xf0]  ;;  %v35_v20 = vld [vmem:[%s1155_s0 + $0x88] sm:$0x1]  ;;  %v647_v25 = vor.u32 %v818_v22, %v644_v23 }
  0x23   :  { %549 = vmatpush.bf16.msrb.mxu0 %v858_v28  ;;  %525 = vmatmul.bf16.vlgmr.msra.gmra.mxu3 %v615_v32  ;;  %v651_v21 = vor.u32 %v821_v19, %v650_v18  ;;  %v167_v24 = vunpack.c.l.b16 %v35_v20  ;;  %v164_v28 = vunpack.c.h.b16 %v938_v13  ;;  %v1116_v13 = vld [vmem:[%s1154_s2] ss:$0 sm:$0xff] }
  0x24   :  { %441 = vmatmul.bf16.vlgmr.msra.gmra.mxu0 %v603_v31 }
  0x25   :  { %v187_v26 = vpack.c.b16 %v167_v24, %v167_v24 }
  0x26   :  { %490 = vmatpush.bf16.msrb.mxu2 %v845_v29  ;;  %462 = vmatpush.bf16.msrb.mxu1 %v837_v30  ;;  %v185_v29 = vpack.c.b16 %v165_v27, %v165_v27  ;;  %v184_v30 = vpack.c.b16 %v164_v28, %v164_v28 }
  0x27   :  { %550 = vmatpush.bf16.msrb.mxu0 %v857_v33 }
  0x2a   :  { %491 = vmatpush.bf16.msrb.mxu2 %v844_v34  ;;  %463 = vmatpush.bf16.msrb.mxu1 %v836_v35 }
  0x2b   :  { %551 = vmatpush.bf16.msrb.mxu0 %v856_v36 }
  0x2e   :  { %492 = vmatpush.bf16.msrb.mxu2 %v843_v37  ;;  %464 = vmatpush.bf16.msrb.mxu1 %v835_v38 }
  0x2f   :  { %552 = vmatpush.bf16.msrb.mxu0 %v855_v41 }
  0x31   :  { %451 = vmatmul.bf16.gmra.mxu1 %v643_v45 }
  0x32   :  { %493 = vmatpush.bf16.msrb.mxu2 %v842_v42  ;;  %465 = vmatpush.bf16.msrb.mxu1 %v834_v43 }
  0x33   :  { %530 = vmatmul.bf16.gmra.mxu3 %v635_v52 }
  0x34   :  { %804 = vmatmul.msk.bf16.vlgmr.msrb.gmra.mxu0 %vm420_vm0, %v619_v51 }
  0x36   :  { %494 = vmatpush.bf16.msrb.mxu2 %v841_v49  ;;  %466 = vmatpush.bf16.msrb.mxu1 %v833_v50 }
  0x3a   :  { %495 = vmatpush.bf16.msrb.mxu2 %v840_v53  ;;  %467 = vmatpush.bf16.msrb.mxu1 %v832_v54 }
  0x3e   :  { %496 = vmatpush.bf16.msrb.mxu2 %v839_v55  ;;  %468 = vmatpush.bf16.msrb.mxu1 %v831_v56 }
  0x41   :  { %497 = vmatmul.bf16.vlgmr.msrb.gmra.mxu2 %v611_v59  ;;  %469 = vmatmul.bf16.vlgmr.msrb.gmra.mxu1 %v607_v63 }
  0x43   :  { %535 = vmatmul.bf16.gmra.mxu3 %v655_v4 }
  0x44   :  { %805 = vmatmul.msk.bf16.gmra.mxu0 %vm420_vm0, %v639_v3 }
  0x51   :  { %502 = vmatmul.bf16.gmra.mxu2 %v631_v8  ;;  %474 = vmatmul.bf16.gmra.mxu1 %v627_v12 }
  0x53   :  { %540 = vmatmul.bf16.gmra.mxu3 %v186_v17 }
  0x54   :  { %806 = vmatmul.msk.bf16.gmra.mxu0 %vm420_vm0, %v659_v16 }
  0x61   :  { %507 = vmatmul.bf16.gmra.mxu2 %v651_v21  ;;  %479 = vmatmul.bf16.gmra.mxu1 %v647_v25 }
  0x64   :  { %807 = vmatmul.msk.bf16.gmra.mxu0 %vm420_vm0, %v187_v26 }
  0x71   :  { %512 = vmatmul.bf16.gmra.mxu2 %v185_v29  ;;  %484 = vmatmul.bf16.gmra.mxu1 %v184_v30 }
  0x9e   :  { %v447_v31 = vpop.f32.mrf.mxu1 }
  0x9f   :  { %v448_v63 = vadd.f32 %v1116_v13, %v447_v31 }
  0xa1   :  { %v442_v32 = vpop.f32.mrf.mxu0 }
  0xa2   :  { %v443_v44 = vadd.f32 %v1116_v13, %v442_v32 }
  0xa4   :  { %v1111_v33 = vpop.f32.mrf.mxu2 }
  0xa6   :  { %v449_v34 = vpop.f32.mrf.mxu1  ;;  %v526_v35 = vpop.f32.mrf.mxu3 }
  0xa7   :  { %v450_v10 = vadd.f32 %v1116_v13, %v449_v34 }
  0xa9   :  { %v444_v36 = vpop.f32.mrf.mxu0 }
  0xaa   :  { %v445_v52 = vadd.f32 %v1116_v13, %v444_v36 }
  0xac   :  { %v459_v37 = vpop.f32.mrf.mxu2 }
  0xae   :  { %v452_v38 = vpop.f32.mrf.mxu1  ;;  %v528_v39 = vpop.f32.mrf.mxu3 }
  0xaf   :  { %v453_v22 = vadd.f32 %v1116_v13, %v452_v38 }
  0xb1   :  { %v554_v40 = vpop.f32.mrf.mxu0 }
  0xb6   :  { %v454_v41 = vpop.f32.mrf.mxu1  ;;  %v531_v42 = vpop.f32.mrf.mxu3 }
  0xb7   :  { %v455_v34 = vadd.f32 %v1116_v13, %v454_v41 }
  0xb9   :  { %v556_v43 = vpop.f32.mrf.mxu0 }
  0xbe   :  { %v470_v45 = vpop.f32.mrf.mxu1  ;;  %v533_v47 = vpop.f32.mrf.mxu3 }
  0xbf   :  { %v471_v46 = vadd.f32 %v470_v45, %v443_v44  ;;  %v458_v45 = vadd.f32 %v1116_v13, %v1111_v33 }
  0xc1   :  { %v559_v49 = vpop.f32.mrf.mxu0 }
  0xc4   :  { %v498_v48 = vpop.f32.mrf.mxu2 }
  0xc5   :  { %v499_v50 = vadd.f32 %v498_v48, %v471_v46 }
  0xc6   :  { %v472_v54 = vpop.f32.mrf.mxu1  ;;  %v536_v56 = vpop.f32.mrf.mxu3 }
  0xc7   :  { %v527_v51 = vadd.f32 %v526_v35, %v499_v50  ;;  %v473_v55 = vadd.f32 %v472_v54, %v445_v52 }
  0xc9   :  { %v555_v53 = vadd.f32 %v554_v40, %v527_v51  ;;  %v561_v59 = vpop.f32.mrf.mxu0 }
  0xcb   :  { %v573_v57 = vmax.f32 %v555_v53, 0.0 }
  0xcc   :  { %v500_v58 = vpop.f32.mrf.mxu2 }
  0xcd   :  { %v580_v60 = vpack.c.bf16 %v573_v57, %v573_v57  ;;  %v501_v61 = vadd.f32 %v500_v58, %v473_v55 }
  0xce   :  { %v475_v1 = vpop.f32.mrf.mxu1  ;;  %v538_v3 = vpop.f32.mrf.mxu3 }
  0xcf   :  { %588 = vst.msk [vmem:[%s1156_s3] sm:$0xf] %vm587_vm1, %v580_v60  ;;  %v529_v62 = vadd.f32 %v528_v39, %v501_v61  ;;  %v476_v2 = vadd.f32 %v475_v1, %v448_v63 }
  0xd1   :  { %v557_v0 = vadd.f32 %v556_v43, %v529_v62  ;;  %v564_v6 = vpop.f32.mrf.mxu0 }
  0xd3   :  { %v574_v4 = vmax.f32 %v557_v0, 0.0 }
  0xd4   :  { %v503_v5 = vpop.f32.mrf.mxu2 }
  0xd5   :  { %v581_v7 = vpack.c.bf16 %v574_v4, %v574_v4  ;;  %v504_v8 = vadd.f32 %v503_v5, %v476_v2 }
  0xd6   :  { %v477_v12 = vpop.f32.mrf.mxu1  ;;  %v541_v15 = vpop.f32.mrf.mxu3 }
  0xd7   :  { %589 = vst.msk [vmem:[%s1156_s3 + $0x4] sm:$0xf] %vm587_vm1, %v581_v7  ;;  %v532_v9 = vadd.f32 %v531_v42, %v504_v8  ;;  %v478_v14 = vadd.f32 %v477_v12, %v450_v10 }
  0xd9   :  { %v560_v11 = vadd.f32 %v559_v49, %v532_v9  ;;  %v566_v18 = vpop.f32.mrf.mxu0 }
  0xdb   :  { %v575_v16 = vmax.f32 %v560_v11, 0.0 }
  0xdc   :  { %v505_v17 = vpop.f32.mrf.mxu2 }
  0xdd   :  { %v582_v19 = vpack.c.bf16 %v575_v16, %v575_v16  ;;  %v506_v20 = vadd.f32 %v505_v17, %v478_v14 }
  0xde   :  { %v480_v24 = vpop.f32.mrf.mxu1  ;;  %v543_v26 = vpop.f32.mrf.mxu3 }
  0xdf   :  { %590 = vst.msk [vmem:[%s1156_s3 + $0x8] sm:$0xf] %vm587_vm1, %v582_v19  ;;  %v534_v21 = vadd.f32 %v533_v47, %v506_v20  ;;  %v481_v25 = vadd.f32 %v480_v24, %v453_v22 }
  0xe1   :  { %v562_v23 = vadd.f32 %v561_v59, %v534_v21  ;;  %v569_v29 = vpop.f32.mrf.mxu0 }
  0xe3   :  { %v576_v27 = vmax.f32 %v562_v23, 0.0 }
  0xe4   :  { %v508_v28 = vpop.f32.mrf.mxu2 }
  0xe5   :  { %v583_v30 = vpack.c.bf16 %v576_v27, %v576_v27  ;;  %v509_v31 = vadd.f32 %v508_v28, %v481_v25 }
  0xe6   :  { %v482_v36 = vpop.f32.mrf.mxu1 }
  0xe7   :  { %591 = vst.msk [vmem:[%s1156_s3 + $0xc] sm:$0xf] %vm587_vm1, %v583_v30  ;;  %v537_v32 = vadd.f32 %v536_v56, %v509_v31  ;;  %v483_v37 = vadd.f32 %v482_v36, %v455_v34 }
  0xe9   :  { %v565_v35 = vadd.f32 %v564_v6, %v537_v32  ;;  %v571_v40 = vpop.f32.mrf.mxu0 }
  0xeb   :  { %v577_v38 = vmax.f32 %v565_v35, 0.0 }
  0xec   :  { %v510_v39 = vpop.f32.mrf.mxu2 }
  0xed   :  { %v584_v42 = vpack.c.bf16 %v577_v38, %v577_v38  ;;  %v511_v43 = vadd.f32 %v510_v39, %v483_v37 }
  0xee   :  { %v485_v47 = vpop.f32.mrf.mxu1 }
  0xef   :  { %592 = vst.msk [vmem:[%s1156_s3 + $0x10] sm:$0xf] %vm587_vm1, %v584_v42  ;;  %v539_v44 = vadd.f32 %v538_v3, %v511_v43  ;;  %v486_v41 = vadd.f32 %v485_v47, %v458_v45 }
  0xf1   :  { %v567_v46 = vadd.f32 %v566_v18, %v539_v44 }
  0xf3   :  { %v578_v48 = vmax.f32 %v567_v46, 0.0 }
  0xf4   :  { %v513_v49 = vpop.f32.mrf.mxu2 }
  0xf5   :  { %v585_v50 = vpack.c.bf16 %v578_v48, %v578_v48  ;;  %v514_v51 = vadd.f32 %v513_v49, %v486_v41 }
  0xf6   :  { %v487_v54 = vpop.f32.mrf.mxu1 }
  0xf7   :  { %593 = vst.msk [vmem:[%s1156_s3 + $0x14] sm:$0xf] %vm587_vm1, %v585_v50  ;;  %v542_v52 = vadd.f32 %v541_v15, %v514_v51 }
  0xf9   :  { %v570_v53 = vadd.f32 %v569_v29, %v542_v52 }
  0xfb   :  { %v579_v55 = vmax.f32 %v570_v53, 0.0 }
  0xfc   :  { %v515_v56 = vpop.f32.mrf.mxu2 }
  0xfd   :  { %v586_v57 = vpack.c.bf16 %v579_v55, %v579_v55 }
  0xff   :  { %595 = vst.msk [vmem:[%s1156_s3 + $0x18] sm:$0x1] %vm594_vm2, %v586_v57 }

// kernel: ppo_forward.14
= control target key start
LH: loop header
LB: loop body
LE: loop exit
PB: predicated region body
PF: predicated region fallthrough
CT: control target
= control target key end

     0   :  { %vm423_vm0 = vcmask 523264   ;;  %vm611_vm1 = vcmask 519168   ;;  %vm618_vm2 = vcmask 516096   ;;  %s1211_s1 = inlined_call_operand.vmem [shape: bf16[576,64], index: 1, kind: input, shape index: {}]   ;;  %s1212_s2 = inlined_call_operand.vmem [shape: f32[1,64], index: 2, kind: input, shape index: {}]   ;;  %s1213_s0 = inlined_call_operand.vmem [shape: bf16[50,576], index: 0, kind: input, shape index: {}]   ;;  %s1214_s3 = inlined_call_operand.vmem [shape: bf16[50,64], index: 3, kind: input, shape index: {}]   ;;  %s1215_s4 = inlined_call_operand.vmem [shape: bf16[50,64], index: 4, kind: output, shape index: {}]  }
   0x1   :  { %v854_v0 = vld [vmem:[%s1211_s1 + $0x38] sm:$0xff]  ;;  %v853_v1 = vld [vmem:[%s1211_s1 + $0x30] sm:$0xff]  ;;  %v852_v4 = vld [vmem:[%s1211_s1 + $0x28] sm:$0xff] }
   0x2   :  { %897 = vmatpush.bf16.msra.mxu1 %v854_v0  ;;  %898 = vmatpush.bf16.msra.mxu2 %v854_v0  ;;  %v878_v2 = vld [vmem:[%s1211_s1 + $0xf8] sm:$0xff]  ;;  %v877_v3 = vld [vmem:[%s1211_s1 + $0xf0] sm:$0xff]  ;;  %v876_v5 = vld [vmem:[%s1211_s1 + $0xe8] sm:$0xff] }
   0x3   :  { %436 = vmatpush.bf16.msra.mxu0 %v854_v0  ;;  %520 = vmatpush.bf16.msra.mxu3 %v878_v2  ;;  %v851_v6 = vld [vmem:[%s1211_s1 + $0x20] sm:$0xff]  ;;  %v850_v8 = vld [vmem:[%s1211_s1 + $0x18] sm:$0xff]  ;;  %v849_v10 = vld [vmem:[%s1211_s1 + $0x10] sm:$0xff] }
   0x4   :  { %v875_v7 = vld [vmem:[%s1211_s1 + $0xe0] sm:$0xff]  ;;  %v874_v9 = vld [vmem:[%s1211_s1 + $0xd8] sm:$0xff]  ;;  %v873_v11 = vld [vmem:[%s1211_s1 + $0xd0] sm:$0xff] }
   0x5   :  { %v848_v12 = vld [vmem:[%s1211_s1 + $0x8] sm:$0xff]  ;;  %v981_v13 = vld [vmem:[%s1213_s0 + $0x78] sm:$0x11]  ;;  %v847_v16 = vld [vmem:[%s1211_s1] sm:$0xff] }
   0x6   :  { %899 = vmatpush.bf16.msra.mxu1 %v853_v1  ;;  %900 = vmatpush.bf16.msra.mxu2 %v853_v1  ;;  %v872_v14 = vld [vmem:[%s1211_s1 + $0xc8] sm:$0xff]  ;;  %v166_v15 = vunpack.c.l.b16 %v981_v13  ;;  %v839_v18 = vld [vmem:[%s1213_s0 + $0x38] sm:$0xf0]  ;;  %v626_v21 = vld [vmem:[%s1213_s0] sm:$0xf] }
   0x7   :  { %437 = vmatpush.bf16.msra.mxu0 %v853_v1  ;;  %521 = vmatpush.bf16.msra.mxu3 %v877_v3  ;;  %v646_v17 = vld [vmem:[%s1213_s0 + $0x28] sm:$0xf]  ;;  %v870_v19 = vld [vmem:[%s1211_s1 + $0xb8] sm:$0xff]  ;;  %v871_v22 = vld [vmem:[%s1211_s1 + $0xc0] sm:$0xff] }
   0x8   :  { %v862_v20 = vld [vmem:[%s1211_s1 + $0x78] sm:$0xff]  ;;  %v647_v23 = vor.u32 %v839_v18, %v646_v17  ;;  %v186_v24 = vpack.c.b16 %v166_v15, %v166_v15  ;;  %v834_v25 = vld [vmem:[%s1213_s0 + $0x10] sm:$0xf0]  ;;  %v833_v26 = vld [vmem:[%s1213_s0 + $0xc] sm:$0xf] }
   0x9   :  { %v636_v27 = vld [vmem:[%s1213_s0 + $0x1c] sm:$0xf0]  ;;  %v882_v28 = vld [vmem:[%s1211_s1 + $0x118] sm:$0xff]  ;;  %v869_v29 = vld [vmem:[%s1211_s1 + $0xb0] sm:$0xff]  ;;  %v627_v31 = vor.u32 %v834_v25, %v626_v21 }
   0xa   :  { %901 = vmatpush.bf16.msra.mxu1 %v852_v4  ;;  %902 = vmatpush.bf16.msra.mxu2 %v852_v4  ;;  %v861_v30 = vld [vmem:[%s1211_s1 + $0x70] sm:$0xff]  ;;  %v639_v32 = vor.u32 %v833_v26, %v636_v27  ;;  %v868_v34 = vld [vmem:[%s1211_s1 + $0xa8] sm:$0xff]  ;;  %v867_v37 = vld [vmem:[%s1211_s1 + $0xa0] sm:$0xff] }
   0xb   :  { %438 = vmatpush.bf16.msra.mxu0 %v852_v4  ;;  %522 = vmatpush.bf16.msra.mxu3 %v876_v5  ;;  %v881_v33 = vld [vmem:[%s1211_s1 + $0x110] sm:$0xff]  ;;  %v860_v35 = vld [vmem:[%s1211_s1 + $0x68] sm:$0xff]  ;;  %v859_v38 = vld [vmem:[%s1211_s1 + $0x60] sm:$0xff] }
   0xc   :  { %v880_v36 = vld [vmem:[%s1211_s1 + $0x108] sm:$0xff]  ;;  %v666_v39 = vld [vmem:[%s1213_s0 + $0x50] sm:$0xf]  ;;  %v844_v40 = vld [vmem:[%s1213_s0 + $0x60] sm:$0xf0] }
   0xd   :  { %v879_v41 = vld [vmem:[%s1211_s1 + $0x100] sm:$0xff]  ;;  %v866_v42 = vld [vmem:[%s1211_s1 + $0x98] sm:$0xff]  ;;  %v642_v44 = vld [vmem:[%s1213_s0 + $0x10] sm:$0xf]  ;;  %v667_v45 = vor.u32 %v844_v40, %v666_v39 }
   0xe   :  { %903 = vmatpush.bf16.msra.mxu1 %v851_v6  ;;  %904 = vmatpush.bf16.msra.mxu2 %v851_v6  ;;  %v858_v43 = vld [vmem:[%s1211_s1 + $0x58] sm:$0xff]  ;;  %v836_v46 = vld [vmem:[%s1213_s0 + $0x20] sm:$0xf0]  ;;  %v838_v47 = vld [vmem:[%s1213_s0 + $0x34] sm:$0xf] }
   0xf   :  { %439 = vmatpush.bf16.msra.mxu0 %v851_v6  ;;  %523 = vmatpush.bf16.msra.mxu3 %v875_v7  ;;  %v656_v48 = vld [vmem:[%s1213_s0 + $0x44] sm:$0xf0]  ;;  %v865_v49 = vld [vmem:[%s1211_s1 + $0x90] sm:$0xff]  ;;  %v643_v51 = vor.u32 %v836_v46, %v642_v44  ;;  %v863_v55 = vld [vmem:[%s1211_s1 + $0x80] sm:$0xff] }
  0x10   :  { %v857_v50 = vld [vmem:[%s1211_s1 + $0x50] sm:$0xff]  ;;  %v659_v52 = vor.u32 %v838_v47, %v656_v48  ;;  %v864_v53 = vld [vmem:[%s1211_s1 + $0x88] sm:$0xff]  ;;  %v855_v56 = vld [vmem:[%s1211_s1 + $0x40] sm:$0xff] }
  0x11   :  { %v856_v54 = vld [vmem:[%s1211_s1 + $0x48] sm:$0xff]  ;;  %v835_v58 = vld [vmem:[%s1213_s0 + $0x18] sm:$0xf0]  ;;  %v832_v60 = vld [vmem:[%s1213_s0 + $0x4] sm:$0xf] }
  0x12   :  { %905 = vmatpush.bf16.msra.mxu1 %v850_v8  ;;  %906 = vmatpush.bf16.msra.mxu2 %v850_v8  ;;  %v634_v57 = vld [vmem:[%s1213_s0 + $0x8] sm:$0xf]  ;;  %v628_v61 = vld [vmem:[%s1213_s0 + $0x14] sm:$0xf0]  ;;  %v841_v0 = vld [vmem:[%s1213_s0 + $0x48] sm:$0xf0] }
  0x13   :  { %440 = vmatpush.bf16.msra.mxu0 %v850_v8  ;;  %524 = vmatpush.bf16.msra.mxu3 %v874_v9  ;;  %v635_v59 = vor.u32 %v835_v58, %v634_v57  ;;  %v662_v62 = vld [vmem:[%s1213_s0 + $0x38] sm:$0xf]  ;;  %v631_v63 = vor.u32 %v832_v60, %v628_v61  ;;  %v843_v1 = vld [vmem:[%s1213_s0 + $0x5c] sm:$0xf]  ;;  %v676_v2 = vld [vmem:[%s1213_s0 + $0x6c] sm:$0xf0] }
  0x14   :  { %v663_v3 = vor.u32 %v841_v0, %v662_v62  ;;  %v679_v4 = vor.u32 %v843_v1, %v676_v2  ;;  %v654_v5 = vld [vmem:[%s1213_s0 + $0x30] sm:$0xf]  ;;  %v840_v6 = vld [vmem:[%s1213_s0 + $0x40] sm:$0xf0]  ;;  %v837_v9 = vld [vmem:[%s1213_s0 + $0x2c] sm:$0xf] }
  0x15   :  { %v37_v7 = vld [vmem:[%s1213_s0 + $0x80] sm:$0x11]  ;;  %v655_v8 = vor.u32 %v840_v6, %v654_v5  ;;  %v846_v15 = vld [vmem:[%s1213_s0 + $0x70] sm:$0xf0]  ;;  %v674_v18 = vld [vmem:[%s1213_s0 + $0x58] sm:$0xf] }
  0x16   :  { %907 = vmatpush.bf16.msra.mxu1 %v849_v10  ;;  %908 = vmatpush.bf16.msra.mxu2 %v849_v10  ;;  %v168_v27 = vunpack.c.l.b16 %v37_v7 }
  0x17   :  { %441 = vmatpush.bf16.msra.mxu0 %v849_v10  ;;  %525 = vmatpush.bf16.msra.mxu3 %v873_v11  ;;  %v648_v10 = vld [vmem:[%s1213_s0 + $0x3c] sm:$0xf0]  ;;  %v169_v11 = vunpack.c.h.b16 %v37_v7 }
  0x19   :  { %v189_v17 = vpack.c.b16 %v169_v11, %v169_v11 }
  0x1a   :  { %909 = vmatpush.bf16.msra.mxu1 %v848_v12  ;;  %910 = vmatpush.bf16.msra.mxu2 %v848_v12 }
  0x1b   :  { %442 = vmatpush.bf16.msra.mxu0 %v848_v12  ;;  %526 = vmatpush.bf16.msra.mxu3 %v872_v14  ;;  %v651_v12 = vor.u32 %v837_v9, %v648_v10  ;;  %v682_v14 = vld [vmem:[%s1213_s0 + $0x60] sm:$0xf]  ;;  %v895_v10 = vld [vmem:[%s1214_s3 + $0x8] sm:$0xff]  }
  0x1e   :  { %911 = vmatpush.bf16.msra.mxu1 %v847_v16  ;;  %912 = vmatpush.bf16.msra.mxu2 %v847_v16 }
  0x1f   :  { %443 = vmatpush.bf16.msra.mxu0 %v847_v16  ;;  %527 = vmatpush.bf16.msra.mxu3 %v871_v22  ;;  %v683_v16 = vor.u32 %v846_v15, %v682_v14  ;;  %v842_v22 = vld [vmem:[%s1213_s0 + $0x54] sm:$0xf] }
  0x21   :  { %449 = vmatmul.bf16.vlgmr.msra.gmra.mxu1 %v647_v23  ;;  %459 = vmatmul.bf16.vlgmr.msra.gmra.mxu2 %v186_v24  ;;  %v668_v23 = vld [vmem:[%s1213_s0 + $0x64] sm:$0xf0] }
  0x22   :  { %492 = vmatpush.bf16.msrb.mxu2 %v870_v19  ;;  %464 = vmatpush.bf16.msrb.mxu1 %v862_v20  ;;  %v845_v19 = vld [vmem:[%s1213_s0 + $0x68] sm:$0xf0]  ;;  %v38_v20 = vld [vmem:[%s1213_s0 + $0x88] sm:$0x1]  ;;  %v671_v25 = vor.u32 %v842_v22, %v668_v23 }
  0x23   :  { %552 = vmatpush.bf16.msrb.mxu0 %v882_v28  ;;  %528 = vmatmul.bf16.vlgmr.msra.gmra.mxu3 %v639_v32  ;;  %v675_v21 = vor.u32 %v845_v19, %v674_v18  ;;  %v170_v24 = vunpack.c.l.b16 %v38_v20  ;;  %v167_v28 = vunpack.c.h.b16 %v981_v13  ;;  %v1161_v13 = vld [vmem:[%s1212_s2] ss:$0 sm:$0xff] }
  0x24   :  { %444 = vmatmul.bf16.vlgmr.msra.gmra.mxu0 %v627_v31 }
  0x25   :  { %v190_v26 = vpack.c.b16 %v170_v24, %v170_v24 }
  0x26   :  { %493 = vmatpush.bf16.msrb.mxu2 %v869_v29  ;;  %465 = vmatpush.bf16.msrb.mxu1 %v861_v30  ;;  %v188_v29 = vpack.c.b16 %v168_v27, %v168_v27  ;;  %v187_v30 = vpack.c.b16 %v167_v28, %v167_v28 }
  0x27   :  { %553 = vmatpush.bf16.msrb.mxu0 %v881_v33 }
  0x2a   :  { %494 = vmatpush.bf16.msrb.mxu2 %v868_v34  ;;  %466 = vmatpush.bf16.msrb.mxu1 %v860_v35 }
  0x2b   :  { %554 = vmatpush.bf16.msrb.mxu0 %v880_v36 }
  0x2e   :  { %495 = vmatpush.bf16.msrb.mxu2 %v867_v37  ;;  %467 = vmatpush.bf16.msrb.mxu1 %v859_v38 }
  0x2f   :  { %555 = vmatpush.bf16.msrb.mxu0 %v879_v41 }
  0x31   :  { %454 = vmatmul.bf16.gmra.mxu1 %v667_v45 }
  0x32   :  { %496 = vmatpush.bf16.msrb.mxu2 %v866_v42  ;;  %468 = vmatpush.bf16.msrb.mxu1 %v858_v43 }
  0x33   :  { %533 = vmatmul.bf16.gmra.mxu3 %v659_v52 }
  0x34   :  { %828 = vmatmul.msk.bf16.vlgmr.msrb.gmra.mxu0 %vm423_vm0, %v643_v51 }
  0x36   :  { %497 = vmatpush.bf16.msrb.mxu2 %v865_v49  ;;  %469 = vmatpush.bf16.msrb.mxu1 %v857_v50  ;;  %v884_v49 = vld [vmem:[%s1214_s3] sm:$0xff]  }
  0x37   :  { %v886_v2 = vunpack.c.h.bf16 %v884_v49 }
  0x3a   :  { %498 = vmatpush.bf16.msrb.mxu2 %v864_v53  ;;  %470 = vmatpush.bf16.msrb.mxu1 %v856_v54  ;;  %v885_v53 = vunpack.c.l.bf16 %v884_v49 }
  0x3e   :  { %499 = vmatpush.bf16.msrb.mxu2 %v863_v55  ;;  %471 = vmatpush.bf16.msrb.mxu1 %v855_v56 }
  0x41   :  { %500 = vmatmul.bf16.vlgmr.msrb.gmra.mxu2 %v635_v59  ;;  %472 = vmatmul.bf16.vlgmr.msrb.gmra.mxu1 %v631_v63 }
  0x43   :  { %538 = vmatmul.bf16.gmra.mxu3 %v679_v4 }
  0x44   :  { %829 = vmatmul.msk.bf16.gmra.mxu0 %vm423_vm0, %v663_v3 }
  0x51   :  { %505 = vmatmul.bf16.gmra.mxu2 %v655_v8  ;;  %477 = vmatmul.bf16.gmra.mxu1 %v651_v12 }
  0x53   :  { %543 = vmatmul.bf16.gmra.mxu3 %v189_v17  ;;  %v889_v17 = vunpack.c.l.bf16 %v895_v10 }
  0x54   :  { %830 = vmatmul.msk.bf16.gmra.mxu0 %vm423_vm0, %v683_v16 }
  0x61   :  { %510 = vmatmul.bf16.gmra.mxu2 %v675_v21  ;;  %482 = vmatmul.bf16.gmra.mxu1 %v671_v25 }
  0x64   :  { %831 = vmatmul.msk.bf16.gmra.mxu0 %vm423_vm0, %v190_v26 }
  0x71   :  { %515 = vmatmul.bf16.gmra.mxu2 %v188_v29  ;;  %487 = vmatmul.bf16.gmra.mxu1 %v187_v30  ;;  %v890_v30 = vunpack.c.h.bf16 %v895_v10 }
  0x9e   :  { %v450_v31 = vpop.f32.mrf.mxu1 }
  0x9f   :  { %v451_v3 = vadd.f32 %v1161_v13, %v450_v31 }
  0xa1   :  { %v445_v32 = vpop.f32.mrf.mxu0 }
  0xa2   :  { %v446_v44 = vadd.f32 %v1161_v13, %v445_v32 }
  0xa4   :  { %v1154_v33 = vpop.f32.mrf.mxu2 }
  0xa6   :  { %v452_v34 = vpop.f32.mrf.mxu1  ;;  %v529_v35 = vpop.f32.mrf.mxu3 }
  0xa7   :  { %v453_v18 = vadd.f32 %v1161_v13, %v452_v34 }
  0xa9   :  { %v447_v36 = vpop.f32.mrf.mxu0 }
  0xaa   :  { %v448_v54 = vadd.f32 %v1161_v13, %v447_v36 }
  0xac   :  { %v462_v37 = vpop.f32.mrf.mxu2 }
  0xae   :  { %v455_v38 = vpop.f32.mrf.mxu1  ;;  %v531_v39 = vpop.f32.mrf.mxu3 }
  0xaf   :  { %v456_v31 = vadd.f32 %v1161_v13, %v455_v38 }
  0xb1   :  { %v557_v40 = vpop.f32.mrf.mxu0 }
  0xb6   :  { %v1156_v41 = vpop.f32.mrf.mxu1  ;;  %v534_v42 = vpop.f32.mrf.mxu3 }
  0xb9   :  { %v559_v43 = vpop.f32.mrf.mxu0 }
  0xbe   :  { %v473_v45 = vpop.f32.mrf.mxu1  ;;  %v536_v47 = vpop.f32.mrf.mxu3 }
  0xbf   :  { %v474_v46 = vadd.f32 %v473_v45, %v446_v44 }
  0xc1   :  { %v562_v50 = vpop.f32.mrf.mxu0 }
  0xc4   :  { %v501_v48 = vpop.f32.mrf.mxu2 }
  0xc5   :  { %v502_v51 = vadd.f32 %v501_v48, %v474_v46 }
  0xc6   :  { %v475_v56 = vpop.f32.mrf.mxu1  ;;  %v539_v58 = vpop.f32.mrf.mxu3 }
  0xc7   :  { %v530_v52 = vadd.f32 %v529_v35, %v502_v51  ;;  %v476_v57 = vadd.f32 %v475_v56, %v448_v54 }
  0xc9   :  { %v558_v55 = vadd.f32 %v557_v40, %v530_v52  ;;  %v564_v61 = vpop.f32.mrf.mxu0  ;;  %v896_v40 = vld [vmem:[%s1214_s3 + $0x10] sm:$0xff]  }
  0xca   :  { %v893_v46 = vunpack.c.l.bf16 %v896_v40 }
  0xcb   :  { %v590_v59 = vadd.f32 %v885_v53, %v558_v55 }
  0xcc   :  { %v503_v60 = vpop.f32.mrf.mxu2 }
  0xcd   :  { %v597_v62 = vmax.f32 %v590_v59, 0.0  ;;  %v504_v63 = vadd.f32 %v503_v60, %v476_v57  ;;  %v461_v59 = vadd.f32 %v1161_v13, %v1154_v33 }
  0xce   :  { %v478_v5 = vpop.f32.mrf.mxu1  ;;  %v541_v7 = vpop.f32.mrf.mxu3 }
  0xcf   :  { %v604_v0 = vpack.c.bf16 %v597_v62, %v597_v62  ;;  %v532_v1 = vadd.f32 %v531_v39, %v504_v63  ;;  %v479_v6 = vadd.f32 %v478_v5, %v451_v3 }
  0xd1   :  { %612 = vst.msk [vmem:[%s1215_s4] sm:$0xf] %vm611_vm1, %v604_v0  ;;  %v560_v4 = vadd.f32 %v559_v43, %v532_v1  ;;  %v567_v11 = vpop.f32.mrf.mxu0  ;;  %v582_v0 = vld [vmem:[%s1214_s3 + $0x18] sm:$0x1] }
  0xd2   :  { %v589_v5 = vunpack.c.l.bf16 %v582_v0 }
  0xd3   :  { %v591_v8 = vadd.f32 %v886_v2, %v560_v4 }
  0xd4   :  { %v506_v9 = vpop.f32.mrf.mxu2 }
  0xd5   :  { %v598_v12 = vmax.f32 %v591_v8, 0.0  ;;  %v507_v14 = vadd.f32 %v506_v9, %v479_v6 }
  0xd6   :  { %v480_v20 = vpop.f32.mrf.mxu1  ;;  %v544_v22 = vpop.f32.mrf.mxu3 }
  0xd7   :  { %v605_v15 = vpack.c.bf16 %v598_v12, %v598_v12  ;;  %v535_v16 = vadd.f32 %v534_v42, %v507_v14  ;;  %v481_v21 = vadd.f32 %v480_v20, %v453_v18 }
  0xd9   :  { %613 = vst.msk [vmem:[%s1215_s4 + $0x4] sm:$0xf] %vm611_vm1, %v605_v15  ;;  %v563_v19 = vadd.f32 %v562_v50, %v535_v16  ;;  %v569_v25 = vpop.f32.mrf.mxu0 }
  0xdb   :  { %v592_v23 = vadd.f32 %v889_v17, %v563_v19 }
  0xdc   :  { %v508_v24 = vpop.f32.mrf.mxu2 }
  0xdd   :  { %v599_v26 = vmax.f32 %v592_v23, 0.0  ;;  %v509_v27 = vadd.f32 %v508_v24, %v481_v21 }
  0xde   :  { %v483_v34 = vpop.f32.mrf.mxu1  ;;  %v546_v36 = vpop.f32.mrf.mxu3 }
  0xdf   :  { %v606_v28 = vpack.c.bf16 %v599_v26, %v599_v26  ;;  %v537_v29 = vadd.f32 %v536_v47, %v509_v27  ;;  %v484_v35 = vadd.f32 %v483_v34, %v456_v31  ;;  %v458_v47 = vadd.f32 %v1161_v13, %v1156_v41 }
  0xe1   :  { %614 = vst.msk [vmem:[%s1215_s4 + $0x8] sm:$0xf] %vm611_vm1, %v606_v28  ;;  %v565_v32 = vadd.f32 %v564_v61, %v537_v29  ;;  %v572_v42 = vpop.f32.mrf.mxu0 }
  0xe3   :  { %v593_v37 = vadd.f32 %v890_v30, %v565_v32 }
  0xe4   :  { %v511_v39 = vpop.f32.mrf.mxu2 }
  0xe5   :  { %v600_v43 = vmax.f32 %v593_v37, 0.0  ;;  %v512_v44 = vadd.f32 %v511_v39, %v484_v35 }
  0xe6   :  { %v485_v49 = vpop.f32.mrf.mxu1 }
  0xe7   :  { %v607_v45 = vpack.c.bf16 %v600_v43, %v600_v43  ;;  %v540_v38 = vadd.f32 %v539_v58, %v512_v44  ;;  %v486_v50 = vadd.f32 %v485_v49, %v458_v47  ;;  %v894_v58 = vunpack.c.h.bf16 %v896_v40 }
  0xe9   :  { %615 = vst.msk [vmem:[%s1215_s4 + $0xc] sm:$0xf] %vm611_vm1, %v607_v45  ;;  %v568_v48 = vadd.f32 %v567_v11, %v540_v38  ;;  %v574_v53 = vpop.f32.mrf.mxu0 }
  0xeb   :  { %v594_v51 = vadd.f32 %v893_v46, %v568_v48 }
  0xec   :  { %v513_v52 = vpop.f32.mrf.mxu2 }
  0xed   :  { %v601_v54 = vmax.f32 %v594_v51, 0.0  ;;  %v514_v55 = vadd.f32 %v513_v52, %v486_v50 }
  0xee   :  { %v488_v60 = vpop.f32.mrf.mxu1 }
  0xef   :  { %v608_v56 = vpack.c.bf16 %v601_v54, %v601_v54  ;;  %v542_v57 = vadd.f32 %v541_v7, %v514_v55  ;;  %v489_v61 = vadd.f32 %v488_v60, %v461_v59 }
  0xf1   :  { %616 = vst.msk [vmem:[%s1215_s4 + $0x10] sm:$0xf] %vm611_vm1, %v608_v56  ;;  %v570_v41 = vadd.f32 %v569_v25, %v542_v57 }
  0xf3   :  { %v595_v62 = vadd.f32 %v894_v58, %v570_v41 }
  0xf4   :  { %v516_v63 = vpop.f32.mrf.mxu2 }
  0xf5   :  { %v602_v1 = vmax.f32 %v595_v62, 0.0  ;;  %v517_v2 = vadd.f32 %v516_v63, %v489_v61 }
  0xf6   :  { %v490_v13 = vpop.f32.mrf.mxu1 }
  0xf7   :  { %v609_v3 = vpack.c.bf16 %v602_v1, %v602_v1  ;;  %v545_v4 = vadd.f32 %v544_v22, %v517_v2 }
  0xf9   :  { %617 = vst.msk [vmem:[%s1215_s4 + $0x14] sm:$0xf] %vm611_vm1, %v609_v3  ;;  %v573_v33 = vadd.f32 %v572_v42, %v545_v4 }
  0xfb   :  { %v596_v6 = vadd.f32 %v589_v5, %v573_v33 }
  0xfc   :  { %v518_v7 = vpop.f32.mrf.mxu2 }
  0xfd   :  { %v603_v8 = vmax.f32 %v596_v6, 0.0 }
  0xff   :  { %v610_v9 = vpack.c.bf16 %v603_v8, %v603_v8 }
 0x101   :  { %619 = vst.msk [vmem:[%s1215_s4 + $0x18] sm:$0x1] %vm618_vm2, %v610_v9 }

// kernel: ppo_forward.15
= control target key start
LH: loop header
LB: loop body
LE: loop exit
PB: predicated region body
PF: predicated region fallthrough
CT: control target
= control target key end

     0   :  { %v570_v2 = vmov 25.0   ;;  %vm36_vm0 = vcmask 523264   ;;  %vm42_vm1 = vcmask 516096   ;;  %vm110_vm3 = vcmask 1041409   ;;  %s852_s1 = inlined_call_operand.vmem [shape: f32[64,4], index: 1, kind: input, shape index: {}]   ;;  %s853_s0 = inlined_call_operand.vmem [shape: bf16[2,25,64], index: 0, kind: input, shape index: {}]   ;;  %s854_s2 = inlined_call_operand.vmem [shape: f32[4,64], index: 2, kind: input, shape index: {}]   ;;  %s855_s3 = inlined_call_operand.vmem [shape: f32[25,25], index: 3, kind: input, shape index: {}]   ;;  %s856_s4 = inlined_call_operand.vmem [shape: f32[25,25], index: 4, kind: input, shape index: {}]   ;;  %s857_s5 = inlined_call_operand.vmem [shape: bf16[2,25,64], index: 5, kind: output, shape index: {}]  }
   0x1   :  { %v106_v0 = vld [vmem:[%s852_s1 + $0x38] sm:$0xff]  ;;  %v105_v1 = vld [vmem:[%s852_s1 + $0x30] sm:$0xff]  ;;  %558 = vrcp.f32 %v570_v2  ;;  %v104_v3 = vld [vmem:[%s852_s1 + $0x28] sm:$0xff]  ;;  %vm165_vm4 = vcmask 1043456   ;;  %vm161_vm5 = vcmask 31744   ;;  %vm350_vm10 = vcmask 1040384  }
   0x2   :  { %122 = vmatpush.msra.mxu0 %v106_v0  ;;  %148 = vmatpush.msra.mxu1 %v106_v0  ;;  %v540_v4 = vld [vmem:[%s853_s0] sm:$0xff]   ;;  %v22_v7 = vld [vmem:[%s853_s0 + $0x8] sm:$0xf]  ;;  %v23_v8 = vld [vmem:[%s853_s0 + $0xc] sm:$0x1]  ;;  %vm329_vm12 = vcmask 130112  }
   0x3   :  { %v614_v5 = vunpack.c.l.bf16 %v540_v4  ;;  %v616_v6 = vunpack.c.h.bf16 %v540_v4  ;;  %v547_v9 = vld [vmem:[%s853_s0 + $0x10] sm:$0xff]   ;;  %v103_v10 = vld [vmem:[%s852_s1 + $0x20] sm:$0xff]  ;;  %v26_v13 = vld [vmem:[%s853_s0 + $0x18] sm:$0xf]  ;;  %v640_v15 = vunpack.c.l.bf16 %v22_v7  ;;  %v642_v16 = vunpack.c.l.bf16 %v23_v8 }
   0x4   :  { %123 = vmatpush.msra.mxu0 %v105_v1  ;;  %149 = vmatpush.msra.mxu1 %v105_v1  ;;  %v630_v11 = vunpack.c.l.bf16 %v547_v9  ;;  %v632_v12 = vunpack.c.h.bf16 %v547_v9  ;;  %v27_v14 = vld [vmem:[%s853_s0 + $0x1c] sm:$0x1]  ;;  %v644_v17 = vunpack.c.l.bf16 %v26_v13  ;;  %v101_v30 = vld [vmem:[%s852_s1 + $0x10] sm:$0xff]  ;;  %v100_v39 = vld [vmem:[%s852_s1 + $0x8] sm:$0xff]  ;;  %vm333_vm13 = vcmask 195712  }
   0x5   :  { %v646_v18 = vunpack.c.l.bf16 %v27_v14  ;;  %v37_v19 = vsel %vm36_vm0, %v614_v5, 0.0  ;;  %v38_v20 = vsel %vm36_vm0, %v616_v6, 0.0  ;;  %v102_v22 = vld [vmem:[%s852_s1 + $0x18] sm:$0xff]  ;;  %v40_v24 = vsel %vm36_vm0, %v640_v15, 0.0  ;;  %v99_v47 = vld [vmem:[%s852_s1] sm:$0xff] }
   0x6   :  { %124 = vmatpush.msra.mxu0 %v104_v3  ;;  %150 = vmatpush.msra.mxu1 %v104_v3  ;;  %v39_v23 = vadd.f32 %v38_v20, %v37_v19  ;;  %v51_v25 = vsel %vm36_vm0, %v630_v11, 0.0  ;;  %v43_v26 = vsel %vm42_vm1, %v642_v16, 0.0  ;;  %v52_v27 = vsel %vm36_vm0, %v632_v12, 0.0 }
   0x7   :  { %v559_v21 = vpop.eup %558  ;;  %v54_v28 = vsel %vm36_vm0, %v644_v17, 0.0  ;;  %v53_v32 = vadd.f32 %v52_v27, %v51_v25  ;;  %v56_v33 = vsel %vm42_vm1, %v646_v18, 0.0  ;;  %v73_v34 = vsel %vm36_vm0, %v614_v5, -inf }
   0x8   :  { %125 = vmatpush.msra.mxu0 %v103_v10  ;;  %151 = vmatpush.msra.mxu1 %v103_v10  ;;  %v65_v29 = vmul.f32 25.0, %v559_v21  ;;  %v41_v31 = vadd.f32 %v40_v24, %v39_v23  ;;  %v74_v36 = vsel %vm36_vm0, %v616_v6, -inf  ;;  %v75_v37 = vsel %vm36_vm0, %v640_v15, -inf }
   0x9   :  { %v77_v38 = vsel %vm42_vm1, %v642_v16, -inf  ;;  %v55_v41 = vadd.f32 %v54_v28, %v53_v32  ;;  %v76_v42 = vmax.f32 %v73_v34, %v75_v37  ;;  %v86_v44 = vsel %vm36_vm0, %v630_v11, -inf }
   0xa   :  { %126 = vmatpush.msra.mxu0 %v102_v22  ;;  %152 = vmatpush.msra.mxu1 %v102_v22  ;;  %v66_v35 = vsub.f32 1.0, %v65_v29  ;;  %v44_v40 = vadd.f32 %v43_v26, %v41_v31  ;;  %v78_v43 = vmax.f32 %v74_v36, %v77_v38  ;;  %v87_v45 = vsel %vm36_vm0, %v632_v12, -inf }
   0xb   :  { %v88_v46 = vsel %vm36_vm0, %v644_v17, -inf  ;;  %v57_v49 = vadd.f32 %v56_v33, %v55_v41  ;;  %v90_v53 = vsel %vm42_vm1, %v646_v18, -inf  ;;  %vm69_vm2 = vweird.f32 %v559_v21 }
   0xc   :  { %127 = vmatpush.msra.mxu0 %v101_v30  ;;  %153 = vmatpush.msra.mxu1 %v101_v30  ;;  %v45_v48 = vrot.slane %v44_v40, 4  ;;  %v79_v50 = vmax.f32 %v76_v42, %v78_v43  ;;  %v89_v51 = vmax.f32 %v86_v44, %v88_v46  ;;  %v67_v52 = vmul.f32 %v559_v21, %v66_v35 }
   0xd   :  { %v58_v55 = vrot.slane %v57_v49, 4  ;;  %v91_v57 = vmax.f32 %v87_v45, %v90_v53  ;;  %vm337_vm14 = vcmask 261312   ;;  %vm347_vm15 = vcmask 203776  }
   0xe   :  { %128 = vmatpush.msra.mxu0 %v100_v39  ;;  %154 = vmatpush.msra.mxu1 %v100_v39  ;;  %v46_v54 = vadd.f32 %v45_v48, %v44_v40  ;;  %v80_v56 = vrot.slane %v79_v50, 4  ;;  %v68_v62 = vadd.f32 %v559_v21, %v67_v52 }
   0xf   :  { %v59_v59 = vadd.f32 %v58_v55, %v57_v49  ;;  %v92_v61 = vmax.f32 %v89_v51, %v91_v57 }
  0x10   :  { %129 = vmatpush.msra.mxu0 %v99_v47  ;;  %155 = vmatpush.msra.mxu1 %v99_v47  ;;  %v47_v58 = vrot.slane %v46_v54, 2  ;;  %v81_v60 = vmax.f32 %v79_v50, %v80_v56  ;;  %v70_v9 = vsel %vm69_vm2, %v559_v21, %v68_v62  ;;  %v107_v21 = vld [vmem:[%s854_s2] sm:$0xf] }
  0x11   :  { %v60_v0 = vrot.slane %v59_v59, 2  ;;  %v93_v2 = vrot.slane %v92_v61, 4  ;;  %529 = vmatpush.msk.msra.mxu2 %vm165_vm4, %v107_v21  ;;  %531 = vmatpush.msk.msra.mxu3 %vm165_vm4, %v107_v21 }
  0x12   :  { %v48_v63 = vadd.f32 %v47_v58, %v46_v54  ;;  %v82_v1 = vrot.slane %v81_v60, 2 }
  0x13   :  { %v61_v4 = vadd.f32 %v60_v0, %v59_v59  ;;  %v94_v8 = vmax.f32 %v92_v61, %v93_v2 }
  0x14   :  { %v49_v3 = vrot.slane %v48_v63, 1  ;;  %v83_v7 = vmax.f32 %v81_v60, %v82_v1 }
  0x15   :  { %v62_v13 = vrot.slane %v61_v4, 1  ;;  %v95_v19 = vrot.slane %v94_v8, 2 }
  0x16   :  { %v50_v10 = vadd.f32 %v49_v3, %v48_v63  ;;  %v84_v14 = vrot.slane %v83_v7, 1 }
  0x17   :  { %v63_v20 = vadd.f32 %v62_v13, %v61_v4  ;;  %v96_v23 = vmax.f32 %v94_v8, %v95_v19  ;;  %v311_v8 = vld [vmem:[%s855_s3 + $0x18] sm:$0x1]  ;;  %v309_v13 = vld [vmem:[%s855_s3 + $0x8] sm:$0xff] }
  0x18   :  { %v71_v22 = vmul.f32 %v70_v9, %v50_v10  ;;  %v85_v25 = vmax.f32 %v83_v7, %v84_v14  ;;  %v571_v7 = vmov 64.0   ;;  %536 = vmatpush.msk.msrb.mxu3 %vm350_vm10, %v311_v8  ;;  %v308_v14 = vld [vmem:[%s855_s3] sm:$0xff] }
  0x19   :  { %v72_v24 = vmul.f32 %v70_v9, %v63_v20  ;;  %v97_v26 = vrot.slane %v96_v23, 1  ;;  %v310_v9 = vld [vmem:[%s855_s3 + $0x10] sm:$0xff] }
  0x1a   :  { %415 = vmatpush.msrb.mxu3 %v310_v9 }
  0x1b   :  { %v111_v27 = vsel %vm110_vm3, %v72_v24, %v71_v22  ;;  %v98_v28 = vmax.f32 %v96_v23, %v97_v26  ;;  %v324_v26 = vlaneseq }
  0x1c   :  { %527 = vmatmul.msk.f32.vlgmr.msra.gmra.mxu0 %vm36_vm0, %v111_v27  ;;  %416 = vmatpush.msrb.mxu3 %v309_v13  ;;  %v315_v27 = vld [vmem:[%s856_s4 + $0x18] sm:$0x1] }
  0x1d   :  { %v137_v29 = vsel %vm110_vm3, %v98_v28, %v85_v25  ;;  %v314_v28 = vld [vmem:[%s856_s4 + $0x10] sm:$0xff]  ;;  %534 = vmatpush.msk.msrb.mxu2 %vm350_vm10, %v315_v27 }
  0x1e   :  { %528 = vmatmul.msk.f32.vlgmr.msra.gmra.mxu1 %vm36_vm0, %v137_v29  ;;  %417 = vmatpush.msrb.mxu3 %v308_v14 }
  0x1f   :  { %367 = vmatpush.msrb.mxu2 %v314_v28 }
  0x99   :  { %v131_v30 = vpop.f32.mrf.mxu0 }
  0x9a   :  { %v134_v31 = vmax.f32 %v131_v30, 0.0 }
  0x9b   :  { %v157_v32 = vpop.f32.mrf.mxu1 }
  0x9c   :  { %v160_v33 = vmax.f32 %v157_v32, 0.0  ;;  %532 = vmatmul.msk.f32.vlgmr.msra.gmra.mxu3 %vm161_vm5, %v134_v31  ;;  %v325_v31 = vand.u32 127, %v324_v26 }
  0x9e   :  { %530 = vmatmul.msk.f32.vlgmr.msra.gmra.mxu2 %vm161_vm5, %v160_v33  ;;  %vm512_vm5 = vsmask.f32 256 }
 0x11f   :  { %v209_v34 = vpop.f32.mrf.mxu3 }
 0x121   :  { %v186_v35 = vpop.f32.mrf.mxu2 }
 0x122   :  { %v210_v36 = vadd.f32 %v209_v34, %v186_v35  ;;  %v327_v34 = vadd.s32 4294967288, %v325_v31 }
 0x124   :  { %v533_v37 = vmul.f32 -1.442695, %v210_v36  ;;  %v313_v36 = vld [vmem:[%s856_s4 + $0x8] sm:$0xff] }
 0x125   :  { %368 = vmatpush.msrb.mxu2 %v313_v36 }
 0x126   :  { %560 = vpow2.f32 %v533_v37  ;;  %v312_v37 = vld [vmem:[%s856_s4] sm:$0xff] }
 0x127   :  { %369 = vmatpush.msrb.mxu2 %v312_v37 }
 0x12c   :  { %v561_v38 = vpop.eup %560 }
 0x12d   :  { %v215_v39 = vadd.f32 1.0, %v561_v38 }
 0x12f   :  { %562 = vrcp.f32 %v215_v39  ;;  %v227_v43 = vand.u32 2147483648, %v215_v39  ;;  %v225_v45 = vand.u32 2147483647, %v215_v39  ;;  %vm221_vm7 = vweird.f32 %v215_v39 }
 0x130   :  { %564 = vrcp.f32 %v571_v7 }
 0x131   :  { %v228_v47 = vor.u32 1.1754944e-38, %v227_v43  ;;  %vm226_vm9 = vcmp.eq.f32.partialorder %v225_v45, 8.507059e+37  ;;  %v331_v43 = vadd.s32 4294967280, %v325_v31 }
 0x135   :  { %v563_v40 = vpop.eup %562 }
 0x136   :  { %v217_v41 = vmul.f32 %v563_v40, %v215_v39  ;;  %vm222_vm6 = vweird.f32 %v563_v40  ;;  %v565_v10 = vpop.eup %564 }
 0x137   :  { %vm223_vm8 = vmor %vm221_vm7, %vm222_vm6  ;;  %v270_v19 = vmul.f32 64.0, %v565_v10  ;;  %vm274_vm11 = vweird.f32 %v565_v10  ;;  %vm507_vm7 = vcmask 519168  }
 0x138   :  { %v218_v42 = vsub.f32 1.0, %v217_v41  ;;  %vm801_vm6 = vmand %vm42_vm1, %vm512_vm5 }
 0x139   :  { %v271_v20 = vsub.f32 1.0, %v270_v19 }
 0x13a   :  { %v219_v44 = vmul.f32 %v563_v40, %v218_v42  ;;  %v335_v42 = vadd.s32 4294967272, %v325_v31 }
 0x13b   :  { %v272_v24 = vmul.f32 %v565_v10, %v271_v20 }
 0x13c   :  { %v220_v46 = vadd.f32 %v563_v40, %v219_v44 }
 0x13d   :  { %v273_v29 = vadd.f32 %v565_v10, %v272_v24 }
 0x13e   :  { %v224_v48 = vsel %vm223_vm8, %v563_v40, %v220_v46 }
 0x13f   :  { %v229_v49 = vsel %vm226_vm9, %v228_v47, %v224_v48  ;;  %v275_v32 = vsel %vm274_vm11, %v565_v10, %v273_v29 }
 0x140   :  { %v233_v50 = vperm.slane %v229_v49, 0  ;;  %v232_v51 = vrot.slane %v229_v49, 1 }
 0x142   :  { %v700_v52 = vmul.f32 %v233_v50, %v640_v15  ;;  %v703_v53 = vmul.f32 %v614_v5, %v233_v50  ;;  %v234_v54 = vperm.slane %v232_v51, 0  ;;  %v715_v15 = vmul.f32 %v616_v6, %v233_v50 }
 0x143   :  { %v727_v61 = vmul.f32 %v233_v50, %v642_v16 }
 0x144   :  { %v251_v55 = vsel %vm36_vm0, %v700_v52, 0.0  ;;  %v245_v56 = vsel %vm36_vm0, %v703_v53, 0.0  ;;  %v710_v57 = vmul.f32 %v630_v11, %v234_v54  ;;  %v718_v5 = vmul.f32 %v632_v12, %v234_v54 }
 0x145   :  { %252 = vadd.xlane.f32.xlu2 %v251_v55  ;;  %246 = vadd.xlane.f32.xlu0 %v245_v56  ;;  %v284_v59 = vsel %vm36_vm0, %v703_v53, -inf  ;;  %v248_v60 = vsel %vm36_vm0, %v715_v15, 0.0  ;;  %v730_v6 = vmul.f32 %v234_v54, %v644_v17  ;;  %v733_v12 = vmul.f32 %v234_v54, %v646_v18 }
 0x146   :  { %v257_v58 = vsel %vm36_vm0, %v710_v57, 0.0  ;;  %v260_v11 = vsel %vm36_vm0, %v718_v5, 0.0  ;;  %v254_v62 = vsel %vm42_vm1, %v727_v61, 0.0  ;;  %v287_v16 = vsel %vm36_vm0, %v715_v15, -inf }
 0x147   :  { %258 = vadd.xlane.f32.xlu1 %v257_v58  ;;  %v263_v63 = vsel %vm36_vm0, %v730_v6, 0.0  ;;  %v266_v0 = vsel %vm42_vm1, %v733_v12, 0.0  ;;  %v299_v17 = vsel %vm36_vm0, %v718_v5, -inf  ;;  %v296_v18 = vsel %vm36_vm0, %v710_v57, -inf }
 0x148   :  { %v290_v1 = vsel %vm36_vm0, %v700_v52, -inf  ;;  %v293_v2 = vsel %vm42_vm1, %v727_v61, -inf  ;;  %v302_v3 = vsel %vm36_vm0, %v730_v6, -inf  ;;  %v305_v4 = vsel %vm42_vm1, %v733_v12, -inf }
 0x14d   :  { %285 = vmax.xlane.f32.xlu2 %v284_v59  ;;  %249 = vadd.xlane.f32.xlu0 %v248_v60 }
 0x14f   :  { %261 = vadd.xlane.f32.xlu1 %v260_v11 }
 0x155   :  { %255 = vadd.xlane.f32.xlu0 %v254_v62  ;;  %264 = vadd.xlane.f32.xlu2 %v263_v63 }
 0x157   :  { %267 = vadd.xlane.f32.xlu1 %v266_v0 }
 0x15d   :  { %288 = vmax.xlane.f32.xlu0 %v287_v16  ;;  %300 = vmax.xlane.f32.xlu2 %v299_v17 }
 0x15f   :  { %297 = vmax.xlane.f32.xlu1 %v296_v18 }
 0x165   :  { %291 = vmax.xlane.f32.xlu0 %v290_v1  ;;  %294 = vmax.xlane.f32.xlu2 %v293_v2 }
 0x167   :  { %303 = vmax.xlane.f32.xlu1 %v302_v3 }
 0x16d   :  { %306 = vmax.xlane.f32.xlu0 %v305_v4 }
 0x1b8   :  { %v253_v22 = vpop.xlane.xlu2 %252  ;;  %v247_v23 = vpop.xlane.xlu0 %246 }
 0x1b9   :  { %v276_v39 = vmul.f32 %v275_v32, %v247_v23  ;;  %v278_v44 = vmul.f32 %v275_v32, %v253_v22 }
 0x1ba   :  { %v259_v25 = vpop.xlane.xlu1 %258 }
 0x1bb   :  { %v280_v40 = vmul.f32 %v275_v32, %v259_v25  ;;  %v382_v48 = vperm.slane %v276_v39, %v325_v31  ;;  %v385_v60 = vperm.slane %v278_v44, %v331_v43 }
 0x1bd   :  { %v389_v51 = vperm.slane %v280_v40, %v325_v31 }
 0x1c0   :  { %v286_v21 = vpop.xlane.xlu2 %285  ;;  %v250_v30 = vpop.xlane.xlu0 %249 }
 0x1c1   :  { %v277_v35 = vmul.f32 %v275_v32, %v250_v30  ;;  %v326_v13 = vperm.slane %v286_v21, %v325_v31 }
 0x1c2   :  { %v262_v33 = vpop.xlane.xlu1 %261 }
 0x1c3   :  { %v281_v38 = vmul.f32 %v275_v32, %v262_v33  ;;  %v383_v41 = vperm.slane %v277_v35, %v327_v34 }
 0x1c5   :  { %v390_v45 = vperm.slane %v281_v38, %v327_v34  ;;  %v384_v55 = vsel %vm329_vm12, %v383_v41, %v382_v48 }
 0x1c6   :  { %v386_v0 = vsel %vm333_vm13, %v385_v60, %v384_v55 }
 0x1c7   :  { %v391_v11 = vsel %vm329_vm12, %v390_v45, %v389_v51 }
 0x1c8   :  { %v256_v46 = vpop.xlane.xlu0 %255  ;;  %v265_v47 = vpop.xlane.xlu2 %264 }
 0x1c9   :  { %v279_v49 = vmul.f32 %v275_v32, %v256_v46  ;;  %v282_v50 = vmul.f32 %v275_v32, %v265_v47 }
 0x1ca   :  { %v268_v54 = vpop.xlane.xlu1 %267 }
 0x1cb   :  { %v387_v56 = vperm.slane %v279_v49, %v335_v42  ;;  %v392_v58 = vperm.slane %v282_v50, %v331_v43  ;;  %v283_v59 = vmul.f32 %v275_v32, %v268_v54 }
 0x1cd   :  { %v393_v62 = vsel %vm333_vm13, %v392_v58, %v391_v11  ;;  %v394_v63 = vperm.slane %v283_v59, %v335_v42  ;;  %v388_v16 = vsel %vm337_vm14, %v387_v56, %v386_v0  ;;  %v514_v59 = vld [vmem:[%s857_s5 + $0xc] sm:$0x1] }
 0x1cf   :  { %v395_v17 = vsel %vm337_vm14, %v394_v63, %v393_v62 }
 0x1d0   :  { %v289_v18 = vpop.xlane.xlu0 %288  ;;  %v396_v1 = vsel %vm110_vm3, %v395_v17, %v388_v16  ;;  %v301_v2 = vpop.xlane.xlu2 %300 }
 0x1d1   :  { %537 = vmatmul.msk.f32.vlgmr.msrb.gmra.mxu3 %vm347_vm15, %v396_v1  ;;  %v328_v7 = vperm.slane %v289_v18, %v327_v34  ;;  %v340_v22 = vperm.slane %v301_v2, %v327_v34  ;;  %v520_v18 = vld [vmem:[%s857_s5 + $0x1c] sm:$0x1] }
 0x1d2   :  { %v298_v3 = vpop.xlane.xlu1 %297 }
 0x1d3   :  { %v339_v14 = vperm.slane %v298_v3, %v325_v31  ;;  %v330_v20 = vsel %vm329_vm12, %v328_v7, %v326_v13  ;;  %v443_v31 = vshrl.u32 %v324_v26, 7 }
 0x1d5   :  { %v341_v27 = vsel %vm329_vm12, %v340_v22, %v339_v14  ;;  %550 = vset.pattern.permute.xlu1 %v443_v31  ;;  %v462_v33 = vadd.s32 24, %v443_v31  ;;  %v450_v51 = vadd.s32 8, %v443_v31  ;;  %v456_v54 = vadd.s32 16, %v443_v31 }
 0x1d7   :  { %552 = vset.pattern.permute.xlu0 %v462_v33  ;;  %551 = vset.pattern.permute.xlu2 %v462_v33 }
 0x1d8   :  { %v292_v4 = vpop.xlane.xlu0 %291  ;;  %v295_v10 = vpop.xlane.xlu2 %294 }
 0x1d9   :  { %v332_v9 = vperm.slane %v292_v4, %v331_v43  ;;  %v336_v23 = vperm.slane %v295_v10, %v335_v42 }
 0x1da   :  { %v304_v8 = vpop.xlane.xlu1 %303 }
 0x1db   :  { %v342_v19 = vperm.slane %v304_v8, %v331_v43  ;;  %v334_v24 = vsel %vm333_vm13, %v332_v9, %v330_v20 }
 0x1dc   :  { %v338_v30 = vsel %vm337_vm14, %v336_v23, %v334_v24 }
 0x1dd   :  { %v343_v29 = vsel %vm333_vm13, %v342_v19, %v341_v27 }
 0x1e0   :  { %v307_v25 = vpop.xlane.xlu0 %306 }
 0x1e1   :  { %v344_v28 = vperm.slane %v307_v25, %v335_v42 }
 0x1e3   :  { %v345_v32 = vsel %vm337_vm14, %v344_v28, %v343_v29 }
 0x1e4   :  { %v346_v21 = vsel %vm110_vm3, %v345_v32, %v338_v30 }
 0x1e5   :  { %535 = vmatmul.msk.f32.vlgmr.msrb.gmra.mxu2 %vm347_vm15, %v346_v21 }
 0x254   :  { %v419_v34 = vpop.f32.mrf.mxu3 }
 0x268   :  { %v371_v35 = vpop.f32.mrf.mxu2 }
 0x269   :  { %v420_v36 = vadd.f32 %v419_v34, %v371_v35 }
 0x26b   :  { %v538_v37 = vmul.f32 -1.442695, %v420_v36 }
 0x26d   :  { %566 = vpow2.f32 %v538_v37 }
 0x273   :  { %v567_v38 = vpop.eup %566 }
 0x274   :  { %v425_v39 = vadd.f32 1.0, %v567_v38 }
 0x276   :  { %568 = vrcp.f32 %v425_v39  ;;  %v437_v43 = vand.u32 2147483648, %v425_v39  ;;  %v435_v45 = vand.u32 2147483647, %v425_v39  ;;  %vm431_vm2 = vweird.f32 %v425_v39 }
 0x278   :  { %v438_v46 = vor.u32 1.1754944e-38, %v437_v43  ;;  %vm436_vm4 = vcmp.eq.f32.partialorder %v435_v45, 8.507059e+37 }
 0x27c   :  { %v569_v40 = vpop.eup %568 }
 0x27d   :  { %v427_v41 = vmul.f32 %v569_v40, %v425_v39  ;;  %vm432_vm0 = vweird.f32 %v569_v40 }
 0x27e   :  { %vm433_vm3 = vmor %vm431_vm2, %vm432_vm0 }
 0x27f   :  { %v428_v42 = vsub.f32 1.0, %v427_v41 }
 0x281   :  { %v429_v44 = vmul.f32 %v569_v40, %v428_v42 }
 0x283   :  { %v430_v26 = vadd.f32 %v569_v40, %v429_v44 }
 0x285   :  { %v434_v47 = vsel %vm433_vm3, %v569_v40, %v430_v26 }
 0x286   :  { %v439_v48 = vsel %vm436_vm4, %v438_v46, %v434_v47 }
 0x287   :  { %v466_v49 = vperm.slane %v439_v48, 1  ;;  %v441_v50 = vperm.slane %v439_v48, 0 }
 0x289   :  { %489 = vperm.xlu0 %552, %v466_v49   ;;  %464 = vperm.xlu2 %551, %v441_v50  }
 0x28a   :  { %446 = vperm.xlu1 %550, %v441_v50  }
 0x291   :  { %553 = vset.pattern.permute.xlu2 %v450_v51 }
 0x292   :  { %554 = vset.pattern.permute.xlu1 %v456_v54 }
 0x299   :  { %452 = vperm.xlu2 %553, %v441_v50  }
 0x29a   :  { %458 = vperm.xlu1 %554, %v441_v50  }
 0x2a1   :  { %555 = vset.pattern.permute.xlu2 %v443_v31 }
 0x2a2   :  { %556 = vset.pattern.permute.xlu1 %v450_v51 }
 0x2a9   :  { %471 = vperm.xlu2 %555, %v466_v49  }
 0x2aa   :  { %477 = vperm.xlu1 %556, %v466_v49  }
 0x2b1   :  { %557 = vset.pattern.permute.xlu2 %v456_v54 }
 0x2b9   :  { %483 = vperm.xlu2 %557, %v466_v49  }
 0x2e3   :  { %v465_v55 = vpop.permute.xlu2 %464 }
 0x2e4   :  { %v494_v56 = vmul.f32 %v465_v55, %v727_v61 }
 0x2e6   :  { %v502_v60 = vpack.c.bf16 %v494_v56, %v494_v56 }
 0x2e8   :  { %v515_v11 = vsel %vm801_vm6, %v502_v60, %v514_v59 }
 0x2e9   :  { %516 = vst [vmem:[%s857_s5 + $0xc] sm:$0x1] %v515_v11 }
 0x2f3   :  { %v453_v62 = vpop.permute.xlu2 %452 }
 0x2f4   :  { %v492_v61 = vmul.f32 %v453_v62, %v715_v15 }
 0x2f6   :  { %v500_v63 = vpack.c.bf16 %v492_v61, %v492_v61 }
 0x2f8   :  { %509 = vst.msk [vmem:[%s857_s5 + $0x4] sm:$0xf] %vm507_vm7, %v500_v63 }
 0x2fb   :  { %v490_v0 = vpop.permute.xlu0 %489 }
 0x2fc   :  { %v498_v16 = vmul.f32 %v490_v0, %v733_v12  ;;  %v447_v17 = vpop.permute.xlu1 %446 }
 0x2fd   :  { %v491_v1 = vmul.f32 %v447_v17, %v703_v53 }
 0x2fe   :  { %v506_v2 = vpack.c.bf16 %v498_v16, %v498_v16 }
 0x2ff   :  { %v499_v3 = vpack.c.bf16 %v491_v1, %v491_v1 }
 0x300   :  { %v521_v15 = vsel %vm801_vm6, %v506_v2, %v520_v18 }
 0x301   :  { %522 = vst [vmem:[%s857_s5 + $0x1c] sm:$0x1] %v521_v15 }
 0x302   :  { %508 = vst.msk [vmem:[%s857_s5] sm:$0xf] %vm507_vm7, %v499_v3 }
 0x303   :  { %v472_v12 = vpop.permute.xlu2 %471 }
 0x304   :  { %v495_v4 = vmul.f32 %v472_v12, %v710_v57 }
 0x306   :  { %v503_v7 = vpack.c.bf16 %v495_v4, %v495_v4 }
 0x308   :  { %517 = vst.msk [vmem:[%s857_s5 + $0x10] sm:$0xf] %vm507_vm7, %v503_v7 }
 0x30c   :  { %v459_v53 = vpop.permute.xlu1 %458 }
 0x30d   :  { %v493_v8 = vmul.f32 %v459_v53, %v700_v52 }
 0x30f   :  { %v501_v9 = vpack.c.bf16 %v493_v8, %v493_v8 }
 0x311   :  { %510 = vst.msk [vmem:[%s857_s5 + $0x8] sm:$0xf] %vm507_vm7, %v501_v9 }
 0x313   :  { %v484_v10 = vpop.permute.xlu2 %483 }
 0x314   :  { %v497_v13 = vmul.f32 %v484_v10, %v730_v6 }
 0x316   :  { %v505_v14 = vpack.c.bf16 %v497_v13, %v497_v13 }
 0x318   :  { %519 = vst.msk [vmem:[%s857_s5 + $0x18] sm:$0xf] %vm507_vm7, %v505_v14 }
 0x31c   :  { %v478_v57 = vpop.permute.xlu1 %477 }
 0x31d   :  { %v496_v19 = vmul.f32 %v478_v57, %v718_v5 }
 0x31f   :  { %v504_v20 = vpack.c.bf16 %v496_v19, %v496_v19 }
 0x321   :  { %518 = vst.msk [vmem:[%s857_s5 + $0x14] sm:$0xf] %vm507_vm7, %v504_v20 }

// kernel: ppo_forward.18
= control target key start
LH: loop header
LB: loop body
LE: loop exit
PB: predicated region body
PF: predicated region fallthrough
CT: control target
= control target key end

     0   :  { %vm361_vm0 = vcmask 523264   ;;  %vm473_vm1 = vcmask 519168   ;;  %vm476_vm2 = vcmask 516096   ;;  %s888_s1 = inlined_call_operand.vmem [shape: bf16[576,64], index: 1, kind: input, shape index: {}]   ;;  %s889_s2 = inlined_call_operand.vmem [shape: f32[1,64], index: 2, kind: input, shape index: {}]   ;;  %s890_s0 = inlined_call_operand.vmem [shape: bf16[18,576], index: 0, kind: input, shape index: {}]   ;;  %s891_s3 = inlined_call_operand.vmem [shape: bf16[18,64], index: 3, kind: input, shape index: {}]   ;;  %s892_s4 = inlined_call_operand.vmem [shape: bf16[18,64], index: 4, kind: output, shape index: {}]  }
   0x1   :  { %v660_v0 = vld [vmem:[%s888_s1 + $0x38] sm:$0xff]  ;;  %v659_v4 = vld [vmem:[%s888_s1 + $0x30] sm:$0xff]  ;;  %v658_v8 = vld [vmem:[%s888_s1 + $0x28] sm:$0xff] }
   0x2   :  { %v668_v1 = vld [vmem:[%s888_s1 + $0x78] sm:$0xff]  ;;  %368 = vmatpush.bf16.msra.mxu0 %v660_v0  ;;  %v667_v5 = vld [vmem:[%s888_s1 + $0x70] sm:$0xff]  ;;  %v666_v9 = vld [vmem:[%s888_s1 + $0x68] sm:$0xff] }
   0x3   :  { %v676_v2 = vld [vmem:[%s888_s1 + $0xb8] sm:$0xff]  ;;  %386 = vmatpush.bf16.msra.mxu1 %v668_v1  ;;  %v675_v6 = vld [vmem:[%s888_s1 + $0xb0] sm:$0xff]  ;;  %v674_v10 = vld [vmem:[%s888_s1 + $0xa8] sm:$0xff] }
   0x4   :  { %v684_v3 = vld [vmem:[%s888_s1 + $0xf8] sm:$0xff]  ;;  %404 = vmatpush.bf16.msra.mxu2 %v676_v2  ;;  %v683_v7 = vld [vmem:[%s888_s1 + $0xf0] sm:$0xff]  ;;  %v682_v11 = vld [vmem:[%s888_s1 + $0xe8] sm:$0xff] }
   0x5   :  { %422 = vmatpush.bf16.msra.mxu3 %v684_v3  ;;  %v657_v12 = vld [vmem:[%s888_s1 + $0x20] sm:$0xff]  ;;  %v656_v16 = vld [vmem:[%s888_s1 + $0x18] sm:$0xff]  ;;  %v655_v20 = vld [vmem:[%s888_s1 + $0x10] sm:$0xff] }
   0x6   :  { %369 = vmatpush.bf16.msra.mxu0 %v659_v4  ;;  %v665_v13 = vld [vmem:[%s888_s1 + $0x60] sm:$0xff]  ;;  %v664_v17 = vld [vmem:[%s888_s1 + $0x58] sm:$0xff]  ;;  %v663_v21 = vld [vmem:[%s888_s1 + $0x50] sm:$0xff] }
   0x7   :  { %387 = vmatpush.bf16.msra.mxu1 %v667_v5  ;;  %v673_v14 = vld [vmem:[%s888_s1 + $0xa0] sm:$0xff]  ;;  %v672_v18 = vld [vmem:[%s888_s1 + $0x98] sm:$0xff]  ;;  %v671_v22 = vld [vmem:[%s888_s1 + $0x90] sm:$0xff] }
   0x8   :  { %405 = vmatpush.bf16.msra.mxu2 %v675_v6  ;;  %v681_v15 = vld [vmem:[%s888_s1 + $0xe0] sm:$0xff]  ;;  %v680_v19 = vld [vmem:[%s888_s1 + $0xd8] sm:$0xff]  ;;  %v679_v23 = vld [vmem:[%s888_s1 + $0xd0] sm:$0xff] }
   0x9   :  { %423 = vmatpush.bf16.msra.mxu3 %v683_v7  ;;  %v654_v24 = vld [vmem:[%s888_s1 + $0x8] sm:$0xff]  ;;  %v653_v28 = vld [vmem:[%s888_s1] sm:$0xff]  ;;  %v650_v33 = vld [vmem:[%s890_s0 + $0x10] sm:$0xf0] }
   0xa   :  { %370 = vmatpush.bf16.msra.mxu0 %v658_v8  ;;  %v662_v25 = vld [vmem:[%s888_s1 + $0x48] sm:$0xff]  ;;  %v661_v29 = vld [vmem:[%s888_s1 + $0x40] sm:$0xff]  ;;  %v486_v35 = vld [vmem:[%s890_s0 + $0x14] sm:$0xf0] }
   0xb   :  { %388 = vmatpush.bf16.msra.mxu1 %v666_v9  ;;  %v670_v26 = vld [vmem:[%s888_s1 + $0x88] sm:$0xff]  ;;  %v669_v30 = vld [vmem:[%s888_s1 + $0x80] sm:$0xff]  ;;  %v651_v37 = vld [vmem:[%s890_s0 + $0x18] sm:$0xf0] }
   0xc   :  { %406 = vmatpush.bf16.msra.mxu2 %v674_v10  ;;  %v678_v27 = vld [vmem:[%s888_s1 + $0xc8] sm:$0xff]  ;;  %v677_v31 = vld [vmem:[%s888_s1 + $0xc0] sm:$0xff]  ;;  %v688_v40 = vld [vmem:[%s888_s1 + $0x118] sm:$0xff] }
   0xd   :  { %424 = vmatpush.bf16.msra.mxu3 %v682_v11  ;;  %v484_v32 = vld [vmem:[%s890_s0] sm:$0xf]  ;;  %v648_v34 = vld [vmem:[%s890_s0 + $0x4] sm:$0xf]  ;;  %v492_v36 = vld [vmem:[%s890_s0 + $0x8] sm:$0xf] }
   0xe   :  { %371 = vmatpush.bf16.msra.mxu0 %v657_v12  ;;  %v649_v38 = vld [vmem:[%s890_s0 + $0xc] sm:$0xf]  ;;  %v494_v39 = vld [vmem:[%s890_s0 + $0x1c] sm:$0xf0]  ;;  %v485_v41 = vor.u32 %v650_v33, %v484_v32  ;;  %v489_v42 = vor.u32 %v648_v34, %v486_v35  ;;  %v493_v43 = vor.u32 %v651_v37, %v492_v36  ;;  %v687_v45 = vld [vmem:[%s888_s1 + $0x110] sm:$0xff] }
   0xf   :  { %389 = vmatpush.bf16.msra.mxu1 %v665_v13  ;;  %v497_v44 = vor.u32 %v649_v38, %v494_v39  ;;  %v686_v46 = vld [vmem:[%s888_s1 + $0x108] sm:$0xff]  ;;  %v25_v48 = vld [vmem:[%s890_s0 + $0x30] sm:$0x11]  ;;  %v685_v49 = vld [vmem:[%s888_s1 + $0x100] sm:$0xff] }
  0x10   :  { %407 = vmatpush.bf16.msra.mxu2 %v673_v14  ;;  %v24_v47 = vld [vmem:[%s890_s0 + $0x28] sm:$0x11]  ;;  %v124_v52 = vunpack.c.l.b16 %v25_v48  ;;  %v125_v53 = vunpack.c.h.b16 %v25_v48  ;;  %v26_v58 = vld [vmem:[%s890_s0 + $0x38] sm:$0x1]  ;;  %v500_v60 = vld [vmem:[%s890_s0 + $0x10] sm:$0xf] }
  0x11   :  { %425 = vmatpush.bf16.msra.mxu3 %v681_v15  ;;  %v122_v50 = vunpack.c.l.b16 %v24_v47  ;;  %v123_v51 = vunpack.c.h.b16 %v24_v47  ;;  %v126_v59 = vunpack.c.l.b16 %v26_v58  ;;  %v652_v61 = vld [vmem:[%s890_s0 + $0x20] sm:$0xf0]  ;;  %v697_v10 = vld [vmem:[%s889_s2] ss:$0 sm:$0xff] }
  0x12   :  { %372 = vmatpush.bf16.msra.mxu0 %v656_v16  ;;  %v134_v56 = vpack.c.b16 %v124_v52, %v124_v52  ;;  %v135_v57 = vpack.c.b16 %v125_v53, %v125_v53  ;;  %v501_v62 = vor.u32 %v652_v61, %v500_v60 }
  0x13   :  { %390 = vmatpush.bf16.msra.mxu1 %v664_v17  ;;  %v132_v54 = vpack.c.b16 %v122_v50, %v122_v50  ;;  %v133_v55 = vpack.c.b16 %v123_v51, %v123_v51  ;;  %v136_v63 = vpack.c.b16 %v126_v59, %v126_v59 }
  0x14   :  { %408 = vmatpush.bf16.msra.mxu2 %v672_v18 }
  0x15   :  { %426 = vmatpush.bf16.msra.mxu3 %v680_v19 }
  0x16   :  { %373 = vmatpush.bf16.msra.mxu0 %v655_v20 }
  0x17   :  { %391 = vmatpush.bf16.msra.mxu1 %v663_v21  ;;  %v690_v21 = vld [vmem:[%s891_s3] sm:$0xff]  }
  0x18   :  { %409 = vmatpush.bf16.msra.mxu2 %v671_v22  ;;  %v460_v22 = vld [vmem:[%s891_s3 + $0x8] sm:$0x1] }
  0x19   :  { %427 = vmatpush.bf16.msra.mxu3 %v679_v23 }
  0x1a   :  { %374 = vmatpush.bf16.msra.mxu0 %v654_v24 }
  0x1b   :  { %392 = vmatpush.bf16.msra.mxu1 %v662_v25 }
  0x1c   :  { %410 = vmatpush.bf16.msra.mxu2 %v670_v26  ;;  %v691_v26 = vunpack.c.l.bf16 %v690_v21 }
  0x1d   :  { %428 = vmatpush.bf16.msra.mxu3 %v678_v27  ;;  %v463_v27 = vunpack.c.l.bf16 %v460_v22 }
  0x1e   :  { %375 = vmatpush.bf16.msra.mxu0 %v653_v28 }
  0x1f   :  { %393 = vmatpush.bf16.msra.mxu1 %v661_v29 }
  0x20   :  { %411 = vmatpush.bf16.msra.mxu2 %v669_v30 }
  0x21   :  { %429 = vmatpush.bf16.msra.mxu3 %v677_v31  ;;  %376 = vmatmul.bf16.vlgmr.msra.gmra.mxu0 %v485_v41 }
  0x22   :  { %444 = vmatpush.bf16.msrb.mxu0 %v688_v40  ;;  %394 = vmatmul.bf16.vlgmr.msra.gmra.mxu1 %v489_v42 }
  0x23   :  { %693 = vmatpush.bf16.msrb.mxu1 %v688_v40  ;;  %412 = vmatmul.bf16.vlgmr.msra.gmra.mxu2 %v493_v43  ;;  %v692_v43 = vunpack.c.h.bf16 %v690_v21 }
  0x24   :  { %430 = vmatmul.bf16.vlgmr.msra.gmra.mxu3 %v497_v44 }
  0x26   :  { %445 = vmatpush.bf16.msrb.mxu0 %v687_v45 }
  0x27   :  { %694 = vmatpush.bf16.msrb.mxu1 %v687_v45 }
  0x2a   :  { %446 = vmatpush.bf16.msrb.mxu0 %v686_v46 }
  0x2b   :  { %695 = vmatpush.bf16.msrb.mxu1 %v686_v46 }
  0x2e   :  { %447 = vmatpush.bf16.msrb.mxu0 %v685_v49 }
  0x2f   :  { %696 = vmatpush.bf16.msrb.mxu1 %v685_v49 }
  0x31   :  { %381 = vmatmul.bf16.gmra.mxu0 %v132_v54 }
  0x32   :  { %399 = vmatmul.bf16.gmra.mxu1 %v133_v55 }
  0x33   :  { %417 = vmatmul.bf16.gmra.mxu2 %v134_v56 }
  0x34   :  { %435 = vmatmul.bf16.gmra.mxu3 %v135_v57 }
  0x41   :  { %646 = vmatmul.msk.bf16.vlgmr.msrb.gmra.mxu0 %vm361_vm0, %v501_v62 }
  0x42   :  { %647 = vmatmul.msk.bf16.vlgmr.msrb.gmra.mxu1 %vm361_vm0, %v136_v63 }
  0x9e   :  { %v377_v0 = vpop.f32.mrf.mxu0 }
  0x9f   :  { %v395_v1 = vpop.f32.mrf.mxu1  ;;  %v378_v11 = vadd.f32 %v697_v10, %v377_v0 }
  0xa1   :  { %v396_v17 = vadd.f32 %v395_v1, %v378_v11 }
  0xa6   :  { %v413_v2 = vpop.f32.mrf.mxu2  ;;  %v379_v4 = vpop.f32.mrf.mxu0 }
  0xa7   :  { %v431_v3 = vpop.f32.mrf.mxu3  ;;  %v397_v5 = vpop.f32.mrf.mxu1  ;;  %v414_v19 = vadd.f32 %v413_v2, %v396_v17  ;;  %v380_v23 = vadd.f32 %v697_v10, %v379_v4 }
  0xa9   :  { %v432_v24 = vadd.f32 %v431_v3, %v414_v19  ;;  %v398_v32 = vadd.f32 %v397_v5, %v380_v23 }
  0xae   :  { %v415_v6 = vpop.f32.mrf.mxu2  ;;  %v382_v8 = vpop.f32.mrf.mxu0 }
  0xaf   :  { %v433_v7 = vpop.f32.mrf.mxu3  ;;  %v400_v9 = vpop.f32.mrf.mxu1  ;;  %v383_v12 = vadd.f32 %v697_v10, %v382_v8  ;;  %v416_v35 = vadd.f32 %v415_v6, %v398_v32 }
  0xb1   :  { %v401_v18 = vadd.f32 %v400_v9, %v383_v12  ;;  %v434_v40 = vadd.f32 %v433_v7, %v416_v35 }
  0xb6   :  { %v418_v13 = vpop.f32.mrf.mxu2  ;;  %v384_v15 = vpop.f32.mrf.mxu0 }
  0xb7   :  { %v436_v14 = vpop.f32.mrf.mxu3  ;;  %v402_v16 = vpop.f32.mrf.mxu1  ;;  %v419_v20 = vadd.f32 %v418_v13, %v401_v18 }
  0xb9   :  { %v437_v25 = vadd.f32 %v436_v14, %v419_v20 }
  0xbe   :  { %v420_v28 = vpop.f32.mrf.mxu2  ;;  %v449_v30 = vpop.f32.mrf.mxu0 }
  0xbf   :  { %v438_v29 = vpop.f32.mrf.mxu3  ;;  %v454_v31 = vpop.f32.mrf.mxu1  ;;  %v450_v33 = vadd.f32 %v449_v30, %v432_v24 }
  0xc0   :  { %v455_v34 = vadd.f32 %v454_v31, %v437_v25 }
  0xc1   :  { %v464_v36 = vadd.f32 %v691_v26, %v450_v33 }
  0xc2   :  { %v466_v37 = vadd.f32 %v463_v27, %v455_v34 }
  0xc3   :  { %v467_v38 = vmax.f32 %v464_v36, 0.0 }
  0xc4   :  { %v469_v39 = vmax.f32 %v466_v37, 0.0 }
  0xc5   :  { %v470_v41 = vpack.c.bf16 %v467_v38, %v467_v38 }
  0xc6   :  { %v472_v42 = vpack.c.bf16 %v469_v39, %v469_v39  ;;  %v451_v44 = vpop.f32.mrf.mxu0 }
  0xc7   :  { %v456_v45 = vpop.f32.mrf.mxu1  ;;  %474 = vst.msk [vmem:[%s892_s4] sm:$0xf] %vm473_vm1, %v470_v41  ;;  %v452_v46 = vadd.f32 %v451_v44, %v434_v40 }
  0xc8   :  { %477 = vst.msk [vmem:[%s892_s4 + $0x8] sm:$0x1] %vm476_vm2, %v472_v42 }
  0xc9   :  { %v465_v47 = vadd.f32 %v692_v43, %v452_v46 }
  0xcb   :  { %v468_v48 = vmax.f32 %v465_v47, 0.0 }
  0xcd   :  { %v471_v49 = vpack.c.bf16 %v468_v48, %v468_v48 }
  0xcf   :  { %475 = vst.msk [vmem:[%s892_s4 + $0x4] sm:$0xf] %vm473_vm1, %v471_v49 }

// kernel: ppo_forward.16
= control target key start
LH: loop header
LB: loop body
LE: loop exit
PB: predicated region body
PF: predicated region fallthrough
CT: control target
= control target key end

     0   :  { %vm358_vm0 = vcmask 523264   ;;  %vm461_vm1 = vcmask 519168   ;;  %vm464_vm2 = vcmask 516096   ;;  %s861_s1 = inlined_call_operand.vmem [shape: bf16[576,64], index: 1, kind: input, shape index: {}]   ;;  %s862_s2 = inlined_call_operand.vmem [shape: f32[1,64], index: 2, kind: input, shape index: {}]   ;;  %s863_s0 = inlined_call_operand.vmem [shape: bf16[18,576], index: 0, kind: input, shape index: {}]   ;;  %s864_s3 = inlined_call_operand.vmem [shape: bf16[18,64], index: 3, kind: output, shape index: {}]  }
   0x1   :  { %v648_v0 = vld [vmem:[%s861_s1 + $0x38] sm:$0xff]  ;;  %v647_v4 = vld [vmem:[%s861_s1 + $0x30] sm:$0xff]  ;;  %v646_v8 = vld [vmem:[%s861_s1 + $0x28] sm:$0xff] }
   0x2   :  { %v656_v1 = vld [vmem:[%s861_s1 + $0x78] sm:$0xff]  ;;  %365 = vmatpush.bf16.msra.mxu0 %v648_v0  ;;  %v655_v5 = vld [vmem:[%s861_s1 + $0x70] sm:$0xff]  ;;  %v654_v9 = vld [vmem:[%s861_s1 + $0x68] sm:$0xff] }
   0x3   :  { %v664_v2 = vld [vmem:[%s861_s1 + $0xb8] sm:$0xff]  ;;  %383 = vmatpush.bf16.msra.mxu1 %v656_v1  ;;  %v663_v6 = vld [vmem:[%s861_s1 + $0xb0] sm:$0xff]  ;;  %v662_v10 = vld [vmem:[%s861_s1 + $0xa8] sm:$0xff] }
   0x4   :  { %v672_v3 = vld [vmem:[%s861_s1 + $0xf8] sm:$0xff]  ;;  %401 = vmatpush.bf16.msra.mxu2 %v664_v2  ;;  %v671_v7 = vld [vmem:[%s861_s1 + $0xf0] sm:$0xff]  ;;  %v670_v11 = vld [vmem:[%s861_s1 + $0xe8] sm:$0xff] }
   0x5   :  { %419 = vmatpush.bf16.msra.mxu3 %v672_v3  ;;  %v645_v12 = vld [vmem:[%s861_s1 + $0x20] sm:$0xff]  ;;  %v644_v16 = vld [vmem:[%s861_s1 + $0x18] sm:$0xff]  ;;  %v643_v20 = vld [vmem:[%s861_s1 + $0x10] sm:$0xff] }
   0x6   :  { %366 = vmatpush.bf16.msra.mxu0 %v647_v4  ;;  %v653_v13 = vld [vmem:[%s861_s1 + $0x60] sm:$0xff]  ;;  %v652_v17 = vld [vmem:[%s861_s1 + $0x58] sm:$0xff]  ;;  %v651_v21 = vld [vmem:[%s861_s1 + $0x50] sm:$0xff] }
   0x7   :  { %384 = vmatpush.bf16.msra.mxu1 %v655_v5  ;;  %v661_v14 = vld [vmem:[%s861_s1 + $0xa0] sm:$0xff]  ;;  %v660_v18 = vld [vmem:[%s861_s1 + $0x98] sm:$0xff]  ;;  %v659_v22 = vld [vmem:[%s861_s1 + $0x90] sm:$0xff] }
   0x8   :  { %402 = vmatpush.bf16.msra.mxu2 %v663_v6  ;;  %v669_v15 = vld [vmem:[%s861_s1 + $0xe0] sm:$0xff]  ;;  %v668_v19 = vld [vmem:[%s861_s1 + $0xd8] sm:$0xff]  ;;  %v667_v23 = vld [vmem:[%s861_s1 + $0xd0] sm:$0xff] }
   0x9   :  { %420 = vmatpush.bf16.msra.mxu3 %v671_v7  ;;  %v642_v24 = vld [vmem:[%s861_s1 + $0x8] sm:$0xff]  ;;  %v641_v28 = vld [vmem:[%s861_s1] sm:$0xff]  ;;  %v638_v33 = vld [vmem:[%s863_s0 + $0x10] sm:$0xf0] }
   0xa   :  { %367 = vmatpush.bf16.msra.mxu0 %v646_v8  ;;  %v650_v25 = vld [vmem:[%s861_s1 + $0x48] sm:$0xff]  ;;  %v649_v29 = vld [vmem:[%s861_s1 + $0x40] sm:$0xff]  ;;  %v474_v35 = vld [vmem:[%s863_s0 + $0x14] sm:$0xf0] }
   0xb   :  { %385 = vmatpush.bf16.msra.mxu1 %v654_v9  ;;  %v658_v26 = vld [vmem:[%s861_s1 + $0x88] sm:$0xff]  ;;  %v657_v30 = vld [vmem:[%s861_s1 + $0x80] sm:$0xff]  ;;  %v639_v37 = vld [vmem:[%s863_s0 + $0x18] sm:$0xf0] }
   0xc   :  { %403 = vmatpush.bf16.msra.mxu2 %v662_v10  ;;  %v666_v27 = vld [vmem:[%s861_s1 + $0xc8] sm:$0xff]  ;;  %v665_v31 = vld [vmem:[%s861_s1 + $0xc0] sm:$0xff]  ;;  %v676_v40 = vld [vmem:[%s861_s1 + $0x118] sm:$0xff] }
   0xd   :  { %421 = vmatpush.bf16.msra.mxu3 %v670_v11  ;;  %v472_v32 = vld [vmem:[%s863_s0] sm:$0xf]  ;;  %v636_v34 = vld [vmem:[%s863_s0 + $0x4] sm:$0xf]  ;;  %v480_v36 = vld [vmem:[%s863_s0 + $0x8] sm:$0xf] }
   0xe   :  { %368 = vmatpush.bf16.msra.mxu0 %v645_v12  ;;  %v637_v38 = vld [vmem:[%s863_s0 + $0xc] sm:$0xf]  ;;  %v482_v39 = vld [vmem:[%s863_s0 + $0x1c] sm:$0xf0]  ;;  %v473_v41 = vor.u32 %v638_v33, %v472_v32  ;;  %v477_v42 = vor.u32 %v636_v34, %v474_v35  ;;  %v481_v43 = vor.u32 %v639_v37, %v480_v36  ;;  %v675_v45 = vld [vmem:[%s861_s1 + $0x110] sm:$0xff] }
   0xf   :  { %386 = vmatpush.bf16.msra.mxu1 %v653_v13  ;;  %v485_v44 = vor.u32 %v637_v38, %v482_v39  ;;  %v674_v46 = vld [vmem:[%s861_s1 + $0x108] sm:$0xff]  ;;  %v22_v48 = vld [vmem:[%s863_s0 + $0x30] sm:$0x11]  ;;  %v673_v49 = vld [vmem:[%s861_s1 + $0x100] sm:$0xff] }
  0x10   :  { %404 = vmatpush.bf16.msra.mxu2 %v661_v14  ;;  %v21_v47 = vld [vmem:[%s863_s0 + $0x28] sm:$0x11]  ;;  %v121_v52 = vunpack.c.l.b16 %v22_v48  ;;  %v122_v53 = vunpack.c.h.b16 %v22_v48  ;;  %v23_v58 = vld [vmem:[%s863_s0 + $0x38] sm:$0x1]  ;;  %v488_v60 = vld [vmem:[%s863_s0 + $0x10] sm:$0xf] }
  0x11   :  { %422 = vmatpush.bf16.msra.mxu3 %v669_v15  ;;  %v119_v50 = vunpack.c.l.b16 %v21_v47  ;;  %v120_v51 = vunpack.c.h.b16 %v21_v47  ;;  %v123_v59 = vunpack.c.l.b16 %v23_v58  ;;  %v640_v61 = vld [vmem:[%s863_s0 + $0x20] sm:$0xf0]  ;;  %v681_v10 = vld [vmem:[%s862_s2] ss:$0 sm:$0xff] }
  0x12   :  { %369 = vmatpush.bf16.msra.mxu0 %v644_v16  ;;  %v131_v56 = vpack.c.b16 %v121_v52, %v121_v52  ;;  %v132_v57 = vpack.c.b16 %v122_v53, %v122_v53  ;;  %v489_v62 = vor.u32 %v640_v61, %v488_v60 }
  0x13   :  { %387 = vmatpush.bf16.msra.mxu1 %v652_v17  ;;  %v129_v54 = vpack.c.b16 %v119_v50, %v119_v50  ;;  %v130_v55 = vpack.c.b16 %v120_v51, %v120_v51  ;;  %v133_v63 = vpack.c.b16 %v123_v59, %v123_v59 }
  0x14   :  { %405 = vmatpush.bf16.msra.mxu2 %v660_v18 }
  0x15   :  { %423 = vmatpush.bf16.msra.mxu3 %v668_v19 }
  0x16   :  { %370 = vmatpush.bf16.msra.mxu0 %v643_v20 }
  0x17   :  { %388 = vmatpush.bf16.msra.mxu1 %v651_v21 }
  0x18   :  { %406 = vmatpush.bf16.msra.mxu2 %v659_v22 }
  0x19   :  { %424 = vmatpush.bf16.msra.mxu3 %v667_v23 }
  0x1a   :  { %371 = vmatpush.bf16.msra.mxu0 %v642_v24 }
  0x1b   :  { %389 = vmatpush.bf16.msra.mxu1 %v650_v25 }
  0x1c   :  { %407 = vmatpush.bf16.msra.mxu2 %v658_v26 }
  0x1d   :  { %425 = vmatpush.bf16.msra.mxu3 %v666_v27 }
  0x1e   :  { %372 = vmatpush.bf16.msra.mxu0 %v641_v28 }
  0x1f   :  { %390 = vmatpush.bf16.msra.mxu1 %v649_v29 }
  0x20   :  { %408 = vmatpush.bf16.msra.mxu2 %v657_v30 }
  0x21   :  { %426 = vmatpush.bf16.msra.mxu3 %v665_v31  ;;  %373 = vmatmul.bf16.vlgmr.msra.gmra.mxu0 %v473_v41 }
  0x22   :  { %441 = vmatpush.bf16.msrb.mxu0 %v676_v40  ;;  %391 = vmatmul.bf16.vlgmr.msra.gmra.mxu1 %v477_v42 }
  0x23   :  { %677 = vmatpush.bf16.msrb.mxu1 %v676_v40  ;;  %409 = vmatmul.bf16.vlgmr.msra.gmra.mxu2 %v481_v43 }
  0x24   :  { %427 = vmatmul.bf16.vlgmr.msra.gmra.mxu3 %v485_v44 }
  0x26   :  { %442 = vmatpush.bf16.msrb.mxu0 %v675_v45 }
  0x27   :  { %678 = vmatpush.bf16.msrb.mxu1 %v675_v45 }
  0x2a   :  { %443 = vmatpush.bf16.msrb.mxu0 %v674_v46 }
  0x2b   :  { %679 = vmatpush.bf16.msrb.mxu1 %v674_v46 }
  0x2e   :  { %444 = vmatpush.bf16.msrb.mxu0 %v673_v49 }
  0x2f   :  { %680 = vmatpush.bf16.msrb.mxu1 %v673_v49 }
  0x31   :  { %378 = vmatmul.bf16.gmra.mxu0 %v129_v54 }
  0x32   :  { %396 = vmatmul.bf16.gmra.mxu1 %v130_v55 }
  0x33   :  { %414 = vmatmul.bf16.gmra.mxu2 %v131_v56 }
  0x34   :  { %432 = vmatmul.bf16.gmra.mxu3 %v132_v57 }
  0x41   :  { %634 = vmatmul.msk.bf16.vlgmr.msrb.gmra.mxu0 %vm358_vm0, %v489_v62 }
  0x42   :  { %635 = vmatmul.msk.bf16.vlgmr.msrb.gmra.mxu1 %vm358_vm0, %v133_v63 }
  0x9e   :  { %v374_v0 = vpop.f32.mrf.mxu0 }
  0x9f   :  { %v392_v1 = vpop.f32.mrf.mxu1  ;;  %v375_v11 = vadd.f32 %v681_v10, %v374_v0 }
  0xa1   :  { %v393_v17 = vadd.f32 %v392_v1, %v375_v11 }
  0xa6   :  { %v410_v2 = vpop.f32.mrf.mxu2  ;;  %v376_v4 = vpop.f32.mrf.mxu0 }
  0xa7   :  { %v428_v3 = vpop.f32.mrf.mxu3  ;;  %v394_v5 = vpop.f32.mrf.mxu1  ;;  %v411_v19 = vadd.f32 %v410_v2, %v393_v17  ;;  %v377_v21 = vadd.f32 %v681_v10, %v376_v4 }
  0xa9   :  { %v429_v22 = vadd.f32 %v428_v3, %v411_v19  ;;  %v395_v28 = vadd.f32 %v394_v5, %v377_v21 }
  0xae   :  { %v412_v6 = vpop.f32.mrf.mxu2  ;;  %v379_v8 = vpop.f32.mrf.mxu0 }
  0xaf   :  { %v430_v7 = vpop.f32.mrf.mxu3  ;;  %v397_v9 = vpop.f32.mrf.mxu1  ;;  %v380_v12 = vadd.f32 %v681_v10, %v379_v8  ;;  %v413_v31 = vadd.f32 %v412_v6, %v395_v28 }
  0xb1   :  { %v398_v18 = vadd.f32 %v397_v9, %v380_v12  ;;  %v431_v36 = vadd.f32 %v430_v7, %v413_v31 }
  0xb6   :  { %v415_v13 = vpop.f32.mrf.mxu2  ;;  %v381_v15 = vpop.f32.mrf.mxu0 }
  0xb7   :  { %v433_v14 = vpop.f32.mrf.mxu3  ;;  %v399_v16 = vpop.f32.mrf.mxu1  ;;  %v416_v20 = vadd.f32 %v415_v13, %v398_v18 }
  0xb9   :  { %v434_v23 = vadd.f32 %v433_v14, %v416_v20 }
  0xbe   :  { %v417_v24 = vpop.f32.mrf.mxu2  ;;  %v446_v26 = vpop.f32.mrf.mxu0 }
  0xbf   :  { %v435_v25 = vpop.f32.mrf.mxu3  ;;  %v451_v27 = vpop.f32.mrf.mxu1  ;;  %v447_v29 = vadd.f32 %v446_v26, %v429_v22 }
  0xc0   :  { %v452_v30 = vadd.f32 %v451_v27, %v434_v23 }
  0xc1   :  { %v455_v32 = vmax.f32 %v447_v29, 0.0 }
  0xc2   :  { %v457_v33 = vmax.f32 %v452_v30, 0.0 }
  0xc3   :  { %v458_v34 = vpack.c.bf16 %v455_v32, %v455_v32 }
  0xc4   :  { %v460_v35 = vpack.c.bf16 %v457_v33, %v457_v33 }
  0xc5   :  { %462 = vst.msk [vmem:[%s864_s3] sm:$0xf] %vm461_vm1, %v458_v34 }
  0xc6   :  { %465 = vst.msk [vmem:[%s864_s3 + $0x8] sm:$0x1] %vm464_vm2, %v460_v35  ;;  %v448_v37 = vpop.f32.mrf.mxu0 }
  0xc7   :  { %v453_v38 = vpop.f32.mrf.mxu1  ;;  %v449_v39 = vadd.f32 %v448_v37, %v431_v36 }
  0xc9   :  { %v456_v40 = vmax.f32 %v449_v39, 0.0 }
  0xcb   :  { %v459_v41 = vpack.c.bf16 %v456_v40, %v456_v40 }
  0xcd   :  { %463 = vst.msk [vmem:[%s864_s3 + $0x4] sm:$0xf] %vm461_vm1, %v459_v41 }

// kernel: ppo_forward.20
= control target key start
LH: loop header
LB: loop body
LE: loop exit
PB: predicated region body
PF: predicated region fallthrough
CT: control target
= control target key end

     0   :  { %vm319_vm0 = vcmask 523264   ;;  %s713_s1 = inlined_call_operand.vmem [shape: bf16[576,128], index: 1, kind: input, shape index: {}]   ;;  %s714_s0 = inlined_call_operand.vmem [shape: bf16[2,576], index: 0, kind: input, shape index: {}]   ;;  %s715_s2 = inlined_call_operand.vmem [shape: f32[1,128], index: 2, kind: input, shape index: {}]   ;;  %s716_s3 = inlined_call_operand.vmem [shape: bf16[2,128], index: 3, kind: output, shape index: {}]  }
   0x1   :  { %v546_v0 = vld [vmem:[%s713_s1 + $0x38] sm:$0xff]  ;;  %v545_v4 = vld [vmem:[%s713_s1 + $0x30] sm:$0xff]  ;;  %v544_v8 = vld [vmem:[%s713_s1 + $0x28] sm:$0xff] }
   0x2   :  { %v562_v1 = vld [vmem:[%s713_s1 + $0xb8] sm:$0xff]  ;;  %322 = vmatpush.bf16.msra.mxu0 %v546_v0  ;;  %v561_v5 = vld [vmem:[%s713_s1 + $0xb0] sm:$0xff]  ;;  %v560_v9 = vld [vmem:[%s713_s1 + $0xa8] sm:$0xff] }
   0x3   :  { %v570_v2 = vld [vmem:[%s713_s1 + $0xf8] sm:$0xff]  ;;  %348 = vmatpush.bf16.msra.mxu2 %v562_v1  ;;  %v569_v6 = vld [vmem:[%s713_s1 + $0xf0] sm:$0xff]  ;;  %v568_v10 = vld [vmem:[%s713_s1 + $0xe8] sm:$0xff] }
   0x4   :  { %v554_v3 = vld [vmem:[%s713_s1 + $0x78] sm:$0xff]  ;;  %361 = vmatpush.bf16.msra.mxu3 %v570_v2  ;;  %v553_v7 = vld [vmem:[%s713_s1 + $0x70] sm:$0xff]  ;;  %v552_v11 = vld [vmem:[%s713_s1 + $0x68] sm:$0xff] }
   0x5   :  { %335 = vmatpush.bf16.msra.mxu1 %v554_v3  ;;  %v543_v12 = vld [vmem:[%s713_s1 + $0x20] sm:$0xff]  ;;  %v542_v17 = vld [vmem:[%s713_s1 + $0x18] sm:$0xff]  ;;  %v541_v21 = vld [vmem:[%s713_s1 + $0x10] sm:$0xff] }
   0x6   :  { %323 = vmatpush.bf16.msra.mxu0 %v545_v4  ;;  %v559_v13 = vld [vmem:[%s713_s1 + $0xa0] sm:$0xff]  ;;  %v558_v18 = vld [vmem:[%s713_s1 + $0x98] sm:$0xff]  ;;  %v557_v22 = vld [vmem:[%s713_s1 + $0x90] sm:$0xff] }
   0x7   :  { %349 = vmatpush.bf16.msra.mxu2 %v561_v5  ;;  %v15_v14 = vld [vmem:[%s714_s0] sm:$0x1f]  ;;  %v566_v19 = vld [vmem:[%s713_s1 + $0xd8] sm:$0xff]  ;;  %v565_v23 = vld [vmem:[%s713_s1 + $0xd0] sm:$0xff] }
   0x8   :  { %362 = vmatpush.bf16.msra.mxu3 %v569_v6  ;;  %v567_v15 = vld [vmem:[%s713_s1 + $0xe0] sm:$0xff]  ;;  %93 = vst [vmem:[#allocation1] ss:$9 sm:$0xff] %v15_v14  ;;  %v550_v20 = vld [vmem:[%s713_s1 + $0x58] sm:$0xff]  ;;  %v549_v24 = vld [vmem:[%s713_s1 + $0x50] sm:$0xff] }
   0x9   :  { %336 = vmatpush.bf16.msra.mxu1 %v553_v7  ;;  %v551_v16 = vld [vmem:[%s713_s1 + $0x60] sm:$0xff]  ;;  %v540_v25 = vld [vmem:[%s713_s1 + $0x8] sm:$0xff]  ;;  %v574_v33 = vld [vmem:[%s713_s1 + $0x118] sm:$0xff] }
   0xa   :  { %324 = vmatpush.bf16.msra.mxu0 %v544_v8  ;;  %v556_v26 = vld [vmem:[%s713_s1 + $0x88] sm:$0xff]  ;;  %v539_v29 = vld [vmem:[%s713_s1] sm:$0xff]  ;;  %v573_v38 = vld [vmem:[%s713_s1 + $0x110] sm:$0xff] }
   0xb   :  { %350 = vmatpush.bf16.msra.mxu2 %v560_v9  ;;  %v564_v27 = vld [vmem:[%s713_s1 + $0xc8] sm:$0xff]  ;;  %v555_v30 = vld [vmem:[%s713_s1 + $0x80] sm:$0xff] }
   0xc   :  { %363 = vmatpush.bf16.msra.mxu3 %v568_v10  ;;  %v548_v28 = vld [vmem:[%s713_s1 + $0x48] sm:$0xff]  ;;  %v563_v31 = vld [vmem:[%s713_s1 + $0xc0] sm:$0xff] }
   0xd   :  { %337 = vmatpush.bf16.msra.mxu1 %v552_v11  ;;  %v547_v32 = vld [vmem:[%s713_s1 + $0x40] sm:$0xff]  ;;  %v572_v39 = vld [vmem:[%s713_s1 + $0x108] sm:$0xff] }
   0xe   :  { %325 = vmatpush.bf16.msra.mxu0 %v543_v12  ;;  %v571_v40 = vld [vmem:[%s713_s1 + $0x100] sm:$0xff] }
   0xf   :  { %351 = vmatpush.bf16.msra.mxu2 %v559_v13  ;;  %v94_v34 = vld [vmem:[#allocation1] sm:$0xff]  ;;  %v96_v35 = vld [vmem:[#allocation1 + $0x12] sm:$0xff]  ;;  %v95_v37 = vld [vmem:[#allocation1 + $0x9] sm:$0xff] }
  0x10   :  { %364 = vmatpush.bf16.msra.mxu3 %v567_v15  ;;  %v97_v36 = vld [vmem:[#allocation1 + $0x1b] sm:$0xff]  ;;  %v98_v41 = vld [vmem:[#allocation1 + $0x24] sm:$0xff] }
  0x11   :  { %338 = vmatpush.bf16.msra.mxu1 %v551_v16  ;;  %v575_v43 = vld [vmem:[%s715_s2] ss:$0 sm:$0xff] }
  0x12   :  { %326 = vmatpush.bf16.msra.mxu0 %v542_v17 }
  0x13   :  { %352 = vmatpush.bf16.msra.mxu2 %v558_v18 }
  0x14   :  { %365 = vmatpush.bf16.msra.mxu3 %v566_v19 }
  0x15   :  { %339 = vmatpush.bf16.msra.mxu1 %v550_v20 }
  0x16   :  { %327 = vmatpush.bf16.msra.mxu0 %v541_v21 }
  0x17   :  { %353 = vmatpush.bf16.msra.mxu2 %v557_v22 }
  0x18   :  { %366 = vmatpush.bf16.msra.mxu3 %v565_v23 }
  0x19   :  { %340 = vmatpush.bf16.msra.mxu1 %v549_v24 }
  0x1a   :  { %328 = vmatpush.bf16.msra.mxu0 %v540_v25 }
  0x1b   :  { %354 = vmatpush.bf16.msra.mxu2 %v556_v26 }
  0x1c   :  { %367 = vmatpush.bf16.msra.mxu3 %v564_v27 }
  0x1d   :  { %341 = vmatpush.bf16.msra.mxu1 %v548_v28 }
  0x1e   :  { %329 = vmatpush.bf16.msra.mxu0 %v539_v29 }
  0x1f   :  { %355 = vmatpush.bf16.msra.mxu2 %v555_v30 }
  0x20   :  { %368 = vmatpush.bf16.msra.mxu3 %v563_v31 }
  0x21   :  { %342 = vmatpush.bf16.msra.mxu1 %v547_v32  ;;  %330 = vmatmul.bf16.vlgmr.msra.gmra.mxu0 %v94_v34 }
  0x22   :  { %378 = vmatpush.bf16.msrb.mxu0 %v574_v33  ;;  %356 = vmatmul.bf16.vlgmr.msra.gmra.mxu2 %v96_v35 }
  0x23   :  { %369 = vmatmul.bf16.vlgmr.msra.gmra.mxu3 %v97_v36 }
  0x24   :  { %343 = vmatmul.bf16.vlgmr.msra.gmra.mxu1 %v95_v37 }
  0x26   :  { %379 = vmatpush.bf16.msrb.mxu0 %v573_v38 }
  0x2a   :  { %380 = vmatpush.bf16.msrb.mxu0 %v572_v39 }
  0x2e   :  { %381 = vmatpush.bf16.msrb.mxu0 %v571_v40 }
  0x31   :  { %538 = vmatmul.msk.bf16.vlgmr.msrb.gmra.mxu0 %vm319_vm0, %v98_v41 }
  0x9e   :  { %v331_v42 = vpop.f32.mrf.mxu0 }
  0x9f   :  { %v332_v45 = vadd.f32 %v575_v43, %v331_v42 }
  0xa1   :  { %v344_v44 = vpop.f32.mrf.mxu1 }
  0xa2   :  { %v345_v49 = vadd.f32 %v344_v44, %v332_v45 }
  0xa5   :  { %v357_v46 = vpop.f32.mrf.mxu2 }
  0xa6   :  { %v370_v47 = vpop.f32.mrf.mxu3  ;;  %v333_v48 = vpop.f32.mrf.mxu0  ;;  %v358_v51 = vadd.f32 %v357_v46, %v345_v49 }
  0xa8   :  { %v371_v53 = vadd.f32 %v370_v47, %v358_v51 }
  0xa9   :  { %v346_v50 = vpop.f32.mrf.mxu1 }
  0xad   :  { %v359_v52 = vpop.f32.mrf.mxu2 }
  0xae   :  { %v372_v54 = vpop.f32.mrf.mxu3  ;;  %v383_v55 = vpop.f32.mrf.mxu0 }
  0xaf   :  { %v384_v56 = vadd.f32 %v383_v55, %v371_v53 }
  0xb1   :  { %v387_v57 = vmax.f32 %v384_v56, 0.0 }
  0xb3   :  { %v388_v58 = vpack.c.bf16 %v387_v57, %v387_v57 }
  0xb5   :  { %389 = vst [vmem:[%s716_s3] sm:$0x1] %v388_v58 }
  0xb6   :  { %v385_v59 = vpop.f32.mrf.mxu0 }

// kernel: ppo_forward.19
= control target key start
LH: loop header
LB: loop body
LE: loop exit
PB: predicated region body
PF: predicated region fallthrough
CT: control target
= control target key end

     0   :  { %v433_v2 = vmov 9.0   ;;  %vm28_vm0 = vcmask 523264   ;;  %vm30_vm1 = vcmask 516096   ;;  %vm86_vm3 = vcmask 1041409   ;;  %s605_s1 = inlined_call_operand.vmem [shape: f32[64,4], index: 1, kind: input, shape index: {}]   ;;  %s606_s0 = inlined_call_operand.vmem [shape: bf16[2,9,64], index: 0, kind: input, shape index: {}]   ;;  %s607_s2 = inlined_call_operand.vmem [shape: f32[4,64], index: 2, kind: input, shape index: {}]   ;;  %s608_s3 = inlined_call_operand.vmem [shape: f32[9,9], index: 3, kind: input, shape index: {}]   ;;  %s609_s4 = inlined_call_operand.vmem [shape: f32[9,9], index: 4, kind: input, shape index: {}]   ;;  %s610_s5 = inlined_call_operand.vmem [shape: bf16[2,9,64], index: 5, kind: output, shape index: {}]  }
   0x1   :  { %v82_v0 = vld [vmem:[%s605_s1 + $0x38] sm:$0xff]  ;;  %v81_v1 = vld [vmem:[%s605_s1 + $0x30] sm:$0xff]  ;;  %421 = vrcp.f32 %v433_v2  ;;  %v80_v3 = vld [vmem:[%s605_s1 + $0x28] sm:$0xff]  ;;  %vm141_vm4 = vcmask 1043456   ;;  %vm137_vm5 = vcmask 31744   ;;  %vm274_vm10 = vcmask 1040384  }
   0x2   :  { %98 = vmatpush.msra.mxu0 %v82_v0  ;;  %124 = vmatpush.msra.mxu1 %v82_v0  ;;  %v20_v4 = vld [vmem:[%s606_s0] sm:$0xf]  ;;  %v21_v5 = vld [vmem:[%s606_s0 + $0x4] sm:$0x1]  ;;  %v22_v6 = vld [vmem:[%s606_s0 + $0x8] sm:$0xf] }
   0x3   :  { %v23_v7 = vld [vmem:[%s606_s0 + $0xc] sm:$0x1]  ;;  %v486_v8 = vunpack.c.l.bf16 %v20_v4  ;;  %v79_v9 = vld [vmem:[%s605_s1 + $0x20] sm:$0xff]  ;;  %v491_v10 = vunpack.c.l.bf16 %v21_v5  ;;  %v493_v11 = vunpack.c.l.bf16 %v22_v6  ;;  %v78_v16 = vld [vmem:[%s605_s1 + $0x18] sm:$0xff]  ;;  %vm265_vm12 = vcmask 130112  }
   0x4   :  { %99 = vmatpush.msra.mxu0 %v81_v1  ;;  %125 = vmatpush.msra.mxu1 %v81_v1  ;;  %v495_v12 = vunpack.c.l.bf16 %v23_v7  ;;  %v77_v24 = vld [vmem:[%s605_s1 + $0x10] sm:$0xff]  ;;  %v76_v32 = vld [vmem:[%s605_s1 + $0x8] sm:$0xff]  ;;  %v75_v38 = vld [vmem:[%s605_s1] sm:$0xff]  ;;  %vm271_vm13 = vcmask 72704  }
   0x5   :  { %v29_v13 = vsel %vm28_vm0, %v486_v8, 0.0  ;;  %v57_v14 = vsel %vm28_vm0, %v486_v8, -inf  ;;  %v31_v17 = vsel %vm30_vm1, %v491_v10, 0.0  ;;  %v39_v18 = vsel %vm28_vm0, %v493_v11, 0.0  ;;  %v83_v63 = vld [vmem:[%s607_s2] sm:$0xf] }
   0x6   :  { %100 = vmatpush.msra.mxu0 %v80_v3  ;;  %126 = vmatpush.msra.mxu1 %v80_v3  ;;  %v40_v19 = vsel %vm30_vm1, %v495_v12, 0.0  ;;  %v58_v20 = vsel %vm30_vm1, %v491_v10, -inf  ;;  %v32_v21 = vadd.f32 %v31_v17, %v29_v13  ;;  %v66_v26 = vsel %vm28_vm0, %v493_v11, -inf }
   0x7   :  { %v422_v15 = vpop.eup %421  ;;  %v41_v22 = vadd.f32 %v40_v19, %v39_v18  ;;  %v59_v25 = vmax.f32 %v57_v14, %v58_v20  ;;  %v67_v27 = vsel %vm30_vm1, %v495_v12, -inf  ;;  %405 = vmatpush.msk.msra.mxu2 %vm141_vm4, %v83_v63  ;;  %407 = vmatpush.msk.msra.mxu3 %vm141_vm4, %v83_v63 }
   0x8   :  { %101 = vmatpush.msra.mxu0 %v79_v9  ;;  %127 = vmatpush.msra.mxu1 %v79_v9  ;;  %v49_v23 = vmul.f32 9.0, %v422_v15  ;;  %v33_v28 = vrot.slane %v32_v21, 4  ;;  %v68_v31 = vmax.f32 %v66_v26, %v67_v27  ;;  %vm53_vm2 = vweird.f32 %v422_v15 }
   0x9   :  { %v42_v29 = vrot.slane %v41_v22, 4  ;;  %v60_v33 = vrot.slane %v59_v25, 4 }
   0xa   :  { %102 = vmatpush.msra.mxu0 %v78_v16  ;;  %128 = vmatpush.msra.mxu1 %v78_v16  ;;  %v50_v30 = vsub.f32 1.0, %v49_v23  ;;  %v34_v34 = vadd.f32 %v33_v28, %v32_v21  ;;  %v69_v37 = vrot.slane %v68_v31, 4 }
   0xb   :  { %v43_v35 = vadd.f32 %v42_v29, %v41_v22  ;;  %v61_v39 = vmax.f32 %v59_v25, %v60_v33 }
   0xc   :  { %103 = vmatpush.msra.mxu0 %v77_v24  ;;  %129 = vmatpush.msra.mxu1 %v77_v24  ;;  %v51_v36 = vmul.f32 %v422_v15, %v50_v30  ;;  %v35_v40 = vrot.slane %v34_v34, 2  ;;  %v70_v42 = vmax.f32 %v68_v31, %v69_v37  ;;  %v255_v37 = vld [vmem:[%s609_s4 + $0x8] sm:$0x1] }
   0xd   :  { %v44_v41 = vrot.slane %v43_v35, 2  ;;  %v62_v44 = vrot.slane %v61_v39, 2  ;;  %410 = vmatpush.msk.msrb.mxu2 %vm274_vm10, %v255_v37 }
   0xe   :  { %104 = vmatpush.msra.mxu0 %v76_v32  ;;  %130 = vmatpush.msra.mxu1 %v76_v32  ;;  %v52_v43 = vadd.f32 %v422_v15, %v51_v36  ;;  %v36_v45 = vadd.f32 %v35_v40, %v34_v34  ;;  %v71_v47 = vrot.slane %v70_v42, 2  ;;  %v253_v36 = vld [vmem:[%s608_s3 + $0x8] sm:$0x1]  ;;  %v254_v40 = vld [vmem:[%s609_s4] sm:$0xff] }
   0xf   :  { %v45_v46 = vadd.f32 %v44_v41, %v43_v35  ;;  %v63_v48 = vmax.f32 %v61_v39, %v62_v44  ;;  %412 = vmatpush.msk.msrb.mxu3 %vm274_vm10, %v253_v36  ;;  %293 = vmatpush.msrb.mxu2 %v254_v40 }
  0x10   :  { %105 = vmatpush.msra.mxu0 %v75_v38  ;;  %131 = vmatpush.msra.mxu1 %v75_v38  ;;  %v37_v49 = vrot.slane %v36_v45, 1  ;;  %v72_v51 = vmax.f32 %v70_v42, %v71_v47  ;;  %v54_v52 = vsel %vm53_vm2, %v422_v15, %v52_v43  ;;  %v252_v38 = vld [vmem:[%s608_s3] sm:$0xff]  ;;  %v260_v47 = vlaneseq }
  0x11   :  { %v46_v50 = vrot.slane %v45_v46, 1  ;;  %v64_v53 = vrot.slane %v63_v48, 1  ;;  %329 = vmatpush.msrb.mxu3 %v252_v38  ;;  %v392_v38 = vld [vmem:[%s610_s5 + $0x4] sm:$0x1] }
  0x12   :  { %v38_v54 = vadd.f32 %v37_v49, %v36_v45  ;;  %v73_v56 = vrot.slane %v72_v51, 1 }
  0x13   :  { %v47_v55 = vadd.f32 %v46_v50, %v45_v46  ;;  %v65_v57 = vmax.f32 %v63_v48, %v64_v53  ;;  %v261_v50 = vand.u32 127, %v260_v47 }
  0x14   :  { %v55_v58 = vmul.f32 %v54_v52, %v38_v54  ;;  %v74_v60 = vmax.f32 %v72_v51, %v73_v56 }
  0x15   :  { %v56_v59 = vmul.f32 %v54_v52, %v47_v55  ;;  %v263_v54 = vadd.s32 4294967288, %v261_v50 }
  0x16   :  { %v113_v62 = vsel %vm86_vm3, %v74_v60, %v65_v57 }
  0x17   :  { %v87_v61 = vsel %vm86_vm3, %v56_v59, %v55_v58  ;;  %404 = vmatmul.msk.f32.vlgmr.msra.gmra.mxu1 %vm28_vm0, %v113_v62 }
  0x18   :  { %403 = vmatmul.msk.f32.vlgmr.msra.gmra.mxu0 %vm28_vm0, %v87_v61 }
  0x94   :  { %v133_v1 = vpop.f32.mrf.mxu1 }
  0x95   :  { %v107_v0 = vpop.f32.mrf.mxu0  ;;  %v136_v3 = vmax.f32 %v133_v1, 0.0 }
  0x96   :  { %v110_v2 = vmax.f32 %v107_v0, 0.0 }
  0x97   :  { %406 = vmatmul.msk.f32.vlgmr.msra.gmra.mxu2 %vm137_vm5, %v136_v3 }
  0x98   :  { %408 = vmatmul.msk.f32.vlgmr.msra.gmra.mxu3 %vm137_vm5, %v110_v2  ;;  %vm387_vm5 = vcmask 519168  }
 0x11a   :  { %v162_v4 = vpop.f32.mrf.mxu2 }
 0x11b   :  { %v185_v5 = vpop.f32.mrf.mxu3 }
 0x11c   :  { %v186_v6 = vadd.f32 %v185_v5, %v162_v4 }
 0x11e   :  { %v409_v7 = vmul.f32 -1.442695, %v186_v6 }
 0x120   :  { %423 = vpow2.f32 %v409_v7 }
 0x126   :  { %v424_v9 = vpop.eup %423 }
 0x127   :  { %v191_v13 = vadd.f32 1.0, %v424_v9 }
 0x129   :  { %425 = vrcp.f32 %v191_v13  ;;  %v203_v17 = vand.u32 2147483648, %v191_v13  ;;  %v201_v19 = vand.u32 2147483647, %v191_v13  ;;  %vm197_vm7 = vweird.f32 %v191_v13 }
 0x12b   :  { %v204_v21 = vor.u32 1.1754944e-38, %v203_v17  ;;  %vm202_vm9 = vcmp.eq.f32.partialorder %v201_v19, 8.507059e+37 }
 0x12f   :  { %v426_v14 = vpop.eup %425 }
 0x130   :  { %v193_v15 = vmul.f32 %v426_v14, %v191_v13  ;;  %vm198_vm6 = vweird.f32 %v426_v14 }
 0x131   :  { %vm199_vm8 = vmor %vm197_vm7, %vm198_vm6 }
 0x132   :  { %v194_v16 = vsub.f32 1.0, %v193_v15  ;;  %v355_v15 = vshrl.u32 %v260_v47, 7  ;;  %v396_v47 = vld [vmem:[%s610_s5 + $0xc] sm:$0x1] }
 0x134   :  { %v195_v18 = vmul.f32 %v426_v14, %v194_v16  ;;  %419 = vset.pattern.permute.xlu1 %v355_v15  ;;  %v362_v16 = vadd.s32 8, %v355_v15 }
 0x136   :  { %v196_v20 = vadd.f32 %v426_v14, %v195_v18  ;;  %418 = vset.pattern.permute.xlu0 %v362_v16  ;;  %417 = vset.pattern.permute.xlu2 %v362_v16 }
 0x138   :  { %v200_v22 = vsel %vm199_vm8, %v426_v14, %v196_v20 }
 0x139   :  { %v205_v23 = vsel %vm202_vm9, %v204_v21, %v200_v22 }
 0x13a   :  { %v209_v24 = vperm.slane %v205_v23, 0  ;;  %v208_v25 = vrot.slane %v205_v23, 1 }
 0x13c   :  { %v533_v26 = vmul.f32 %v209_v24, %v486_v8  ;;  %v210_v27 = vperm.slane %v208_v25, 0  ;;  %v545_v32 = vmul.f32 %v209_v24, %v491_v10 }
 0x13e   :  { %v240_v28 = vsel %vm28_vm0, %v533_v26, -inf  ;;  %v217_v29 = vsel %vm28_vm0, %v533_v26, 0.0  ;;  %v540_v30 = vmul.f32 %v210_v27, %v493_v11  ;;  %v548_v8 = vmul.f32 %v210_v27, %v495_v12 }
 0x13f   :  { %241 = vmax.xlane.f32.xlu2 %v240_v28  ;;  %218 = vadd.xlane.f32.xlu0 %v217_v29  ;;  %v243_v33 = vsel %vm30_vm1, %v545_v32, -inf  ;;  %v220_v34 = vsel %vm30_vm1, %v545_v32, 0.0  ;;  %v434_v12 = vmov 64.0  }
 0x140   :  { %v223_v31 = vsel %vm28_vm0, %v540_v30, 0.0  ;;  %v226_v11 = vsel %vm30_vm1, %v548_v8, 0.0  ;;  %v246_v35 = vsel %vm28_vm0, %v540_v30, -inf  ;;  %v249_v10 = vsel %vm30_vm1, %v548_v8, -inf }
 0x141   :  { %224 = vadd.xlane.f32.xlu1 %v223_v31  ;;  %427 = vrcp.f32 %v434_v12 }
 0x147   :  { %244 = vmax.xlane.f32.xlu2 %v243_v33  ;;  %221 = vadd.xlane.f32.xlu0 %v220_v34  ;;  %v428_v39 = vpop.eup %427 }
 0x148   :  { %v230_v41 = vmul.f32 64.0, %v428_v39  ;;  %vm234_vm11 = vweird.f32 %v428_v39 }
 0x149   :  { %227 = vadd.xlane.f32.xlu1 %v226_v11 }
 0x14a   :  { %v231_v42 = vsub.f32 1.0, %v230_v41 }
 0x14c   :  { %v232_v43 = vmul.f32 %v428_v39, %v231_v42 }
 0x14e   :  { %v233_v45 = vadd.f32 %v428_v39, %v232_v43 }
 0x14f   :  { %247 = vmax.xlane.f32.xlu0 %v246_v35 }
 0x150   :  { %v235_v49 = vsel %vm234_vm11, %v428_v39, %v233_v45 }
 0x151   :  { %250 = vmax.xlane.f32.xlu1 %v249_v10 }
 0x1b2   :  { %v219_v44 = vpop.xlane.xlu0 %218  ;;  %v242_v48 = vpop.xlane.xlu2 %241 }
 0x1b3   :  { %v236_v52 = vmul.f32 %v235_v49, %v219_v44  ;;  %v262_v5 = vperm.slane %v242_v48, %v261_v50 }
 0x1b4   :  { %v225_v46 = vpop.xlane.xlu1 %224 }
 0x1b5   :  { %v238_v53 = vmul.f32 %v235_v49, %v225_v46  ;;  %v302_v59 = vperm.slane %v236_v52, %v261_v50 }
 0x1b7   :  { %v305_v60 = vperm.slane %v238_v53, %v261_v50 }
 0x1ba   :  { %v222_v51 = vpop.xlane.xlu0 %221  ;;  %v245_v62 = vpop.xlane.xlu2 %244 }
 0x1bb   :  { %v237_v55 = vmul.f32 %v235_v49, %v222_v51  ;;  %v264_v3 = vperm.slane %v245_v62, %v263_v54 }
 0x1bc   :  { %v228_v56 = vpop.xlane.xlu1 %227 }
 0x1bd   :  { %v303_v57 = vperm.slane %v237_v55, %v263_v54  ;;  %v239_v58 = vmul.f32 %v235_v49, %v228_v56  ;;  %v266_v9 = vsel %vm265_vm12, %v264_v3, %v262_v5 }
 0x1bf   :  { %v306_v61 = vperm.slane %v239_v58, %v263_v54  ;;  %v304_v63 = vsel %vm265_vm12, %v303_v57, %v302_v59 }
 0x1c1   :  { %v307_v0 = vsel %vm265_vm12, %v306_v61, %v305_v60 }
 0x1c2   :  { %v248_v1 = vpop.xlane.xlu0 %247  ;;  %v308_v2 = vsel %vm86_vm3, %v307_v0, %v304_v63 }
 0x1c3   :  { %413 = vmatmul.msk.f32.vlgmr.msrb.gmra.mxu3 %vm271_vm13, %v308_v2  ;;  %v267_v6 = vperm.slane %v248_v1, %v261_v50 }
 0x1c4   :  { %v251_v4 = vpop.xlane.xlu1 %250 }
 0x1c5   :  { %v268_v7 = vperm.slane %v251_v4, %v263_v54 }
 0x1c7   :  { %v269_v13 = vsel %vm265_vm12, %v268_v7, %v267_v6 }
 0x1c8   :  { %v270_v14 = vsel %vm86_vm3, %v269_v13, %v266_v9  ;;  %vm390_vm3 = vsmask.f32 256 }
 0x1c9   :  { %411 = vmatmul.msk.f32.vlgmr.msrb.gmra.mxu2 %vm271_vm13, %v270_v14  ;;  %vm576_vm4 = vmand %vm30_vm1, %vm390_vm3 }
 0x246   :  { %v331_v17 = vpop.f32.mrf.mxu3 }
 0x24c   :  { %v295_v18 = vpop.f32.mrf.mxu2 }
 0x24d   :  { %v332_v19 = vadd.f32 %v331_v17, %v295_v18 }
 0x24f   :  { %v414_v20 = vmul.f32 -1.442695, %v332_v19 }
 0x251   :  { %429 = vpow2.f32 %v414_v20 }
 0x257   :  { %v430_v21 = vpop.eup %429 }
 0x258   :  { %v337_v22 = vadd.f32 1.0, %v430_v21 }
 0x25a   :  { %431 = vrcp.f32 %v337_v22  ;;  %v349_v27 = vand.u32 2147483648, %v337_v22  ;;  %v347_v29 = vand.u32 2147483647, %v337_v22  ;;  %vm343_vm15 = vweird.f32 %v337_v22 }
 0x25c   :  { %v350_v33 = vor.u32 1.1754944e-38, %v349_v27  ;;  %vm348_vm2 = vcmp.eq.f32.partialorder %v347_v29, 8.507059e+37 }
 0x260   :  { %v432_v23 = vpop.eup %431 }
 0x261   :  { %v339_v24 = vmul.f32 %v432_v23, %v337_v22  ;;  %vm344_vm14 = vweird.f32 %v432_v23 }
 0x262   :  { %vm345_vm0 = vmor %vm343_vm15, %vm344_vm14 }
 0x263   :  { %v340_v25 = vsub.f32 1.0, %v339_v24 }
 0x265   :  { %v341_v28 = vmul.f32 %v432_v23, %v340_v25 }
 0x267   :  { %v342_v31 = vadd.f32 %v432_v23, %v341_v28 }
 0x269   :  { %v346_v34 = vsel %vm345_vm0, %v432_v23, %v342_v31 }
 0x26a   :  { %v351_v11 = vsel %vm348_vm2, %v350_v33, %v346_v34 }
 0x26b   :  { %v366_v35 = vperm.slane %v351_v11, 1  ;;  %v353_v10 = vperm.slane %v351_v11, 0 }
 0x26d   :  { %377 = vperm.xlu0 %418, %v366_v35   ;;  %358 = vperm.xlu1 %419, %v353_v10  }
 0x26e   :  { %364 = vperm.xlu2 %417, %v353_v10  }
 0x276   :  { %420 = vset.pattern.permute.xlu2 %v355_v15 }
 0x27e   :  { %371 = vperm.xlu2 %420, %v366_v35  }
 0x2c8   :  { %v365_v12 = vpop.permute.xlu2 %364 }
 0x2c9   :  { %v380_v36 = vmul.f32 %v365_v12, %v545_v32 }
 0x2cb   :  { %v384_v39 = vpack.c.bf16 %v380_v36, %v380_v36 }
 0x2cd   :  { %v393_v40 = vsel %vm576_vm4, %v384_v39, %v392_v38 }
 0x2ce   :  { %394 = vst [vmem:[%s610_s5 + $0x4] sm:$0x1] %v393_v40 }
 0x2d8   :  { %v372_v41 = vpop.permute.xlu2 %371 }
 0x2d9   :  { %v381_v32 = vmul.f32 %v372_v41, %v540_v30 }
 0x2db   :  { %v385_v42 = vpack.c.bf16 %v381_v32, %v381_v32 }
 0x2dd   :  { %395 = vst.msk [vmem:[%s610_s5 + $0x8] sm:$0xf] %vm387_vm5, %v385_v42 }
 0x2df   :  { %v378_v43 = vpop.permute.xlu0 %377  ;;  %v359_v44 = vpop.permute.xlu1 %358 }
 0x2e0   :  { %v382_v45 = vmul.f32 %v378_v43, %v548_v8  ;;  %v379_v46 = vmul.f32 %v359_v44, %v533_v26 }
 0x2e2   :  { %v386_v48 = vpack.c.bf16 %v382_v45, %v382_v45  ;;  %v383_v49 = vpack.c.bf16 %v379_v46, %v379_v46 }
 0x2e4   :  { %v397_v30 = vsel %vm576_vm4, %v386_v48, %v396_v47  ;;  %388 = vst.msk [vmem:[%s610_s5] sm:$0xf] %vm387_vm5, %v383_v49 }
 0x2e5   :  { %398 = vst [vmem:[%s610_s5 + $0xc] sm:$0x1] %v397_v30 }

// kernel: ppo_forward.21
= control target key start
LH: loop header
LB: loop body
LE: loop exit
PB: predicated region body
PF: predicated region fallthrough
CT: control target
= control target key end

     0   :  { %s4725_s0 = inlined_call_operand.vmem [shape: bf16[2,128], index: 0, kind: input, shape index: {}]   ;;  %s4726_s1 = inlined_call_operand.vmem [shape: bf16[128,1024], index: 1, kind: input, shape index: {}]   ;;  %s4727_s2 = inlined_call_operand.vmem [shape: f32[1,1024], index: 2, kind: input, shape index: {}]   ;;  %s4728_s3 = inlined_call_operand.vmem [shape: f32[1,512], index: 3, kind: input, shape index: {}]   ;;  %s4729_s4 = inlined_call_operand.vmem [shape: f32[1,512], index: 4, kind: input, shape index: {}]   ;;  %s4730_s5 = inlined_call_operand.vmem [shape: f32[1,512], index: 5, kind: input, shape index: {}]   ;;  %s4731_s6 = inlined_call_operand.vmem [shape: f32[1,512], index: 6, kind: input, shape index: {}]   ;;  %s4732_s7 = inlined_call_operand.vmem [shape: bf16[512,256], index: 7, kind: input, shape index: {}]   ;;  %s4733_s8 = inlined_call_operand.vmem [shape: f32[1,256], index: 8, kind: input, shape index: {}]   ;;  %s4734_s9 = inlined_call_operand.vmem [shape: bf16[512,256], index: 9, kind: input, shape index: {}]   ;;  %s4735_s10 = inlined_call_operand.vmem [shape: f32[1,256], index: 10, kind: input, shape index: {}]   ;;  %s4736_s11 = inlined_call_operand.vmem [shape: bf16[256,6], index: 11, kind: input, shape index: {}]   ;;  %s4737_s12 = inlined_call_operand.vmem [shape: f32[1,6], index: 12, kind: input, shape index: {}]   ;;  %s4738_s13 = inlined_call_operand.vmem [shape: bf16[256,1], index: 13, kind: input, shape index: {}]   ;;  %s4739_s14 = inlined_call_operand.<no memory space> [shape: f32[1,1], index: 14, kind: input, shape index: {}]   ;;  %s4740_s15 = inlined_call_operand.hbm [shape: f32[2,6], index: 15, kind: output, shape index: {0}]   ;;  %s4741_s16 = inlined_call_operand.vmem [shape: f32[2,1], index: 16, kind: output, shape index: {1}]  }
   0x1   :  { %4742 = sst [smem:[#allocation6_spill]] %s4725_s0  ;;  %v22_v0 = vstv %s4739_s14 }
   0x2   :  { %23 = vst [vmem:[#allocation2] sm:$0x1] %v22_v0 }
   0x3   :  { %v2290_v1 = vld [vmem:[%s4726_s1 + $0x1c0] sm:$0xf]  ;;  %v3016_v3 = vld [vmem:[%s4726_s1 + $0x1c4] sm:$0xf]  ;;  %v2298_v6 = vld [vmem:[%s4726_s1 + $0x1c8] sm:$0xf] }
   0x4   :  { %v3020_v2 = vld [vmem:[%s4726_s1 + $0x1dc] sm:$0xf0]  ;;  %v2292_v5 = vld [vmem:[%s4726_s1 + $0x1e0] sm:$0xf0]  ;;  %v3021_v7 = vld [vmem:[%s4726_s1 + $0x1e4] sm:$0xf0] }
   0x5   :  { %v2291_v4 = vor.u32 %v3020_v2, %v2290_v1  ;;  %v2295_v8 = vor.u32 %v3016_v3, %v2292_v5  ;;  %v2299_v9 = vor.u32 %v3021_v7, %v2298_v6  ;;  %v3017_v10 = vld [vmem:[%s4726_s1 + $0x1cc] sm:$0xf]  ;;  %v2258_v12 = vld [vmem:[%s4726_s1 + $0x180] sm:$0xf]  ;;  %v3008_v15 = vld [vmem:[%s4726_s1 + $0x184] sm:$0xf] }
   0x6   :  { %v2300_v11 = vld [vmem:[%s4726_s1 + $0x1e8] sm:$0xf0]  ;;  %v3012_v14 = vld [vmem:[%s4726_s1 + $0x19c] sm:$0xf0]  ;;  %v2260_v16 = vld [vmem:[%s4726_s1 + $0x1a0] sm:$0xf0] }
   0x7   :  { %458 = vmatpush.bf16.msra.mxu0 %v2291_v4  ;;  %v2303_v13 = vor.u32 %v3017_v10, %v2300_v11  ;;  %471 = vmatpush.bf16.msra.mxu1 %v2295_v8  ;;  %v2259_v17 = vor.u32 %v3012_v14, %v2258_v12  ;;  %v2263_v18 = vor.u32 %v3008_v15, %v2260_v16  ;;  %v2266_v19 = vld [vmem:[%s4726_s1 + $0x188] sm:$0xf]  ;;  %v3009_v21 = vld [vmem:[%s4726_s1 + $0x18c] sm:$0xf]  ;;  %v2226_v24 = vld [vmem:[%s4726_s1 + $0x140] sm:$0xf] }
   0x8   :  { %484 = vmatpush.bf16.msra.mxu2 %v2299_v9  ;;  %v3013_v20 = vld [vmem:[%s4726_s1 + $0x1a4] sm:$0xf0]  ;;  %v2268_v23 = vld [vmem:[%s4726_s1 + $0x1a8] sm:$0xf0]  ;;  %v3004_v25 = vld [vmem:[%s4726_s1 + $0x15c] sm:$0xf0] }
   0x9   :  { %497 = vmatpush.bf16.msra.mxu3 %v2303_v13  ;;  %v2267_v22 = vor.u32 %v3013_v20, %v2266_v19  ;;  %v2271_v26 = vor.u32 %v3009_v21, %v2268_v23  ;;  %v3000_v27 = vld [vmem:[%s4726_s1 + $0x144] sm:$0xf]  ;;  %v2234_v29 = vld [vmem:[%s4726_s1 + $0x148] sm:$0xf]  ;;  %v2227_v30 = vor.u32 %v3004_v25, %v2226_v24  ;;  %v3001_v32 = vld [vmem:[%s4726_s1 + $0x14c] sm:$0xf] }
   0xa   :  { %v2228_v28 = vld [vmem:[%s4726_s1 + $0x160] sm:$0xf0]  ;;  %v3005_v31 = vld [vmem:[%s4726_s1 + $0x164] sm:$0xf0]  ;;  %v2236_v33 = vld [vmem:[%s4726_s1 + $0x168] sm:$0xf0] }
   0xb   :  { %459 = vmatpush.bf16.msra.mxu0 %v2259_v17  ;;  %472 = vmatpush.bf16.msra.mxu1 %v2263_v18  ;;  %v2231_v34 = vor.u32 %v3000_v27, %v2228_v28  ;;  %v2235_v35 = vor.u32 %v3005_v31, %v2234_v29  ;;  %v2194_v36 = vld [vmem:[%s4726_s1 + $0x100] sm:$0xf]  ;;  %v2992_v38 = vld [vmem:[%s4726_s1 + $0x104] sm:$0xf]  ;;  %v2239_v39 = vor.u32 %v3001_v32, %v2236_v33  ;;  %v2202_v41 = vld [vmem:[%s4726_s1 + $0x108] sm:$0xf] }
   0xc   :  { %485 = vmatpush.bf16.msra.mxu2 %v2267_v22  ;;  %v2996_v37 = vld [vmem:[%s4726_s1 + $0x11c] sm:$0xf0]  ;;  %v2196_v40 = vld [vmem:[%s4726_s1 + $0x120] sm:$0xf0]  ;;  %v2997_v42 = vld [vmem:[%s4726_s1 + $0x124] sm:$0xf0] }
   0xd   :  { %498 = vmatpush.bf16.msra.mxu3 %v2271_v26  ;;  %v2993_v43 = vld [vmem:[%s4726_s1 + $0x10c] sm:$0xf]  ;;  %v2195_v45 = vor.u32 %v2996_v37, %v2194_v36  ;;  %v2199_v46 = vor.u32 %v2992_v38, %v2196_v40  ;;  %v2203_v47 = vor.u32 %v2997_v42, %v2202_v41  ;;  %v2162_v48 = vld [vmem:[%s4726_s1 + $0xc0] sm:$0xf]  ;;  %v2984_v50 = vld [vmem:[%s4726_s1 + $0xc4] sm:$0xf] }
   0xe   :  { %v2204_v44 = vld [vmem:[%s4726_s1 + $0x128] sm:$0xf0]  ;;  %v2988_v49 = vld [vmem:[%s4726_s1 + $0xdc] sm:$0xf0]  ;;  %v2164_v52 = vld [vmem:[%s4726_s1 + $0xe0] sm:$0xf0] }
   0xf   :  { %460 = vmatpush.bf16.msra.mxu0 %v2227_v30  ;;  %473 = vmatpush.bf16.msra.mxu1 %v2231_v34  ;;  %v2207_v51 = vor.u32 %v2993_v43, %v2204_v44  ;;  %v2170_v53 = vld [vmem:[%s4726_s1 + $0xc8] sm:$0xf]  ;;  %v2985_v55 = vld [vmem:[%s4726_s1 + $0xcc] sm:$0xf]  ;;  %v2163_v57 = vor.u32 %v2988_v49, %v2162_v48  ;;  %v2167_v58 = vor.u32 %v2984_v50, %v2164_v52  ;;  %v2130_v60 = vld [vmem:[%s4726_s1 + $0x80] sm:$0xf] }
  0x10   :  { %486 = vmatpush.bf16.msra.mxu2 %v2235_v35  ;;  %v2989_v54 = vld [vmem:[%s4726_s1 + $0xe4] sm:$0xf0]  ;;  %v2172_v56 = vld [vmem:[%s4726_s1 + $0xe8] sm:$0xf0]  ;;  %v2980_v61 = vld [vmem:[%s4726_s1 + $0x9c] sm:$0xf0] }
  0x11   :  { %499 = vmatpush.bf16.msra.mxu3 %v2239_v39  ;;  %v2171_v59 = vor.u32 %v2989_v54, %v2170_v53  ;;  %v2976_v62 = vld [vmem:[%s4726_s1 + $0x84] sm:$0xf]  ;;  %v2175_v63 = vor.u32 %v2985_v55, %v2172_v56  ;;  %v2138_v1 = vld [vmem:[%s4726_s1 + $0x88] sm:$0xf]  ;;  %v2977_v3 = vld [vmem:[%s4726_s1 + $0x8c] sm:$0xf]  ;;  %v2131_v5 = vor.u32 %v2980_v61, %v2130_v60 }
  0x12   :  { %v2132_v0 = vld [vmem:[%s4726_s1 + $0xa0] sm:$0xf0]  ;;  %v2981_v2 = vld [vmem:[%s4726_s1 + $0xa4] sm:$0xf0]  ;;  %v2140_v4 = vld [vmem:[%s4726_s1 + $0xa8] sm:$0xf0] }
  0x13   :  { %461 = vmatpush.bf16.msra.mxu0 %v2195_v45  ;;  %474 = vmatpush.bf16.msra.mxu1 %v2199_v46  ;;  %v2135_v6 = vor.u32 %v2976_v62, %v2132_v0  ;;  %v2139_v7 = vor.u32 %v2981_v2, %v2138_v1  ;;  %v2098_v8 = vld [vmem:[%s4726_s1 + $0x40] sm:$0xf]  ;;  %v2968_v10 = vld [vmem:[%s4726_s1 + $0x44] sm:$0xf]  ;;  %v2143_v11 = vor.u32 %v2977_v3, %v2140_v4  ;;  %v2106_v13 = vld [vmem:[%s4726_s1 + $0x48] sm:$0xf] }
  0x14   :  { %487 = vmatpush.bf16.msra.mxu2 %v2203_v47  ;;  %v2972_v9 = vld [vmem:[%s4726_s1 + $0x5c] sm:$0xf0]  ;;  %v2100_v12 = vld [vmem:[%s4726_s1 + $0x60] sm:$0xf0]  ;;  %v2973_v14 = vld [vmem:[%s4726_s1 + $0x64] sm:$0xf0] }
  0x15   :  { %500 = vmatpush.bf16.msra.mxu3 %v2207_v51  ;;  %v2969_v15 = vld [vmem:[%s4726_s1 + $0x4c] sm:$0xf]  ;;  %v2099_v17 = vor.u32 %v2972_v9, %v2098_v8  ;;  %v2066_v18 = vld [vmem:[%s4726_s1] sm:$0xf]  ;;  %v2103_v19 = vor.u32 %v2968_v10, %v2100_v12  ;;  %v2107_v20 = vor.u32 %v2973_v14, %v2106_v13  ;;  %v2960_v22 = vld [vmem:[%s4726_s1 + $0x4] sm:$0xf] }
  0x16   :  { %v2108_v16 = vld [vmem:[%s4726_s1 + $0x68] sm:$0xf0]  ;;  %v2964_v21 = vld [vmem:[%s4726_s1 + $0x1c] sm:$0xf0]  ;;  %v2068_v23 = vld [vmem:[%s4726_s1 + $0x20] sm:$0xf0] }
  0x17   :  { %462 = vmatpush.bf16.msra.mxu0 %v2163_v57  ;;  %475 = vmatpush.bf16.msra.mxu1 %v2167_v58  ;;  %v2111_v24 = vor.u32 %v2969_v15, %v2108_v16  ;;  %v2074_v25 = vld [vmem:[%s4726_s1 + $0x8] sm:$0xf]  ;;  %v2961_v27 = vld [vmem:[%s4726_s1 + $0xc] sm:$0xf]  ;;  %v2314_v29 = vld [vmem:[%s4726_s1 + $0x1d8] sm:$0xf]  ;;  %v2067_v31 = vor.u32 %v2964_v21, %v2066_v18  ;;  %v2071_v34 = vor.u32 %v2960_v22, %v2068_v23 }
  0x18   :  { %488 = vmatpush.bf16.msra.mxu2 %v2171_v59  ;;  %v2965_v26 = vld [vmem:[%s4726_s1 + $0x24] sm:$0xf0]  ;;  %v2076_v28 = vld [vmem:[%s4726_s1 + $0x28] sm:$0xf0]  ;;  %v3023_v30 = vld [vmem:[%s4726_s1 + $0x1f4] sm:$0xf0] }
  0x19   :  { %501 = vmatpush.bf16.msra.mxu3 %v2175_v63  ;;  %v3019_v32 = vld [vmem:[%s4726_s1 + $0x1dc] sm:$0xf]  ;;  %v2075_v35 = vor.u32 %v2965_v26, %v2074_v25  ;;  %v2079_v36 = vor.u32 %v2961_v27, %v2076_v28  ;;  %v2315_v37 = vor.u32 %v3023_v30, %v2314_v29  ;;  %v2306_v38 = vld [vmem:[%s4726_s1 + $0x1d0] sm:$0xf]  ;;  %v3018_v40 = vld [vmem:[%s4726_s1 + $0x1d4] sm:$0xf] }
  0x1a   :  { %v2316_v33 = vld [vmem:[%s4726_s1 + $0x1f8] sm:$0xf0]  ;;  %v3022_v39 = vld [vmem:[%s4726_s1 + $0x1ec] sm:$0xf0]  ;;  %v2308_v42 = vld [vmem:[%s4726_s1 + $0x1f0] sm:$0xf0] }
  0x1b   :  { %463 = vmatpush.bf16.msra.mxu0 %v2131_v5  ;;  %476 = vmatpush.bf16.msra.mxu1 %v2135_v6  ;;  %v2319_v41 = vor.u32 %v3019_v32, %v2316_v33  ;;  %v2282_v43 = vld [vmem:[%s4726_s1 + $0x198] sm:$0xf]  ;;  %s4743_s29 = sld [smem:[#allocation6_spill]]  ;;  %v3011_v46 = vld [vmem:[%s4726_s1 + $0x19c] sm:$0xf]  ;;  %v2307_v48 = vor.u32 %v3022_v39, %v2306_v38  ;;  %v2311_v49 = vor.u32 %v3018_v40, %v2308_v42 }
  0x1c   :  { %489 = vmatpush.bf16.msra.mxu2 %v2139_v7  ;;  %v3015_v44 = vld [vmem:[%s4726_s1 + $0x1b4] sm:$0xf0]  ;;  %v2284_v47 = vld [vmem:[%s4726_s1 + $0x1b8] sm:$0xf0]  ;;  %v2274_v51 = vld [vmem:[%s4726_s1 + $0x190] sm:$0xf] }
  0x1d   :  { %502 = vmatpush.bf16.msra.mxu3 %v2143_v11  ;;  %v2283_v50 = vor.u32 %v3015_v44, %v2282_v43  ;;  %v3014_v52 = vld [vmem:[%s4726_s1 + $0x1ac] sm:$0xf0]  ;;  %v3010_v53 = vld [vmem:[%s4726_s1 + $0x194] sm:$0xf]  ;;  %v2287_v54 = vor.u32 %v3011_v46, %v2284_v47  ;;  %v2250_v56 = vld [vmem:[%s4726_s1 + $0x158] sm:$0xf] }
  0x1e   :  { %v2276_v55 = vld [vmem:[%s4726_s1 + $0x1b0] sm:$0xf0]  ;;  %v3007_v57 = vld [vmem:[%s4726_s1 + $0x174] sm:$0xf0]  ;;  %v3003_v58 = vld [vmem:[%s4726_s1 + $0x15c] sm:$0xf]  ;;  %v2275_v60 = vor.u32 %v3014_v52, %v2274_v51 }
  0x1f   :  { %464 = vmatpush.bf16.msra.mxu0 %v2099_v17  ;;  %477 = vmatpush.bf16.msra.mxu1 %v2103_v19  ;;  %v2252_v59 = vld [vmem:[%s4726_s1 + $0x178] sm:$0xf0]  ;;  %v2279_v61 = vor.u32 %v3010_v53, %v2276_v55  ;;  %v2251_v62 = vor.u32 %v3007_v57, %v2250_v56  ;;  %v2242_v63 = vld [vmem:[%s4726_s1 + $0x150] sm:$0xf]  ;;  %v3002_v1 = vld [vmem:[%s4726_s1 + $0x154] sm:$0xf] }
  0x20   :  { %490 = vmatpush.bf16.msra.mxu2 %v2107_v20  ;;  %v3006_v0 = vld [vmem:[%s4726_s1 + $0x16c] sm:$0xf0]  ;;  %v2255_v2 = vor.u32 %v3003_v58, %v2252_v59  ;;  %v2244_v3 = vld [vmem:[%s4726_s1 + $0x170] sm:$0xf0]  ;;  %v2218_v4 = vld [vmem:[%s4726_s1 + $0x118] sm:$0xf] }
  0x21   :  { %503 = vmatpush.bf16.msra.mxu3 %v2111_v24  ;;  %v3535_v45 = vld [vmem:[%s4743_s29] sm:$0x1]  ;;  %v2999_v5 = vld [vmem:[%s4726_s1 + $0x134] sm:$0xf0]  ;;  %v2995_v6 = vld [vmem:[%s4726_s1 + $0x11c] sm:$0xf]  ;;  %v2243_v8 = vor.u32 %v3006_v0, %v2242_v63  ;;  %v2247_v10 = vor.u32 %v3002_v1, %v2244_v3 }
  0x22   :  { %v2220_v7 = vld [vmem:[%s4726_s1 + $0x138] sm:$0xf0]  ;;  %v2210_v9 = vld [vmem:[%s4726_s1 + $0x110] sm:$0xf]  ;;  %v2219_v11 = vor.u32 %v2999_v5, %v2218_v4  ;;  %v2994_v13 = vld [vmem:[%s4726_s1 + $0x114] sm:$0xf] }
  0x23   :  { %465 = vmatpush.bf16.msra.mxu0 %v2067_v31  ;;  %478 = vmatpush.bf16.msra.mxu1 %v2071_v34  ;;  %v2998_v12 = vld [vmem:[%s4726_s1 + $0x12c] sm:$0xf0]  ;;  %v2212_v14 = vld [vmem:[%s4726_s1 + $0x130] sm:$0xf0]  ;;  %v2223_v15 = vor.u32 %v2995_v6, %v2220_v7  ;;  %v2186_v16 = vld [vmem:[%s4726_s1 + $0xd8] sm:$0xf] }
  0x24   :  { %491 = vmatpush.bf16.msra.mxu2 %v2075_v35  ;;  %v2991_v17 = vld [vmem:[%s4726_s1 + $0xf4] sm:$0xf0]  ;;  %v2987_v18 = vld [vmem:[%s4726_s1 + $0xdc] sm:$0xf]  ;;  %v2211_v20 = vor.u32 %v2998_v12, %v2210_v9 }
  0x25   :  { %504 = vmatpush.bf16.msra.mxu3 %v2079_v36  ;;  %v2188_v19 = vld [vmem:[%s4726_s1 + $0xf8] sm:$0xf0] }
  0x26   :  { %466 = vmatmul.bf16.vlgmr.msra.gmra.mxu0 %v3535_v45  ;;  %479 = vmatmul.bf16.vlgmr.msra.gmra.mxu1 %v3535_v45 }
  0x27   :  { %492 = vmatmul.bf16.vlgmr.msra.gmra.mxu2 %v3535_v45  ;;  %510 = vmatpush.bf16.msrb.mxu0 %v2307_v48 }
  0x28   :  { %536 = vmatpush.bf16.msrb.mxu2 %v2315_v37  ;;  %505 = vmatmul.bf16.vlgmr.msra.gmra.mxu3 %v3535_v45 }
  0x29   :  { %549 = vmatpush.bf16.msrb.mxu3 %v2319_v41  ;;  %523 = vmatpush.bf16.msrb.mxu1 %v2311_v49 }
  0x2b   :  { %511 = vmatpush.bf16.msrb.mxu0 %v2275_v60 }
  0x2c   :  { %537 = vmatpush.bf16.msrb.mxu2 %v2283_v50 }
  0x2d   :  { %550 = vmatpush.bf16.msrb.mxu3 %v2287_v54  ;;  %524 = vmatpush.bf16.msrb.mxu1 %v2279_v61 }
  0x2f   :  { %512 = vmatpush.bf16.msrb.mxu0 %v2243_v8 }
  0x30   :  { %538 = vmatpush.bf16.msrb.mxu2 %v2251_v62 }
  0x31   :  { %551 = vmatpush.bf16.msrb.mxu3 %v2255_v2 }
  0x32   :  { %24 = vsyncpa [#allocation4], 0  ;;  %525 = vmatpush.bf16.msrb.mxu1 %v2247_v10  ;;  %v2215_v21 = vor.u32 %v2994_v13, %v2212_v14  ;;  %v2187_v22 = vor.u32 %v2991_v17, %v2186_v16  ;;  %v2178_v23 = vld [vmem:[%s4726_s1 + $0xd0] sm:$0xf]  ;;  %v2986_v25 = vld [vmem:[%s4726_s1 + $0xd4] sm:$0xf]  ;;  %v2191_v26 = vor.u32 %v2987_v18, %v2188_v19 }
  0x33   :  { %v2990_v24 = vld [vmem:[%s4726_s1 + $0xec] sm:$0xf0]  ;;  %v2180_v27 = vld [vmem:[%s4726_s1 + $0xf0] sm:$0xf0]  ;;  %v2154_v28 = vld [vmem:[%s4726_s1 + $0x98] sm:$0xf]  ;;  %513 = vmatpush.bf16.msrb.mxu0 %v2211_v20 }
  0x34   :  { %539 = vmatpush.bf16.msrb.mxu2 %v2219_v11  ;;  %v2983_v29 = vld [vmem:[%s4726_s1 + $0xb4] sm:$0xf0]  ;;  %v2979_v30 = vld [vmem:[%s4726_s1 + $0x9c] sm:$0xf]  ;;  %v2179_v32 = vor.u32 %v2990_v24, %v2178_v23  ;;  %v2183_v33 = vor.u32 %v2986_v25, %v2180_v27  ;;  %v2146_v35 = vld [vmem:[%s4726_s1 + $0x90] sm:$0xf] }
  0x35   :  { %552 = vmatpush.bf16.msrb.mxu3 %v2223_v15  ;;  %v2156_v31 = vld [vmem:[%s4726_s1 + $0xb8] sm:$0xf0]  ;;  %v2155_v34 = vor.u32 %v2983_v29, %v2154_v28  ;;  %v2982_v36 = vld [vmem:[%s4726_s1 + $0xac] sm:$0xf0]  ;;  %v2978_v37 = vld [vmem:[%s4726_s1 + $0x94] sm:$0xf] }
  0x36   :  { %526 = vmatpush.bf16.msrb.mxu1 %v2215_v21  ;;  %v2159_v38 = vor.u32 %v2979_v30, %v2156_v31  ;;  %v2148_v39 = vld [vmem:[%s4726_s1 + $0xb0] sm:$0xf0]  ;;  %v2122_v40 = vld [vmem:[%s4726_s1 + $0x58] sm:$0xf]  ;;  %v2971_v42 = vld [vmem:[%s4726_s1 + $0x5c] sm:$0xf]  ;;  %v2147_v44 = vor.u32 %v2982_v36, %v2146_v35 }
  0x37   :  { %v2975_v41 = vld [vmem:[%s4726_s1 + $0x74] sm:$0xf0]  ;;  %v2124_v43 = vld [vmem:[%s4726_s1 + $0x78] sm:$0xf0]  ;;  %514 = vmatpush.bf16.msrb.mxu0 %v2179_v32  ;;  %v2151_v46 = vor.u32 %v2978_v37, %v2148_v39  ;;  %v2114_v48 = vld [vmem:[%s4726_s1 + $0x50] sm:$0xf] }
  0x38   :  { %540 = vmatpush.bf16.msrb.mxu2 %v2187_v22  ;;  %v2123_v47 = vor.u32 %v2975_v41, %v2122_v40  ;;  %v2974_v49 = vld [vmem:[%s4726_s1 + $0x6c] sm:$0xf0]  ;;  %v2970_v50 = vld [vmem:[%s4726_s1 + $0x54] sm:$0xf]  ;;  %v2127_v51 = vor.u32 %v2971_v42, %v2124_v43  ;;  %v2090_v53 = vld [vmem:[%s4726_s1 + $0x18] sm:$0xf] }
  0x39   :  { %553 = vmatpush.bf16.msrb.mxu3 %v2191_v26  ;;  %v2116_v52 = vld [vmem:[%s4726_s1 + $0x70] sm:$0xf0]  ;;  %v2967_v54 = vld [vmem:[%s4726_s1 + $0x34] sm:$0xf0]  ;;  %v2963_v55 = vld [vmem:[%s4726_s1 + $0x1c] sm:$0xf]  ;;  %v2115_v57 = vor.u32 %v2974_v49, %v2114_v48 }
  0x3a   :  { %527 = vmatpush.bf16.msrb.mxu1 %v2183_v33  ;;  %v2092_v56 = vld [vmem:[%s4726_s1 + $0x38] sm:$0xf0]  ;;  %v2119_v58 = vor.u32 %v2970_v50, %v2116_v52  ;;  %v2091_v59 = vor.u32 %v2967_v54, %v2090_v53  ;;  %v2082_v60 = vld [vmem:[%s4726_s1 + $0x10] sm:$0xf]  ;;  %v2962_v63 = vld [vmem:[%s4726_s1 + $0x14] sm:$0xf] }
  0x3b   :  { %515 = vmatpush.bf16.msrb.mxu0 %v2147_v44  ;;  %v2966_v61 = vld [vmem:[%s4726_s1 + $0x2c] sm:$0xf0]  ;;  %v2095_v62 = vor.u32 %v2963_v55, %v2092_v56  ;;  %v2084_v0 = vld [vmem:[%s4726_s1 + $0x30] sm:$0xf0]  ;;  %v120_v3 = vld [vmem:[%s4727_s2] sm:$0xff]  ;;  %vm564_vm0 = vcmask 1041408  }
  0x3c   :  { %541 = vmatpush.bf16.msrb.mxu2 %v2155_v34  ;;  %v2083_v1 = vor.u32 %v2966_v61, %v2082_v60  ;;  %v2087_v2 = vor.u32 %v2962_v63, %v2084_v0  ;;  %v122_v4 = vperm.slane %v120_v3, 0  ;;  %v123_v5 = vperm.slane %v120_v3, 1  ;;  %s3221_s24 = smov [#allocation3]  }
  0x3d   :  { %554 = vmatpush.bf16.msrb.mxu3 %v2159_v38  ;;  %v124_v12 = vperm.slane %v120_v3, 2  ;;  %v125_v13 = vperm.slane %v120_v3, 3  ;;  %v126_v26 = vperm.slane %v120_v3, 4  ;;  %v127_v27 = vperm.slane %v120_v3, 5  ;;  %s2049_s25 = sshll.u32 %s3221_s24, 4  ;;  %s2050_s25 = int_to_ptr.vmem [resolvable:$true] %s2049_s25 }
  0x3e   :  { %528 = vmatpush.bf16.msrb.mxu1 %v2151_v46  ;;  %v128_v29 = vperm.slane %v120_v3, 6  ;;  %v129_v32 = vperm.slane %v120_v3, 7  ;;  %v3220_v50 = vmov 512.0   ;;  %vm1880_vm8 = vcmask 41984  }
  0x3f   :  { %516 = vmatpush.bf16.msrb.mxu0 %v2115_v57  ;;  %3188 = vrcp.f32 %v3220_v50  ;;  %v3033_v50 = vld [vmem:[%s4732_s7 + $0x44] sm:$0xf0]  ;;  %vm2042_vm9 = vcmask 1024  }
  0x40   :  { %542 = vmatpush.bf16.msrb.mxu2 %v2123_v47 }
  0x41   :  { %555 = vmatpush.bf16.msrb.mxu3 %v2127_v51 }
  0x42   :  { %529 = vmatpush.bf16.msrb.mxu1 %v2119_v58 }
  0x43   :  { %517 = vmatpush.bf16.msrb.mxu0 %v2083_v1 }
  0x44   :  { %543 = vmatpush.bf16.msrb.mxu2 %v2091_v59 }
  0x45   :  { %556 = vmatpush.bf16.msrb.mxu3 %v2095_v62  ;;  %v3189_v51 = vpop.eup %3188 }
  0x46   :  { %530 = vmatpush.bf16.msrb.mxu1 %v2087_v2  ;;  %518 = vmatmul.bf16.vlgmr.msrb.gmra.mxu0 %v3535_v45  ;;  %v575_v52 = vmul.f32 512.0, %v3189_v51  ;;  %vm579_vm1 = vweird.f32 %v3189_v51 }
  0x47   :  { %544 = vmatmul.bf16.vlgmr.msrb.gmra.mxu2 %v3535_v45 }
  0x48   :  { %557 = vmatmul.bf16.vlgmr.msrb.gmra.mxu3 %v3535_v45  ;;  %v576_v53 = vsub.f32 1.0, %v575_v52 }
  0x49   :  { %531 = vmatmul.bf16.vlgmr.msrb.gmra.mxu1 %v3535_v45 }
  0x4a   :  { %v577_v54 = vmul.f32 %v3189_v51, %v576_v53  ;;  %v3049_v53 = vld [vmem:[%s4732_s7 + $0xc4] sm:$0xf0] }
  0x4c   :  { %v578_v55 = vadd.f32 %v3189_v51, %v577_v54  ;;  %v2482_v54 = vld [vmem:[%s4732_s7 + $0x140] sm:$0xf] }
  0x4e   :  { %v3730_v56 = vsel %vm579_vm1, %v3189_v51, %v578_v55  ;;  %v2418_v51 = vld [vmem:[%s4732_s7 + $0xc0] sm:$0xf]  ;;  %v3065_v55 = vld [vmem:[%s4732_s7 + $0x144] sm:$0xf0] }
  0xa3   :  { %v467_v6 = vpop.f32.mrf.mxu0  ;;  %v480_v8 = vpop.f32.mrf.mxu1 }
  0xa4   :  { %v468_v7 = vadd.f32 %v467_v6, %v122_v4  ;;  %v481_v9 = vadd.f32 %v480_v8, %v123_v5 }
  0xa6   :  { %v565_v10 = vsel %vm564_vm0, %v468_v7, 0.0  ;;  %v566_v11 = vsel %vm564_vm0, %v481_v9, 0.0 }
  0xa7   :  { %v567_v14 = vadd.f32 %v566_v11, %v565_v10  ;;  %v3039_v10 = vld [vmem:[%s4732_s7 + $0x74] sm:$0xf0]  ;;  %v2442_v11 = vld [vmem:[%s4732_s7 + $0xf0] sm:$0xf] }
  0xaa   :  { %v493_v15 = vpop.f32.mrf.mxu2 }
  0xab   :  { %v494_v45 = vadd.f32 %v493_v15, %v124_v12  ;;  %v506_v16 = vpop.f32.mrf.mxu3  ;;  %v469_v17 = vpop.f32.mrf.mxu0  ;;  %v2506_v15 = vld [vmem:[%s4732_s7 + $0x170] sm:$0xf] }
  0xac   :  { %v507_v18 = vadd.f32 %v506_v16, %v125_v13  ;;  %v482_v19 = vpop.f32.mrf.mxu1 }
  0xad   :  { %v568_v20 = vsel %vm564_vm0, %v494_v45, 0.0  ;;  %v3087_v19 = vld [vmem:[%s4732_s7 + $0x1f4] sm:$0xf0] }
  0xae   :  { %v569_v21 = vadd.f32 %v568_v20, %v567_v14  ;;  %v570_v22 = vsel %vm564_vm0, %v507_v18, 0.0  ;;  %v3055_v14 = vld [vmem:[%s4732_s7 + $0xf4] sm:$0xf0]  ;;  %v2370_v20 = vld [vmem:[%s4732_s7 + $0x60] sm:$0xf] }
  0xaf   :  { %v2443_v16 = vor.u32 %v3055_v14, %v2442_v11 }
  0xb0   :  { %v571_v23 = vadd.f32 %v570_v22, %v569_v21  ;;  %v3037_v22 = vld [vmem:[%s4732_s7 + $0x64] sm:$0xf0] }
  0xb1   :  { %1127 = vmatpush.bf16.msra.mxu1 %v2443_v16  ;;  %v3045_v16 = vld [vmem:[%s4732_s7 + $0xa4] sm:$0xf0] }
  0xb2   :  { %v495_v24 = vpop.f32.mrf.mxu2  ;;  %572 = vadd.xlane.f32.xlu0 %v571_v23  ;;  %v2434_v23 = vld [vmem:[%s4732_s7 + $0xe0] sm:$0xf] }
  0xb3   :  { %v508_v25 = vpop.f32.mrf.mxu3  ;;  %v3053_v24 = vld [vmem:[%s4732_s7 + $0xe4] sm:$0xf0] }
  0xb4   :  { %v2371_v25 = vor.u32 %v3037_v22, %v2370_v20  ;;  %v2530_v20 = vld [vmem:[%s4732_s7 + $0x1a0] sm:$0xf] }
  0xc3   :  { %v519_v28 = vpop.f32.mrf.mxu0 }
  0xc4   :  { %v3714_v30 = vadd.f32 %v519_v28, %v126_v26  ;;  %v2435_v26 = vor.u32 %v3053_v24, %v2434_v23  ;;  %v3069_v28 = vld [vmem:[%s4732_s7 + $0x164] sm:$0xf0] }
  0xc6   :  { %v532_v31 = vpop.f32.mrf.mxu1  ;;  %v647_v34 = vsel %vm564_vm0, %v3714_v30, 0.0  ;;  %1128 = vmatpush.bf16.msra.mxu1 %v2435_v26 }
  0xc7   :  { %v3716_v33 = vadd.f32 %v532_v31, %v127_v27  ;;  %v2498_v27 = vld [vmem:[%s4732_s7 + $0x160] sm:$0xf] }
  0xc8   :  { %v2499_v31 = vor.u32 %v3069_v28, %v2498_v27  ;;  %v2330_v28 = vld [vmem:[%s4732_s7 + $0x10] sm:$0xf] }
  0xc9   :  { %v648_v36 = vsel %vm564_vm0, %v3716_v33, 0.0 }
  0xca   :  { %v545_v35 = vpop.f32.mrf.mxu2  ;;  %v649_v39 = vadd.f32 %v648_v36, %v647_v34  ;;  %v2362_v34 = vld [vmem:[%s4732_s7 + $0x50] sm:$0xf] }
  0xcb   :  { %v3722_v37 = vadd.f32 %v545_v35, %v128_v29  ;;  %v558_v38 = vpop.f32.mrf.mxu3  ;;  %v521_v44 = vpop.f32.mrf.mxu0  ;;  %v2562_v29 = vld [vmem:[%s4732_s7 + $0x1e0] sm:$0xf]  ;;  %v3035_v35 = vld [vmem:[%s4732_s7 + $0x54] sm:$0xf0] }
  0xcc   :  { %v3724_v40 = vadd.f32 %v558_v38, %v129_v32  ;;  %v3085_v32 = vld [vmem:[%s4732_s7 + $0x1e4] sm:$0xf0]  ;;  %v2426_v38 = vld [vmem:[%s4732_s7 + $0xd0] sm:$0xf] }
  0xcd   :  { %v650_v41 = vsel %vm564_vm0, %v3722_v37, 0.0  ;;  %v2563_v36 = vor.u32 %v3085_v32, %v2562_v29  ;;  %v2554_v44 = vld [vmem:[%s4732_s7 + $0x1d0] sm:$0xf]  ;;  %v3027_v29 = vld [vmem:[%s4732_s7 + $0x14] sm:$0xf0] }
  0xce   :  { %v651_v42 = vadd.f32 %v650_v41, %v649_v39  ;;  %v652_v43 = vsel %vm564_vm0, %v3724_v40, 0.0  ;;  %v534_v47 = vpop.f32.mrf.mxu1  ;;  %v3051_v39 = vld [vmem:[%s4732_s7 + $0xd4] sm:$0xf0]  ;;  %v2490_v41 = vld [vmem:[%s4732_s7 + $0x150] sm:$0xf] }
  0xcf   :  { %v2427_v47 = vor.u32 %v3051_v39, %v2426_v38  ;;  %v3043_v38 = vld [vmem:[%s4732_s7 + $0x94] sm:$0xf0]  ;;  %v2458_v39 = vld [vmem:[%s4732_s7 + $0x110] sm:$0xf] }
  0xd0   :  { %v653_v46 = vadd.f32 %v652_v43, %v651_v42  ;;  %v2363_v42 = vor.u32 %v3035_v35, %v2362_v34  ;;  %v3067_v43 = vld [vmem:[%s4732_s7 + $0x154] sm:$0xf0] }
  0xd1   :  { %1129 = vmatpush.bf16.msra.mxu1 %v2427_v47 }
  0xd2   :  { %654 = vadd.xlane.f32.xlu0 %v653_v46  ;;  %v547_v48 = vpop.f32.mrf.mxu2  ;;  %v3083_v46 = vld [vmem:[%s4732_s7 + $0x1d4] sm:$0xf0] }
  0xd3   :  { %v560_v49 = vpop.f32.mrf.mxu3  ;;  %v2491_v48 = vor.u32 %v3067_v43, %v2490_v41  ;;  %v2555_v52 = vor.u32 %v3083_v46, %v2554_v44  ;;  %v2331_v43 = vor.u32 %v3027_v29, %v2330_v28  ;;  %v3084_v28 = vld [vmem:[%s4732_s7 + $0x1e4] sm:$0xf]  ;;  %v2564_v29 = vld [vmem:[%s4732_s7 + $0x1e8] sm:$0xf0] }
  0xd4   :  { %v2354_v49 = vld [vmem:[%s4732_s7 + $0x40] sm:$0xf] }
 0x125   :  { %v573_v57 = vpop.xlane.xlu0 %572 }
 0x126   :  { %v581_v58 = vmul.f32 %v3730_v56, %v573_v57  ;;  %v2546_v57 = vld [vmem:[%s4732_s7 + $0x1c0] sm:$0xf] }
 0x128   :  { %v3733_v59 = vsub.f32 %v468_v7, %v581_v58  ;;  %v3735_v60 = vsub.f32 %v481_v9, %v581_v58  ;;  %v3737_v61 = vsub.f32 %v494_v45, %v581_v58  ;;  %v3739_v62 = vsub.f32 %v507_v18, %v581_v58  ;;  %v2378_v9 = vld [vmem:[%s4732_s7 + $0x70] sm:$0xf]  ;;  %v3071_v45 = vld [vmem:[%s4732_s7 + $0x174] sm:$0xf0]  ;;  %v3081_v58 = vld [vmem:[%s4732_s7 + $0x1c4] sm:$0xf0] }
 0x129   :  { %v2379_v13 = vor.u32 %v3039_v10, %v2378_v9  ;;  %v2507_v17 = vor.u32 %v3071_v45, %v2506_v15  ;;  %v2570_v18 = vld [vmem:[%s4732_s7 + $0x1f0] sm:$0xf]  ;;  %v3079_v10 = vld [vmem:[%s4732_s7 + $0x1b4] sm:$0xf0]  ;;  %v2402_v45 = vld [vmem:[%s4732_s7 + $0xa0] sm:$0xf] }
 0x12a   :  { %v586_v63 = vmul.f32 %v3733_v59, %v3733_v59  ;;  %v587_v0 = vmul.f32 %v3735_v60, %v3735_v60  ;;  %v588_v1 = vmul.f32 %v3737_v61, %v3737_v61  ;;  %v589_v2 = vmul.f32 %v3739_v62, %v3739_v62  ;;  %v2538_v9 = vld [vmem:[%s4732_s7 + $0x1b0] sm:$0xf] }
 0x12b   :  { %1114 = vmatpush.bf16.msra.mxu0 %v2379_v13  ;;  %v2571_v21 = vor.u32 %v3087_v19, %v2570_v18  ;;  %1140 = vmatpush.bf16.msra.mxu2 %v2507_v17  ;;  %v3029_v13 = vld [vmem:[%s4732_s7 + $0x24] sm:$0xf0]  ;;  %v2466_v17 = vld [vmem:[%s4732_s7 + $0x120] sm:$0xf]  ;;  %v2539_v18 = vor.u32 %v3079_v10, %v2538_v9  ;;  %v2380_v10 = vld [vmem:[%s4732_s7 + $0x78] sm:$0xf0] }
 0x12c   :  { %v590_v3 = vsel %vm564_vm0, %v586_v63, 0.0  ;;  %v591_v4 = vsel %vm564_vm0, %v587_v0, 0.0  ;;  %v593_v6 = vsel %vm564_vm0, %v588_v1, 0.0  ;;  %v595_v8 = vsel %vm564_vm0, %v589_v2, 0.0  ;;  %v2346_v2 = vld [vmem:[%s4732_s7 + $0x30] sm:$0xf] }
 0x12d   :  { %v592_v5 = vadd.f32 %v591_v4, %v590_v3  ;;  %1153 = vmatpush.bf16.msra.mxu3 %v2571_v21  ;;  %v2355_v63 = vor.u32 %v3033_v50, %v2354_v49  ;;  %v2419_v0 = vor.u32 %v3049_v53, %v2418_v51  ;;  %v2483_v1 = vor.u32 %v3065_v55, %v2482_v54  ;;  %v3031_v3 = vld [vmem:[%s4732_s7 + $0x34] sm:$0xf0]  ;;  %v2410_v4 = vld [vmem:[%s4732_s7 + $0xb0] sm:$0xf]  ;;  %v3061_v19 = vld [vmem:[%s4732_s7 + $0x124] sm:$0xf0] }
 0x12e   :  { %v2347_v11 = vor.u32 %v3031_v3, %v2346_v2  ;;  %v3077_v21 = vld [vmem:[%s4732_s7 + $0x1a4] sm:$0xf0]  ;;  %v2467_v26 = vor.u32 %v3061_v19, %v2466_v17  ;;  %v2450_v2 = vld [vmem:[%s4732_s7 + $0x100] sm:$0xf]  ;;  %v3036_v19 = vld [vmem:[%s4732_s7 + $0x64] sm:$0xf] }
 0x12f   :  { %v594_v7 = vadd.f32 %v593_v6, %v592_v5  ;;  %1115 = vmatpush.bf16.msra.mxu0 %v2371_v25  ;;  %1141 = vmatpush.bf16.msra.mxu2 %v2499_v31  ;;  %v2547_v5 = vor.u32 %v3081_v58, %v2546_v57  ;;  %v3047_v6 = vld [vmem:[%s4732_s7 + $0xb4] sm:$0xf0]  ;;  %v2403_v25 = vor.u32 %v3045_v16, %v2402_v45  ;;  %v2394_v31 = vld [vmem:[%s4732_s7 + $0x90] sm:$0xf]  ;;  %v2322_v57 = vld [vmem:[%s4732_s7] sm:$0xf] }
 0x130   :  { %1130 = vmatpush.bf16.msra.mxu1 %v2419_v0  ;;  %v2411_v14 = vor.u32 %v3047_v6, %v2410_v4  ;;  %v2531_v27 = vor.u32 %v3077_v21, %v2530_v20  ;;  %v2395_v44 = vor.u32 %v3043_v38, %v2394_v31  ;;  %v3025_v58 = vld [vmem:[%s4732_s7 + $0x4] sm:$0xf0]  ;;  %v2514_v6 = vld [vmem:[%s4732_s7 + $0x180] sm:$0xf]  ;;  %v2508_v45 = vld [vmem:[%s4732_s7 + $0x178] sm:$0xf0]  ;;  %v2567_v38 = vor.u32 %v3084_v28, %v2564_v29 }
 0x131   :  { %v596_v12 = vadd.f32 %v595_v8, %v594_v7  ;;  %1154 = vmatpush.bf16.msra.mxu3 %v2563_v36  ;;  %v2474_v7 = vld [vmem:[%s4732_s7 + $0x130] sm:$0xf]  ;;  %v3063_v8 = vld [vmem:[%s4732_s7 + $0x134] sm:$0xf0]  ;;  %v2323_v0 = vor.u32 %v3025_v58, %v2322_v57  ;;  %v3057_v3 = vld [vmem:[%s4732_s7 + $0x104] sm:$0xf0] }
 0x132   :  { %v2475_v15 = vor.u32 %v3063_v8, %v2474_v7  ;;  %v3073_v7 = vld [vmem:[%s4732_s7 + $0x184] sm:$0xf0]  ;;  %v3038_v8 = vld [vmem:[%s4732_s7 + $0x74] sm:$0xf]  ;;  %v2372_v20 = vld [vmem:[%s4732_s7 + $0x68] sm:$0xf0] }
 0x133   :  { %597 = vadd.xlane.f32.xlu1 %v596_v12  ;;  %1116 = vmatpush.bf16.msra.mxu0 %v2363_v42  ;;  %v2338_v12 = vld [vmem:[%s4732_s7 + $0x20] sm:$0xf]  ;;  %v2515_v9 = vor.u32 %v3073_v7, %v2514_v6  ;;  %v3086_v16 = vld [vmem:[%s4732_s7 + $0x1f4] sm:$0xf]  ;;  %v2412_v6 = vld [vmem:[%s4732_s7 + $0xb8] sm:$0xf0] }
 0x134   :  { %1142 = vmatpush.bf16.msra.mxu2 %v2491_v48  ;;  %v2339_v24 = vor.u32 %v3029_v13, %v2338_v12  ;;  %1131 = vmatpush.bf16.msra.mxu1 %v2411_v14  ;;  %v2444_v12 = vld [vmem:[%s4732_s7 + $0xf8] sm:$0xf0]  ;;  %v2383_v13 = vor.u32 %v3038_v8, %v2380_v10  ;;  %v3062_v7 = vld [vmem:[%s4732_s7 + $0x134] sm:$0xf] }
 0x135   :  { %1155 = vmatpush.bf16.msra.mxu3 %v2555_v52  ;;  %v2476_v8 = vld [vmem:[%s4732_s7 + $0x138] sm:$0xf0]  ;;  %v3058_v29 = vld [vmem:[%s4732_s7 + $0x114] sm:$0xf] }
 0x136   :  { %v2479_v10 = vor.u32 %v3062_v7, %v2476_v8  ;;  %v2396_v28 = vld [vmem:[%s4732_s7 + $0x98] sm:$0xf0] }
 0x137   :  { %1117 = vmatpush.bf16.msra.mxu0 %v2355_v63  ;;  %v2386_v63 = vld [vmem:[%s4732_s7 + $0x80] sm:$0xf] }
 0x138   :  { %1143 = vmatpush.bf16.msra.mxu2 %v2483_v1  ;;  %1132 = vmatpush.bf16.msra.mxu1 %v2403_v25  ;;  %v3041_v1 = vld [vmem:[%s4732_s7 + $0x84] sm:$0xf0]  ;;  %v3068_v25 = vld [vmem:[%s4732_s7 + $0x164] sm:$0xf] }
 0x139   :  { %1156 = vmatpush.bf16.msra.mxu3 %v2547_v5  ;;  %v2387_v4 = vor.u32 %v3041_v1, %v2386_v63  ;;  %v2451_v5 = vor.u32 %v3057_v3, %v2450_v2  ;;  %v3080_v63 = vld [vmem:[%s4732_s7 + $0x1c4] sm:$0xf]  ;;  %v3030_v2 = vld [vmem:[%s4732_s7 + $0x34] sm:$0xf]  ;;  %v2348_v3 = vld [vmem:[%s4732_s7 + $0x38] sm:$0xf0] }
 0x13b   :  { %1118 = vmatpush.bf16.msra.mxu0 %v2347_v11  ;;  %v3054_v11 = vld [vmem:[%s4732_s7 + $0xf4] sm:$0xf] }
 0x13c   :  { %1144 = vmatpush.bf16.msra.mxu2 %v2475_v15  ;;  %1133 = vmatpush.bf16.msra.mxu1 %v2395_v44  ;;  %v2447_v14 = vor.u32 %v3054_v11, %v2444_v12  ;;  %v3070_v15 = vld [vmem:[%s4732_s7 + $0x174] sm:$0xf]  ;;  %v2540_v12 = vld [vmem:[%s4732_s7 + $0x1b8] sm:$0xf0] }
 0x13d   :  { %1157 = vmatpush.bf16.msra.mxu3 %v2539_v18  ;;  %v2511_v17 = vor.u32 %v3070_v15, %v2508_v45  ;;  %v2572_v18 = vld [vmem:[%s4732_s7 + $0x1f8] sm:$0xf0]  ;;  %v3078_v11 = vld [vmem:[%s4732_s7 + $0x1b4] sm:$0xf]  ;;  %v2340_v15 = vld [vmem:[%s4732_s7 + $0x28] sm:$0xf0] }
 0x13e   :  { %v2575_v21 = vor.u32 %v3086_v16, %v2572_v18  ;;  %v3044_v45 = vld [vmem:[%s4732_s7 + $0xa4] sm:$0xf] }
 0x13f   :  { %1119 = vmatpush.bf16.msra.mxu0 %v2339_v24  ;;  %v2436_v24 = vld [vmem:[%s4732_s7 + $0xe8] sm:$0xf0]  ;;  %v3060_v18 = vld [vmem:[%s4732_s7 + $0x124] sm:$0xf] }
 0x140   :  { %1145 = vmatpush.bf16.msra.mxu2 %v2467_v26  ;;  %1134 = vmatpush.bf16.msra.mxu1 %v2387_v4  ;;  %v3046_v4 = vld [vmem:[%s4732_s7 + $0xb4] sm:$0xf] }
 0x141   :  { %1158 = vmatpush.bf16.msra.mxu3 %v2531_v27  ;;  %v2500_v27 = vld [vmem:[%s4732_s7 + $0x168] sm:$0xf0] }
 0x142   :  { %v2503_v31 = vor.u32 %v3068_v25, %v2500_v27  ;;  %v3042_v27 = vld [vmem:[%s4732_s7 + $0x94] sm:$0xf] }
 0x143   :  { %1120 = vmatpush.bf16.msra.mxu0 %v2331_v43 }
 0x144   :  { %1179 = vmatpush.bf16.msrb.mxu1 %v2447_v14  ;;  %v3028_v14 = vld [vmem:[%s4732_s7 + $0x24] sm:$0xf] }
 0x145   :  { %v655_v22 = vpop.xlane.xlu0 %654  ;;  %v2343_v16 = vor.u32 %v3028_v14, %v2340_v15 }
 0x146   :  { %v656_v23 = vmul.f32 %v655_v22, %v3730_v56  ;;  %v2375_v22 = vor.u32 %v3036_v19, %v2372_v20  ;;  %v2468_v19 = vld [vmem:[%s4732_s7 + $0x128] sm:$0xf0] }
 0x147   :  { %1121 = vmatpush.bf16.msra.mxu0 %v2323_v0  ;;  %v2548_v0 = vld [vmem:[%s4732_s7 + $0x1c8] sm:$0xf0] }
 0x148   :  { %v3908_v32 = vsub.f32 %v3714_v30, %v656_v23  ;;  %v3911_v34 = vsub.f32 %v3716_v33, %v656_v23  ;;  %v3914_v35 = vsub.f32 %v3722_v37, %v656_v23  ;;  %v3917_v36 = vsub.f32 %v3724_v40, %v656_v23  ;;  %v3059_v30 = vld [vmem:[%s4732_s7 + $0x114] sm:$0xf0]  ;;  %v2522_v33 = vld [vmem:[%s4732_s7 + $0x190] sm:$0xf]  ;;  %v3052_v23 = vld [vmem:[%s4732_s7 + $0xe4] sm:$0xf] }
 0x149   :  { %v3075_v37 = vld [vmem:[%s4732_s7 + $0x194] sm:$0xf0]  ;;  %v2459_v46 = vor.u32 %v3059_v30, %v2458_v39  ;;  %v2439_v26 = vor.u32 %v3052_v23, %v2436_v24  ;;  %v3034_v39 = vld [vmem:[%s4732_s7 + $0x54] sm:$0xf]  ;;  %v2364_v30 = vld [vmem:[%s4732_s7 + $0x58] sm:$0xf0]  ;;  %v2551_v1 = vor.u32 %v3080_v63, %v2548_v0 }
 0x14a   :  { %v661_v40 = vmul.f32 %v3908_v32, %v3908_v32  ;;  %v662_v41 = vmul.f32 %v3911_v34, %v3911_v34  ;;  %v663_v42 = vmul.f32 %v3914_v35, %v3914_v35  ;;  %v664_v47 = vmul.f32 %v3917_v36, %v3917_v36  ;;  %v2532_v23 = vld [vmem:[%s4732_s7 + $0x1a8] sm:$0xf0]  ;;  %v3026_v24 = vld [vmem:[%s4732_s7 + $0x14] sm:$0xf] }
 0x14b   :  { %v2523_v50 = vor.u32 %v3075_v37, %v2522_v33  ;;  %1146 = vmatpush.bf16.msra.mxu2 %v2459_v46  ;;  %1166 = vmatpush.bf16.msrb.mxu0 %v2383_v13  ;;  %v3050_v33 = vld [vmem:[%s4732_s7 + $0xd4] sm:$0xf]  ;;  %v2367_v37 = vor.u32 %v3034_v39, %v2364_v30  ;;  %v2543_v13 = vor.u32 %v3078_v11, %v2540_v12 }
 0x14c   :  { %v665_v48 = vsel %vm564_vm0, %v661_v40, 0.0  ;;  %v666_v49 = vsel %vm564_vm0, %v662_v41, 0.0  ;;  %v668_v52 = vsel %vm564_vm0, %v663_v42, 0.0  ;;  %v670_v54 = vsel %vm564_vm0, %v664_v47, 0.0  ;;  %1180 = vmatpush.bf16.msrb.mxu1 %v2439_v26  ;;  %v2428_v40 = vld [vmem:[%s4732_s7 + $0xd8] sm:$0xf0] }
 0x14d   :  { %v667_v51 = vadd.f32 %v666_v49, %v665_v48  ;;  %1159 = vmatpush.bf16.msra.mxu3 %v2523_v50  ;;  %v3066_v41 = vld [vmem:[%s4732_s7 + $0x154] sm:$0xf]  ;;  %v2492_v42 = vld [vmem:[%s4732_s7 + $0x158] sm:$0xf0]  ;;  %v2431_v43 = vor.u32 %v3050_v33, %v2428_v40  ;;  %v3032_v49 = vld [vmem:[%s4732_s7 + $0x44] sm:$0xf]  ;;  %v2399_v30 = vor.u32 %v3042_v27, %v2396_v28 }
 0x14e   :  { %v2495_v44 = vor.u32 %v3066_v41, %v2492_v42  ;;  %v3082_v46 = vld [vmem:[%s4732_s7 + $0x1d4] sm:$0xf]  ;;  %v2556_v47 = vld [vmem:[%s4732_s7 + $0x1d8] sm:$0xf0]  ;;  %v2356_v50 = vld [vmem:[%s4732_s7 + $0x48] sm:$0xf0] }
 0x14f   :  { %v669_v53 = vadd.f32 %v668_v52, %v667_v51  ;;  %1147 = vmatpush.bf16.msra.mxu2 %v2451_v5  ;;  %1167 = vmatpush.bf16.msrb.mxu0 %v2375_v22  ;;  %v2559_v48 = vor.u32 %v3082_v46, %v2556_v47  ;;  %v3048_v51 = vld [vmem:[%s4732_s7 + $0xc4] sm:$0xf]  ;;  %v2359_v52 = vor.u32 %v3032_v49, %v2356_v50  ;;  %v2332_v26 = vld [vmem:[%s4732_s7 + $0x18] sm:$0xf0]  ;;  %v2324_v42 = vld [vmem:[%s4732_s7 + $0x8] sm:$0xf0] }
 0x150   :  { %1181 = vmatpush.bf16.msrb.mxu1 %v2431_v43  ;;  %v2351_v5 = vor.u32 %v3030_v2, %v2348_v3  ;;  %v3076_v22 = vld [vmem:[%s4732_s7 + $0x1a4] sm:$0xf]  ;;  %v2335_v39 = vor.u32 %v3026_v24, %v2332_v26  ;;  %v2524_v33 = vld [vmem:[%s4732_s7 + $0x198] sm:$0xf0]  ;;  %v2388_v46 = vld [vmem:[%s4732_s7 + $0x88] sm:$0xf0] }
 0x151   :  { %v671_v55 = vadd.f32 %v670_v54, %v669_v53  ;;  %1160 = vmatpush.bf16.msra.mxu3 %v2515_v9  ;;  %v2420_v53 = vld [vmem:[%s4732_s7 + $0xc8] sm:$0xf0]  ;;  %v3064_v54 = vld [vmem:[%s4732_s7 + $0x144] sm:$0xf]  ;;  %v2415_v9 = vor.u32 %v3046_v4, %v2412_v6  ;;  %v2535_v25 = vor.u32 %v3076_v22, %v2532_v23  ;;  %v562_v2 = vld [vmem:[%s4728_s3] sm:$0xf] }
 0x152   :  { %v2423_v57 = vor.u32 %v3048_v51, %v2420_v53  ;;  %v3024_v41 = vld [vmem:[%s4732_s7 + $0x4] sm:$0xf]  ;;  %v2516_v53 = vld [vmem:[%s4732_s7 + $0x188] sm:$0xf0]  ;;  %v563_v4 = vld [vmem:[%s4729_s4] sm:$0xf] }
 0x153   :  { %672 = vadd.xlane.f32.xlu1 %v671_v55  ;;  %1192 = vmatpush.bf16.msrb.mxu2 %v2511_v17  ;;  %v2484_v55 = vld [vmem:[%s4732_s7 + $0x148] sm:$0xf0]  ;;  %v3040_v43 = vld [vmem:[%s4732_s7 + $0x84] sm:$0xf]  ;;  %v616_v6 = vperm.slane %v562_v2, 0  ;;  %v629_v7 = vperm.slane %v563_v4, 0 }
 0x154   :  { %1168 = vmatpush.bf16.msrb.mxu0 %v2367_v37  ;;  %v2487_v58 = vor.u32 %v3064_v54, %v2484_v55  ;;  %1182 = vmatpush.bf16.msrb.mxu1 %v2423_v57  ;;  %v2404_v17 = vld [vmem:[%s4732_s7 + $0xa8] sm:$0xf0]  ;;  %v3056_v47 = vld [vmem:[%s4732_s7 + $0x104] sm:$0xf]  ;;  %v2391_v50 = vor.u32 %v3040_v43, %v2388_v46  ;;  %v617_v8 = vperm.slane %v562_v2, 1  ;;  %v630_v12 = vperm.slane %v563_v4, 1 }
 0x155   :  { %1205 = vmatpush.bf16.msrb.mxu3 %v2575_v21  ;;  %v2407_v20 = vor.u32 %v3044_v45, %v2404_v17  ;;  %v2471_v21 = vor.u32 %v3060_v18, %v2468_v19  ;;  %v632_v14 = vperm.slane %v563_v4, 3  ;;  %v2634_v22 = vld [vmem:[%s4734_s9 + $0x70] sm:$0xf]  ;;  %v3135_v27 = vld [vmem:[%s4734_s9 + $0x174] sm:$0xf0] }
 0x156   :  { %v2826_v28 = vld [vmem:[%s4734_s9 + $0x1f0] sm:$0xf] }
 0x157   :  { %1193 = vmatpush.bf16.msrb.mxu2 %v2503_v31  ;;  %v2460_v31 = vld [vmem:[%s4732_s7 + $0x118] sm:$0xf0] }
 0x158   :  { %1169 = vmatpush.bf16.msrb.mxu0 %v2359_v52  ;;  %1183 = vmatpush.bf16.msrb.mxu1 %v2415_v9  ;;  %v2463_v37 = vor.u32 %v3058_v29, %v2460_v31  ;;  %v3072_v52 = vld [vmem:[%s4732_s7 + $0x184] sm:$0xf]  ;;  %v618_v9 = vperm.slane %v562_v2, 2 }
 0x159   :  { %1206 = vmatpush.bf16.msrb.mxu3 %v2567_v38  ;;  %v3074_v38 = vld [vmem:[%s4732_s7 + $0x194] sm:$0xf]  ;;  %v2519_v55 = vor.u32 %v3072_v52, %v2516_v53  ;;  %v3117_v52 = vld [vmem:[%s4734_s9 + $0xe4] sm:$0xf0]  ;;  %v2754_v53 = vld [vmem:[%s4734_s9 + $0x160] sm:$0xf] }
 0x15a   :  { %v2527_v40 = vor.u32 %v3074_v38, %v2524_v33  ;;  %v3151_v33 = vld [vmem:[%s4734_s9 + $0x1f4] sm:$0xf0] }
 0x15b   :  { %1194 = vmatpush.bf16.msrb.mxu2 %v2495_v44  ;;  %v2327_v44 = vor.u32 %v3024_v41, %v2324_v42 }
 0x15c   :  { %1170 = vmatpush.bf16.msrb.mxu0 %v2351_v5  ;;  %1184 = vmatpush.bf16.msrb.mxu1 %v2407_v20 }
 0x15d   :  { %1207 = vmatpush.bf16.msrb.mxu3 %v2559_v48  ;;  %v2452_v48 = vld [vmem:[%s4732_s7 + $0x108] sm:$0xf0] }
 0x15e   :  { %v2455_v51 = vor.u32 %v3056_v47, %v2452_v48  ;;  %v2626_v47 = vld [vmem:[%s4734_s9 + $0x60] sm:$0xf]  ;;  %v3101_v48 = vld [vmem:[%s4734_s9 + $0x64] sm:$0xf0] }
 0x15f   :  { %1195 = vmatpush.bf16.msrb.mxu2 %v2487_v58 }
 0x160   :  { %1171 = vmatpush.bf16.msrb.mxu0 %v2343_v16  ;;  %1185 = vmatpush.bf16.msrb.mxu1 %v2399_v30 }
 0x161   :  { %1208 = vmatpush.bf16.msrb.mxu3 %v2551_v1 }
 0x163   :  { %1196 = vmatpush.bf16.msrb.mxu2 %v2479_v10  ;;  %v619_v10 = vperm.slane %v562_v2, 3 }
 0x164   :  { %1172 = vmatpush.bf16.msrb.mxu0 %v2335_v39  ;;  %1186 = vmatpush.bf16.msrb.mxu1 %v2391_v50 }
 0x165   :  { %1209 = vmatpush.bf16.msrb.mxu3 %v2543_v13  ;;  %v631_v13 = vperm.slane %v563_v4, 2  ;;  %v2682_v4 = vld [vmem:[%s4734_s9 + $0xd0] sm:$0xf] }
 0x167   :  { %1197 = vmatpush.bf16.msrb.mxu2 %v2471_v21 }
 0x168   :  { %1173 = vmatpush.bf16.msrb.mxu0 %v2327_v44 }
 0x169   :  { %1210 = vmatpush.bf16.msrb.mxu3 %v2535_v25 }
 0x16b   :  { %1198 = vmatpush.bf16.msrb.mxu2 %v2463_v37 }
 0x16d   :  { %1211 = vmatpush.bf16.msrb.mxu3 %v2527_v40 }
 0x16f   :  { %1199 = vmatpush.bf16.msrb.mxu2 %v2455_v51  ;;  %v2827_v51 = vor.u32 %v3151_v33, %v2826_v28  ;;  %v2730_v28 = vld [vmem:[%s4734_s9 + $0x130] sm:$0xf]  ;;  %v3093_v33 = vld [vmem:[%s4734_s9 + $0x24] sm:$0xf0] }
 0x171   :  { %1212 = vmatpush.bf16.msrb.mxu3 %v2519_v55  ;;  %v2818_v55 = vld [vmem:[%s4734_s9 + $0x1e0] sm:$0xf] }
 0x1a6   :  { %v598_v49 = vpop.xlane.xlu1 %597 }
 0x1a7   :  { %v599_v54 = vmul.f32 %v598_v49, %v3730_v56 }
 0x1a9   :  { %v600_v57 = vadd.f32 1e-05, %v599_v54  ;;  %v3133_v54 = vld [vmem:[%s4734_s9 + $0x164] sm:$0xf0] }
 0x1aa   :  { %v2755_v2 = vor.u32 %v3133_v54, %v2754_v53  ;;  %v3125_v53 = vld [vmem:[%s4734_s9 + $0x124] sm:$0xf0]  ;;  %v2786_v54 = vld [vmem:[%s4734_s9 + $0x1a0] sm:$0xf] }
 0x1ab   :  { %3190 = vrsqrt.f32 %v600_v57  ;;  %vm607_vm3 = vweird.f32 %v600_v57 }
 0x1b1   :  { %v3191_v58 = vpop.eup %3190 }
 0x1b2   :  { %v602_v63 = vmul.f32 %v3191_v58, %v600_v57  ;;  %vm608_vm2 = vweird.f32 %v3191_v58  ;;  %v3149_v57 = vld [vmem:[%s4734_s9 + $0x1e4] sm:$0xf0] }
 0x1b3   :  { %vm609_vm4 = vmor %vm607_vm3, %vm608_vm2 }
 0x1b4   :  { %v603_v0 = vmul.f32 %v3191_v58, %v602_v63 }
 0x1b6   :  { %v604_v1 = vmul.f32 0.5, %v603_v0  ;;  %v2618_v0 = vld [vmem:[%s4734_s9 + $0x50] sm:$0xf] }
 0x1b8   :  { %v605_v3 = vsub.f32 1.5, %v604_v1  ;;  %v3099_v1 = vld [vmem:[%s4734_s9 + $0x54] sm:$0xf0] }
 0x1ba   :  { %v606_v5 = vmul.f32 %v3191_v58, %v605_v3  ;;  %v2819_v3 = vor.u32 %v3149_v57, %v2818_v55  ;;  %v3141_v55 = vld [vmem:[%s4734_s9 + $0x1a4] sm:$0xf0] }
 0x1bc   :  { %v610_v11 = vsel %vm609_vm4, %v3191_v58, %v606_v5  ;;  %v2627_v58 = vor.u32 %v3101_v48, %v2626_v47  ;;  %v3115_v5 = vld [vmem:[%s4734_s9 + $0xd4] sm:$0xf0] }
 0x1bd   :  { %v611_v15 = vmul.f32 %v610_v11, %v3733_v59  ;;  %v612_v45 = vmul.f32 %v610_v11, %v3735_v60  ;;  %v613_v16 = vmul.f32 %v610_v11, %v3737_v61  ;;  %v614_v17 = vmul.f32 %v610_v11, %v3739_v62  ;;  %v3103_v59 = vld [vmem:[%s4734_s9 + $0x74] sm:$0xf0]  ;;  %v2698_v60 = vld [vmem:[%s4734_s9 + $0xf0] sm:$0xf] }
 0x1be   :  { %v3119_v61 = vld [vmem:[%s4734_s9 + $0xf4] sm:$0xf0]  ;;  %v2762_v62 = vld [vmem:[%s4734_s9 + $0x170] sm:$0xf]  ;;  %v2635_v40 = vor.u32 %v3103_v59, %v2634_v22  ;;  %v2683_v11 = vor.u32 %v3115_v5, %v2682_v4  ;;  %v3145_v22 = vld [vmem:[%s4734_s9 + $0x1c4] sm:$0xf0] }
 0x1bf   :  { %v624_v18 = vmul.f32 %v616_v6, %v611_v15  ;;  %v625_v19 = vmul.f32 %v617_v8, %v612_v45  ;;  %v626_v20 = vmul.f32 %v618_v9, %v613_v16  ;;  %v627_v21 = vmul.f32 %v619_v10, %v614_v17  ;;  %v2746_v6 = vld [vmem:[%s4734_s9 + $0x150] sm:$0xf]  ;;  %v3147_v9 = vld [vmem:[%s4734_s9 + $0x1d4] sm:$0xf0]  ;;  %v2674_v16 = vld [vmem:[%s4734_s9 + $0xc0] sm:$0xf] }
 0x1c0   :  { %v2699_v41 = vor.u32 %v3119_v61, %v2698_v60  ;;  %v2763_v50 = vor.u32 %v3135_v27, %v2762_v62  ;;  %v2810_v8 = vld [vmem:[%s4734_s9 + $0x1d0] sm:$0xf]  ;;  %v2619_v10 = vor.u32 %v3099_v1, %v2618_v0  ;;  %v3113_v17 = vld [vmem:[%s4734_s9 + $0xc4] sm:$0xf0]  ;;  %v3095_v59 = vld [vmem:[%s4734_s9 + $0x34] sm:$0xf0] }
 0x1c1   :  { %v637_v23 = vadd.f32 %v629_v7, %v624_v18  ;;  %v638_v24 = vadd.f32 %v630_v12, %v625_v19  ;;  %v639_v25 = vadd.f32 %v631_v13, %v626_v20  ;;  %v640_v26 = vadd.f32 %v632_v14, %v627_v21  ;;  %v3131_v7 = vld [vmem:[%s4734_s9 + $0x154] sm:$0xf0]  ;;  %v2610_v12 = vld [vmem:[%s4734_s9 + $0x40] sm:$0xf]  ;;  %v3097_v13 = vld [vmem:[%s4734_s9 + $0x44] sm:$0xf0] }
 0x1c2   :  { %v2747_v15 = vor.u32 %v3131_v7, %v2746_v6  ;;  %v2811_v45 = vor.u32 %v3147_v9, %v2810_v8  ;;  %v2738_v18 = vld [vmem:[%s4734_s9 + $0x140] sm:$0xf]  ;;  %v3129_v20 = vld [vmem:[%s4734_s9 + $0x144] sm:$0xf0]  ;;  %v2666_v60 = vld [vmem:[%s4734_s9 + $0xb0] sm:$0xf] }
 0x1c3   :  { %v641_v31 = vmax.f32 %v637_v23, 0.0  ;;  %v642_v38 = vmax.f32 %v638_v24, 0.0  ;;  %v643_v39 = vmax.f32 %v639_v25, 0.0  ;;  %v644_v30 = vmax.f32 %v640_v26, 0.0  ;;  %v2802_v21 = vld [vmem:[%s4734_s9 + $0x1c0] sm:$0xf] }
 0x1c4   :  { %v2602_v23 = vld [vmem:[%s4734_s9 + $0x30] sm:$0xf]  ;;  %v2611_v25 = vor.u32 %v3097_v13, %v2610_v12  ;;  %v2675_v26 = vor.u32 %v3113_v17, %v2674_v16  ;;  %v3111_v61 = vld [vmem:[%s4734_s9 + $0xb4] sm:$0xf0]  ;;  %v2739_v62 = vor.u32 %v3129_v20, %v2738_v18  ;;  %v2803_v27 = vor.u32 %v3145_v22, %v2802_v21  ;;  %v2578_v17 = vld [vmem:[%s4734_s9] sm:$0xf] }
 0x1c5   :  { %v4198_v42 = vpack.c.bf16 %v641_v31, %v641_v31  ;;  %v4200_v43 = vpack.c.bf16 %v642_v38, %v642_v38  ;;  %v4202_v44 = vpack.c.bf16 %v643_v39, %v643_v39  ;;  %v4204_v46 = vpack.c.bf16 %v644_v30, %v644_v30  ;;  %v2794_v31 = vld [vmem:[%s4734_s9 + $0x1b0] sm:$0xf]  ;;  %v3143_v39 = vld [vmem:[%s4734_s9 + $0x1b4] sm:$0xf0]  ;;  %v2594_v30 = vld [vmem:[%s4734_s9 + $0x20] sm:$0xf] }
 0x1c6   :  { %v673_v29 = vpop.xlane.xlu1 %672  ;;  %v2603_v47 = vor.u32 %v3095_v59, %v2602_v23  ;;  %v2667_v48 = vor.u32 %v3111_v61, %v2666_v60  ;;  %v2586_v0 = vld [vmem:[%s4734_s9 + $0x10] sm:$0xf]  ;;  %v3107_v5 = vld [vmem:[%s4734_s9 + $0x94] sm:$0xf0]  ;;  %v3089_v21 = vld [vmem:[%s4734_s9 + $0x4] sm:$0xf0] }
 0x1c7   :  { %v674_v37 = vmul.f32 %v673_v29, %v3730_v56  ;;  %v2690_v56 = vld [vmem:[%s4734_s9 + $0xe0] sm:$0xf]  ;;  %1122 = vmatmul.bf16.vlgmr.msra.gmra.mxu0 %v4198_v42  ;;  %1135 = vmatmul.bf16.vlgmr.msra.gmra.mxu1 %v4200_v43  ;;  %v3127_v29 = vld [vmem:[%s4734_s9 + $0x134] sm:$0xf0]  ;;  %v2650_v4 = vld [vmem:[%s4734_s9 + $0x90] sm:$0xf] }
 0x1c8   :  { %1148 = vmatmul.bf16.vlgmr.msra.gmra.mxu2 %v4202_v44  ;;  %1161 = vmatmul.bf16.vlgmr.msra.gmra.mxu3 %v4204_v46  ;;  %v2691_v63 = vor.u32 %v3117_v52, %v2690_v56  ;;  %v2722_v56 = vld [vmem:[%s4734_s9 + $0x120] sm:$0xf]  ;;  %v2795_v52 = vor.u32 %v3143_v39, %v2794_v31  ;;  %v2714_v7 = vld [vmem:[%s4734_s9 + $0x110] sm:$0xf]  ;;  %v3123_v8 = vld [vmem:[%s4734_s9 + $0x114] sm:$0xf0] }
 0x1c9   :  { %v4215_v49 = vadd.f32 1e-05, %v674_v37  ;;  %1614 = vmatpush.bf16.msra.mxu0 %v2635_v40  ;;  %1627 = vmatpush.bf16.msra.mxu1 %v2699_v41  ;;  %v2658_v37 = vld [vmem:[%s4734_s9 + $0xa0] sm:$0xf]  ;;  %v3109_v40 = vld [vmem:[%s4734_s9 + $0xa4] sm:$0xf0] }
 0x1ca   :  { %1640 = vmatpush.bf16.msra.mxu2 %v2763_v50  ;;  %1653 = vmatpush.bf16.msra.mxu3 %v2827_v51  ;;  %v645_v50 = vld [vmem:[%s4730_s5] sm:$0xf]  ;;  %v2731_v51 = vor.u32 %v3127_v29, %v2730_v28  ;;  %v2778_v9 = vld [vmem:[%s4734_s9 + $0x190] sm:$0xf]  ;;  %v3139_v13 = vld [vmem:[%s4734_s9 + $0x194] sm:$0xf0] }
 0x1cb   :  { %3192 = vrsqrt.f32 %v4215_v49  ;;  %vm682_vm6 = vweird.f32 %v4215_v49  ;;  %v692_v1 = vperm.slane %v645_v50, 1  ;;  %v694_v6 = vperm.slane %v645_v50, 3  ;;  %v3105_v22 = vld [vmem:[%s4734_s9 + $0x84] sm:$0xf0]  ;;  %v2770_v60 = vld [vmem:[%s4734_s9 + $0x180] sm:$0xf] }
 0x1cc   :  { %v3121_v59 = vld [vmem:[%s4734_s9 + $0x104] sm:$0xf0]  ;;  %v3118_v31 = vld [vmem:[%s4734_s9 + $0xf4] sm:$0xf] }
 0x1cd   :  { %1615 = vmatpush.bf16.msra.mxu0 %v2627_v58  ;;  %1628 = vmatpush.bf16.msra.mxu1 %v2691_v63  ;;  %v2595_v58 = vor.u32 %v3093_v33, %v2594_v30  ;;  %v2659_v63 = vor.u32 %v3109_v40, %v2658_v37  ;;  %v3137_v61 = vld [vmem:[%s4734_s9 + $0x184] sm:$0xf0]  ;;  %v3134_v39 = vld [vmem:[%s4734_s9 + $0x174] sm:$0xf]  ;;  %v2579_v37 = vor.u32 %v3089_v21, %v2578_v17  ;;  %v2812_v17 = vld [vmem:[%s4734_s9 + $0x1d8] sm:$0xf0] }
 0x1ce   :  { %1641 = vmatpush.bf16.msra.mxu2 %v2755_v2  ;;  %1654 = vmatpush.bf16.msra.mxu3 %v2819_v3  ;;  %v693_v2 = vperm.slane %v645_v50, 2  ;;  %v2787_v3 = vor.u32 %v3141_v55, %v2786_v54  ;;  %v3112_v21 = vld [vmem:[%s4734_s9 + $0xc4] sm:$0xf] }
 0x1d1   :  { %v4267_v14 = vpop.eup %3192  ;;  %1616 = vmatpush.bf16.msra.mxu0 %v2619_v10  ;;  %1629 = vmatpush.bf16.msra.mxu1 %v2683_v11 }
 0x1d2   :  { %v677_v19 = vmul.f32 %v4267_v14, %v4215_v49  ;;  %1642 = vmatpush.bf16.msra.mxu2 %v2747_v15  ;;  %1655 = vmatpush.bf16.msra.mxu3 %v2811_v45  ;;  %vm683_vm5 = vweird.f32 %v4267_v14  ;;  %v3091_v49 = vld [vmem:[%s4734_s9 + $0x14] sm:$0xf0] }
 0x1d3   :  { %vm684_vm7 = vmor %vm682_vm6, %vm683_vm5 }
 0x1d4   :  { %v678_v24 = vmul.f32 %v4267_v14, %v677_v19 }
 0x1d5   :  { %1617 = vmatpush.bf16.msra.mxu0 %v2611_v25  ;;  %1630 = vmatpush.bf16.msra.mxu1 %v2675_v26  ;;  %v2779_v25 = vor.u32 %v3139_v13, %v2778_v9  ;;  %v2706_v26 = vld [vmem:[%s4734_s9 + $0x100] sm:$0xf]  ;;  %v2620_v9 = vld [vmem:[%s4734_s9 + $0x58] sm:$0xf0]  ;;  %v3114_v13 = vld [vmem:[%s4734_s9 + $0xd4] sm:$0xf] }
 0x1d6   :  { %v679_v38 = vmul.f32 0.5, %v678_v24  ;;  %1643 = vmatpush.bf16.msra.mxu2 %v2739_v62  ;;  %1656 = vmatpush.bf16.msra.mxu3 %v2803_v27  ;;  %v2715_v24 = vor.u32 %v3123_v8, %v2714_v7  ;;  %v3102_v62 = vld [vmem:[%s4734_s9 + $0x74] sm:$0xf]  ;;  %v2636_v27 = vld [vmem:[%s4734_s9 + $0x78] sm:$0xf0] }
 0x1d7   :  { %1174 = vmatmul.bf16.vlgmr.msrb.gmra.mxu0 %v4198_v42  ;;  %1187 = vmatmul.bf16.vlgmr.msrb.gmra.mxu1 %v4200_v43  ;;  %v646_v42 = vld [vmem:[%s4731_s6] sm:$0xf]  ;;  %v691_v43 = vperm.slane %v645_v50, 0  ;;  %v2771_v50 = vor.u32 %v3137_v61, %v2770_v60  ;;  %v3098_v8 = vld [vmem:[%s4734_s9 + $0x54] sm:$0xf] }
 0x1d8   :  { %v680_v41 = vsub.f32 1.5, %v679_v38  ;;  %1200 = vmatmul.bf16.vlgmr.msrb.gmra.mxu2 %v4202_v44  ;;  %1213 = vmatmul.bf16.vlgmr.msrb.gmra.mxu3 %v4204_v46  ;;  %v2723_v46 = vor.u32 %v3125_v53, %v2722_v56  ;;  %v705_v15 = vperm.slane %v646_v42, 1  ;;  %v706_v45 = vperm.slane %v646_v42, 2  ;;  %v2700_v38 = vld [vmem:[%s4734_s9 + $0xf8] sm:$0xf0] }
 0x1d9   :  { %1618 = vmatpush.bf16.msra.mxu0 %v2603_v47  ;;  %1631 = vmatpush.bf16.msra.mxu1 %v2667_v48  ;;  %v707_v20 = vperm.slane %v646_v42, 3  ;;  %v3150_v47 = vld [vmem:[%s4734_s9 + $0x1f4] sm:$0xf]  ;;  %v2828_v48 = vld [vmem:[%s4734_s9 + $0x1f8] sm:$0xf0]  ;;  %v2707_v56 = vor.u32 %v3121_v59, %v2706_v26  ;;  %v2639_v53 = vor.u32 %v3102_v62, %v2636_v27  ;;  %v2703_v54 = vor.u32 %v3118_v31, %v2700_v38 }
 0x1da   :  { %v681_v57 = vmul.f32 %v4267_v14, %v680_v41  ;;  %1644 = vmatpush.bf16.msra.mxu2 %v2731_v51  ;;  %1657 = vmatpush.bf16.msra.mxu3 %v2795_v52  ;;  %v2764_v41 = vld [vmem:[%s4734_s9 + $0x178] sm:$0xf0]  ;;  %v3100_v51 = vld [vmem:[%s4734_s9 + $0x64] sm:$0xf]  ;;  %v2628_v52 = vld [vmem:[%s4734_s9 + $0x68] sm:$0xf0] }
 0x1db   :  { %v3094_v60 = vld [vmem:[%s4734_s9 + $0x34] sm:$0xf]  ;;  %v2604_v61 = vld [vmem:[%s4734_s9 + $0x38] sm:$0xf0] }
 0x1dc   :  { %v685_v44 = vsel %vm684_vm7, %v4267_v14, %v681_v57  ;;  %v704_v14 = vperm.slane %v646_v42, 0  ;;  %v3126_v31 = vld [vmem:[%s4734_s9 + $0x134] sm:$0xf]  ;;  %v2732_v38 = vld [vmem:[%s4734_s9 + $0x138] sm:$0xf0] }
 0x1dd   :  { %v686_v10 = vmul.f32 %v685_v44, %v3908_v32  ;;  %v687_v11 = vmul.f32 %v685_v44, %v3911_v34  ;;  %v688_v12 = vmul.f32 %v685_v44, %v3914_v35  ;;  %v689_v16 = vmul.f32 %v685_v44, %v3917_v36  ;;  %1619 = vmatpush.bf16.msra.mxu0 %v2595_v58  ;;  %v2642_v36 = vld [vmem:[%s4734_s9 + $0x80] sm:$0xf]  ;;  %v3116_v58 = vld [vmem:[%s4734_s9 + $0xe4] sm:$0xf] }
 0x1de   :  { %1632 = vmatpush.bf16.msra.mxu1 %v2659_v63  ;;  %v2587_v34 = vor.u32 %v3091_v49, %v2586_v0  ;;  %v2651_v35 = vor.u32 %v3107_v5, %v2650_v4  ;;  %1645 = vmatpush.bf16.msra.mxu2 %v2723_v46  ;;  %v2643_v40 = vor.u32 %v3105_v22, %v2642_v36  ;;  %v2692_v63 = vld [vmem:[%s4734_s9 + $0xe8] sm:$0xf0]  ;;  %v3148_v44 = vld [vmem:[%s4734_s9 + $0x1e4] sm:$0xf] }
 0x1df   :  { %v699_v18 = vmul.f32 %v691_v43, %v686_v10  ;;  %v700_v19 = vmul.f32 %v692_v1, %v687_v11  ;;  %v701_v32 = vmul.f32 %v693_v2, %v688_v12  ;;  %v702_v23 = vmul.f32 %v694_v6, %v689_v16  ;;  %1658 = vmatpush.bf16.msra.mxu3 %v2787_v3  ;;  %v3132_v1 = vld [vmem:[%s4734_s9 + $0x164] sm:$0xf]  ;;  %v2756_v2 = vld [vmem:[%s4734_s9 + $0x168] sm:$0xf0]  ;;  %v3146_v16 = vld [vmem:[%s4734_s9 + $0x1d4] sm:$0xf] }
 0x1e0   :  { %v2767_v0 = vor.u32 %v3134_v39, %v2764_v41  ;;  %v2831_v49 = vor.u32 %v3150_v47, %v2828_v48  ;;  %v2820_v46 = vld [vmem:[%s4734_s9 + $0x1e8] sm:$0xf0]  ;;  %v2631_v3 = vor.u32 %v3100_v51, %v2628_v52  ;;  %v2695_v4 = vor.u32 %v3116_v58, %v2692_v63  ;;  %v3128_v22 = vld [vmem:[%s4734_s9 + $0x144] sm:$0xf]  ;;  %v3142_v39 = vld [vmem:[%s4734_s9 + $0x1b4] sm:$0xf] }
 0x1e1   :  { %v712_v28 = vadd.f32 %v704_v14, %v699_v18  ;;  %v713_v29 = vadd.f32 %v705_v15, %v700_v19  ;;  %v714_v30 = vadd.f32 %v706_v45, %v701_v32  ;;  %v715_v33 = vadd.f32 %v707_v20, %v702_v23  ;;  %1620 = vmatpush.bf16.msra.mxu0 %v2587_v34  ;;  %v2684_v14 = vld [vmem:[%s4734_s9 + $0xd8] sm:$0xf0]  ;;  %v3130_v15 = vld [vmem:[%s4734_s9 + $0x154] sm:$0xf]  ;;  %v3096_v32 = vld [vmem:[%s4734_s9 + $0x44] sm:$0xf] }
 0x1e2   :  { %1633 = vmatpush.bf16.msra.mxu1 %v2651_v35  ;;  %1646 = vmatpush.bf16.msra.mxu2 %v2715_v24  ;;  %v2759_v7 = vor.u32 %v3132_v1, %v2756_v2  ;;  %v2823_v12 = vor.u32 %v3148_v44, %v2820_v46  ;;  %v2748_v45 = vld [vmem:[%s4734_s9 + $0x158] sm:$0xf0]  ;;  %v2623_v18 = vor.u32 %v3098_v8, %v2620_v9  ;;  %v2612_v20 = vld [vmem:[%s4734_s9 + $0x48] sm:$0xf0]  ;;  %v3144_v24 = vld [vmem:[%s4734_s9 + $0x1c4] sm:$0xf] }
 0x1e3   :  { %1659 = vmatpush.bf16.msra.mxu3 %v2779_v25  ;;  %v716_v55 = vmax.f32 %v712_v28, 0.0  ;;  %v717_v57 = vmax.f32 %v713_v29, 0.0  ;;  %v718_v42 = vmax.f32 %v714_v30, 0.0  ;;  %v719_v43 = vmax.f32 %v715_v33, 0.0  ;;  %v2676_v36 = vld [vmem:[%s4734_s9 + $0xc8] sm:$0xf0] }
 0x1e4   :  { %v2687_v19 = vor.u32 %v3114_v13, %v2684_v14  ;;  %v2751_v34 = vor.u32 %v3130_v15, %v2748_v45  ;;  %v2815_v35 = vor.u32 %v3146_v16, %v2812_v17  ;;  %v2740_v23 = vld [vmem:[%s4734_s9 + $0x148] sm:$0xf0]  ;;  %v2615_v26 = vor.u32 %v3096_v32, %v2612_v20  ;;  %v3110_v28 = vld [vmem:[%s4734_s9 + $0xb4] sm:$0xf]  ;;  %v2668_v29 = vld [vmem:[%s4734_s9 + $0xb8] sm:$0xf0] }
 0x1e5   :  { %1621 = vmatpush.bf16.msra.mxu0 %v2579_v37  ;;  %v4454_v5 = vpack.c.bf16 %v716_v55, %v716_v55  ;;  %v4456_v6 = vpack.c.bf16 %v717_v57, %v717_v57  ;;  %v4464_v10 = vpack.c.bf16 %v718_v42, %v718_v42  ;;  %v4466_v11 = vpack.c.bf16 %v719_v43, %v719_v43  ;;  %v2804_v25 = vld [vmem:[%s4734_s9 + $0x1c8] sm:$0xf0]  ;;  %v2796_v30 = vld [vmem:[%s4734_s9 + $0x1b8] sm:$0xf0]  ;;  %v3124_v51 = vld [vmem:[%s4734_s9 + $0x124] sm:$0xf] }
 0x1e6   :  { %1634 = vmatpush.bf16.msra.mxu1 %v2643_v40  ;;  %1647 = vmatpush.bf16.msra.mxu2 %v2707_v56  ;;  %v2679_v59 = vor.u32 %v3112_v21, %v2676_v36  ;;  %v2743_v62 = vor.u32 %v3128_v22, %v2740_v23  ;;  %v2807_v27 = vor.u32 %v3144_v24, %v2804_v25  ;;  %v3092_v40 = vld [vmem:[%s4734_s9 + $0x24] sm:$0xf]  ;;  %v2596_v41 = vld [vmem:[%s4734_s9 + $0x28] sm:$0xf0]  ;;  %v3090_v58 = vld [vmem:[%s4734_s9 + $0x14] sm:$0xf] }
 0x1e7   :  { %1660 = vmatpush.bf16.msra.mxu3 %v2771_v50  ;;  %v2607_v33 = vor.u32 %v3094_v60, %v2604_v61  ;;  %v2671_v37 = vor.u32 %v3110_v28, %v2668_v29  ;;  %v2735_v47 = vor.u32 %v3126_v31, %v2732_v38  ;;  %v2799_v48 = vor.u32 %v3142_v39, %v2796_v30  ;;  %v3108_v56 = vld [vmem:[%s4734_s9 + $0xa4] sm:$0xf]  ;;  %v2660_v50 = vld [vmem:[%s4734_s9 + $0xa8] sm:$0xf0]  ;;  %v2588_v63 = vld [vmem:[%s4734_s9 + $0x18] sm:$0xf0] }
 0x1e8   :  { %1622 = vmatmul.bf16.vlgmr.msra.gmra.mxu0 %v4454_v5  ;;  %v2724_v52 = vld [vmem:[%s4734_s9 + $0x128] sm:$0xf0]  ;;  %v2599_v55 = vor.u32 %v3092_v40, %v2596_v41  ;;  %v2663_v57 = vor.u32 %v3108_v56, %v2660_v50  ;;  %v3106_v42 = vld [vmem:[%s4734_s9 + $0x94] sm:$0xf]  ;;  %v2652_v43 = vld [vmem:[%s4734_s9 + $0x98] sm:$0xf0] }
 0x1e9   :  { %1666 = vmatpush.bf16.msrb.mxu0 %v2639_v53  ;;  %1635 = vmatmul.bf16.vlgmr.msra.gmra.mxu1 %v4456_v6  ;;  %v3140_v53 = vld [vmem:[%s4734_s9 + $0x1a4] sm:$0xf]  ;;  %v3122_v1 = vld [vmem:[%s4734_s9 + $0x114] sm:$0xf]  ;;  %v2716_v2 = vld [vmem:[%s4734_s9 + $0x118] sm:$0xf0] }
 0x1ea   :  { %1679 = vmatpush.bf16.msrb.mxu1 %v2703_v54  ;;  %1692 = vmatpush.bf16.msrb.mxu2 %v2767_v0  ;;  %v2788_v54 = vld [vmem:[%s4734_s9 + $0x1a8] sm:$0xf0]  ;;  %v2727_v0 = vor.u32 %v3124_v51, %v2724_v52  ;;  %v3138_v44 = vld [vmem:[%s4734_s9 + $0x194] sm:$0xf]  ;;  %v2780_v46 = vld [vmem:[%s4734_s9 + $0x198] sm:$0xf0]  ;;  %v2719_v9 = vor.u32 %v3122_v1, %v2716_v2 }
 0x1eb   :  { %1705 = vmatpush.bf16.msrb.mxu3 %v2831_v49  ;;  %1648 = vmatmul.bf16.vlgmr.msra.gmra.mxu2 %v4464_v10  ;;  %v2791_v49 = vor.u32 %v3140_v53, %v2788_v54  ;;  %v2580_v8 = vld [vmem:[%s4734_s9 + $0x8] sm:$0xf0]  ;;  %v3104_v13 = vld [vmem:[%s4734_s9 + $0x84] sm:$0xf]  ;;  %v3162_v60 = vld [vmem:[%s4736_s11 + $0x50] sm:$0xff] }
 0x1ec   :  { %1661 = vmatmul.bf16.vlgmr.msra.gmra.mxu3 %v4466_v11  ;;  %v2644_v14 = vld [vmem:[%s4734_s9 + $0x88] sm:$0xf0]  ;;  %v3120_v15 = vld [vmem:[%s4734_s9 + $0x104] sm:$0xf]  ;;  %v3174_v61 = vld [vmem:[%s4738_s13 + $0x30] sm:$0xff] }
 0x1ed   :  { %1667 = vmatpush.bf16.msrb.mxu0 %v2631_v3  ;;  %v2591_v3 = vor.u32 %v3090_v58, %v2588_v63  ;;  %v2708_v45 = vld [vmem:[%s4734_s9 + $0x108] sm:$0xf0]  ;;  %v3136_v16 = vld [vmem:[%s4734_s9 + $0x184] sm:$0xf]  ;;  %v788_v28 = vld [vmem:[%s4733_s8] sm:$0x3] }
 0x1ee   :  { %1680 = vmatpush.bf16.msrb.mxu1 %v2695_v4  ;;  %1693 = vmatpush.bf16.msrb.mxu2 %v2759_v7  ;;  %v2655_v4 = vor.u32 %v3106_v42, %v2652_v43  ;;  %v3088_v7 = vld [vmem:[%s4734_s9 + $0x4] sm:$0xf]  ;;  %v2772_v17 = vld [vmem:[%s4734_s9 + $0x188] sm:$0xf0]  ;;  %v2711_v32 = vor.u32 %v3120_v15, %v2708_v45  ;;  %v790_v29 = vperm.slane %v788_v28, 0  ;;  %v3170_v40 = vld [vmem:[%s4738_s13 + $0x10] sm:$0xff] }
 0x1ef   :  { %1706 = vmatpush.bf16.msrb.mxu3 %v2823_v12  ;;  %v2783_v12 = vor.u32 %v3138_v44, %v2780_v46  ;;  %v2775_v20 = vor.u32 %v3136_v16, %v2772_v17  ;;  %v3157_v21 = vld [vmem:[%s4736_s11 + $0x28] sm:$0xff]  ;;  %v3156_v36 = vld [vmem:[%s4736_s11 + $0x20] sm:$0xff]  ;;  %v3183_v63 = vld [vmem:[%s4738_s13 + $0x78] sm:$0xff] }
 0x1f0   :  { %v3153_v22 = vld [vmem:[%s4736_s11 + $0x8] sm:$0xff]  ;;  %v3152_v24 = vld [vmem:[%s4736_s11] sm:$0xff]  ;;  %v3182_v2 = vld [vmem:[%s4738_s13 + $0x70] sm:$0xff] }
 0x1f1   :  { %1668 = vmatpush.bf16.msrb.mxu0 %v2623_v18  ;;  %v2583_v18 = vor.u32 %v3088_v7, %v2580_v8  ;;  %v3165_v23 = vld [vmem:[%s4736_s11 + $0x68] sm:$0xff]  ;;  %v3164_v25 = vld [vmem:[%s4736_s11 + $0x60] sm:$0xff]  ;;  %v3179_v16 = vld [vmem:[%s4738_s13 + $0x58] sm:$0xff] }
 0x1f2   :  { %1681 = vmatpush.bf16.msrb.mxu1 %v2687_v19  ;;  %1694 = vmatpush.bf16.msrb.mxu2 %v2751_v34  ;;  %v2647_v19 = vor.u32 %v3104_v13, %v2644_v14  ;;  %v3159_v34 = vld [vmem:[%s4736_s11 + $0x38] sm:$0xff]  ;;  %v3160_v31 = vld [vmem:[%s4736_s11 + $0x40] sm:$0xff]  ;;  %v3169_v53 = vld [vmem:[%s4738_s13 + $0x8] sm:$0xff] }
 0x1f3   :  { %1707 = vmatpush.bf16.msrb.mxu3 %v2815_v35  ;;  %v3158_v35 = vld [vmem:[%s4736_s11 + $0x30] sm:$0xff]  ;;  %v3172_v38 = vld [vmem:[%s4738_s13 + $0x20] sm:$0xff]  ;;  %v3181_v44 = vld [vmem:[%s4738_s13 + $0x68] sm:$0xff] }
 0x1f4   :  { %v3168_v58 = vld [vmem:[%s4738_s13] sm:$0xff] }
 0x1f5   :  { %1669 = vmatpush.bf16.msrb.mxu0 %v2615_v26  ;;  %v3163_v26 = vld [vmem:[%s4736_s11 + $0x58] sm:$0xff]  ;;  %v1288_v15 = vld [vmem:[%s4735_s10] sm:$0x3] }
 0x1f6   :  { %1682 = vmatpush.bf16.msrb.mxu1 %v2679_v59  ;;  %1695 = vmatpush.bf16.msrb.mxu2 %v2743_v62  ;;  %v3175_v59 = vld [vmem:[%s4738_s13 + $0x38] sm:$0xff]  ;;  %v3161_v62 = vld [vmem:[%s4736_s11 + $0x48] sm:$0xff] }
 0x1f7   :  { %1708 = vmatpush.bf16.msrb.mxu3 %v2807_v27  ;;  %v3173_v27 = vld [vmem:[%s4738_s13 + $0x28] sm:$0xff] }
 0x1f9   :  { %1670 = vmatpush.bf16.msrb.mxu0 %v2607_v33 }
 0x1fa   :  { %1683 = vmatpush.bf16.msrb.mxu1 %v2671_v37  ;;  %1696 = vmatpush.bf16.msrb.mxu2 %v2735_v47  ;;  %v3171_v37 = vld [vmem:[%s4738_s13 + $0x18] sm:$0xff] }
 0x1fb   :  { %1709 = vmatpush.bf16.msrb.mxu3 %v2799_v48 }
 0x1fd   :  { %1671 = vmatpush.bf16.msrb.mxu0 %v2599_v55 }
 0x1fe   :  { %1684 = vmatpush.bf16.msrb.mxu1 %v2663_v57  ;;  %1697 = vmatpush.bf16.msrb.mxu2 %v2727_v0  ;;  %v791_v57 = vperm.slane %v788_v28, 1 }
 0x1ff   :  { %1710 = vmatpush.bf16.msrb.mxu3 %v2791_v49 }
 0x201   :  { %1672 = vmatpush.bf16.msrb.mxu0 %v2591_v3 }
 0x202   :  { %1685 = vmatpush.bf16.msrb.mxu1 %v2655_v4  ;;  %1698 = vmatpush.bf16.msrb.mxu2 %v2719_v9 }
 0x203   :  { %1711 = vmatpush.bf16.msrb.mxu3 %v2783_v12  ;;  %v3180_v12 = vld [vmem:[%s4738_s13 + $0x60] sm:$0xff] }
 0x205   :  { %1673 = vmatpush.bf16.msrb.mxu0 %v2583_v18 }
 0x206   :  { %1686 = vmatpush.bf16.msrb.mxu1 %v2647_v19  ;;  %1699 = vmatpush.bf16.msrb.mxu2 %v2711_v32  ;;  %v1290_v19 = vperm.slane %v1288_v15, 0 }
 0x207   :  { %1712 = vmatpush.bf16.msrb.mxu3 %v2775_v20 }
 0x208   :  { %1674 = vmatmul.bf16.vlgmr.msrb.gmra.mxu0 %v4454_v5  ;;  %v3155_v5 = vld [vmem:[%s4736_s11 + $0x18] sm:$0xff] }
 0x209   :  { %1854 = vmatpush.bf16.msra.mxu0 %v3159_v34  ;;  %1687 = vmatmul.bf16.vlgmr.msrb.gmra.mxu1 %v4456_v6  ;;  %v3167_v6 = vld [vmem:[%s4736_s11 + $0x78] sm:$0xff]  ;;  %v3178_v34 = vld [vmem:[%s4738_s13 + $0x50] sm:$0xff] }
 0x20a   :  { %1700 = vmatmul.bf16.vlgmr.msrb.gmra.mxu2 %v4464_v10  ;;  %1713 = vmatmul.bf16.vlgmr.msrb.gmra.mxu3 %v4466_v11  ;;  %v3154_v10 = vld [vmem:[%s4736_s11 + $0x10] sm:$0xff] }
 0x20b   :  { %1867 = vmatpush.bf16.msra.mxu1 %v3167_v6  ;;  %v3166_v11 = vld [vmem:[%s4736_s11 + $0x70] sm:$0xff]  ;;  %2016 = vmatpush.bf16.msra.mxu2 %v3175_v59  ;;  %s2051_s11 = sshll.u32 %s4740_s15, 4  ;;  %s2052_s11 = int_to_ptr.hbm [resolvable:$true] %s2051_s11 }
 0x20c   :  { %2029 = vmatpush.bf16.msra.mxu3 %v3183_v63  ;;  %v3187_v63 = vld [vmem:[#allocation2] ss:$0 sm:$0xff] }
 0x20d   :  { %1855 = vmatpush.bf16.msra.mxu0 %v3158_v35 }
 0x20f   :  { %1868 = vmatpush.bf16.msra.mxu1 %v3166_v11  ;;  %2017 = vmatpush.bf16.msra.mxu2 %v3174_v61  ;;  %v1291_v61 = vperm.slane %v1288_v15, 1 }
 0x210   :  { %2030 = vmatpush.bf16.msra.mxu3 %v3182_v2 }
 0x211   :  { %1856 = vmatpush.bf16.msra.mxu0 %v3157_v21  ;;  %v3177_v21 = vld [vmem:[%s4738_s13 + $0x48] sm:$0xff] }
 0x213   :  { %1869 = vmatpush.bf16.msra.mxu1 %v3165_v23  ;;  %2018 = vmatpush.bf16.msra.mxu2 %v3173_v27  ;;  %v3176_v23 = vld [vmem:[%s4738_s13 + $0x40] sm:$0xff] }
 0x214   :  { %2031 = vmatpush.bf16.msra.mxu3 %v3181_v44 }
 0x215   :  { %1857 = vmatpush.bf16.msra.mxu0 %v3156_v36 }
 0x217   :  { %1870 = vmatpush.bf16.msra.mxu1 %v3164_v25  ;;  %2019 = vmatpush.bf16.msra.mxu2 %v3172_v38 }
 0x218   :  { %2032 = vmatpush.bf16.msra.mxu3 %v3180_v12 }
 0x219   :  { %1858 = vmatpush.bf16.msra.mxu0 %v3155_v5 }
 0x21b   :  { %1871 = vmatpush.bf16.msra.mxu1 %v3163_v26  ;;  %2020 = vmatpush.bf16.msra.mxu2 %v3171_v37 }
 0x21c   :  { %2033 = vmatpush.bf16.msra.mxu3 %v3179_v16 }
 0x21d   :  { %1859 = vmatpush.bf16.msra.mxu0 %v3154_v10 }
 0x21f   :  { %1872 = vmatpush.bf16.msra.mxu1 %v3162_v60  ;;  %2021 = vmatpush.bf16.msra.mxu2 %v3170_v40 }
 0x220   :  { %2034 = vmatpush.bf16.msra.mxu3 %v3178_v34 }
 0x221   :  { %1860 = vmatpush.bf16.msra.mxu0 %v3153_v22 }
 0x223   :  { %1873 = vmatpush.bf16.msra.mxu1 %v3161_v62  ;;  %2022 = vmatpush.bf16.msra.mxu2 %v3169_v53 }
 0x224   :  { %2035 = vmatpush.bf16.msra.mxu3 %v3177_v21 }
 0x225   :  { %1861 = vmatpush.bf16.msra.mxu0 %v3152_v24 }
 0x227   :  { %1874 = vmatpush.bf16.msra.mxu1 %v3160_v31  ;;  %2023 = vmatpush.bf16.msra.mxu2 %v3168_v58 }
 0x228   :  { %2036 = vmatpush.bf16.msra.mxu3 %v3176_v23 }
 0x244   :  { %v1123_v39 = vpop.f32.mrf.mxu0  ;;  %v1136_v30 = vpop.f32.mrf.mxu1 }
 0x245   :  { %v1124_v33 = vadd.f32 %v1123_v39, %v790_v29 }
 0x247   :  { %v1137_v41 = vadd.f32 %v1136_v30, %v1124_v33 }
 0x24b   :  { %v1149_v47 = vpop.f32.mrf.mxu2  ;;  %v1162_v48 = vpop.f32.mrf.mxu3 }
 0x24c   :  { %v1150_v56 = vadd.f32 %v1149_v47, %v1137_v41  ;;  %v1125_v50 = vpop.f32.mrf.mxu0  ;;  %v1138_v51 = vpop.f32.mrf.mxu1 }
 0x24d   :  { %v3186_v51 = vld [vmem:[%s4737_s12] ss:$0 sm:$0xff] }
 0x24e   :  { %v1163_v52 = vadd.f32 %v1162_v48, %v1150_v56 }
 0x250   :  { %v1218_v54 = vmax.f32 %v1163_v52, 0.0 }
 0x252   :  { %v1720_v55 = vpack.c.bf16 %v1218_v54, %v1218_v54 }
 0x253   :  { %v1151_v0 = vpop.f32.mrf.mxu2  ;;  %v1164_v49 = vpop.f32.mrf.mxu3 }
 0x254   :  { %1862 = vmatmul.bf16.vlgmr.msra.gmra.mxu0 %v1720_v55  ;;  %v1175_v42 = vpop.f32.mrf.mxu0  ;;  %v1188_v43 = vpop.f32.mrf.mxu1 }
 0x255   :  { %v1176_v1 = vadd.f32 %v1175_v42, %v791_v57 }
 0x257   :  { %v1189_v46 = vadd.f32 %v1188_v43, %v1176_v1 }
 0x25b   :  { %v1201_v3 = vpop.f32.mrf.mxu2  ;;  %v1214_v4 = vpop.f32.mrf.mxu3 }
 0x25c   :  { %v1202_v7 = vadd.f32 %v1201_v3, %v1189_v46  ;;  %v1177_v8 = vpop.f32.mrf.mxu0  ;;  %v1190_v9 = vpop.f32.mrf.mxu1 }
 0x25e   :  { %v1215_v13 = vadd.f32 %v1214_v4, %v1202_v7 }
 0x260   :  { %v1219_v14 = vmax.f32 %v1215_v13, 0.0 }
 0x262   :  { %v1721_v45 = vpack.c.bf16 %v1219_v14, %v1219_v14 }
 0x263   :  { %v1203_v17 = vpop.f32.mrf.mxu2  ;;  %v1216_v18 = vpop.f32.mrf.mxu3 }
 0x264   :  { %1875 = vmatmul.bf16.vlgmr.msra.gmra.mxu1 %v1721_v45 }
 0x265   :  { %v1623_v32 = vpop.f32.mrf.mxu0 }
 0x266   :  { %v1636_v20 = vpop.f32.mrf.mxu1  ;;  %v1624_v35 = vadd.f32 %v1623_v32, %v1290_v19 }
 0x268   :  { %v1637_v36 = vadd.f32 %v1636_v20, %v1624_v35 }
 0x26d   :  { %v1625_v11 = vpop.f32.mrf.mxu0 }
 0x26e   :  { %v1649_v5 = vpop.f32.mrf.mxu2  ;;  %v1638_v22 = vpop.f32.mrf.mxu1 }
 0x26f   :  { %v1662_v6 = vpop.f32.mrf.mxu3  ;;  %v1650_v10 = vadd.f32 %v1649_v5, %v1637_v36 }
 0x271   :  { %v1663_v24 = vadd.f32 %v1662_v6, %v1650_v10 }
 0x273   :  { %v1718_v25 = vmax.f32 %v1663_v24, 0.0 }
 0x275   :  { %v1882_v26 = vpack.c.bf16 %v1718_v25, %v1718_v25 }
 0x276   :  { %v1651_v59 = vpop.f32.mrf.mxu2 }
 0x277   :  { %v1664_v60 = vpop.f32.mrf.mxu3  ;;  %2024 = vmatmul.bf16.vlgmr.msra.gmra.mxu2 %v1882_v26 }
 0x285   :  { %v1675_v62 = vpop.f32.mrf.mxu0 }
 0x286   :  { %v1688_v27 = vpop.f32.mrf.mxu1  ;;  %v1676_v28 = vadd.f32 %v1675_v62, %v1291_v61 }
 0x288   :  { %v1689_v29 = vadd.f32 %v1688_v27, %v1676_v28 }
 0x28d   :  { %v1701_v31 = vpop.f32.mrf.mxu2  ;;  %v1714_v38 = vpop.f32.mrf.mxu3 }
 0x28e   :  { %v1702_v39 = vadd.f32 %v1701_v31, %v1689_v29  ;;  %v1677_v30 = vpop.f32.mrf.mxu0  ;;  %v1690_v33 = vpop.f32.mrf.mxu1 }
 0x290   :  { %v1715_v37 = vadd.f32 %v1714_v38, %v1702_v39 }
 0x292   :  { %v1719_v40 = vmax.f32 %v1715_v37, 0.0 }
 0x294   :  { %v1883_v41 = vpack.c.bf16 %v1719_v40, %v1719_v40 }
 0x295   :  { %v1703_v47 = vpop.f32.mrf.mxu2  ;;  %v1716_v48 = vpop.f32.mrf.mxu3 }
 0x296   :  { %2037 = vmatmul.bf16.vlgmr.msra.gmra.mxu3 %v1883_v41 }
 0x2d1   :  { %v1863_v56 = vpop.f32.mrf.mxu0 }
 0x2d2   :  { %v1864_v52 = vadd.f32 %v3186_v51, %v1863_v56 }
 0x2d9   :  { %v1865_v50 = vpop.f32.mrf.mxu0 }
 0x2e1   :  { %v1876_v53 = vpop.f32.mrf.mxu1 }
 0x2e2   :  { %v1877_v54 = vadd.f32 %v1876_v53, %v1864_v52 }
 0x2e4   :  { %1881 = vst.msk [vmem:[#allocation3] sm:$0x3] %vm1880_vm8, %v1877_v54 }
 0x2e5   :  { %2054 = dma.vmem_to_hbm [thread:$0]  %s2050_s25, 32, %s2052_s11, [#allocation4]  }
 0x2e9   :  { %v1878_v55 = vpop.f32.mrf.mxu1 }
 0x2fa   :  { %v2025_v57 = vpop.f32.mrf.mxu2 }
 0x2fb   :  { %v2026_v0 = vadd.f32 %v3187_v63, %v2025_v57 }
 0x302   :  { %v2027_v58 = vpop.f32.mrf.mxu2 }
 0x319   :  { %v2038_v49 = vpop.f32.mrf.mxu3 }
 0x31a   :  { %v2039_v42 = vadd.f32 %v2038_v49, %v2026_v0 }
 0x31c   :  { %2043 = vst.msk [vmem:[%s4741_s16] sm:$0x3] %vm2042_vm9, %v2039_v42 }
 0x321   :  { %v2040_v43 = vpop.f32.mrf.mxu3 }
 0x322   :  { %3218 = dma.done.wait [#allocation4], 32  }
 0x323   :  { %3219 = vsyncadd [#allocation4], 4294967264 }
 0x324   :  { %2063 = vsyncpa [#allocation4], 1 }

</bundles_post_ra>
